<compile_context>
chip_gen: v5e
topology: v5e:2x2
jax: 0.10.0
libtpu: 0.0.40
codegen_flags: <defaults>
</compile_context>

<pallas_src>
import functools
import warnings

import jax
import jax.numpy as jnp
from jax.experimental import pallas as pl
from jax.experimental.pallas import tpu as pltpu


EMBED_DIM = 128
NUM_HEADS = 2
HEAD_DIM = EMBED_DIM // NUM_HEADS
NUM_LAYERS = 2
SEQ_LEN = 64            # 32 -> 16 -> 8 spatial, 8*8 = 64 tokens
NUM_CLASSES = 10
CLASSES_PAD = 128       # lane-dense padded logits width (sliced back to 10 outside)
LN_EPS = 1e-5
VMEM_LIMIT = 32 * 1024 * 1024   # <= 32 MiB: safe on v5e/v6e (128 MiB) and v7x (64 MiB)


# ----------------------------------------------------------------------------
# Kernel 1: conv1 (3x3, s1, p1, no bias) as im2col GEMM + fused ReLU.
# bf16 operands -> full-rate MXU, f32 accumulation, bf16 writeback (halves HBM traffic).
# ----------------------------------------------------------------------------
def _conv_gemm_relu_kernel(a_ref, w_ref, o_ref):
    acc = jnp.dot(a_ref[...], w_ref[...], preferred_element_type=jnp.float32)
    o_ref[...] = jnp.maximum(acc, 0.0).astype(o_ref.dtype)


def _pick_row_tile(m):
    # Prefer >= 2 grid steps so dimension_semantics=("parallel",) can shard over both v7x TCs.
    for t in (512, 256, 128):
        if m % t == 0 and m // t >= 2:
            return t
    for t in (512, 256, 128):
        if m % t == 0:
            return t
    return m


def conv1_3x3_relu(x_bf16, w):
    """Conv2d(3->64, k3 s1 p1, no bias) + ReLU on NHWC bf16 input via im2col GEMM."""
    B, H, W, C = x_bf16.shape
    Cout = w.shape[-1]
    # im2col glue (column order (kh, kw, ci) matches w.reshape below); only 27 ch/pixel here.
    xp = jnp.pad(x_bf16, ((0, 0), (1, 1), (1, 1), (0, 0)))
    cols = [xp[:, kh:kh + H, kw:kw + W, :] for kh in range(3) for kw in range(3)]
    patches = jnp.concatenate(cols, axis=-1).reshape(B * H * W, 9 * C)

    K = 9 * C
    Kp = ((K + 31) // 32) * 32                 # pad contraction dim
    w2 = w.reshape(K, Cout).astype(jnp.bfloat16)
    if Kp != K:
        patches = jnp.pad(patches, ((0, 0), (0, Kp - K)))
        w2 = jnp.pad(w2, ((0, Kp - K), (0, 0)))

    M = B * H * W
    tm = _pick_row_tile(M)
    y = pl.pallas_call(
        _conv_gemm_relu_kernel,
        out_shape=jax.ShapeDtypeStruct((M, Cout), jnp.bfloat16),
        grid=(M // tm,),
        in_specs=[
            pl.BlockSpec((tm, Kp), lambda i: (i, 0)),
            pl.BlockSpec((Kp, Cout), lambda i: (0, 0)),
        ],
        out_specs=pl.BlockSpec((tm, Cout), lambda i: (i, 0)),
        compiler_params=pltpu.CompilerParams(
            dimension_semantics=("parallel",),
            vmem_limit_bytes=VMEM_LIMIT),
    )(patches, w2)
    return y.reshape(B, H, W, Cout)


# ----------------------------------------------------------------------------
# Kernel 2: conv2 (3x3, s1, p1, no bias) + ReLU, fused per image (9-tap accumulation).
# Removes the im2col 9x HBM blow-up; grid=(B,) so both v7x TCs run at B >= 2.
# ----------------------------------------------------------------------------
def _conv2_taps_relu_kernel(x_ref, w_ref, o_ref):
    # x_ref: (1, H+2, W+2, Cin) bf16 padded image; w_ref: (9, Cin, Cout) bf16
    # o_ref: (1, H*W, Cout) bf16
    _, HP, WP, Cin = x_ref.shape
    H, W = HP - 2, WP - 2
    Cout = o_ref.shape[-1]
    acc = jnp.zeros((H * W, Cout), jnp.float32)
    for kh in range(3):
        for kw in range(3):
            tap = x_ref[0, kh:kh + H, kw:kw + W, :].reshape(H * W, Cin)   # bf16 window
            acc = acc + jnp.dot(tap, w_ref[kh * 3 + kw],
                                preferred_element_type=jnp.float32)
    o_ref[0] = jnp.maximum(acc, 0.0).astype(o_ref.dtype)


def conv2_3x3_relu(x_bf16, w):
    """Conv2d(64->128, k3 s1 p1, no bias) + ReLU on NHWC bf16, per-image fused kernel."""
    B, H, W, Cin = x_bf16.shape
    Cout = w.shape[-1]
    xp = jnp.pad(x_bf16, ((0, 0), (1, 1), (1, 1), (0, 0)))          # conv zero padding
    w9 = w.reshape(9, Cin, Cout).astype(jnp.bfloat16)
    y = pl.pallas_call(
        _conv2_taps_relu_kernel,
        out_shape=jax.ShapeDtypeStruct((B, H * W, Cout), jnp.bfloat16),
        grid=(B,),
        in_specs=[
            pl.BlockSpec((1, H + 2, W + 2, Cin), lambda b: (b, 0, 0, 0)),
            pl.BlockSpec((9, Cin, Cout), lambda b: (0, 0, 0)),
        ],
        out_specs=pl.BlockSpec((1, H * W, Cout), lambda b: (b, 0, 0)),
        compiler_params=pltpu.CompilerParams(
            dimension_semantics=("parallel",),
            vmem_limit_bytes=VMEM_LIMIT),
    )(xp, w9)
    return y.reshape(B, H, W, Cout)


# ----------------------------------------------------------------------------
# MaxPool2d(3, stride=2, padding=1) — pairwise max tree over strided views (XLA glue,
# single fused elementwise pass on bf16; max is exact in bf16).
# ----------------------------------------------------------------------------
def maxpool_3x3_s2_p1(x):
    B, H, W, C = x.shape
    Ho, Wo = H // 2, W // 2
    neg = float(jnp.finfo(x.dtype).min)
    xp = jnp.pad(x, ((0, 0), (1, 1), (1, 1), (0, 0)), constant_values=neg)
    out = None
    for kh in range(3):
        for kw in range(3):
            v = xp[:, kh:kh + 2 * Ho:2, kw:kw + 2 * Wo:2, :]
            out = v if out is None else jnp.maximum(out, v)
    return out


# ----------------------------------------------------------------------------
# Kernel 3: fused transformer (2 layers) + final LN + softmax seq-pool + classifier.
# Batch-tiled: Bt elements per grid step, token-parallel GEMMs on (Bt*64, 128) slabs,
# per-element 64x64 attention.  Weights bf16, activations cast bf16 at each dot,
# f32 accumulation and f32 elementwise math.
# ----------------------------------------------------------------------------
def _ln(v, g, b):
    mu = jnp.mean(v, axis=-1, keepdims=True)
    vc = v - mu
    var = jnp.mean(vc * vc, axis=-1, keepdims=True)      # biased var (PyTorch LayerNorm)
    return vc * jax.lax.rsqrt(var + LN_EPS) * g + b


def _softmax_rows(s):
    # softmax over last axis; division moved to the EUP via approx reciprocal
    s = s - jnp.max(s, axis=-1, keepdims=True)
    p = jnp.exp(s)
    return p * pl.reciprocal(jnp.sum(p, axis=-1, keepdims=True), approx=True)


def _transformer_head_kernel(tok_ref, pos_ref, preg_ref, preb_ref,
                             wq_ref, wk_ref, wv_ref, projw_ref, projb_ref,
                             n1g_ref, n1b_ref, l1w_ref, l1b_ref, l2w_ref, l2b_ref,
                             ng_ref, nb_ref, poolw_ref, fcw_ref, fcb_ref,
                             o_ref, attn_ref,
                             *, bt, seq, num_layers, num_heads, gelu_act):
    D = tok_ref.shape[-1]
    hd = D // num_heads
    M = bt * seq

    # tokens (bf16) + positional embedding (f32), flattened to a tall (M, D) f32 slab
    x = (tok_ref[...].astype(jnp.float32) + pos_ref[...]).reshape(M, D)

    for l in range(num_layers):
        # ---- pre-norm multi-head self-attention + residual ----
        h = _ln(x, preg_ref[l], preb_ref[l]).astype(jnp.bfloat16)
        q = jnp.dot(h, wq_ref[l], preferred_element_type=jnp.float32)   # scale folded into Wq
        k = jnp.dot(h, wk_ref[l], preferred_element_type=jnp.float32)
        v = jnp.dot(h, wv_ref[l], preferred_element_type=jnp.float32)
        # hoist per-head lane extracts out of the per-element loop
        q_heads = [q[:, i * hd:(i + 1) * hd].astype(jnp.bfloat16) for i in range(num_heads)]
        k_heads = [k[:, i * hd:(i + 1) * hd].astype(jnp.bfloat16) for i in range(num_heads)]
        v_heads = [v[:, i * hd:(i + 1) * hd].astype(jnp.bfloat16) for i in range(num_heads)]
        for b in range(bt):
            r0 = b * seq
            for i in range(num_heads):
                qb = q_heads[i][r0:r0 + seq, :]
                kb = k_heads[i][r0:r0 + seq, :]
                vb = v_heads[i][r0:r0 + seq, :]
                s = jax.lax.dot_general(qb, kb, (((1,), (1,)), ((), ())),
                                        preferred_element_type=jnp.float32)
                p = _softmax_rows(s)                                     # f32 softmax
                ob = jnp.dot(p.astype(jnp.bfloat16), vb,
                             preferred_element_type=jnp.float32)
                attn_ref[r0:r0 + seq, i * hd:(i + 1) * hd] = ob
        attn = jnp.dot(attn_ref[...].astype(jnp.bfloat16), projw_ref[l],
                       preferred_element_type=jnp.float32) + projb_ref[l]
        x = x + attn

        # ---- norm1, GELU MLP, residual (SHI-Labs CCT ordering) ----
        x = _ln(x, n1g_ref[l], n1b_ref[l])
        h1 = jnp.dot(x.astype(jnp.bfloat16), l1w_ref[l],
                     preferred_element_type=jnp.float32) + l1b_ref[l]
        if gelu_act == "gelu_erf":                       # exact GELU (PyTorch F.gelu)
            h1 = 0.5 * h1 * (1.0 + jax.lax.erf(h1 * 0.7071067811865475))
        else:
            h1 = jax.nn.gelu(h1, approximate=True)
        h2 = jnp.dot(h1.astype(jnp.bfloat16), l2w_ref[l],
                     preferred_element_type=jnp.float32) + l2b_ref[l]
        x = x + h2

    # ---- final LayerNorm, per-element softmax seq-pool, lane-padded classifier ----
    x = _ln(x, ng_ref[...], nb_ref[...])                                   # (M, D)
    # attention_pool bias cancels in the softmax, so it is dropped on purpose
    scores = jnp.sum(x * poolw_ref[...], axis=-1, keepdims=True)           # (M, 1)
    fcw = fcw_ref[...]
    fcb = fcb_ref[...]
    for b in range(bt):
        r0 = b * seq
        sc = scores[r0:r0 + seq, :]
        sc = sc - jnp.max(sc, axis=0, keepdims=True)
        wgt = jnp.exp(sc)
        wgt = wgt * pl.reciprocal(jnp.sum(wgt, axis=0, keepdims=True), approx=True)
        pooled = jnp.sum(wgt * x[r0:r0 + seq, :], axis=0, keepdims=True)   # (1, D)
        logits = jnp.dot(pooled.astype(jnp.bfloat16), fcw,
                         preferred_element_type=jnp.float32) + fcb         # (1, 128)
        o_ref[b] = logits


def _pick_bt(batch):
    # Largest divisor of batch <= 8, preferring >= 2 grid steps (both v7x TensorCores).
    cands = [d for d in range(1, min(batch, 8) + 1) if batch % d == 0]
    two_step = [d for d in cands if batch // d >= 2]
    return max(two_step) if two_step else max(cands)


def transformer_head(tokens_bf16, params, gelu_act):
    B, N, D = tokens_bf16.shape
    L = NUM_LAYERS
    bt = _pick_bt(B)
    layers = params["layers"]
    scale = float(HEAD_DIM) ** -0.5

    def stack_vec(name):
        return jnp.stack([lp[name].reshape(1, D) for lp in layers], 0).astype(jnp.float32)

    def stack_mat(fn):
        return jnp.stack([fn(lp) for lp in layers], 0).astype(jnp.bfloat16)

    preg, preb = stack_vec("pre_g"), stack_vec("pre_b")
    n1g, n1b = stack_vec("n1_g"), stack_vec("n1_b")
    projb, l1b, l2b = stack_vec("proj_b"), stack_vec("lin1_b"), stack_vec("lin2_b")
    wq = stack_mat(lambda lp: lp["qkv_w"][:, :D] * scale)       # fold attention scale into Q
    wk = stack_mat(lambda lp: lp["qkv_w"][:, D:2 * D])
    wv = stack_mat(lambda lp: lp["qkv_w"][:, 2 * D:])
    projw = stack_mat(lambda lp: lp["proj_w"])
    l1w = stack_mat(lambda lp: lp["lin1_w"])
    l2w = stack_mat(lambda lp: lp["lin2_w"])

    ng = params["norm_g"].reshape(1, D).astype(jnp.float32)
    nb = params["norm_b"].reshape(1, D).astype(jnp.float32)
    poolw = params["pool_w"].reshape(1, D).astype(jnp.float32)   # (D,1) -> row
    pos = params["pos_emb"].astype(jnp.float32)                   # (1, N, D)
    fcw = jnp.pad(params["fc_w"],
                  ((0, 0), (0, CLASSES_PAD - NUM_CLASSES))).astype(jnp.bfloat16)
    fcb = jnp.pad(params["fc_b"],
                  (0, CLASSES_PAD - NUM_CLASSES)).reshape(1, CLASSES_PAD).astype(jnp.float32)

    def full(shape):
        return pl.BlockSpec(shape, lambda b, n=len(shape): (0,) * n)

    out = pl.pallas_call(
        functools.partial(_transformer_head_kernel, bt=bt, seq=N,
                          num_layers=L, num_heads=NUM_HEADS, gelu_act=gelu_act),
        out_shape=jax.ShapeDtypeStruct((B, 1, CLASSES_PAD), jnp.float32),
        grid=(B // bt,),
        in_specs=[
            pl.BlockSpec((bt, N, D), lambda b: (b, 0, 0)),        # tokens of this batch tile
            full((1, N, D)),                                      # pos_emb
            full((L, 1, D)), full((L, 1, D)),                     # pre_g, pre_b
            full((L, D, D)), full((L, D, D)), full((L, D, D)),    # wq, wk, wv (bf16)
            full((L, D, D)), full((L, 1, D)),                     # proj_w (bf16), proj_b
            full((L, 1, D)), full((L, 1, D)),                     # n1_g, n1_b
            full((L, D, D)), full((L, 1, D)),                     # lin1_w (bf16), lin1_b
            full((L, D, D)), full((L, 1, D)),                     # lin2_w (bf16), lin2_b
            full((1, D)), full((1, D)),                           # norm_g, norm_b
            full((1, D)),                                         # pool_w row
            full((D, CLASSES_PAD)), full((1, CLASSES_PAD)),       # fc_w (bf16), fc_b
        ],
        out_specs=pl.BlockSpec((bt, 1, CLASSES_PAD), lambda b: (b, 0, 0)),
        scratch_shapes=[pltpu.VMEM((bt * N, D), jnp.float32)],    # per-head attn assembly
        compiler_params=pltpu.CompilerParams(
            dimension_semantics=("parallel",),
            vmem_limit_bytes=VMEM_LIMIT),
    )(tokens_bf16, pos, preg, preb, wq, wk, wv, projw, projb, n1g, n1b,
      l1w, l1b, l2w, l2b, ng, nb, poolw, fcw, fcb)
    return out.reshape(B, CLASSES_PAD)[:, :NUM_CLASSES]


# ----------------------------------------------------------------------------
# Parameters (synthetic, deterministic) and full forward pass
# ----------------------------------------------------------------------------
def init_params(key):
    D = EMBED_DIM
    ks = jax.random.split(key, 16)

    def nrm(k, shape, std=0.02):
        return jax.random.normal(k, shape, jnp.float32) * std

    p = {
        "conv1_w": nrm(ks[0], (3, 3, 3, 64), 0.1),
        "conv2_w": nrm(ks[1], (3, 3, 64, D), 0.05),
        "pos_emb": nrm(ks[2], (1, SEQ_LEN, D), 0.2),
        "norm_g": jnp.ones((D,), jnp.float32),
        "norm_b": jnp.zeros((D,), jnp.float32),
        "pool_w": nrm(ks[3], (D, 1)),
        "pool_b": jnp.zeros((1,), jnp.float32),   # cancels in the seq-pool softmax
        "fc_w": nrm(ks[4], (D, NUM_CLASSES)),
        "fc_b": jnp.zeros((NUM_CLASSES,), jnp.float32),
        "layers": [],
    }
    idx = 5
    for _ in range(NUM_LAYERS):
        lp = {
            "pre_g": jnp.ones((D,), jnp.float32),
            "pre_b": jnp.zeros((D,), jnp.float32),
            "qkv_w": nrm(ks[idx], (D, 3 * D)),           # no bias (matches Attention.qkv)
            "proj_w": nrm(ks[idx + 1], (D, D)),
            "proj_b": jnp.zeros((D,), jnp.float32),
            "n1_g": jnp.ones((D,), jnp.float32),
            "n1_b": jnp.zeros((D,), jnp.float32),
            "lin1_w": nrm(ks[idx + 2], (D, D)),          # mlp_ratio = 1 -> ffn dim 128
            "lin1_b": jnp.zeros((D,), jnp.float32),
            "lin2_w": nrm(ks[idx + 3], (D, D)),
            "lin2_b": jnp.zeros((D,), jnp.float32),
        }
        idx += 4
        p["layers"].append(lp)
    return p


def cct_forward(params, x_nchw, gelu_act):
    # NCHW (PyTorch) -> NHWC so channels sit on the 128-lane axis; bf16 on the conv path.
    x = jnp.transpose(x_nchw, (0, 2, 3, 1)).astype(jnp.bfloat16)
    x = conv1_3x3_relu(x, params["conv1_w"])     # (B, 32, 32, 64)  bf16
    x = maxpool_3x3_s2_p1(x)                     # (B, 16, 16, 64)  bf16
    x = conv2_3x3_relu(x, params["conv2_w"])     # (B, 16, 16, 128) bf16
    x = maxpool_3x3_s2_p1(x)                     # (B, 8, 8, 128)   bf16
    B, Ho, Wo, D = x.shape
    tokens = x.reshape(B, Ho * Wo, D)            # == flatten(2,3).transpose(-2,-1)
    return transformer_head(tokens, params, gelu_act)


def pick_gelu_act():
    """Prefer exact erf GELU (PyTorch F.gelu); warn + fall back to tanh approx if erf won't lower."""
    def k(x_ref, o_ref):
        x = x_ref[...]
        o_ref[...] = 0.5 * x * (1.0 + jax.lax.erf(x * 0.7071067811865475))
    try:
        f = pl.pallas_call(k, out_shape=jax.ShapeDtypeStruct((8, 128), jnp.float32))
        jax.block_until_ready(f(jnp.zeros((8, 128), jnp.float32)))
        return "gelu_erf"
    except Exception:
        # TODO(synk): exact erf GELU not lowerable on this Mosaic build; tanh approximation
        # differs from PyTorch F.gelu at ~1e-3 level.
        warnings.warn("Falling back to tanh-approximate GELU (lax.erf not lowerable here).")
        return "gelu_tanh"


if __name__ == "__main__":
    gelu_act = pick_gelu_act()
    params = init_params(jax.random.PRNGKey(42))
    x = jax.random.normal(jax.random.PRNGKey(0), (2, 3, 32, 32), jnp.float32)

    fwd = jax.jit(functools.partial(cct_forward, gelu_act=gelu_act))
    out = fwd(params, x)
    jax.block_until_ready(out)
    assert out.shape == (2, NUM_CLASSES) and out.dtype == jnp.float32
    print("KERNEL_OK")
</pallas_src>

<mosaic_0001>
module attributes {stable_mosaic.version = 11 : i64} {
  func.func @k(%arg0: memref<8x128xf32, #tpu.memory_space<vmem>>, %arg1: memref<8x128xf32, #tpu.memory_space<vmem>>) attributes {dimension_semantics = [], scalar_prefetch = 0 : i64, scratch_operands = 0 : i64, tpu.core_type = #tpu.core_type<tc>} {
    %c0 = arith.constant 0 : index
    %c0_0 = arith.constant 0 : index
    %0 = vector.load %arg0[%c0, %c0_0] : memref<8x128xf32, #tpu.memory_space<vmem>>, vector<8x128xf32>
    %cst = arith.constant 5.000000e-01 : f32
    %1 = vector.broadcast %cst : f32 to vector<8x128xf32>
    %2 = arith.mulf %1, %0 : vector<8x128xf32>
    %cst_1 = arith.constant 0.707106769 : f32
    %3 = vector.broadcast %cst_1 : f32 to vector<8x128xf32>
    %4 = arith.mulf %0, %3 : vector<8x128xf32>
    %5 = math.erf %4 : vector<8x128xf32>
    %cst_2 = arith.constant 1.000000e+00 : f32
    %6 = vector.broadcast %cst_2 : f32 to vector<8x128xf32>
    %7 = arith.addf %6, %5 : vector<8x128xf32>
    %8 = arith.mulf %2, %7 : vector<8x128xf32>
    %c0_3 = arith.constant 0 : index
    %c0_4 = arith.constant 0 : index
    %9 = vector.load %arg1[%c0_3, %c0_4] : memref<8x128xf32, #tpu.memory_space<vmem>>, vector<8x128xf32>
    tpu.vector_store %arg1[%c0_3, %c0_4], %8 {strides = array<i32>} : memref<8x128xf32, #tpu.memory_space<vmem>>, vector<8x128xf32>,
    return
  }
}

module attributes {stable_mosaic.version = 11 : i64} {
  func.func @_conv_gemm_relu_kernel(%arg0: i32, %arg1: memref<512x32xbf16, #tpu.memory_space<vmem>>, %arg2: memref<32x64xbf16, #tpu.memory_space<vmem>>, %arg3: memref<512x64xbf16, #tpu.memory_space<vmem>>) attributes {dimension_semantics = [#tpu.dimension_semantics<parallel>], iteration_bounds = array<i64: 4>, scalar_prefetch = 0 : i64, scratch_operands = 0 : i64, tpu.core_type = #tpu.core_type<tc>, window_params = [{transform_indices = @transform_0, window_bounds = array<i64: 512, 32>}, {pipeline_mode = #tpu.pipeline_mode<synchronous>, transform_indices = @transform_1, window_bounds = array<i64: 32, 64>}, {transform_indices = @transform_2, window_bounds = array<i64: 512, 64>}]} {
    %c0 = arith.constant 0 : index
    %c0_0 = arith.constant 0 : index
    %0 = vector.load %arg1[%c0, %c0_0] : memref<512x32xbf16, #tpu.memory_space<vmem>>, vector<512x32xbf16>
    %c0_1 = arith.constant 0 : index
    %c0_2 = arith.constant 0 : index
    %1 = vector.load %arg2[%c0_1, %c0_2] : memref<32x64xbf16, #tpu.memory_space<vmem>>, vector<32x64xbf16>
    %cst = arith.constant dense<0.000000e+00> : vector<512x64xf32>
    %2 = tpu.matmul %0, %1, %cst {dimension_numbers = #tpu.dot_dimension_numbers<[1], [0], [0], [1], [0, 0, 1, 1], [], []>} : vector<512x32xbf16>, vector<32x64xbf16>, vector<512x64xf32> -> vector<512x64xf32>
    %cst_3 = arith.constant 0.000000e+00 : f32
    %3 = vector.broadcast %cst_3 : f32 to vector<512x64xf32>
    %4 = arith.maximumf %2, %3 : vector<512x64xf32>
    %5 = arith.truncf %4 : vector<512x64xf32> to vector<512x64xbf16>
    %c0_4 = arith.constant 0 : index
    %c0_5 = arith.constant 0 : index
    %6 = vector.load %arg3[%c0_4, %c0_5] : memref<512x64xbf16, #tpu.memory_space<vmem>>, vector<512x64xbf16>
    tpu.vector_store %arg3[%c0_4, %c0_5], %5 {strides = array<i32>} : memref<512x64xbf16, #tpu.memory_space<vmem>>, vector<512x64xbf16>,
    return
  }
  func.func @transform_0(%arg0: i32) -> (i32, i32) {
    %c0_i32 = arith.constant 0 : i32
    %c0_i32_0 = arith.constant 0 : i32
    return %arg0, %c0_i32 : i32, i32
  }
  func.func @transform_1(%arg0: i32) -> (i32, i32) {
    %c0_i32 = arith.constant 0 : i32
    %c0_i32_0 = arith.constant 0 : i32
    %c0_i32_1 = arith.constant 0 : i32
    return %c0_i32, %c0_i32_0 : i32, i32
  }
  func.func @transform_2(%arg0: i32) -> (i32, i32) {
    %c0_i32 = arith.constant 0 : i32
    %c0_i32_0 = arith.constant 0 : i32
    return %arg0, %c0_i32 : i32, i32
  }
}

module attributes {stable_mosaic.version = 11 : i64} {
  func.func @_conv2_taps_relu_kernel(%arg0: i32, %arg1: memref<1x18x18x64xbf16, #tpu.memory_space<vmem>>, %arg2: memref<9x64x128xbf16, #tpu.memory_space<vmem>>, %arg3: memref<1x256x128xbf16, #tpu.memory_space<vmem>>) attributes {dimension_semantics = [#tpu.dimension_semantics<parallel>], iteration_bounds = array<i64: 2>, scalar_prefetch = 0 : i64, scratch_operands = 0 : i64, tpu.core_type = #tpu.core_type<tc>, window_params = [{transform_indices = @transform_0, window_bounds = array<i64: 1, 18, 18, 64>}, {pipeline_mode = #tpu.pipeline_mode<synchronous>, transform_indices = @transform_1, window_bounds = array<i64: 9, 64, 128>}, {transform_indices = @transform_2, window_bounds = array<i64: 1, 256, 128>}]} {
    %cst = arith.constant 0.000000e+00 : f32
    %0 = vector.broadcast %cst : f32 to vector<256x128xf32>
    %c0 = arith.constant 0 : index
    %c0_0 = arith.constant 0 : index
    %c0_1 = arith.constant 0 : index
    %c0_2 = arith.constant 0 : index
    %1 = vector.load %arg1[%c0, %c0_0, %c0_1, %c0_2] : memref<1x18x18x64xbf16, #tpu.memory_space<vmem>>, vector<1x16x16x64xbf16>
    %2 = vector.shape_cast %1 : vector<1x16x16x64xbf16> to vector<16x16x64xbf16>
    %3 = vector.shape_cast %2 : vector<16x16x64xbf16> to vector<256x64xbf16>
    %c0_3 = arith.constant 0 : index
    %c0_4 = arith.constant 0 : index
    %c0_5 = arith.constant 0 : index
    %4 = vector.load %arg2[%c0_3, %c0_4, %c0_5] : memref<9x64x128xbf16, #tpu.memory_space<vmem>>, vector<1x64x128xbf16>
    %5 = vector.shape_cast %4 : vector<1x64x128xbf16> to vector<64x128xbf16>
    %cst_6 = arith.constant dense<0.000000e+00> : vector<256x128xf32>
    %6 = tpu.matmul %3, %5, %cst_6 {dimension_numbers = #tpu.dot_dimension_numbers<[1], [0], [0], [1], [0, 0, 1, 1], [], []>} : vector<256x64xbf16>, vector<64x128xbf16>, vector<256x128xf32> -> vector<256x128xf32>
    %7 = arith.addf %0, %6 : vector<256x128xf32>
    %c0_7 = arith.constant 0 : index
    %c0_8 = arith.constant 0 : index
    %c1 = arith.constant 1 : index
    %c0_9 = arith.constant 0 : index
    %8 = vector.load %arg1[%c0_7, %c0_8, %c1, %c0_9] : memref<1x18x18x64xbf16, #tpu.memory_space<vmem>>, vector<1x16x16x64xbf16>
    %9 = vector.shape_cast %8 : vector<1x16x16x64xbf16> to vector<16x16x64xbf16>
    %10 = vector.shape_cast %9 : vector<16x16x64xbf16> to vector<256x64xbf16>
    %c1_10 = arith.constant 1 : index
    %c0_11 = arith.constant 0 : index
    %c0_12 = arith.constant 0 : index
    %11 = vector.load %arg2[%c1_10, %c0_11, %c0_12] : memref<9x64x128xbf16, #tpu.memory_space<vmem>>, vector<1x64x128xbf16>
    %12 = vector.shape_cast %11 : vector<1x64x128xbf16> to vector<64x128xbf16>
    %cst_13 = arith.constant dense<0.000000e+00> : vector<256x128xf32>
    %13 = tpu.matmul %10, %12, %cst_13 {dimension_numbers = #tpu.dot_dimension_numbers<[1], [0], [0], [1], [0, 0, 1, 1], [], []>} : vector<256x64xbf16>, vector<64x128xbf16>, vector<256x128xf32> -> vector<256x128xf32>
    %14 = arith.addf %7, %13 : vector<256x128xf32>
    %c0_14 = arith.constant 0 : index
    %c0_15 = arith.constant 0 : index
    %c2 = arith.constant 2 : index
    %c0_16 = arith.constant 0 : index
    %15 = vector.load %arg1[%c0_14, %c0_15, %c2, %c0_16] : memref<1x18x18x64xbf16, #tpu.memory_space<vmem>>, vector<1x16x16x64xbf16>
    %16 = vector.shape_cast %15 : vector<1x16x16x64xbf16> to vector<16x16x64xbf16>
    %17 = vector.shape_cast %16 : vector<16x16x64xbf16> to vector<256x64xbf16>
    %c2_17 = arith.constant 2 : index
    %c0_18 = arith.constant 0 : index
    %c0_19 = arith.constant 0 : index
    %18 = vector.load %arg2[%c2_17, %c0_18, %c0_19] : memref<9x64x128xbf16, #tpu.memory_space<vmem>>, vector<1x64x128xbf16>
    %19 = vector.shape_cast %18 : vector<1x64x128xbf16> to vector<64x128xbf16>
    %cst_20 = arith.constant dense<0.000000e+00> : vector<256x128xf32>
    %20 = tpu.matmul %17, %19, %cst_20 {dimension_numbers = #tpu.dot_dimension_numbers<[1], [0], [0], [1], [0, 0, 1, 1], [], []>} : vector<256x64xbf16>, vector<64x128xbf16>, vector<256x128xf32> -> vector<256x128xf32>
    %21 = arith.addf %14, %20 : vector<256x128xf32>
    %c0_21 = arith.constant 0 : index
    %c1_22 = arith.constant 1 : index
    %c0_23 = arith.constant 0 : index
    %c0_24 = arith.constant 0 : index
    %22 = vector.load %arg1[%c0_21, %c1_22, %c0_23, %c0_24] : memref<1x18x18x64xbf16, #tpu.memory_space<vmem>>, vector<1x16x16x64xbf16>
    %23 = vector.shape_cast %22 : vector<1x16x16x64xbf16> to vector<16x16x64xbf16>
    %24 = vector.shape_cast %23 : vector<16x16x64xbf16> to vector<256x64xbf16>
    %c3 = arith.constant 3 : index
    %c0_25 = arith.constant 0 : index
    %c0_26 = arith.constant 0 : index
    %25 = vector.load %arg2[%c3, %c0_25, %c0_26] : memref<9x64x128xbf16, #tpu.memory_space<vmem>>, vector<1x64x128xbf16>
    %26 = vector.shape_cast %25 : vector<1x64x128xbf16> to vector<64x128xbf16>
    %cst_27 = arith.constant dense<0.000000e+00> : vector<256x128xf32>
    %27 = tpu.matmul %24, %26, %cst_27 {dimension_numbers = #tpu.dot_dimension_numbers<[1], [0], [0], [1], [0, 0, 1, 1], [], []>} : vector<256x64xbf16>, vector<64x128xbf16>, vector<256x128xf32> -> vector<256x128xf32>
    %28 = arith.addf %21, %27 : vector<256x128xf32>
    %c0_28 = arith.constant 0 : index
    %c1_29 = arith.constant 1 : index
    %c1_30 = arith.constant 1 : index
    %c0_31 = arith.constant 0 : index
    %29 = vector.load %arg1[%c0_28, %c1_29, %c1_30, %c0_31] : memref<1x18x18x64xbf16, #tpu.memory_space<vmem>>, vector<1x16x16x64xbf16>
    %30 = vector.shape_cast %29 : vector<1x16x16x64xbf16> to vector<16x16x64xbf16>
    %31 = vector.shape_cast %30 : vector<16x16x64xbf16> to vector<256x64xbf16>
    %c4 = arith.constant 4 : index
    %c0_32 = arith.constant 0 : index
    %c0_33 = arith.constant 0 : index
    %32 = vector.load %arg2[%c4, %c0_32, %c0_33] : memref<9x64x128xbf16, #tpu.memory_space<vmem>>, vector<1x64x128xbf16>
    %33 = vector.shape_cast %32 : vector<1x64x128xbf16> to vector<64x128xbf16>
    %cst_34 = arith.constant dense<0.000000e+00> : vector<256x128xf32>
    %34 = tpu.matmul %31, %33, %cst_34 {dimension_numbers = #tpu.dot_dimension_numbers<[1], [0], [0], [1], [0, 0, 1, 1], [], []>} : vector<256x64xbf16>, vector<64x128xbf16>, vector<256x128xf32> -> vector<256x128xf32>
    %35 = arith.addf %28, %34 : vector<256x128xf32>
    %c0_35 = arith.constant 0 : index
    %c1_36 = arith.constant 1 : index
    %c2_37 = arith.constant 2 : index
    %c0_38 = arith.constant 0 : index
    %36 = vector.load %arg1[%c0_35, %c1_36, %c2_37, %c0_38] : memref<1x18x18x64xbf16, #tpu.memory_space<vmem>>, vector<1x16x16x64xbf16>
    %37 = vector.shape_cast %36 : vector<1x16x16x64xbf16> to vector<16x16x64xbf16>
    %38 = vector.shape_cast %37 : vector<16x16x64xbf16> to vector<256x64xbf16>
    %c5 = arith.constant 5 : index
    %c0_39 = arith.constant 0 : index
    %c0_40 = arith.constant 0 : index
    %39 = vector.load %arg2[%c5, %c0_39, %c0_40] : memref<9x64x128xbf16, #tpu.memory_space<vmem>>, vector<1x64x128xbf16>
    %40 = vector.shape_cast %39 : vector<1x64x128xbf16> to vector<64x128xbf16>
    %cst_41 = arith.constant dense<0.000000e+00> : vector<256x128xf32>
    %41 = tpu.matmul %38, %40, %cst_41 {dimension_numbers = #tpu.dot_dimension_numbers<[1], [0], [0], [1], [0, 0, 1, 1], [], []>} : vector<256x64xbf16>, vector<64x128xbf16>, vector<256x128xf32> -> vector<256x128xf32>
    %42 = arith.addf %35, %41 : vector<256x128xf32>
    %c0_42 = arith.constant 0 : index
    %c2_43 = arith.constant 2 : index
    %c0_44 = arith.constant 0 : index
    %c0_45 = arith.constant 0 : index
    %43 = vector.load %arg1[%c0_42, %c2_43, %c0_44, %c0_45] : memref<1x18x18x64xbf16, #tpu.memory_space<vmem>>, vector<1x16x16x64xbf16>
    %44 = vector.shape_cast %43 : vector<1x16x16x64xbf16> to vector<16x16x64xbf16>
    %45 = vector.shape_cast %44 : vector<16x16x64xbf16> to vector<256x64xbf16>
    %c6 = arith.constant 6 : index
    %c0_46 = arith.constant 0 : index
    %c0_47 = arith.constant 0 : index
    %46 = vector.load %arg2[%c6, %c0_46, %c0_47] : memref<9x64x128xbf16, #tpu.memory_space<vmem>>, vector<1x64x128xbf16>
    %47 = vector.shape_cast %46 : vector<1x64x128xbf16> to vector<64x128xbf16>
    %cst_48 = arith.constant dense<0.000000e+00> : vector<256x128xf32>
    %48 = tpu.matmul %45, %47, %cst_48 {dimension_numbers = #tpu.dot_dimension_numbers<[1], [0], [0], [1], [0, 0, 1, 1], [], []>} : vector<256x64xbf16>, vector<64x128xbf16>, vector<256x128xf32> -> vector<256x128xf32>
    %49 = arith.addf %42, %48 : vector<256x128xf32>
    %c0_49 = arith.constant 0 : index
    %c2_50 = arith.constant 2 : index
    %c1_51 = arith.constant 1 : index
    %c0_52 = arith.constant 0 : index
    %50 = vector.load %arg1[%c0_49, %c2_50, %c1_51, %c0_52] : memref<1x18x18x64xbf16, #tpu.memory_space<vmem>>, vector<1x16x16x64xbf16>
    %51 = vector.shape_cast %50 : vector<1x16x16x64xbf16> to vector<16x16x64xbf16>
    %52 = vector.shape_cast %51 : vector<16x16x64xbf16> to vector<256x64xbf16>
    %c7 = arith.constant 7 : index
    %c0_53 = arith.constant 0 : index
    %c0_54 = arith.constant 0 : index
    %53 = vector.load %arg2[%c7, %c0_53, %c0_54] : memref<9x64x128xbf16, #tpu.memory_space<vmem>>, vector<1x64x128xbf16>
    %54 = vector.shape_cast %53 : vector<1x64x128xbf16> to vector<64x128xbf16>
    %cst_55 = arith.constant dense<0.000000e+00> : vector<256x128xf32>
    %55 = tpu.matmul %52, %54, %cst_55 {dimension_numbers = #tpu.dot_dimension_numbers<[1], [0], [0], [1], [0, 0, 1, 1], [], []>} : vector<256x64xbf16>, vector<64x128xbf16>, vector<256x128xf32> -> vector<256x128xf32>
    %56 = arith.addf %49, %55 : vector<256x128xf32>
    %c0_56 = arith.constant 0 : index
    %c2_57 = arith.constant 2 : index
    %c2_58 = arith.constant 2 : index
    %c0_59 = arith.constant 0 : index
    %57 = vector.load %arg1[%c0_56, %c2_57, %c2_58, %c0_59] : memref<1x18x18x64xbf16, #tpu.memory_space<vmem>>, vector<1x16x16x64xbf16>
    %58 = vector.shape_cast %57 : vector<1x16x16x64xbf16> to vector<16x16x64xbf16>
    %59 = vector.shape_cast %58 : vector<16x16x64xbf16> to vector<256x64xbf16>
    %c8 = arith.constant 8 : index
    %c0_60 = arith.constant 0 : index
    %c0_61 = arith.constant 0 : index
    %60 = vector.load %arg2[%c8, %c0_60, %c0_61] : memref<9x64x128xbf16, #tpu.memory_space<vmem>>, vector<1x64x128xbf16>
    %61 = vector.shape_cast %60 : vector<1x64x128xbf16> to vector<64x128xbf16>
    %cst_62 = arith.constant dense<0.000000e+00> : vector<256x128xf32>
    %62 = tpu.matmul %59, %61, %cst_62 {dimension_numbers = #tpu.dot_dimension_numbers<[1], [0], [0], [1], [0, 0, 1, 1], [], []>} : vector<256x64xbf16>, vector<64x128xbf16>, vector<256x128xf32> -> vector<256x128xf32>
    %63 = arith.addf %56, %62 : vector<256x128xf32>
    %cst_63 = arith.constant 0.000000e+00 : f32
    %64 = vector.broadcast %cst_63 : f32 to vector<256x128xf32>
    %65 = arith.maximumf %63, %64 : vector<256x128xf32>
    %66 = arith.truncf %65 : vector<256x128xf32> to vector<256x128xbf16>
    %c0_64 = arith.constant 0 : index
    %c0_65 = arith.constant 0 : index
    %c0_66 = arith.constant 0 : index
    %67 = vector.load %arg3[%c0_64, %c0_65, %c0_66] : memref<1x256x128xbf16, #tpu.memory_space<vmem>>, vector<1x256x128xbf16>
    %68 = vector.shape_cast %67 : vector<1x256x128xbf16> to vector<256x128xbf16>
    %69 = vector.shape_cast %66 : vector<256x128xbf16> to vector<1x256x128xbf16>
    tpu.vector_store %arg3[%c0_64, %c0_65, %c0_66], %69 {strides = array<i32>} : memref<1x256x128xbf16, #tpu.memory_space<vmem>>, vector<1x256x128xbf16>,
    return
  }
  func.func @transform_0(%arg0: i32) -> (i32, i32, i32, i32) {
    %c0_i32 = arith.constant 0 : i32
    %c0_i32_0 = arith.constant 0 : i32
    %c0_i32_1 = arith.constant 0 : i32
    %c0_i32_2 = arith.constant 0 : i32
    return %arg0, %c0_i32, %c0_i32_0, %c0_i32_1 : i32, i32, i32, i32
  }
  func.func @transform_1(%arg0: i32) -> (i32, i32, i32) {
    %c0_i32 = arith.constant 0 : i32
    %c0_i32_0 = arith.constant 0 : i32
    %c0_i32_1 = arith.constant 0 : i32
    %c0_i32_2 = arith.constant 0 : i32
    return %c0_i32, %c0_i32_0, %c0_i32_1 : i32, i32, i32
  }
  func.func @transform_2(%arg0: i32) -> (i32, i32, i32) {
    %c0_i32 = arith.constant 0 : i32
    %c0_i32_0 = arith.constant 0 : i32
    %c0_i32_1 = arith.constant 0 : i32
    return %arg0, %c0_i32, %c0_i32_0 : i32, i32, i32
  }
}

module attributes {stable_mosaic.version = 11 : i64} {
  func.func @_transformer_head_kernel(%arg0: i32, %arg1: memref<1x64x128xbf16, #tpu.memory_space<vmem>>, %arg2: memref<1x64x128xf32, #tpu.memory_space<vmem>>, %arg3: memref<2x1x128xf32, #tpu.memory_space<vmem>>, %arg4: memref<2x1x128xf32, #tpu.memory_space<vmem>>, %arg5: memref<2x128x128xbf16, #tpu.memory_space<vmem>>, %arg6: memref<2x128x128xbf16, #tpu.memory_space<vmem>>, %arg7: memref<2x128x128xbf16, #tpu.memory_space<vmem>>, %arg8: memref<2x128x128xbf16, #tpu.memory_space<vmem>>, %arg9: memref<2x1x128xf32, #tpu.memory_space<vmem>>, %arg10: memref<2x1x128xf32, #tpu.memory_space<vmem>>, %arg11: memref<2x1x128xf32, #tpu.memory_space<vmem>>, %arg12: memref<2x128x128xbf16, #tpu.memory_space<vmem>>, %arg13: memref<2x1x128xf32, #tpu.memory_space<vmem>>, %arg14: memref<2x128x128xbf16, #tpu.memory_space<vmem>>, %arg15: memref<2x1x128xf32, #tpu.memory_space<vmem>>, %arg16: memref<1x128xf32, #tpu.memory_space<vmem>>, %arg17: memref<1x128xf32, #tpu.memory_space<vmem>>, %arg18: memref<1x128xf32, #tpu.memory_space<vmem>>, %arg19: memref<128x128xbf16, #tpu.memory_space<vmem>>, %arg20: memref<1x128xf32, #tpu.memory_space<vmem>>, %arg21: memref<1x1x128xf32, #tpu.memory_space<vmem>>, %arg22: memref<64x128xf32, #tpu.memory_space<vmem>>) attributes {dimension_semantics = [#tpu.dimension_semantics<parallel>], iteration_bounds = array<i64: 2>, scalar_prefetch = 0 : i64, scratch_operands = 1 : i64, tpu.core_type = #tpu.core_type<tc>, window_params = [{transform_indices = @transform_0, window_bounds = array<i64: 1, 64, 128>}, {pipeline_mode = #tpu.pipeline_mode<synchronous>, transform_indices = @transform_1, window_bounds = array<i64: 1, 64, 128>}, {pipeline_mode = #tpu.pipeline_mode<synchronous>, transform_indices = @transform_2, window_bounds = array<i64: 2, 1, 128>}, {pipeline_mode = #tpu.pipeline_mode<synchronous>, transform_indices = @transform_3, window_bounds = array<i64: 2, 1, 128>}, {pipeline_mode = #tpu.pipeline_mode<synchronous>, transform_indices = @transform_4, window_bounds = array<i64: 2, 128, 128>}, {pipeline_mode = #tpu.pipeline_mode<synchronous>, transform_indices = @transform_5, window_bounds = array<i64: 2, 128, 128>}, {pipeline_mode = #tpu.pipeline_mode<synchronous>, transform_indices = @transform_6, window_bounds = array<i64: 2, 128, 128>}, {pipeline_mode = #tpu.pipeline_mode<synchronous>, transform_indices = @transform_7, window_bounds = array<i64: 2, 128, 128>}, {pipeline_mode = #tpu.pipeline_mode<synchronous>, transform_indices = @transform_8, window_bounds = array<i64: 2, 1, 128>}, {pipeline_mode = #tpu.pipeline_mode<synchronous>, transform_indices = @transform_9, window_bounds = array<i64: 2, 1, 128>}, {pipeline_mode = #tpu.pipeline_mode<synchronous>, transform_indices = @transform_10, window_bounds = array<i64: 2, 1, 128>}, {pipeline_mode = #tpu.pipeline_mode<synchronous>, transform_indices = @transform_11, window_bounds = array<i64: 2, 128, 128>}, {pipeline_mode = #tpu.pipeline_mode<synchronous>, transform_indices = @transform_12, window_bounds = array<i64: 2, 1, 128>}, {pipeline_mode = #tpu.pipeline_mode<synchronous>, transform_indices = @transform_13, window_bounds = array<i64: 2, 128, 128>}, {pipeline_mode = #tpu.pipeline_mode<synchronous>, transform_indices = @transform_14, window_bounds = array<i64: 2, 1, 128>}, {pipeline_mode = #tpu.pipeline_mode<synchronous>, transform_indices = @transform_15, window_bounds = array<i64: 1, 128>}, {pipeline_mode = #tpu.pipeline_mode<synchronous>, transform_indices = @transform_16, window_bounds = array<i64: 1, 128>}, {pipeline_mode = #tpu.pipeline_mode<synchronous>, transform_indices = @transform_17, window_bounds = array<i64: 1, 128>}, {pipeline_mode = #tpu.pipeline_mode<synchronous>, transform_indices = @transform_18, window_bounds = array<i64: 128, 128>}, {pipeline_mode = #tpu.pipeline_mode<synchronous>, transform_indices = @transform_19, window_bounds = array<i64: 1, 128>}, {transform_indices = @transform_20, window_bounds = array<i64: 1, 1, 128>}]} {
    %c0 = arith.constant 0 : index
    %c0_0 = arith.constant 0 : index
    %c0_1 = arith.constant 0 : index
    %0 = vector.load %arg1[%c0, %c0_0, %c0_1] : memref<1x64x128xbf16, #tpu.memory_space<vmem>>, vector<1x64x128xbf16>
    %1 = arith.extf %0 : vector<1x64x128xbf16> to vector<1x64x128xf32>
    %c0_2 = arith.constant 0 : index
    %c0_3 = arith.constant 0 : index
    %c0_4 = arith.constant 0 : index
    %2 = vector.load %arg2[%c0_2, %c0_3, %c0_4] : memref<1x64x128xf32, #tpu.memory_space<vmem>>, vector<1x64x128xf32>
    %3 = arith.addf %1, %2 : vector<1x64x128xf32>
    %4 = vector.shape_cast %3 : vector<1x64x128xf32> to vector<64x128xf32>
    %c0_5 = arith.constant 0 : index
    %c0_6 = arith.constant 0 : index
    %c0_7 = arith.constant 0 : index
    %5 = vector.load %arg3[%c0_5, %c0_6, %c0_7] : memref<2x1x128xf32, #tpu.memory_space<vmem>>, vector<1x1x128xf32>
    %6 = vector.shape_cast %5 : vector<1x1x128xf32> to vector<1x128xf32>
    %c0_8 = arith.constant 0 : index
    %c0_9 = arith.constant 0 : index
    %c0_10 = arith.constant 0 : index
    %7 = vector.load %arg4[%c0_8, %c0_9, %c0_10] : memref<2x1x128xf32, #tpu.memory_space<vmem>>, vector<1x1x128xf32>
    %8 = vector.shape_cast %7 : vector<1x1x128xf32> to vector<1x128xf32>
    %cst = arith.constant dense<0.000000e+00> : vector<64xf32>
    %9 = vector.multi_reduction <add>, %4, %cst [1] : vector<64x128xf32> to vector<64xf32>
    %10 = vector.shape_cast %9 : vector<64xf32> to vector<64x1xf32>
    %cst_11 = arith.constant 1.280000e+02 : f32
    %11 = vector.broadcast %cst_11 : f32 to vector<64x1xf32>
    %12 = arith.divf %10, %11 : vector<64x1xf32>
    %13 = vector.broadcast %12 : vector<64x1xf32> to vector<64x128xf32>
    %14 = arith.subf %4, %13 : vector<64x128xf32>
    %15 = arith.mulf %14, %14 : vector<64x128xf32>
    %cst_12 = arith.constant dense<0.000000e+00> : vector<64xf32>
    %16 = vector.multi_reduction <add>, %15, %cst_12 [1] : vector<64x128xf32> to vector<64xf32>
    %17 = vector.shape_cast %16 : vector<64xf32> to vector<64x1xf32>
    %cst_13 = arith.constant 1.280000e+02 : f32
    %18 = vector.broadcast %cst_13 : f32 to vector<64x1xf32>
    %19 = arith.divf %17, %18 : vector<64x1xf32>
    %cst_14 = arith.constant 9.99999974E-6 : f32
    %20 = vector.broadcast %cst_14 : f32 to vector<64x1xf32>
    %21 = arith.addf %19, %20 : vector<64x1xf32>
    %22 = math.rsqrt %21 : vector<64x1xf32>
    %23 = vector.broadcast %22 : vector<64x1xf32> to vector<64x128xf32>
    %24 = arith.mulf %14, %23 : vector<64x128xf32>
    %25 = vector.broadcast %6 : vector<1x128xf32> to vector<64x128xf32>
    %26 = arith.mulf %24, %25 : vector<64x128xf32>
    %27 = vector.broadcast %8 : vector<1x128xf32> to vector<64x128xf32>
    %28 = arith.addf %26, %27 : vector<64x128xf32>
    %29 = arith.truncf %28 : vector<64x128xf32> to vector<64x128xbf16>
    %c0_15 = arith.constant 0 : index
    %c0_16 = arith.constant 0 : index
    %c0_17 = arith.constant 0 : index
    %30 = vector.load %arg5[%c0_15, %c0_16, %c0_17] : memref<2x128x128xbf16, #tpu.memory_space<vmem>>, vector<1x128x128xbf16>
    %31 = vector.shape_cast %30 : vector<1x128x128xbf16> to vector<128x128xbf16>
    %cst_18 = arith.constant dense<0.000000e+00> : vector<64x128xf32>
    %32 = tpu.matmul %29, %31, %cst_18 {dimension_numbers = #tpu.dot_dimension_numbers<[1], [0], [0], [1], [0, 0, 1, 1], [], []>} : vector<64x128xbf16>, vector<128x128xbf16>, vector<64x128xf32> -> vector<64x128xf32>
    %c0_19 = arith.constant 0 : index
    %c0_20 = arith.constant 0 : index
    %c0_21 = arith.constant 0 : index
    %33 = vector.load %arg6[%c0_19, %c0_20, %c0_21] : memref<2x128x128xbf16, #tpu.memory_space<vmem>>, vector<1x128x128xbf16>
    %34 = vector.shape_cast %33 : vector<1x128x128xbf16> to vector<128x128xbf16>
    %cst_22 = arith.constant dense<0.000000e+00> : vector<64x128xf32>
    %35 = tpu.matmul %29, %34, %cst_22 {dimension_numbers = #tpu.dot_dimension_numbers<[1], [0], [0], [1], [0, 0, 1, 1], [], []>} : vector<64x128xbf16>, vector<128x128xbf16>, vector<64x128xf32> -> vector<64x128xf32>
    %c0_23 = arith.constant 0 : index
    %c0_24 = arith.constant 0 : index
    %c0_25 = arith.constant 0 : index
    %36 = vector.load %arg7[%c0_23, %c0_24, %c0_25] : memref<2x128x128xbf16, #tpu.memory_space<vmem>>, vector<1x128x128xbf16>
    %37 = vector.shape_cast %36 : vector<1x128x128xbf16> to vector<128x128xbf16>
    %cst_26 = arith.constant dense<0.000000e+00> : vector<64x128xf32>
    %38 = tpu.matmul %29, %37, %cst_26 {dimension_numbers = #tpu.dot_dimension_numbers<[1], [0], [0], [1], [0, 0, 1, 1], [], []>} : vector<64x128xbf16>, vector<128x128xbf16>, vector<64x128xf32> -> vector<64x128xf32>
    %39 = vector.extract_strided_slice %32 {offsets = [0, 0], sizes = [64, 64], strides = [1, 1]} : vector<64x128xf32> to vector<64x64xf32>
    %40 = arith.truncf %39 : vector<64x64xf32> to vector<64x64xbf16>
    %41 = vector.extract_strided_slice %32 {offsets = [0, 64], sizes = [64, 64], strides = [1, 1]} : vector<64x128xf32> to vector<64x64xf32>
    %42 = arith.truncf %41 : vector<64x64xf32> to vector<64x64xbf16>
    %43 = vector.extract_strided_slice %35 {offsets = [0, 0], sizes = [64, 64], strides = [1, 1]} : vector<64x128xf32> to vector<64x64xf32>
    %44 = arith.truncf %43 : vector<64x64xf32> to vector<64x64xbf16>
    %45 = vector.extract_strided_slice %35 {offsets = [0, 64], sizes = [64, 64], strides = [1, 1]} : vector<64x128xf32> to vector<64x64xf32>
    %46 = arith.truncf %45 : vector<64x64xf32> to vector<64x64xbf16>
    %47 = vector.extract_strided_slice %38 {offsets = [0, 0], sizes = [64, 64], strides = [1, 1]} : vector<64x128xf32> to vector<64x64xf32>
    %48 = arith.truncf %47 : vector<64x64xf32> to vector<64x64xbf16>
    %49 = vector.extract_strided_slice %38 {offsets = [0, 64], sizes = [64, 64], strides = [1, 1]} : vector<64x128xf32> to vector<64x64xf32>
    %50 = arith.truncf %49 : vector<64x64xf32> to vector<64x64xbf16>
    %cst_27 = arith.constant dense<0.000000e+00> : vector<64x64xf32>
    %51 = tpu.matmul %40, %44, %cst_27 {dimension_numbers = #tpu.dot_dimension_numbers<[1], [1], [0], [0], [0, 0, 1, 0], [], []>} : vector<64x64xbf16>, vector<64x64xbf16>, vector<64x64xf32> -> vector<64x64xf32>
    %cst_28 = arith.constant dense<0xFF800000> : vector<64xf32>
    %52 = vector.multi_reduction <maximumf>, %51, %cst_28 [1] : vector<64x64xf32> to vector<64xf32>
    %53 = vector.shape_cast %52 : vector<64xf32> to vector<64x1xf32>
    %54 = vector.broadcast %53 : vector<64x1xf32> to vector<64x64xf32>
    %55 = arith.subf %51, %54 : vector<64x64xf32>
    %56 = math.exp %55 : vector<64x64xf32>
    %cst_29 = arith.constant dense<0.000000e+00> : vector<64xf32>
    %57 = vector.multi_reduction <add>, %56, %cst_29 [1] : vector<64x64xf32> to vector<64xf32>
    %58 = vector.shape_cast %57 : vector<64xf32> to vector<64x1xf32>
    %59 = tpu.reciprocal %58 {approx = true} : vector<64x1xf32> -> vector<64x1xf32>
    %60 = vector.broadcast %59 : vector<64x1xf32> to vector<64x64xf32>
    %61 = arith.mulf %56, %60 : vector<64x64xf32>
    %62 = arith.truncf %61 : vector<64x64xf32> to vector<64x64xbf16>
    %cst_30 = arith.constant dense<0.000000e+00> : vector<64x64xf32>
    %63 = tpu.matmul %62, %48, %cst_30 {dimension_numbers = #tpu.dot_dimension_numbers<[1], [0], [0], [1], [0, 0, 1, 1], [], []>} : vector<64x64xbf16>, vector<64x64xbf16>, vector<64x64xf32> -> vector<64x64xf32>
    %c0_31 = arith.constant 0 : index
    %c0_32 = arith.constant 0 : index
    %64 = vector.load %arg22[%c0_31, %c0_32] : memref<64x128xf32, #tpu.memory_space<vmem>>, vector<64x64xf32>
    tpu.vector_store %arg22[%c0_31, %c0_32], %63 {strides = array<i32>} : memref<64x128xf32, #tpu.memory_space<vmem>>, vector<64x64xf32>,
    %cst_33 = arith.constant dense<0.000000e+00> : vector<64x64xf32>
    %65 = tpu.matmul %42, %46, %cst_33 {dimension_numbers = #tpu.dot_dimension_numbers<[1], [1], [0], [0], [0, 0, 1, 0], [], []>} : vector<64x64xbf16>, vector<64x64xbf16>, vector<64x64xf32> -> vector<64x64xf32>
    %cst_34 = arith.constant dense<0xFF800000> : vector<64xf32>
    %66 = vector.multi_reduction <maximumf>, %65, %cst_34 [1] : vector<64x64xf32> to vector<64xf32>
    %67 = vector.shape_cast %66 : vector<64xf32> to vector<64x1xf32>
    %68 = vector.broadcast %67 : vector<64x1xf32> to vector<64x64xf32>
    %69 = arith.subf %65, %68 : vector<64x64xf32>
    %70 = math.exp %69 : vector<64x64xf32>
    %cst_35 = arith.constant dense<0.000000e+00> : vector<64xf32>
    %71 = vector.multi_reduction <add>, %70, %cst_35 [1] : vector<64x64xf32> to vector<64xf32>
    %72 = vector.shape_cast %71 : vector<64xf32> to vector<64x1xf32>
    %73 = tpu.reciprocal %72 {approx = true} : vector<64x1xf32> -> vector<64x1xf32>
    %74 = vector.broadcast %73 : vector<64x1xf32> to vector<64x64xf32>
    %75 = arith.mulf %70, %74 : vector<64x64xf32>
    %76 = arith.truncf %75 : vector<64x64xf32> to vector<64x64xbf16>
    %cst_36 = arith.constant dense<0.000000e+00> : vector<64x64xf32>
    %77 = tpu.matmul %76, %50, %cst_36 {dimension_numbers = #tpu.dot_dimension_numbers<[1], [0], [0], [1], [0, 0, 1, 1], [], []>} : vector<64x64xbf16>, vector<64x64xbf16>, vector<64x64xf32> -> vector<64x64xf32>
    %c0_37 = arith.constant 0 : index
    %c64 = arith.constant 64 : index
    %78 = vector.load %arg22[%c0_37, %c64] : memref<64x128xf32, #tpu.memory_space<vmem>>, vector<64x64xf32>
    tpu.vector_store %arg22[%c0_37, %c64], %77 {strides = array<i32>} : memref<64x128xf32, #tpu.memory_space<vmem>>, vector<64x64xf32>,
    %c0_38 = arith.constant 0 : index
    %c0_39 = arith.constant 0 : index
    %79 = vector.load %arg22[%c0_38, %c0_39] : memref<64x128xf32, #tpu.memory_space<vmem>>, vector<64x128xf32>
    %80 = arith.truncf %79 : vector<64x128xf32> to vector<64x128xbf16>
    %c0_40 = arith.constant 0 : index
    %c0_41 = arith.constant 0 : index
    %c0_42 = arith.constant 0 : index
    %81 = vector.load %arg8[%c0_40, %c0_41, %c0_42] : memref<2x128x128xbf16, #tpu.memory_space<vmem>>, vector<1x128x128xbf16>
    %82 = vector.shape_cast %81 : vector<1x128x128xbf16> to vector<128x128xbf16>
    %cst_43 = arith.constant dense<0.000000e+00> : vector<64x128xf32>
    %83 = tpu.matmul %80, %82, %cst_43 {dimension_numbers = #tpu.dot_dimension_numbers<[1], [0], [0], [1], [0, 0, 1, 1], [], []>} : vector<64x128xbf16>, vector<128x128xbf16>, vector<64x128xf32> -> vector<64x128xf32>
    %c0_44 = arith.constant 0 : index
    %c0_45 = arith.constant 0 : index
    %c0_46 = arith.constant 0 : index
    %84 = vector.load %arg9[%c0_44, %c0_45, %c0_46] : memref<2x1x128xf32, #tpu.memory_space<vmem>>, vector<1x1x128xf32>
    %85 = vector.shape_cast %84 : vector<1x1x128xf32> to vector<1x128xf32>
    %86 = vector.broadcast %85 : vector<1x128xf32> to vector<64x128xf32>
    %87 = arith.addf %83, %86 : vector<64x128xf32>
    %88 = arith.addf %4, %87 : vector<64x128xf32>
    %c0_47 = arith.constant 0 : index
    %c0_48 = arith.constant 0 : index
    %c0_49 = arith.constant 0 : index
    %89 = vector.load %arg10[%c0_47, %c0_48, %c0_49] : memref<2x1x128xf32, #tpu.memory_space<vmem>>, vector<1x1x128xf32>
    %90 = vector.shape_cast %89 : vector<1x1x128xf32> to vector<1x128xf32>
    %c0_50 = arith.constant 0 : index
    %c0_51 = arith.constant 0 : index
    %c0_52 = arith.constant 0 : index
    %91 = vector.load %arg11[%c0_50, %c0_51, %c0_52] : memref<2x1x128xf32, #tpu.memory_space<vmem>>, vector<1x1x128xf32>
    %92 = vector.shape_cast %91 : vector<1x1x128xf32> to vector<1x128xf32>
    %cst_53 = arith.constant dense<0.000000e+00> : vector<64xf32>
    %93 = vector.multi_reduction <add>, %88, %cst_53 [1] : vector<64x128xf32> to vector<64xf32>
    %94 = vector.shape_cast %93 : vector<64xf32> to vector<64x1xf32>
    %cst_54 = arith.constant 1.280000e+02 : f32
    %95 = vector.broadcast %cst_54 : f32 to vector<64x1xf32>
    %96 = arith.divf %94, %95 : vector<64x1xf32>
    %97 = vector.broadcast %96 : vector<64x1xf32> to vector<64x128xf32>
    %98 = arith.subf %88, %97 : vector<64x128xf32>
    %99 = arith.mulf %98, %98 : vector<64x128xf32>
    %cst_55 = arith.constant dense<0.000000e+00> : vector<64xf32>
    %100 = vector.multi_reduction <add>, %99, %cst_55 [1] : vector<64x128xf32> to vector<64xf32>
    %101 = vector.shape_cast %100 : vector<64xf32> to vector<64x1xf32>
    %cst_56 = arith.constant 1.280000e+02 : f32
    %102 = vector.broadcast %cst_56 : f32 to vector<64x1xf32>
    %103 = arith.divf %101, %102 : vector<64x1xf32>
    %cst_57 = arith.constant 9.99999974E-6 : f32
    %104 = vector.broadcast %cst_57 : f32 to vector<64x1xf32>
    %105 = arith.addf %103, %104 : vector<64x1xf32>
    %106 = math.rsqrt %105 : vector<64x1xf32>
    %107 = vector.broadcast %106 : vector<64x1xf32> to vector<64x128xf32>
    %108 = arith.mulf %98, %107 : vector<64x128xf32>
    %109 = vector.broadcast %90 : vector<1x128xf32> to vector<64x128xf32>
    %110 = arith.mulf %108, %109 : vector<64x128xf32>
    %111 = vector.broadcast %92 : vector<1x128xf32> to vector<64x128xf32>
    %112 = arith.addf %110, %111 : vector<64x128xf32>
    %113 = arith.truncf %112 : vector<64x128xf32> to vector<64x128xbf16>
    %c0_58 = arith.constant 0 : index
    %c0_59 = arith.constant 0 : index
    %c0_60 = arith.constant 0 : index
    %114 = vector.load %arg12[%c0_58, %c0_59, %c0_60] : memref<2x128x128xbf16, #tpu.memory_space<vmem>>, vector<1x128x128xbf16>
    %115 = vector.shape_cast %114 : vector<1x128x128xbf16> to vector<128x128xbf16>
    %cst_61 = arith.constant dense<0.000000e+00> : vector<64x128xf32>
    %116 = tpu.matmul %113, %115, %cst_61 {dimension_numbers = #tpu.dot_dimension_numbers<[1], [0], [0], [1], [0, 0, 1, 1], [], []>} : vector<64x128xbf16>, vector<128x128xbf16>, vector<64x128xf32> -> vector<64x128xf32>
    %c0_62 = arith.constant 0 : index
    %c0_63 = arith.constant 0 : index
    %c0_64 = arith.constant 0 : index
    %117 = vector.load %arg13[%c0_62, %c0_63, %c0_64] : memref<2x1x128xf32, #tpu.memory_space<vmem>>, vector<1x1x128xf32>
    %118 = vector.shape_cast %117 : vector<1x1x128xf32> to vector<1x128xf32>
    %119 = vector.broadcast %118 : vector<1x128xf32> to vector<64x128xf32>
    %120 = arith.addf %116, %119 : vector<64x128xf32>
    %121 = arith.mulf %120, %120 : vector<64x128xf32>
    %122 = arith.mulf %120, %121 : vector<64x128xf32>
    %cst_65 = arith.constant 4.471500e-02 : f32
    %123 = vector.broadcast %cst_65 : f32 to vector<64x128xf32>
    %124 = arith.mulf %123, %122 : vector<64x128xf32>
    %125 = arith.addf %120, %124 : vector<64x128xf32>
    %cst_66 = arith.constant 0.797884583 : f32
    %126 = vector.broadcast %cst_66 : f32 to vector<64x128xf32>
    %127 = arith.mulf %126, %125 : vector<64x128xf32>
    %128 = math.tanh %127 : vector<64x128xf32>
    %cst_67 = arith.constant 1.000000e+00 : f32
    %129 = vector.broadcast %cst_67 : f32 to vector<64x128xf32>
    %130 = arith.addf %129, %128 : vector<64x128xf32>
    %cst_68 = arith.constant 5.000000e-01 : f32
    %131 = vector.broadcast %cst_68 : f32 to vector<64x128xf32>
    %132 = arith.mulf %131, %130 : vector<64x128xf32>
    %133 = arith.mulf %120, %132 : vector<64x128xf32>
    %134 = arith.truncf %133 : vector<64x128xf32> to vector<64x128xbf16>
    %c0_69 = arith.constant 0 : index
    %c0_70 = arith.constant 0 : index
    %c0_71 = arith.constant 0 : index
    %135 = vector.load %arg14[%c0_69, %c0_70, %c0_71] : memref<2x128x128xbf16, #tpu.memory_space<vmem>>, vector<1x128x128xbf16>
    %136 = vector.shape_cast %135 : vector<1x128x128xbf16> to vector<128x128xbf16>
    %cst_72 = arith.constant dense<0.000000e+00> : vector<64x128xf32>
    %137 = tpu.matmul %134, %136, %cst_72 {dimension_numbers = #tpu.dot_dimension_numbers<[1], [0], [0], [1], [0, 0, 1, 1], [], []>} : vector<64x128xbf16>, vector<128x128xbf16>, vector<64x128xf32> -> vector<64x128xf32>
    %c0_73 = arith.constant 0 : index
    %c0_74 = arith.constant 0 : index
    %c0_75 = arith.constant 0 : index
    %138 = vector.load %arg15[%c0_73, %c0_74, %c0_75] : memref<2x1x128xf32, #tpu.memory_space<vmem>>, vector<1x1x128xf32>
    %139 = vector.shape_cast %138 : vector<1x1x128xf32> to vector<1x128xf32>
    %140 = vector.broadcast %139 : vector<1x128xf32> to vector<64x128xf32>
    %141 = arith.addf %137, %140 : vector<64x128xf32>
    %142 = arith.addf %112, %141 : vector<64x128xf32>
    %c1 = arith.constant 1 : index
    %c0_76 = arith.constant 0 : index
    %c0_77 = arith.constant 0 : index
    %143 = vector.load %arg3[%c1, %c0_76, %c0_77] : memref<2x1x128xf32, #tpu.memory_space<vmem>>, vector<1x1x128xf32>
    %144 = vector.shape_cast %143 : vector<1x1x128xf32> to vector<1x128xf32>
    %c1_78 = arith.constant 1 : index
    %c0_79 = arith.constant 0 : index
    %c0_80 = arith.constant 0 : index
    %145 = vector.load %arg4[%c1_78, %c0_79, %c0_80] : memref<2x1x128xf32, #tpu.memory_space<vmem>>, vector<1x1x128xf32>
    %146 = vector.shape_cast %145 : vector<1x1x128xf32> to vector<1x128xf32>
    %cst_81 = arith.constant dense<0.000000e+00> : vector<64xf32>
    %147 = vector.multi_reduction <add>, %142, %cst_81 [1] : vector<64x128xf32> to vector<64xf32>
    %148 = vector.shape_cast %147 : vector<64xf32> to vector<64x1xf32>
    %cst_82 = arith.constant 1.280000e+02 : f32
    %149 = vector.broadcast %cst_82 : f32 to vector<64x1xf32>
    %150 = arith.divf %148, %149 : vector<64x1xf32>
    %151 = vector.broadcast %150 : vector<64x1xf32> to vector<64x128xf32>
    %152 = arith.subf %142, %151 : vector<64x128xf32>
    %153 = arith.mulf %152, %152 : vector<64x128xf32>
    %cst_83 = arith.constant dense<0.000000e+00> : vector<64xf32>
    %154 = vector.multi_reduction <add>, %153, %cst_83 [1] : vector<64x128xf32> to vector<64xf32>
    %155 = vector.shape_cast %154 : vector<64xf32> to vector<64x1xf32>
    %cst_84 = arith.constant 1.280000e+02 : f32
    %156 = vector.broadcast %cst_84 : f32 to vector<64x1xf32>
    %157 = arith.divf %155, %156 : vector<64x1xf32>
    %cst_85 = arith.constant 9.99999974E-6 : f32
    %158 = vector.broadcast %cst_85 : f32 to vector<64x1xf32>
    %159 = arith.addf %157, %158 : vector<64x1xf32>
    %160 = math.rsqrt %159 : vector<64x1xf32>
    %161 = vector.broadcast %160 : vector<64x1xf32> to vector<64x128xf32>
    %162 = arith.mulf %152, %161 : vector<64x128xf32>
    %163 = vector.broadcast %144 : vector<1x128xf32> to vector<64x128xf32>
    %164 = arith.mulf %162, %163 : vector<64x128xf32>
    %165 = vector.broadcast %146 : vector<1x128xf32> to vector<64x128xf32>
    %166 = arith.addf %164, %165 : vector<64x128xf32>
    %167 = arith.truncf %166 : vector<64x128xf32> to vector<64x128xbf16>
    %c1_86 = arith.constant 1 : index
    %c0_87 = arith.constant 0 : index
    %c0_88 = arith.constant 0 : index
    %168 = vector.load %arg5[%c1_86, %c0_87, %c0_88] : memref<2x128x128xbf16, #tpu.memory_space<vmem>>, vector<1x128x128xbf16>
    %169 = vector.shape_cast %168 : vector<1x128x128xbf16> to vector<128x128xbf16>
    %cst_89 = arith.constant dense<0.000000e+00> : vector<64x128xf32>
    %170 = tpu.matmul %167, %169, %cst_89 {dimension_numbers = #tpu.dot_dimension_numbers<[1], [0], [0], [1], [0, 0, 1, 1], [], []>} : vector<64x128xbf16>, vector<128x128xbf16>, vector<64x128xf32> -> vector<64x128xf32>
    %c1_90 = arith.constant 1 : index
    %c0_91 = arith.constant 0 : index
    %c0_92 = arith.constant 0 : index
    %171 = vector.load %arg6[%c1_90, %c0_91, %c0_92] : memref<2x128x128xbf16, #tpu.memory_space<vmem>>, vector<1x128x128xbf16>
    %172 = vector.shape_cast %171 : vector<1x128x128xbf16> to vector<128x128xbf16>
    %cst_93 = arith.constant dense<0.000000e+00> : vector<64x128xf32>
    %173 = tpu.matmul %167, %172, %cst_93 {dimension_numbers = #tpu.dot_dimension_numbers<[1], [0], [0], [1], [0, 0, 1, 1], [], []>} : vector<64x128xbf16>, vector<128x128xbf16>, vector<64x128xf32> -> vector<64x128xf32>
    %c1_94 = arith.constant 1 : index
    %c0_95 = arith.constant 0 : index
    %c0_96 = arith.constant 0 : index
    %174 = vector.load %arg7[%c1_94, %c0_95, %c0_96] : memref<2x128x128xbf16, #tpu.memory_space<vmem>>, vector<1x128x128xbf16>
    %175 = vector.shape_cast %174 : vector<1x128x128xbf16> to vector<128x128xbf16>
    %cst_97 = arith.constant dense<0.000000e+00> : vector<64x128xf32>
    %176 = tpu.matmul %167, %175, %cst_97 {dimension_numbers = #tpu.dot_dimension_numbers<[1], [0], [0], [1], [0, 0, 1, 1], [], []>} : vector<64x128xbf16>, vector<128x128xbf16>, vector<64x128xf32> -> vector<64x128xf32>
    %177 = vector.extract_strided_slice %170 {offsets = [0, 0], sizes = [64, 64], strides = [1, 1]} : vector<64x128xf32> to vector<64x64xf32>
    %178 = arith.truncf %177 : vector<64x64xf32> to vector<64x64xbf16>
    %179 = vector.extract_strided_slice %170 {offsets = [0, 64], sizes = [64, 64], strides = [1, 1]} : vector<64x128xf32> to vector<64x64xf32>
    %180 = arith.truncf %179 : vector<64x64xf32> to vector<64x64xbf16>
    %181 = vector.extract_strided_slice %173 {offsets = [0, 0], sizes = [64, 64], strides = [1, 1]} : vector<64x128xf32> to vector<64x64xf32>
    %182 = arith.truncf %181 : vector<64x64xf32> to vector<64x64xbf16>
    %183 = vector.extract_strided_slice %173 {offsets = [0, 64], sizes = [64, 64], strides = [1, 1]} : vector<64x128xf32> to vector<64x64xf32>
    %184 = arith.truncf %183 : vector<64x64xf32> to vector<64x64xbf16>
    %185 = vector.extract_strided_slice %176 {offsets = [0, 0], sizes = [64, 64], strides = [1, 1]} : vector<64x128xf32> to vector<64x64xf32>
    %186 = arith.truncf %185 : vector<64x64xf32> to vector<64x64xbf16>
    %187 = vector.extract_strided_slice %176 {offsets = [0, 64], sizes = [64, 64], strides = [1, 1]} : vector<64x128xf32> to vector<64x64xf32>
    %188 = arith.truncf %187 : vector<64x64xf32> to vector<64x64xbf16>
    %cst_98 = arith.constant dense<0.000000e+00> : vector<64x64xf32>
    %189 = tpu.matmul %178, %182, %cst_98 {dimension_numbers = #tpu.dot_dimension_numbers<[1], [1], [0], [0], [0, 0, 1, 0], [], []>} : vector<64x64xbf16>, vector<64x64xbf16>, vector<64x64xf32> -> vector<64x64xf32>
    %cst_99 = arith.constant dense<0xFF800000> : vector<64xf32>
    %190 = vector.multi_reduction <maximumf>, %189, %cst_99 [1] : vector<64x64xf32> to vector<64xf32>
    %191 = vector.shape_cast %190 : vector<64xf32> to vector<64x1xf32>
    %192 = vector.broadcast %191 : vector<64x1xf32> to vector<64x64xf32>
    %193 = arith.subf %189, %192 : vector<64x64xf32>
    %194 = math.exp %193 : vector<64x64xf32>
    %cst_100 = arith.constant dense<0.000000e+00> : vector<64xf32>
    %195 = vector.multi_reduction <add>, %194, %cst_100 [1] : vector<64x64xf32> to vector<64xf32>
    %196 = vector.shape_cast %195 : vector<64xf32> to vector<64x1xf32>
    %197 = tpu.reciprocal %196 {approx = true} : vector<64x1xf32> -> vector<64x1xf32>
    %198 = vector.broadcast %197 : vector<64x1xf32> to vector<64x64xf32>
    %199 = arith.mulf %194, %198 : vector<64x64xf32>
    %200 = arith.truncf %199 : vector<64x64xf32> to vector<64x64xbf16>
    %cst_101 = arith.constant dense<0.000000e+00> : vector<64x64xf32>
    %201 = tpu.matmul %200, %186, %cst_101 {dimension_numbers = #tpu.dot_dimension_numbers<[1], [0], [0], [1], [0, 0, 1, 1], [], []>} : vector<64x64xbf16>, vector<64x64xbf16>, vector<64x64xf32> -> vector<64x64xf32>
    %c0_102 = arith.constant 0 : index
    %c0_103 = arith.constant 0 : index
    %202 = vector.load %arg22[%c0_102, %c0_103] : memref<64x128xf32, #tpu.memory_space<vmem>>, vector<64x64xf32>
    tpu.vector_store %arg22[%c0_102, %c0_103], %201 {strides = array<i32>} : memref<64x128xf32, #tpu.memory_space<vmem>>, vector<64x64xf32>,
    %cst_104 = arith.constant dense<0.000000e+00> : vector<64x64xf32>
    %203 = tpu.matmul %180, %184, %cst_104 {dimension_numbers = #tpu.dot_dimension_numbers<[1], [1], [0], [0], [0, 0, 1, 0], [], []>} : vector<64x64xbf16>, vector<64x64xbf16>, vector<64x64xf32> -> vector<64x64xf32>
    %cst_105 = arith.constant dense<0xFF800000> : vector<64xf32>
    %204 = vector.multi_reduction <maximumf>, %203, %cst_105 [1] : vector<64x64xf32> to vector<64xf32>
    %205 = vector.shape_cast %204 : vector<64xf32> to vector<64x1xf32>
    %206 = vector.broadcast %205 : vector<64x1xf32> to vector<64x64xf32>
    %207 = arith.subf %203, %206 : vector<64x64xf32>
    %208 = math.exp %207 : vector<64x64xf32>
    %cst_106 = arith.constant dense<0.000000e+00> : vector<64xf32>
    %209 = vector.multi_reduction <add>, %208, %cst_106 [1] : vector<64x64xf32> to vector<64xf32>
    %210 = vector.shape_cast %209 : vector<64xf32> to vector<64x1xf32>
    %211 = tpu.reciprocal %210 {approx = true} : vector<64x1xf32> -> vector<64x1xf32>
    %212 = vector.broadcast %211 : vector<64x1xf32> to vector<64x64xf32>
    %213 = arith.mulf %208, %212 : vector<64x64xf32>
    %214 = arith.truncf %213 : vector<64x64xf32> to vector<64x64xbf16>
    %cst_107 = arith.constant dense<0.000000e+00> : vector<64x64xf32>
    %215 = tpu.matmul %214, %188, %cst_107 {dimension_numbers = #tpu.dot_dimension_numbers<[1], [0], [0], [1], [0, 0, 1, 1], [], []>} : vector<64x64xbf16>, vector<64x64xbf16>, vector<64x64xf32> -> vector<64x64xf32>
    %c0_108 = arith.constant 0 : index
    %c64_109 = arith.constant 64 : index
    %216 = vector.load %arg22[%c0_108, %c64_109] : memref<64x128xf32, #tpu.memory_space<vmem>>, vector<64x64xf32>
    tpu.vector_store %arg22[%c0_108, %c64_109], %215 {strides = array<i32>} : memref<64x128xf32, #tpu.memory_space<vmem>>, vector<64x64xf32>,
    %c0_110 = arith.constant 0 : index
    %c0_111 = arith.constant 0 : index
    %217 = vector.load %arg22[%c0_110, %c0_111] : memref<64x128xf32, #tpu.memory_space<vmem>>, vector<64x128xf32>
    %218 = arith.truncf %217 : vector<64x128xf32> to vector<64x128xbf16>
    %c1_112 = arith.constant 1 : index
    %c0_113 = arith.constant 0 : index
    %c0_114 = arith.constant 0 : index
    %219 = vector.load %arg8[%c1_112, %c0_113, %c0_114] : memref<2x128x128xbf16, #tpu.memory_space<vmem>>, vector<1x128x128xbf16>
    %220 = vector.shape_cast %219 : vector<1x128x128xbf16> to vector<128x128xbf16>
    %cst_115 = arith.constant dense<0.000000e+00> : vector<64x128xf32>
    %221 = tpu.matmul %218, %220, %cst_115 {dimension_numbers = #tpu.dot_dimension_numbers<[1], [0], [0], [1], [0, 0, 1, 1], [], []>} : vector<64x128xbf16>, vector<128x128xbf16>, vector<64x128xf32> -> vector<64x128xf32>
    %c1_116 = arith.constant 1 : index
    %c0_117 = arith.constant 0 : index
    %c0_118 = arith.constant 0 : index
    %222 = vector.load %arg9[%c1_116, %c0_117, %c0_118] : memref<2x1x128xf32, #tpu.memory_space<vmem>>, vector<1x1x128xf32>
    %223 = vector.shape_cast %222 : vector<1x1x128xf32> to vector<1x128xf32>
    %224 = vector.broadcast %223 : vector<1x128xf32> to vector<64x128xf32>
    %225 = arith.addf %221, %224 : vector<64x128xf32>
    %226 = arith.addf %142, %225 : vector<64x128xf32>
    %c1_119 = arith.constant 1 : index
    %c0_120 = arith.constant 0 : index
    %c0_121 = arith.constant 0 : index
    %227 = vector.load %arg10[%c1_119, %c0_120, %c0_121] : memref<2x1x128xf32, #tpu.memory_space<vmem>>, vector<1x1x128xf32>
    %228 = vector.shape_cast %227 : vector<1x1x128xf32> to vector<1x128xf32>
    %c1_122 = arith.constant 1 : index
    %c0_123 = arith.constant 0 : index
    %c0_124 = arith.constant 0 : index
    %229 = vector.load %arg11[%c1_122, %c0_123, %c0_124] : memref<2x1x128xf32, #tpu.memory_space<vmem>>, vector<1x1x128xf32>
    %230 = vector.shape_cast %229 : vector<1x1x128xf32> to vector<1x128xf32>
    %cst_125 = arith.constant dense<0.000000e+00> : vector<64xf32>
    %231 = vector.multi_reduction <add>, %226, %cst_125 [1] : vector<64x128xf32> to vector<64xf32>
    %232 = vector.shape_cast %231 : vector<64xf32> to vector<64x1xf32>
    %cst_126 = arith.constant 1.280000e+02 : f32
    %233 = vector.broadcast %cst_126 : f32 to vector<64x1xf32>
    %234 = arith.divf %232, %233 : vector<64x1xf32>
    %235 = vector.broadcast %234 : vector<64x1xf32> to vector<64x128xf32>
    %236 = arith.subf %226, %235 : vector<64x128xf32>
    %237 = arith.mulf %236, %236 : vector<64x128xf32>
    %cst_127 = arith.constant dense<0.000000e+00> : vector<64xf32>
    %238 = vector.multi_reduction <add>, %237, %cst_127 [1] : vector<64x128xf32> to vector<64xf32>
    %239 = vector.shape_cast %238 : vector<64xf32> to vector<64x1xf32>
    %cst_128 = arith.constant 1.280000e+02 : f32
    %240 = vector.broadcast %cst_128 : f32 to vector<64x1xf32>
    %241 = arith.divf %239, %240 : vector<64x1xf32>
    %cst_129 = arith.constant 9.99999974E-6 : f32
    %242 = vector.broadcast %cst_129 : f32 to vector<64x1xf32>
    %243 = arith.addf %241, %242 : vector<64x1xf32>
    %244 = math.rsqrt %243 : vector<64x1xf32>
    %245 = vector.broadcast %244 : vector<64x1xf32> to vector<64x128xf32>
    %246 = arith.mulf %236, %245 : vector<64x128xf32>
    %247 = vector.broadcast %228 : vector<1x128xf32> to vector<64x128xf32>
    %248 = arith.mulf %246, %247 : vector<64x128xf32>
    %249 = vector.broadcast %230 : vector<1x128xf32> to vector<64x128xf32>
    %250 = arith.addf %248, %249 : vector<64x128xf32>
    %251 = arith.truncf %250 : vector<64x128xf32> to vector<64x128xbf16>
    %c1_130 = arith.constant 1 : index
    %c0_131 = arith.constant 0 : index
    %c0_132 = arith.constant 0 : index
    %252 = vector.load %arg12[%c1_130, %c0_131, %c0_132] : memref<2x128x128xbf16, #tpu.memory_space<vmem>>, vector<1x128x128xbf16>
    %253 = vector.shape_cast %252 : vector<1x128x128xbf16> to vector<128x128xbf16>
    %cst_133 = arith.constant dense<0.000000e+00> : vector<64x128xf32>
    %254 = tpu.matmul %251, %253, %cst_133 {dimension_numbers = #tpu.dot_dimension_numbers<[1], [0], [0], [1], [0, 0, 1, 1], [], []>} : vector<64x128xbf16>, vector<128x128xbf16>, vector<64x128xf32> -> vector<64x128xf32>
    %c1_134 = arith.constant 1 : index
    %c0_135 = arith.constant 0 : index
    %c0_136 = arith.constant 0 : index
    %255 = vector.load %arg13[%c1_134, %c0_135, %c0_136] : memref<2x1x128xf32, #tpu.memory_space<vmem>>, vector<1x1x128xf32>
    %256 = vector.shape_cast %255 : vector<1x1x128xf32> to vector<1x128xf32>
    %257 = vector.broadcast %256 : vector<1x128xf32> to vector<64x128xf32>
    %258 = arith.addf %254, %257 : vector<64x128xf32>
    %259 = arith.mulf %258, %258 : vector<64x128xf32>
    %260 = arith.mulf %258, %259 : vector<64x128xf32>
    %cst_137 = arith.constant 4.471500e-02 : f32
    %261 = vector.broadcast %cst_137 : f32 to vector<64x128xf32>
    %262 = arith.mulf %261, %260 : vector<64x128xf32>
    %263 = arith.addf %258, %262 : vector<64x128xf32>
    %cst_138 = arith.constant 0.797884583 : f32
    %264 = vector.broadcast %cst_138 : f32 to vector<64x128xf32>
    %265 = arith.mulf %264, %263 : vector<64x128xf32>
    %266 = math.tanh %265 : vector<64x128xf32>
    %cst_139 = arith.constant 1.000000e+00 : f32
    %267 = vector.broadcast %cst_139 : f32 to vector<64x128xf32>
    %268 = arith.addf %267, %266 : vector<64x128xf32>
    %cst_140 = arith.constant 5.000000e-01 : f32
    %269 = vector.broadcast %cst_140 : f32 to vector<64x128xf32>
    %270 = arith.mulf %269, %268 : vector<64x128xf32>
    %271 = arith.mulf %258, %270 : vector<64x128xf32>
    %272 = arith.truncf %271 : vector<64x128xf32> to vector<64x128xbf16>
    %c1_141 = arith.constant 1 : index
    %c0_142 = arith.constant 0 : index
    %c0_143 = arith.constant 0 : index
    %273 = vector.load %arg14[%c1_141, %c0_142, %c0_143] : memref<2x128x128xbf16, #tpu.memory_space<vmem>>, vector<1x128x128xbf16>
    %274 = vector.shape_cast %273 : vector<1x128x128xbf16> to vector<128x128xbf16>
    %cst_144 = arith.constant dense<0.000000e+00> : vector<64x128xf32>
    %275 = tpu.matmul %272, %274, %cst_144 {dimension_numbers = #tpu.dot_dimension_numbers<[1], [0], [0], [1], [0, 0, 1, 1], [], []>} : vector<64x128xbf16>, vector<128x128xbf16>, vector<64x128xf32> -> vector<64x128xf32>
    %c1_145 = arith.constant 1 : index
    %c0_146 = arith.constant 0 : index
    %c0_147 = arith.constant 0 : index
    %276 = vector.load %arg15[%c1_145, %c0_146, %c0_147] : memref<2x1x128xf32, #tpu.memory_space<vmem>>, vector<1x1x128xf32>
    %277 = vector.shape_cast %276 : vector<1x1x128xf32> to vector<1x128xf32>
    %278 = vector.broadcast %277 : vector<1x128xf32> to vector<64x128xf32>
    %279 = arith.addf %275, %278 : vector<64x128xf32>
    %280 = arith.addf %250, %279 : vector<64x128xf32>
    %c0_148 = arith.constant 0 : index
    %c0_149 = arith.constant 0 : index
    %281 = vector.load %arg16[%c0_148, %c0_149] : memref<1x128xf32, #tpu.memory_space<vmem>>, vector<1x128xf32>
    %c0_150 = arith.constant 0 : index
    %c0_151 = arith.constant 0 : index
    %282 = vector.load %arg17[%c0_150, %c0_151] : memref<1x128xf32, #tpu.memory_space<vmem>>, vector<1x128xf32>
    %cst_152 = arith.constant dense<0.000000e+00> : vector<64xf32>
    %283 = vector.multi_reduction <add>, %280, %cst_152 [1] : vector<64x128xf32> to vector<64xf32>
    %284 = vector.shape_cast %283 : vector<64xf32> to vector<64x1xf32>
    %cst_153 = arith.constant 1.280000e+02 : f32
    %285 = vector.broadcast %cst_153 : f32 to vector<64x1xf32>
    %286 = arith.divf %284, %285 : vector<64x1xf32>
    %287 = vector.broadcast %286 : vector<64x1xf32> to vector<64x128xf32>
    %288 = arith.subf %280, %287 : vector<64x128xf32>
    %289 = arith.mulf %288, %288 : vector<64x128xf32>
    %cst_154 = arith.constant dense<0.000000e+00> : vector<64xf32>
    %290 = vector.multi_reduction <add>, %289, %cst_154 [1] : vector<64x128xf32> to vector<64xf32>
    %291 = vector.shape_cast %290 : vector<64xf32> to vector<64x1xf32>
    %cst_155 = arith.constant 1.280000e+02 : f32
    %292 = vector.broadcast %cst_155 : f32 to vector<64x1xf32>
    %293 = arith.divf %291, %292 : vector<64x1xf32>
    %cst_156 = arith.constant 9.99999974E-6 : f32
    %294 = vector.broadcast %cst_156 : f32 to vector<64x1xf32>
    %295 = arith.addf %293, %294 : vector<64x1xf32>
    %296 = math.rsqrt %295 : vector<64x1xf32>
    %297 = vector.broadcast %296 : vector<64x1xf32> to vector<64x128xf32>
    %298 = arith.mulf %288, %297 : vector<64x128xf32>
    %299 = vector.broadcast %281 : vector<1x128xf32> to vector<64x128xf32>
    %300 = arith.mulf %298, %299 : vector<64x128xf32>
    %301 = vector.broadcast %282 : vector<1x128xf32> to vector<64x128xf32>
    %302 = arith.addf %300, %301 : vector<64x128xf32>
    %c0_157 = arith.constant 0 : index
    %c0_158 = arith.constant 0 : index
    %303 = vector.load %arg18[%c0_157, %c0_158] : memref<1x128xf32, #tpu.memory_space<vmem>>, vector<1x128xf32>
    %304 = vector.broadcast %303 : vector<1x128xf32> to vector<64x128xf32>
    %305 = arith.mulf %302, %304 : vector<64x128xf32>
    %cst_159 = arith.constant dense<0.000000e+00> : vector<64xf32>
    %306 = vector.multi_reduction <add>, %305, %cst_159 [1] : vector<64x128xf32> to vector<64xf32>
    %307 = vector.shape_cast %306 : vector<64xf32> to vector<64x1xf32>
    %c0_160 = arith.constant 0 : index
    %c0_161 = arith.constant 0 : index
    %308 = vector.load %arg19[%c0_160, %c0_161] : memref<128x128xbf16, #tpu.memory_space<vmem>>, vector<128x128xbf16>
    %c0_162 = arith.constant 0 : index
    %c0_163 = arith.constant 0 : index
    %309 = vector.load %arg20[%c0_162, %c0_163] : memref<1x128xf32, #tpu.memory_space<vmem>>, vector<1x128xf32>
    %cst_164 = arith.constant dense<0xFF800000> : vector<1xf32>
    %310 = vector.multi_reduction <maximumf>, %307, %cst_164 [0] : vector<64x1xf32> to vector<1xf32>
    %311 = vector.shape_cast %310 : vector<1xf32> to vector<1x1xf32>
    %312 = vector.broadcast %311 : vector<1x1xf32> to vector<64x1xf32>
    %313 = arith.subf %307, %312 : vector<64x1xf32>
    %314 = math.exp %313 : vector<64x1xf32>
    %cst_165 = arith.constant dense<0.000000e+00> : vector<1xf32>
    %315 = vector.multi_reduction <add>, %314, %cst_165 [0] : vector<64x1xf32> to vector<1xf32>
    %316 = vector.shape_cast %315 : vector<1xf32> to vector<1x1xf32>
    %317 = tpu.reciprocal %316 {approx = true} : vector<1x1xf32> -> vector<1x1xf32>
    %318 = vector.broadcast %317 : vector<1x1xf32> to vector<64x1xf32>
    %319 = arith.mulf %314, %318 : vector<64x1xf32>
    %320 = vector.broadcast %319 : vector<64x1xf32> to vector<64x128xf32>
    %321 = arith.mulf %320, %302 : vector<64x128xf32>
    %cst_166 = arith.constant dense<0.000000e+00> : vector<128xf32>
    %322 = vector.multi_reduction <add>, %321, %cst_166 [0] : vector<64x128xf32> to vector<128xf32>
    %323 = vector.shape_cast %322 : vector<128xf32> to vector<1x128xf32>
    %324 = arith.truncf %323 : vector<1x128xf32> to vector<1x128xbf16>
    %cst_167 = arith.constant dense<0.000000e+00> : vector<1x128xf32>
    %325 = tpu.matmul %324, %308, %cst_167 {dimension_numbers = #tpu.dot_dimension_numbers<[1], [0], [0], [1], [0, 0, 1, 1], [], []>} : vector<1x128xbf16>, vector<128x128xbf16>, vector<1x128xf32> -> vector<1x128xf32>
    %326 = arith.addf %325, %309 : vector<1x128xf32>
    %c0_168 = arith.constant 0 : index
    %c0_169 = arith.constant 0 : index
    %c0_170 = arith.constant 0 : index
    %327 = vector.load %arg21[%c0_168, %c0_169, %c0_170] : memref<1x1x128xf32, #tpu.memory_space<vmem>>, vector<1x1x128xf32>
    %328 = vector.shape_cast %327 : vector<1x1x128xf32> to vector<1x128xf32>
    %329 = vector.shape_cast %326 : vector<1x128xf32> to vector<1x1x128xf32>
    tpu.vector_store %arg21[%c0_168, %c0_169, %c0_170], %329 {strides = array<i32>} : memref<1x1x128xf32, #tpu.memory_space<vmem>>, vector<1x1x128xf32>,
    return
  }
  func.func @transform_0(%arg0: i32) -> (i32, i32, i32) {
    %c0_i32 = arith.constant 0 : i32
    %c0_i32_0 = arith.constant 0 : i32
    %c0_i32_1 = arith.constant 0 : i32
    return %arg0, %c0_i32, %c0_i32_0 : i32, i32, i32
  }
  func.func @transform_1(%arg0: i32) -> (i32, i32, i32) {
    %c0_i32 = arith.constant 0 : i32
    %c0_i32_0 = arith.constant 0 : i32
    %c0_i32_1 = arith.constant 0 : i32
    %c0_i32_2 = arith.constant 0 : i32
    return %c0_i32, %c0_i32_0, %c0_i32_1 : i32, i32, i32
  }
  func.func @transform_2(%arg0: i32) -> (i32, i32, i32) {
    %c0_i32 = arith.constant 0 : i32
    %c0_i32_0 = arith.constant 0 : i32
    %c0_i32_1 = arith.constant 0 : i32
    %c0_i32_2 = arith.constant 0 : i32
    return %c0_i32, %c0_i32_0, %c0_i32_1 : i32, i32, i32
  }
  func.func @transform_3(%arg0: i32) -> (i32, i32, i32) {
    %c0_i32 = arith.constant 0 : i32
    %c0_i32_0 = arith.constant 0 : i32
    %c0_i32_1 = arith.constant 0 : i32
    %c0_i32_2 = arith.constant 0 : i32
    return %c0_i32, %c0_i32_0, %c0_i32_1 : i32, i32, i32
  }
  func.func @transform_4(%arg0: i32) -> (i32, i32, i32) {
    %c0_i32 = arith.constant 0 : i32
    %c0_i32_0 = arith.constant 0 : i32
    %c0_i32_1 = arith.constant 0 : i32
    %c0_i32_2 = arith.constant 0 : i32
    return %c0_i32, %c0_i32_0, %c0_i32_1 : i32, i32, i32
  }
  func.func @transform_5(%arg0: i32) -> (i32, i32, i32) {
    %c0_i32 = arith.constant 0 : i32
    %c0_i32_0 = arith.constant 0 : i32
    %c0_i32_1 = arith.constant 0 : i32
    %c0_i32_2 = arith.constant 0 : i32
    return %c0_i32, %c0_i32_0, %c0_i32_1 : i32, i32, i32
  }
  func.func @transform_6(%arg0: i32) -> (i32, i32, i32) {
    %c0_i32 = arith.constant 0 : i32
    %c0_i32_0 = arith.constant 0 : i32
    %c0_i32_1 = arith.constant 0 : i32
    %c0_i32_2 = arith.constant 0 : i32
    return %c0_i32, %c0_i32_0, %c0_i32_1 : i32, i32, i32
  }
  func.func @transform_7(%arg0: i32) -> (i32, i32, i32) {
    %c0_i32 = arith.constant 0 : i32
    %c0_i32_0 = arith.constant 0 : i32
    %c0_i32_1 = arith.constant 0 : i32
    %c0_i32_2 = arith.constant 0 : i32
    return %c0_i32, %c0_i32_0, %c0_i32_1 : i32, i32, i32
  }
  func.func @transform_8(%arg0: i32) -> (i32, i32, i32) {
    %c0_i32 = arith.constant 0 : i32
    %c0_i32_0 = arith.constant 0 : i32
    %c0_i32_1 = arith.constant 0 : i32
    %c0_i32_2 = arith.constant 0 : i32
    return %c0_i32, %c0_i32_0, %c0_i32_1 : i32, i32, i32
  }
  func.func @transform_9(%arg0: i32) -> (i32, i32, i32) {
    %c0_i32 = arith.constant 0 : i32
    %c0_i32_0 = arith.constant 0 : i32
    %c0_i32_1 = arith.constant 0 : i32
    %c0_i32_2 = arith.constant 0 : i32
    return %c0_i32, %c0_i32_0, %c0_i32_1 : i32, i32, i32
  }
  func.func @transform_10(%arg0: i32) -> (i32, i32, i32) {
    %c0_i32 = arith.constant 0 : i32
    %c0_i32_0 = arith.constant 0 : i32
    %c0_i32_1 = arith.constant 0 : i32
    %c0_i32_2 = arith.constant 0 : i32
    return %c0_i32, %c0_i32_0, %c0_i32_1 : i32, i32, i32
  }
  func.func @transform_11(%arg0: i32) -> (i32, i32, i32) {
    %c0_i32 = arith.constant 0 : i32
    %c0_i32_0 = arith.constant 0 : i32
    %c0_i32_1 = arith.constant 0 : i32
    %c0_i32_2 = arith.constant 0 : i32
    return %c0_i32, %c0_i32_0, %c0_i32_1 : i32, i32, i32
  }
  func.func @transform_12(%arg0: i32) -> (i32, i32, i32) {
    %c0_i32 = arith.constant 0 : i32
    %c0_i32_0 = arith.constant 0 : i32
    %c0_i32_1 = arith.constant 0 : i32
    %c0_i32_2 = arith.constant 0 : i32
    return %c0_i32, %c0_i32_0, %c0_i32_1 : i32, i32, i32
  }
  func.func @transform_13(%arg0: i32) -> (i32, i32, i32) {
    %c0_i32 = arith.constant 0 : i32
    %c0_i32_0 = arith.constant 0 : i32
    %c0_i32_1 = arith.constant 0 : i32
    %c0_i32_2 = arith.constant 0 : i32
    return %c0_i32, %c0_i32_0, %c0_i32_1 : i32, i32, i32
  }
  func.func @transform_14(%arg0: i32) -> (i32, i32, i32) {
    %c0_i32 = arith.constant 0 : i32
    %c0_i32_0 = arith.constant 0 : i32
    %c0_i32_1 = arith.constant 0 : i32
    %c0_i32_2 = arith.constant 0 : i32
    return %c0_i32, %c0_i32_0, %c0_i32_1 : i32, i32, i32
  }
  func.func @transform_15(%arg0: i32) -> (i32, i32) {
    %c0_i32 = arith.constant 0 : i32
    %c0_i32_0 = arith.constant 0 : i32
    %c0_i32_1 = arith.constant 0 : i32
    return %c0_i32, %c0_i32_0 : i32, i32
  }
  func.func @transform_16(%arg0: i32) -> (i32, i32) {
    %c0_i32 = arith.constant 0 : i32
    %c0_i32_0 = arith.constant 0 : i32
    %c0_i32_1 = arith.constant 0 : i32
    return %c0_i32, %c0_i32_0 : i32, i32
  }
  func.func @transform_17(%arg0: i32) -> (i32, i32) {
    %c0_i32 = arith.constant 0 : i32
    %c0_i32_0 = arith.constant 0 : i32
    %c0_i32_1 = arith.constant 0 : i32
    return %c0_i32, %c0_i32_0 : i32, i32
  }
  func.func @transform_18(%arg0: i32) -> (i32, i32) {
    %c0_i32 = arith.constant 0 : i32
    %c0_i32_0 = arith.constant 0 : i32
    %c0_i32_1 = arith.constant 0 : i32
    return %c0_i32, %c0_i32_0 : i32, i32
  }
  func.func @transform_19(%arg0: i32) -> (i32, i32) {
    %c0_i32 = arith.constant 0 : i32
    %c0_i32_0 = arith.constant 0 : i32
    %c0_i32_1 = arith.constant 0 : i32
    return %c0_i32, %c0_i32_0 : i32, i32
  }
  func.func @transform_20(%arg0: i32) -> (i32, i32, i32) {
    %c0_i32 = arith.constant 0 : i32
    %c0_i32_0 = arith.constant 0 : i32
    %c0_i32_1 = arith.constant 0 : i32
    return %arg0, %c0_i32, %c0_i32_0 : i32, i32, i32
  }
}

</mosaic_0001>

<bundles_post_ra>
// kernel: tpu_custom_call.1
= control target key start
LH: loop header
LB: loop body
LE: loop exit
PB: predicated region body
PF: predicated region fallthrough
CT: control target
= control target key end

     0   :  { %6 = vsyncpa [#allocation3], 0  ;;  %s161_s0 = inlined_call_operand.hbm [shape: f32[8,128], index: 0, kind: input, shape index: {}]   ;;  %s162_s1 = inlined_call_operand.hbm [shape: f32[8,128], index: 1, kind: output, shape index: {}]  }
   0x1   :  { %7 = vsyncpa [#allocation4], 0  ;;  %s13_s8 = sshll.u32 %s161_s0, 4  ;;  %s143_s9 = smov [#allocation2]   ;;  %s14_s8 = int_to_ptr.hbm [resolvable:$true] %s13_s8 }
   0x2   :  { %s15_s10 = sshll.u32 %s143_s9, 4  ;;  %s16_s10 = int_to_ptr.vmem [resolvable:$true] %s15_s10 }
   0x3   :  { %18 = dma.hbm_to_vmem [thread:$0]  %s14_s8, 128, %s16_s10, [#allocation3]  }
   0x4   :  { %139 = dma.done.wait [#allocation3], 128  }
   0x5   :  { %140 = vsyncadd [#allocation3], 4294967168  ;;  %v23_v0 = vld [vmem:[#allocation2] sm:$0xff]  ;;  %s144_s0 = smov [#allocation5]   ;;  %s76_s14 = sshll.u32 %s162_s1, 4  ;;  %s77_s14 = int_to_ptr.hbm [resolvable:$true] %s76_s14 }
   0x6   :  { %v25_v1 = vmul.f32 0.70710677, %v23_v0  ;;  %v24_v36 = vmul.f32 0.5, %v23_v0  ;;  %s74_s11 = sshll.u32 %s144_s0, 4  ;;  %s75_s11 = int_to_ptr.vmem [resolvable:$true] %s74_s11 }
   0x8   :  { %v26_v2 = vmul.f32 %v25_v1, %v25_v1 }
   0xa   :  { %v27_v3 = vmin.f32 %v26_v2, 16.0 }
   0xc   :  { %v28_v4 = vmul.f32 2.1237322e-06, %v27_v3  ;;  %v39_v5 = vmul.f32 3.8918573e-05, %v27_v3 }
   0xe   :  { %v29_v6 = vadd.f32 0.00028619796, %v28_v4  ;;  %v40_v7 = vadd.f32 0.001143296, %v39_v5 }
  0x10   :  { %v30_v8 = vmul.f32 %v29_v6, %v27_v3  ;;  %v41_v9 = vmul.f32 %v40_v7, %v27_v3 }
  0x12   :  { %v31_v10 = vadd.f32 0.0036580483, %v30_v8  ;;  %v42_v11 = vadd.f32 0.014752088, %v41_v9 }
  0x14   :  { %v32_v12 = vmul.f32 %v31_v10, %v27_v3  ;;  %v43_v13 = vmul.f32 %v42_v11, %v27_v3 }
  0x16   :  { %v44_v14 = vadd.f32 0.112945676, %v43_v13  ;;  %v33_v15 = vadd.f32 0.05243302, %v32_v12 }
  0x18   :  { %v45_v16 = vmul.f32 %v44_v14, %v27_v3  ;;  %v34_v18 = vmul.f32 %v33_v15, %v27_v3 }
  0x1a   :  { %v46_v17 = vadd.f32 0.4994258, %v45_v16  ;;  %v35_v21 = vadd.f32 0.18741608, %v34_v18 }
  0x1c   :  { %v47_v19 = vmul.f32 %v46_v17, %v27_v3  ;;  %v36_v22 = vmul.f32 %v35_v21, %v27_v3 }
  0x1e   :  { %v48_v20 = vadd.f32 1.0, %v47_v19  ;;  %v37_v25 = vadd.f32 1.1283791, %v36_v22 }
  0x20   :  { %89 = vrcp.f32 %v48_v20  ;;  %v60_v26 = vand.u32 2147483648, %v48_v20  ;;  %vm54_vm0 = vweird.f32 %v48_v20  ;;  %v58_v28 = vand.u32 2147483647, %v48_v20 }
  0x21   :  { %v38_v31 = vmul.f32 %v37_v25, %v25_v1 }
  0x22   :  { %v61_v30 = vor.u32 1.1754944e-38, %v60_v26  ;;  %vm59_vm3 = vcmp.eq.f32.partialorder %v58_v28, 8.507059e+37 }
  0x26   :  { %v90_v23 = vpop.eup %89 }
  0x27   :  { %v50_v24 = vmul.f32 %v90_v23, %v48_v20  ;;  %vm55_vm1 = vweird.f32 %v90_v23 }
  0x28   :  { %vm56_vm2 = vmor %vm54_vm0, %vm55_vm1 }
  0x29   :  { %v51_v27 = vsub.f32 1.0, %v50_v24 }
  0x2b   :  { %v52_v29 = vmul.f32 %v90_v23, %v51_v27 }
  0x2d   :  { %v53_v32 = vadd.f32 %v90_v23, %v52_v29 }
  0x2f   :  { %v57_v33 = vsel %vm56_vm2, %v90_v23, %v53_v32 }
  0x30   :  { %v62_v34 = vsel %vm59_vm3, %v61_v30, %v57_v33 }
  0x31   :  { %v63_v35 = vmul.f32 %v62_v34, %v38_v31 }
  0x33   :  { %v86_v37 = vclamps-f32 %v63_v35, 1.0 }
  0x35   :  { %v66_v38 = vadd.f32 1.0, %v86_v37 }
  0x37   :  { %v67_v39 = vmul.f32 %v66_v38, %v24_v36 }
  0x39   :  { %68 = vst [vmem:[#allocation5] sm:$0xff] %v67_v39 }
  0x3a   :  { %79 = dma.vmem_to_hbm [thread:$0]  %s75_s11, 128, %s77_s14, [#allocation4]  }
  0x3b   :  { %141 = dma.done.wait [#allocation4], 128  }
  0x3c   :  { %142 = vsyncadd [#allocation4], 4294967168 }
  0x3d   :  { %84 = vsyncpa [#allocation3], 1 }
  0x3e   :  { %85 = vsyncpa [#allocation4], 1 }

// kernel: cct_forward.3
= control target key start
LH: loop header
LB: loop body
LE: loop exit
PB: predicated region body
PF: predicated region fallthrough
CT: control target
= control target key end

     0   :  { %s1153_s9 = smov 0   ;;  %s1379_s0 = inlined_call_operand.vmem [shape: bf16[2048,32], index: 0, kind: input, shape index: {}]   ;;  %s1380_s1 = inlined_call_operand.vmem [shape: bf16[32,64], index: 1, kind: input, shape index: {}]   ;;  %s1381_s2 = inlined_call_operand.vmem [shape: bf16[2048,64], index: 2, kind: output, shape index: {}]  }
   0x1 LB: > { %s903_s10 = sadd.s32 4294967295, %s1136_s9   ;;  %p907_p0 = scmp.ge.s32.totalorder %s1136_s9, 1  ;;  %s1136_s9 = sphi %s1153_s9, %s12_s9  }
   0x2   : > { %p113_p1 = scmp.lt.s32.totalorder %s1136_s9, 5 }
   0x4   : > { %p114_p2 = pnand %p907_p0, %p113_p1 }
   0x5   : > { %s908_s13 = sshll.u32 (!%p114_p2), %s903_s10, 6 }
   0x6   : > { %117 = sbr.rel (%p114_p2) target bundleno = 278 (0x116), region = 28  ;;  %p136_p3 = scmp.lt.s32.totalorder (!%p114_p2), %s908_s13, 255 }
   0xb   : > { %v1115_v0 = vld [vmem:[%s1380_s1 + $0x8] sm:$0xff]  ;;  %v1114_v1 = vld [vmem:[%s1380_s1] sm:$0xff]  ;;  %s1383_s13 = smov (!%p136_p3, %s908_s13), 255  ;;  %vm388_vm0 = vcmask 261120   ;;  %vm782_vm1 = vcmask 519168  }
   0xc   : > { %491 = vmatpush.bf16.msra.mxu0 %v1115_v0  ;;  %1116 = vmatpush.bf16.msra.mxu1 %v1115_v0  ;;  %s909_s16 = sshll.u32 %s1383_s13, 2 }
   0xd   : > { %1117 = vmatpush.bf16.msra.mxu2 %v1115_v0  ;;  %1118 = vmatpush.bf16.msra.mxu3 %v1115_v0  ;;  %s1175_s19 = scalar_lea.vmem %s1379_s0, %s909_s16  ;;  %s1246_s22 = scalar_lea.vmem %s1381_s2, %s909_s16 }
   0xe   : > { %v1082_v2 = vld [vmem:[%s1175_s19] sm:$0xff]  ;;  %v1083_v6 = vld [vmem:[%s1175_s19 + $0x8] sm:$0xff]  ;;  %v1084_v10 = vld [vmem:[%s1175_s19 + $0x10] sm:$0xff] }
   0xf   : > { %v1090_v3 = vld [vmem:[%s1175_s19 + $0x40] sm:$0xff]  ;;  %v1091_v7 = vld [vmem:[%s1175_s19 + $0x48] sm:$0xff]  ;;  %v1092_v11 = vld [vmem:[%s1175_s19 + $0x50] sm:$0xff] }
  0x10   : > { %492 = vmatpush.bf16.msra.mxu0 %v1114_v1  ;;  %1119 = vmatpush.bf16.msra.mxu1 %v1114_v1  ;;  %v1098_v4 = vld [vmem:[%s1175_s19 + $0x80] sm:$0xff]  ;;  %v1099_v8 = vld [vmem:[%s1175_s19 + $0x88] sm:$0xff]  ;;  %v1100_v12 = vld [vmem:[%s1175_s19 + $0x90] sm:$0xff] }
  0x11   : > { %1120 = vmatpush.bf16.msra.mxu2 %v1114_v1  ;;  %1121 = vmatpush.bf16.msra.mxu3 %v1114_v1  ;;  %v1106_v5 = vld [vmem:[%s1175_s19 + $0xc0] sm:$0xff]  ;;  %v1107_v9 = vld [vmem:[%s1175_s19 + $0xc8] sm:$0xff]  ;;  %v1108_v13 = vld [vmem:[%s1175_s19 + $0xd0] sm:$0xff] }
  0x12   : > { %v1085_v14 = vld [vmem:[%s1175_s19 + $0x18] sm:$0xff]  ;;  %v1086_v18 = vld [vmem:[%s1175_s19 + $0x20] sm:$0xff]  ;;  %v1087_v22 = vld [vmem:[%s1175_s19 + $0x28] sm:$0xff] }
  0x13   : > { %1048 = vmatmul.msk.bf16.vlgmr.msra.gmra.mxu0 %vm388_vm0, %v1082_v2  ;;  %1056 = vmatmul.msk.bf16.vlgmr.msra.gmra.mxu1 %vm388_vm0, %v1090_v3  ;;  %v1093_v15 = vld [vmem:[%s1175_s19 + $0x58] sm:$0xff]  ;;  %v1094_v19 = vld [vmem:[%s1175_s19 + $0x60] sm:$0xff]  ;;  %v1095_v23 = vld [vmem:[%s1175_s19 + $0x68] sm:$0xff] }
  0x14   : > { %1064 = vmatmul.msk.bf16.vlgmr.msra.gmra.mxu2 %vm388_vm0, %v1098_v4  ;;  %1072 = vmatmul.msk.bf16.vlgmr.msra.gmra.mxu3 %vm388_vm0, %v1106_v5  ;;  %v1101_v16 = vld [vmem:[%s1175_s19 + $0x98] sm:$0xff]  ;;  %v1102_v20 = vld [vmem:[%s1175_s19 + $0xa0] sm:$0xff]  ;;  %v1103_v24 = vld [vmem:[%s1175_s19 + $0xa8] sm:$0xff] }
  0x15   : > { %v1109_v17 = vld [vmem:[%s1175_s19 + $0xd8] sm:$0xff]  ;;  %v1110_v21 = vld [vmem:[%s1175_s19 + $0xe0] sm:$0xff]  ;;  %v1111_v25 = vld [vmem:[%s1175_s19 + $0xe8] sm:$0xff] }
  0x16   : > { %v1088_v26 = vld [vmem:[%s1175_s19 + $0x30] sm:$0xff]  ;;  %v1089_v30 = vld [vmem:[%s1175_s19 + $0x38] sm:$0xff] }
  0x17   : > { %v1096_v27 = vld [vmem:[%s1175_s19 + $0x70] sm:$0xff]  ;;  %v1097_v31 = vld [vmem:[%s1175_s19 + $0x78] sm:$0xff] }
  0x18   : > { %v1104_v28 = vld [vmem:[%s1175_s19 + $0xb0] sm:$0xff]  ;;  %v1105_v32 = vld [vmem:[%s1175_s19 + $0xb8] sm:$0xff] }
  0x19   : > { %v1112_v29 = vld [vmem:[%s1175_s19 + $0xf0] sm:$0xff]  ;;  %v1113_v33 = vld [vmem:[%s1175_s19 + $0xf8] sm:$0xff] }
  0x23   : > { %1049 = vmatmul.msk.bf16.gmra.mxu0 %vm388_vm0, %v1083_v6  ;;  %1057 = vmatmul.msk.bf16.gmra.mxu1 %vm388_vm0, %v1091_v7 }
  0x24   : > { %1065 = vmatmul.msk.bf16.gmra.mxu2 %vm388_vm0, %v1099_v8  ;;  %1073 = vmatmul.msk.bf16.gmra.mxu3 %vm388_vm0, %v1107_v9 }
  0x33   : > { %1050 = vmatmul.msk.bf16.gmra.mxu0 %vm388_vm0, %v1084_v10  ;;  %1058 = vmatmul.msk.bf16.gmra.mxu1 %vm388_vm0, %v1092_v11 }
  0x34   : > { %1066 = vmatmul.msk.bf16.gmra.mxu2 %vm388_vm0, %v1100_v12  ;;  %1074 = vmatmul.msk.bf16.gmra.mxu3 %vm388_vm0, %v1108_v13 }
  0x43   : > { %1051 = vmatmul.msk.bf16.gmra.mxu0 %vm388_vm0, %v1085_v14  ;;  %1059 = vmatmul.msk.bf16.gmra.mxu1 %vm388_vm0, %v1093_v15 }
  0x44   : > { %1067 = vmatmul.msk.bf16.gmra.mxu2 %vm388_vm0, %v1101_v16  ;;  %1075 = vmatmul.msk.bf16.gmra.mxu3 %vm388_vm0, %v1109_v17 }
  0x53   : > { %1052 = vmatmul.msk.bf16.gmra.mxu0 %vm388_vm0, %v1086_v18  ;;  %1060 = vmatmul.msk.bf16.gmra.mxu1 %vm388_vm0, %v1094_v19 }
  0x54   : > { %1068 = vmatmul.msk.bf16.gmra.mxu2 %vm388_vm0, %v1102_v20  ;;  %1076 = vmatmul.msk.bf16.gmra.mxu3 %vm388_vm0, %v1110_v21 }
  0x63   : > { %1053 = vmatmul.msk.bf16.gmra.mxu0 %vm388_vm0, %v1087_v22  ;;  %1061 = vmatmul.msk.bf16.gmra.mxu1 %vm388_vm0, %v1095_v23 }
  0x64   : > { %1069 = vmatmul.msk.bf16.gmra.mxu2 %vm388_vm0, %v1103_v24  ;;  %1077 = vmatmul.msk.bf16.gmra.mxu3 %vm388_vm0, %v1111_v25 }
  0x73   : > { %1054 = vmatmul.msk.bf16.gmra.mxu0 %vm388_vm0, %v1088_v26  ;;  %1062 = vmatmul.msk.bf16.gmra.mxu1 %vm388_vm0, %v1096_v27 }
  0x74   : > { %1070 = vmatmul.msk.bf16.gmra.mxu2 %vm388_vm0, %v1104_v28  ;;  %1078 = vmatmul.msk.bf16.gmra.mxu3 %vm388_vm0, %v1112_v29 }
  0x83   : > { %1055 = vmatmul.msk.bf16.gmra.mxu0 %vm388_vm0, %v1089_v30  ;;  %1063 = vmatmul.msk.bf16.gmra.mxu1 %vm388_vm0, %v1097_v31 }
  0x84   : > { %1071 = vmatmul.msk.bf16.gmra.mxu2 %vm388_vm0, %v1105_v32  ;;  %1079 = vmatmul.msk.bf16.gmra.mxu3 %vm388_vm0, %v1113_v33 }
  0x90   : > { %v494_v34 = vpop.f32.mrf.mxu0  ;;  %v534_v35 = vpop.f32.mrf.mxu1 }
  0x91   : > { %v654_v36 = vmax.f32 %v494_v34, 0.0  ;;  %v670_v37 = vmax.f32 %v534_v35, 0.0 }
  0x93   : > { %v718_v38 = vpack.c.bf16 %v654_v36, %v654_v36  ;;  %v734_v39 = vpack.c.bf16 %v670_v37, %v670_v37 }
  0x95   : > { %783 = vst.msk [vmem:[%s1246_s22] sm:$0xf] %vm782_vm1, %v718_v38 }
  0x96   : > { %799 = vst.msk [vmem:[%s1246_s22 + $0x40] sm:$0xf] %vm782_vm1, %v734_v39 }
  0x97   : > { %v574_v40 = vpop.f32.mrf.mxu2  ;;  %v614_v41 = vpop.f32.mrf.mxu3 }
  0x98   : > { %v686_v42 = vmax.f32 %v574_v40, 0.0  ;;  %v702_v43 = vmax.f32 %v614_v41, 0.0  ;;  %v496_v44 = vpop.f32.mrf.mxu0  ;;  %v536_v45 = vpop.f32.mrf.mxu1 }
  0x99   : > { %v655_v46 = vmax.f32 %v496_v44, 0.0  ;;  %v671_v47 = vmax.f32 %v536_v45, 0.0 }
  0x9a   : > { %v750_v48 = vpack.c.bf16 %v686_v42, %v686_v42  ;;  %v766_v49 = vpack.c.bf16 %v702_v43, %v702_v43 }
  0x9b   : > { %v719_v50 = vpack.c.bf16 %v655_v46, %v655_v46  ;;  %v735_v51 = vpack.c.bf16 %v671_v47, %v671_v47 }
  0x9c   : > { %815 = vst.msk [vmem:[%s1246_s22 + $0x80] sm:$0xf] %vm782_vm1, %v750_v48 }
  0x9d   : > { %831 = vst.msk [vmem:[%s1246_s22 + $0xc0] sm:$0xf] %vm782_vm1, %v766_v49 }
  0x9e   : > { %784 = vst.msk [vmem:[%s1246_s22 + $0x4] sm:$0xf] %vm782_vm1, %v719_v50 }
  0x9f   : > { %800 = vst.msk [vmem:[%s1246_s22 + $0x44] sm:$0xf] %vm782_vm1, %v735_v51  ;;  %v576_v52 = vpop.f32.mrf.mxu2  ;;  %v616_v53 = vpop.f32.mrf.mxu3 }
  0xa0   : > { %v687_v54 = vmax.f32 %v576_v52, 0.0  ;;  %v703_v55 = vmax.f32 %v616_v53, 0.0  ;;  %v499_v56 = vpop.f32.mrf.mxu0  ;;  %v539_v57 = vpop.f32.mrf.mxu1 }
  0xa1   : > { %v656_v58 = vmax.f32 %v499_v56, 0.0  ;;  %v672_v59 = vmax.f32 %v539_v57, 0.0 }
  0xa2   : > { %v751_v60 = vpack.c.bf16 %v687_v54, %v687_v54  ;;  %v767_v61 = vpack.c.bf16 %v703_v55, %v703_v55 }
  0xa3   : > { %v720_v62 = vpack.c.bf16 %v656_v58, %v656_v58  ;;  %v736_v63 = vpack.c.bf16 %v672_v59, %v672_v59 }
  0xa4   : > { %816 = vst.msk [vmem:[%s1246_s22 + $0x84] sm:$0xf] %vm782_vm1, %v751_v60 }
  0xa5   : > { %832 = vst.msk [vmem:[%s1246_s22 + $0xc4] sm:$0xf] %vm782_vm1, %v767_v61 }
  0xa6   : > { %785 = vst.msk [vmem:[%s1246_s22 + $0x8] sm:$0xf] %vm782_vm1, %v720_v62 }
  0xa7   : > { %801 = vst.msk [vmem:[%s1246_s22 + $0x48] sm:$0xf] %vm782_vm1, %v736_v63  ;;  %v579_v0 = vpop.f32.mrf.mxu2  ;;  %v619_v1 = vpop.f32.mrf.mxu3 }
  0xa8   : > { %v688_v2 = vmax.f32 %v579_v0, 0.0  ;;  %v704_v3 = vmax.f32 %v619_v1, 0.0  ;;  %v501_v4 = vpop.f32.mrf.mxu0  ;;  %v541_v5 = vpop.f32.mrf.mxu1 }
  0xa9   : > { %v657_v6 = vmax.f32 %v501_v4, 0.0  ;;  %v673_v7 = vmax.f32 %v541_v5, 0.0 }
  0xaa   : > { %v752_v8 = vpack.c.bf16 %v688_v2, %v688_v2  ;;  %v768_v9 = vpack.c.bf16 %v704_v3, %v704_v3 }
  0xab   : > { %v721_v10 = vpack.c.bf16 %v657_v6, %v657_v6  ;;  %v737_v11 = vpack.c.bf16 %v673_v7, %v673_v7 }
  0xac   : > { %817 = vst.msk [vmem:[%s1246_s22 + $0x88] sm:$0xf] %vm782_vm1, %v752_v8 }
  0xad   : > { %833 = vst.msk [vmem:[%s1246_s22 + $0xc8] sm:$0xf] %vm782_vm1, %v768_v9 }
  0xae   : > { %786 = vst.msk [vmem:[%s1246_s22 + $0xc] sm:$0xf] %vm782_vm1, %v721_v10 }
  0xaf   : > { %802 = vst.msk [vmem:[%s1246_s22 + $0x4c] sm:$0xf] %vm782_vm1, %v737_v11  ;;  %v581_v12 = vpop.f32.mrf.mxu2  ;;  %v621_v13 = vpop.f32.mrf.mxu3 }
  0xb0   : > { %v689_v14 = vmax.f32 %v581_v12, 0.0  ;;  %v705_v15 = vmax.f32 %v621_v13, 0.0  ;;  %v504_v16 = vpop.f32.mrf.mxu0  ;;  %v544_v17 = vpop.f32.mrf.mxu1 }
  0xb1   : > { %v658_v18 = vmax.f32 %v504_v16, 0.0  ;;  %v674_v19 = vmax.f32 %v544_v17, 0.0 }
  0xb2   : > { %v753_v20 = vpack.c.bf16 %v689_v14, %v689_v14  ;;  %v769_v21 = vpack.c.bf16 %v705_v15, %v705_v15 }
  0xb3   : > { %v722_v22 = vpack.c.bf16 %v658_v18, %v658_v18  ;;  %v738_v23 = vpack.c.bf16 %v674_v19, %v674_v19 }
  0xb4   : > { %818 = vst.msk [vmem:[%s1246_s22 + $0x8c] sm:$0xf] %vm782_vm1, %v753_v20 }
  0xb5   : > { %834 = vst.msk [vmem:[%s1246_s22 + $0xcc] sm:$0xf] %vm782_vm1, %v769_v21 }
  0xb6   : > { %787 = vst.msk [vmem:[%s1246_s22 + $0x10] sm:$0xf] %vm782_vm1, %v722_v22 }
  0xb7   : > { %803 = vst.msk [vmem:[%s1246_s22 + $0x50] sm:$0xf] %vm782_vm1, %v738_v23  ;;  %v584_v24 = vpop.f32.mrf.mxu2  ;;  %v624_v25 = vpop.f32.mrf.mxu3 }
  0xb8   : > { %v690_v26 = vmax.f32 %v584_v24, 0.0  ;;  %v706_v27 = vmax.f32 %v624_v25, 0.0  ;;  %v506_v28 = vpop.f32.mrf.mxu0  ;;  %v546_v29 = vpop.f32.mrf.mxu1 }
  0xb9   : > { %v659_v30 = vmax.f32 %v506_v28, 0.0  ;;  %v675_v31 = vmax.f32 %v546_v29, 0.0 }
  0xba   : > { %v754_v32 = vpack.c.bf16 %v690_v26, %v690_v26  ;;  %v770_v33 = vpack.c.bf16 %v706_v27, %v706_v27 }
  0xbb   : > { %v723_v34 = vpack.c.bf16 %v659_v30, %v659_v30  ;;  %v739_v35 = vpack.c.bf16 %v675_v31, %v675_v31 }
  0xbc   : > { %819 = vst.msk [vmem:[%s1246_s22 + $0x90] sm:$0xf] %vm782_vm1, %v754_v32 }
  0xbd   : > { %835 = vst.msk [vmem:[%s1246_s22 + $0xd0] sm:$0xf] %vm782_vm1, %v770_v33 }
  0xbe   : > { %788 = vst.msk [vmem:[%s1246_s22 + $0x14] sm:$0xf] %vm782_vm1, %v723_v34 }
  0xbf   : > { %804 = vst.msk [vmem:[%s1246_s22 + $0x54] sm:$0xf] %vm782_vm1, %v739_v35  ;;  %v586_v36 = vpop.f32.mrf.mxu2  ;;  %v626_v37 = vpop.f32.mrf.mxu3 }
  0xc0   : > { %v691_v38 = vmax.f32 %v586_v36, 0.0  ;;  %v707_v39 = vmax.f32 %v626_v37, 0.0  ;;  %v509_v40 = vpop.f32.mrf.mxu0  ;;  %v549_v41 = vpop.f32.mrf.mxu1 }
  0xc1   : > { %v660_v42 = vmax.f32 %v509_v40, 0.0  ;;  %v676_v43 = vmax.f32 %v549_v41, 0.0 }
  0xc2   : > { %v755_v44 = vpack.c.bf16 %v691_v38, %v691_v38  ;;  %v771_v45 = vpack.c.bf16 %v707_v39, %v707_v39 }
  0xc3   : > { %v724_v46 = vpack.c.bf16 %v660_v42, %v660_v42  ;;  %v740_v47 = vpack.c.bf16 %v676_v43, %v676_v43 }
  0xc4   : > { %820 = vst.msk [vmem:[%s1246_s22 + $0x94] sm:$0xf] %vm782_vm1, %v755_v44 }
  0xc5   : > { %836 = vst.msk [vmem:[%s1246_s22 + $0xd4] sm:$0xf] %vm782_vm1, %v771_v45 }
  0xc6   : > { %789 = vst.msk [vmem:[%s1246_s22 + $0x18] sm:$0xf] %vm782_vm1, %v724_v46 }
  0xc7   : > { %805 = vst.msk [vmem:[%s1246_s22 + $0x58] sm:$0xf] %vm782_vm1, %v740_v47  ;;  %v589_v48 = vpop.f32.mrf.mxu2  ;;  %v629_v49 = vpop.f32.mrf.mxu3 }
  0xc8   : > { %v692_v50 = vmax.f32 %v589_v48, 0.0  ;;  %v708_v51 = vmax.f32 %v629_v49, 0.0  ;;  %v511_v52 = vpop.f32.mrf.mxu0  ;;  %v551_v53 = vpop.f32.mrf.mxu1 }
  0xc9   : > { %v661_v54 = vmax.f32 %v511_v52, 0.0  ;;  %v677_v55 = vmax.f32 %v551_v53, 0.0 }
  0xca   : > { %v756_v56 = vpack.c.bf16 %v692_v50, %v692_v50  ;;  %v772_v57 = vpack.c.bf16 %v708_v51, %v708_v51 }
  0xcb   : > { %v725_v58 = vpack.c.bf16 %v661_v54, %v661_v54  ;;  %v741_v59 = vpack.c.bf16 %v677_v55, %v677_v55 }
  0xcc   : > { %821 = vst.msk [vmem:[%s1246_s22 + $0x98] sm:$0xf] %vm782_vm1, %v756_v56 }
  0xcd   : > { %837 = vst.msk [vmem:[%s1246_s22 + $0xd8] sm:$0xf] %vm782_vm1, %v772_v57 }
  0xce   : > { %790 = vst.msk [vmem:[%s1246_s22 + $0x1c] sm:$0xf] %vm782_vm1, %v725_v58 }
  0xcf   : > { %806 = vst.msk [vmem:[%s1246_s22 + $0x5c] sm:$0xf] %vm782_vm1, %v741_v59  ;;  %v591_v60 = vpop.f32.mrf.mxu2  ;;  %v631_v61 = vpop.f32.mrf.mxu3 }
  0xd0   : > { %v693_v62 = vmax.f32 %v591_v60, 0.0  ;;  %v709_v63 = vmax.f32 %v631_v61, 0.0  ;;  %v514_v0 = vpop.f32.mrf.mxu0  ;;  %v554_v1 = vpop.f32.mrf.mxu1 }
  0xd1   : > { %v662_v2 = vmax.f32 %v514_v0, 0.0  ;;  %v678_v3 = vmax.f32 %v554_v1, 0.0 }
  0xd2   : > { %v757_v4 = vpack.c.bf16 %v693_v62, %v693_v62  ;;  %v773_v5 = vpack.c.bf16 %v709_v63, %v709_v63 }
  0xd3   : > { %v726_v6 = vpack.c.bf16 %v662_v2, %v662_v2  ;;  %v742_v7 = vpack.c.bf16 %v678_v3, %v678_v3 }
  0xd4   : > { %822 = vst.msk [vmem:[%s1246_s22 + $0x9c] sm:$0xf] %vm782_vm1, %v757_v4 }
  0xd5   : > { %838 = vst.msk [vmem:[%s1246_s22 + $0xdc] sm:$0xf] %vm782_vm1, %v773_v5 }
  0xd6   : > { %791 = vst.msk [vmem:[%s1246_s22 + $0x20] sm:$0xf] %vm782_vm1, %v726_v6 }
  0xd7   : > { %807 = vst.msk [vmem:[%s1246_s22 + $0x60] sm:$0xf] %vm782_vm1, %v742_v7  ;;  %v594_v8 = vpop.f32.mrf.mxu2  ;;  %v634_v9 = vpop.f32.mrf.mxu3 }
  0xd8   : > { %v694_v10 = vmax.f32 %v594_v8, 0.0  ;;  %v710_v11 = vmax.f32 %v634_v9, 0.0  ;;  %v516_v12 = vpop.f32.mrf.mxu0  ;;  %v556_v13 = vpop.f32.mrf.mxu1 }
  0xd9   : > { %v663_v14 = vmax.f32 %v516_v12, 0.0  ;;  %v679_v15 = vmax.f32 %v556_v13, 0.0 }
  0xda   : > { %v758_v16 = vpack.c.bf16 %v694_v10, %v694_v10  ;;  %v774_v17 = vpack.c.bf16 %v710_v11, %v710_v11 }
  0xdb   : > { %v727_v18 = vpack.c.bf16 %v663_v14, %v663_v14  ;;  %v743_v19 = vpack.c.bf16 %v679_v15, %v679_v15 }
  0xdc   : > { %823 = vst.msk [vmem:[%s1246_s22 + $0xa0] sm:$0xf] %vm782_vm1, %v758_v16 }
  0xdd   : > { %839 = vst.msk [vmem:[%s1246_s22 + $0xe0] sm:$0xf] %vm782_vm1, %v774_v17 }
  0xde   : > { %792 = vst.msk [vmem:[%s1246_s22 + $0x24] sm:$0xf] %vm782_vm1, %v727_v18 }
  0xdf   : > { %808 = vst.msk [vmem:[%s1246_s22 + $0x64] sm:$0xf] %vm782_vm1, %v743_v19  ;;  %v596_v20 = vpop.f32.mrf.mxu2  ;;  %v636_v21 = vpop.f32.mrf.mxu3 }
  0xe0   : > { %v695_v22 = vmax.f32 %v596_v20, 0.0  ;;  %v711_v23 = vmax.f32 %v636_v21, 0.0  ;;  %v519_v24 = vpop.f32.mrf.mxu0  ;;  %v559_v25 = vpop.f32.mrf.mxu1 }
  0xe1   : > { %v664_v26 = vmax.f32 %v519_v24, 0.0  ;;  %v680_v27 = vmax.f32 %v559_v25, 0.0 }
  0xe2   : > { %v759_v28 = vpack.c.bf16 %v695_v22, %v695_v22  ;;  %v775_v29 = vpack.c.bf16 %v711_v23, %v711_v23 }
  0xe3   : > { %v728_v30 = vpack.c.bf16 %v664_v26, %v664_v26  ;;  %v744_v31 = vpack.c.bf16 %v680_v27, %v680_v27 }
  0xe4   : > { %824 = vst.msk [vmem:[%s1246_s22 + $0xa4] sm:$0xf] %vm782_vm1, %v759_v28 }
  0xe5   : > { %840 = vst.msk [vmem:[%s1246_s22 + $0xe4] sm:$0xf] %vm782_vm1, %v775_v29 }
  0xe6   : > { %793 = vst.msk [vmem:[%s1246_s22 + $0x28] sm:$0xf] %vm782_vm1, %v728_v30 }
  0xe7   : > { %809 = vst.msk [vmem:[%s1246_s22 + $0x68] sm:$0xf] %vm782_vm1, %v744_v31  ;;  %v599_v32 = vpop.f32.mrf.mxu2  ;;  %v639_v33 = vpop.f32.mrf.mxu3 }
  0xe8   : > { %v696_v34 = vmax.f32 %v599_v32, 0.0  ;;  %v712_v35 = vmax.f32 %v639_v33, 0.0  ;;  %v521_v36 = vpop.f32.mrf.mxu0  ;;  %v561_v37 = vpop.f32.mrf.mxu1 }
  0xe9   : > { %v665_v38 = vmax.f32 %v521_v36, 0.0  ;;  %v681_v39 = vmax.f32 %v561_v37, 0.0 }
  0xea   : > { %v760_v40 = vpack.c.bf16 %v696_v34, %v696_v34  ;;  %v776_v41 = vpack.c.bf16 %v712_v35, %v712_v35 }
  0xeb   : > { %v729_v42 = vpack.c.bf16 %v665_v38, %v665_v38  ;;  %v745_v43 = vpack.c.bf16 %v681_v39, %v681_v39 }
  0xec   : > { %825 = vst.msk [vmem:[%s1246_s22 + $0xa8] sm:$0xf] %vm782_vm1, %v760_v40 }
  0xed   : > { %841 = vst.msk [vmem:[%s1246_s22 + $0xe8] sm:$0xf] %vm782_vm1, %v776_v41 }
  0xee   : > { %794 = vst.msk [vmem:[%s1246_s22 + $0x2c] sm:$0xf] %vm782_vm1, %v729_v42 }
  0xef   : > { %810 = vst.msk [vmem:[%s1246_s22 + $0x6c] sm:$0xf] %vm782_vm1, %v745_v43  ;;  %v601_v44 = vpop.f32.mrf.mxu2  ;;  %v641_v45 = vpop.f32.mrf.mxu3 }
  0xf0   : > { %v697_v46 = vmax.f32 %v601_v44, 0.0  ;;  %v713_v47 = vmax.f32 %v641_v45, 0.0  ;;  %v524_v48 = vpop.f32.mrf.mxu0  ;;  %v564_v49 = vpop.f32.mrf.mxu1 }
  0xf1   : > { %v666_v50 = vmax.f32 %v524_v48, 0.0  ;;  %v682_v51 = vmax.f32 %v564_v49, 0.0 }
  0xf2   : > { %v761_v52 = vpack.c.bf16 %v697_v46, %v697_v46  ;;  %v777_v53 = vpack.c.bf16 %v713_v47, %v713_v47 }
  0xf3   : > { %v730_v54 = vpack.c.bf16 %v666_v50, %v666_v50  ;;  %v746_v55 = vpack.c.bf16 %v682_v51, %v682_v51 }
  0xf4   : > { %826 = vst.msk [vmem:[%s1246_s22 + $0xac] sm:$0xf] %vm782_vm1, %v761_v52 }
  0xf5   : > { %842 = vst.msk [vmem:[%s1246_s22 + $0xec] sm:$0xf] %vm782_vm1, %v777_v53 }
  0xf6   : > { %795 = vst.msk [vmem:[%s1246_s22 + $0x30] sm:$0xf] %vm782_vm1, %v730_v54 }
  0xf7   : > { %811 = vst.msk [vmem:[%s1246_s22 + $0x70] sm:$0xf] %vm782_vm1, %v746_v55  ;;  %v604_v56 = vpop.f32.mrf.mxu2  ;;  %v644_v57 = vpop.f32.mrf.mxu3 }
  0xf8   : > { %v698_v58 = vmax.f32 %v604_v56, 0.0  ;;  %v714_v59 = vmax.f32 %v644_v57, 0.0  ;;  %v526_v60 = vpop.f32.mrf.mxu0  ;;  %v566_v61 = vpop.f32.mrf.mxu1 }
  0xf9   : > { %v667_v62 = vmax.f32 %v526_v60, 0.0  ;;  %v683_v63 = vmax.f32 %v566_v61, 0.0 }
  0xfa   : > { %v762_v0 = vpack.c.bf16 %v698_v58, %v698_v58  ;;  %v778_v1 = vpack.c.bf16 %v714_v59, %v714_v59 }
  0xfb   : > { %v731_v2 = vpack.c.bf16 %v667_v62, %v667_v62  ;;  %v747_v3 = vpack.c.bf16 %v683_v63, %v683_v63 }
  0xfc   : > { %827 = vst.msk [vmem:[%s1246_s22 + $0xb0] sm:$0xf] %vm782_vm1, %v762_v0 }
  0xfd   : > { %843 = vst.msk [vmem:[%s1246_s22 + $0xf0] sm:$0xf] %vm782_vm1, %v778_v1 }
  0xfe   : > { %796 = vst.msk [vmem:[%s1246_s22 + $0x34] sm:$0xf] %vm782_vm1, %v731_v2 }
  0xff   : > { %812 = vst.msk [vmem:[%s1246_s22 + $0x74] sm:$0xf] %vm782_vm1, %v747_v3  ;;  %v606_v4 = vpop.f32.mrf.mxu2  ;;  %v646_v5 = vpop.f32.mrf.mxu3 }
 0x100   : > { %v699_v6 = vmax.f32 %v606_v4, 0.0  ;;  %v715_v7 = vmax.f32 %v646_v5, 0.0  ;;  %v529_v8 = vpop.f32.mrf.mxu0  ;;  %v569_v9 = vpop.f32.mrf.mxu1 }
 0x101   : > { %v668_v10 = vmax.f32 %v529_v8, 0.0  ;;  %v684_v11 = vmax.f32 %v569_v9, 0.0 }
 0x102   : > { %v763_v12 = vpack.c.bf16 %v699_v6, %v699_v6  ;;  %v779_v13 = vpack.c.bf16 %v715_v7, %v715_v7 }
 0x103   : > { %v732_v14 = vpack.c.bf16 %v668_v10, %v668_v10  ;;  %v748_v15 = vpack.c.bf16 %v684_v11, %v684_v11 }
 0x104   : > { %828 = vst.msk [vmem:[%s1246_s22 + $0xb4] sm:$0xf] %vm782_vm1, %v763_v12 }
 0x105   : > { %844 = vst.msk [vmem:[%s1246_s22 + $0xf4] sm:$0xf] %vm782_vm1, %v779_v13 }
 0x106   : > { %797 = vst.msk [vmem:[%s1246_s22 + $0x38] sm:$0xf] %vm782_vm1, %v732_v14 }
 0x107   : > { %813 = vst.msk [vmem:[%s1246_s22 + $0x78] sm:$0xf] %vm782_vm1, %v748_v15  ;;  %v609_v16 = vpop.f32.mrf.mxu2  ;;  %v649_v17 = vpop.f32.mrf.mxu3 }
 0x108   : > { %v700_v18 = vmax.f32 %v609_v16, 0.0  ;;  %v716_v19 = vmax.f32 %v649_v17, 0.0  ;;  %v531_v20 = vpop.f32.mrf.mxu0  ;;  %v571_v21 = vpop.f32.mrf.mxu1 }
 0x109   : > { %v669_v22 = vmax.f32 %v531_v20, 0.0  ;;  %v685_v23 = vmax.f32 %v571_v21, 0.0 }
 0x10a   : > { %v764_v24 = vpack.c.bf16 %v700_v18, %v700_v18  ;;  %v780_v25 = vpack.c.bf16 %v716_v19, %v716_v19 }
 0x10b   : > { %v733_v26 = vpack.c.bf16 %v669_v22, %v669_v22  ;;  %v749_v27 = vpack.c.bf16 %v685_v23, %v685_v23 }
 0x10c   : > { %829 = vst.msk [vmem:[%s1246_s22 + $0xb8] sm:$0xf] %vm782_vm1, %v764_v24 }
 0x10d   : > { %845 = vst.msk [vmem:[%s1246_s22 + $0xf8] sm:$0xf] %vm782_vm1, %v780_v25 }
 0x10e   : > { %798 = vst.msk [vmem:[%s1246_s22 + $0x3c] sm:$0xf] %vm782_vm1, %v733_v26 }
 0x10f   : > { %814 = vst.msk [vmem:[%s1246_s22 + $0x7c] sm:$0xf] %vm782_vm1, %v749_v27  ;;  %v611_v28 = vpop.f32.mrf.mxu2  ;;  %v651_v29 = vpop.f32.mrf.mxu3 }
 0x110   : > { %v701_v30 = vmax.f32 %v611_v28, 0.0  ;;  %v717_v31 = vmax.f32 %v651_v29, 0.0 }
 0x112   : > { %v765_v32 = vpack.c.bf16 %v701_v30, %v701_v30  ;;  %v781_v33 = vpack.c.bf16 %v717_v31, %v717_v31 }
 0x114   : > { %830 = vst.msk [vmem:[%s1246_s22 + $0xbc] sm:$0xf] %vm782_vm1, %v765_v32 }
 0x115   : > { %846 = vst.msk [vmem:[%s1246_s22 + $0xfc] sm:$0xf] %vm782_vm1, %v781_v33 }
 0x116 PF: > { %s12_s9 = sadd.s32 1, %s1136_s9  }
 0x117   : > { %p9_p4 = scmp.ge.s32.totalorder %s12_s9, 6  }
 0x119   :  { %11 = sbr.rel (!%p9_p4) target bundleno = 1 (0x1), region = 58 }

// kernel: cct_forward.4
= control target key start
LH: loop header
LB: loop body
LE: loop exit
PB: predicated region body
PF: predicated region fallthrough
CT: control target
= control target key end

     0   :  { %s5528_s9 = smov 0   ;;  %s6948_s0 = inlined_call_operand.vmem [shape: bf16[2,18,18,64], index: 0, kind: input, shape index: {}]   ;;  %s6949_s1 = inlined_call_operand.vmem [shape: bf16[9,64,128], index: 1, kind: input, shape index: {}]   ;;  %s6950_s2 = inlined_call_operand.vmem [shape: bf16[2,256,128], index: 2, kind: output, shape index: {}]  }
   0x1 LB: > { %s4458_s10 = sadd.s32 4294967295, %s5511_s9   ;;  %p4462_p0 = scmp.ge.s32.totalorder %s5511_s9, 1  ;;  %s5511_s9 = sphi %s5528_s9, %s12_s9  }
   0x2   : > { %p112_p1 = scmp.lt.s32.totalorder %s5511_s9, 3 }
   0x4   : > { %p113_p2 = pnand %p4462_p0, %p112_p1 }
   0x6   : > { %116 = sbr.rel (%p113_p2) target bundleno = 758 (0x2f6), region = 28 }
   0xb   : > { %v5276_v0 = vld [vmem:[%s6949_s1 + $0x38] sm:$0xff]  ;;  %p134_p3 = scmp.lt.s32.totalorder %s4458_s10, 1  ;;  %v5275_v1 = vld [vmem:[%s6949_s1 + $0x30] sm:$0xff]  ;;  %v5274_v2 = vld [vmem:[%s6949_s1 + $0x28] sm:$0xff]  ;;  %vm201_vm0 = vsmask.f32 3328 }
   0xc   : > { %5432 = vmatpush.bf16.msra.mxu1 %v5276_v0  ;;  %5433 = vmatpush.bf16.msra.mxu2 %v5276_v0  ;;  %vm202_vm1 = vsmask.f32 7440  ;;  %v5273_v6 = vld [vmem:[%s6949_s1 + $0x20] sm:$0xff]  ;;  %v5280_v30 = vld [vmem:[%s6949_s1 + $0x58] sm:$0xff]  ;;  %vm669_vm3 = vcmask 523264   ;;  %vm1096_vm4 = vcmask 1042432  }
   0xd   : > { %s6962_s10 = smov (!%p134_p3, %s4458_s10), 1  ;;  %5434 = vmatpush.bf16.msra.mxu3 %v5276_v0  ;;  %722 = vmatpush.bf16.msra.mxu0 %v5276_v0  ;;  %v5300_v31 = vld [vmem:[%s6949_s1 + $0x78] sm:$0xff]  ;;  %vm5572_vm2 = vmor %vm201_vm0, %vm202_vm1  ;;  %vm1097_vm5 = vcmask 1046532  }
   0xe   : > { %s5444_s15 = smul.u32 216, %s6962_s10  ;;  %v5272_v36 = vld [vmem:[%s6949_s1 + $0x18] sm:$0xff]  ;;  %vm5790_vm6 = vmor %vm1096_vm4, %vm1097_vm5  ;;  %s5252_s11 = sshll.u32 %s6962_s10, 7 }
   0xf   : > { %v5304_v37 = vld [vmem:[%s6949_s1 + $0x98] sm:$0xff]  ;;  %s6708_s13 = scalar_lea.vmem %s6950_s2, %s5252_s11 }
  0x10   : > { %5435 = vmatpush.bf16.msra.mxu1 %v5275_v1  ;;  %5436 = vmatpush.bf16.msra.mxu2 %v5275_v1  ;;  %s5551_s20 = scalar_lea.vmem %s6948_s0, %s5444_s15 }
  0x11   : > { %5437 = vmatpush.bf16.msra.mxu3 %v5275_v1  ;;  %723 = vmatpush.bf16.msra.mxu0 %v5275_v1  ;;  %v153_v3 = vld [vmem:[%s5551_s20 + $0x30] sm:$0xf]  ;;  %v154_v4 = vld [vmem:[%s5551_s20 + $0x34] sm:$0xf]  ;;  %v189_v5 = vld [vmem:[%s5551_s20 + $0x38] sm:$0x1] }
  0x12   : > { %v301_v7 = vshrl.u32 %v153_v3, 16  ;;  %v304_v8 = vshll.u32 %v153_v3, 16  ;;  %v310_v9 = vshll.u32 %v154_v4, 16  ;;  %v314_v10 = vshrl.u32 %v154_v4, 16  ;;  %v161_v11 = vld [vmem:[%s5551_s20 + $0x60] sm:$0xf] }
  0x13   : > { %v320_v12 = vshll.u32 %v189_v5, 16  ;;  %v162_v13 = vld [vmem:[%s5551_s20 + $0x64] sm:$0xf]  ;;  %v193_v14 = vld [vmem:[%s5551_s20 + $0x68] sm:$0x1]  ;;  %v397_v15 = vshrl.u32 %v161_v11, 16 }
  0x14   : > { %5438 = vmatpush.bf16.msra.mxu1 %v5274_v2  ;;  %5439 = vmatpush.bf16.msra.mxu2 %v5274_v2  ;;  %v303_v16 = vrot.slane %v301_v7, 4  ;;  %v306_v17 = vrot.slane %v304_v8, 5  ;;  %v312_v18 = vrot.slane %v310_v9, 5  ;;  %v316_v19 = vrot.slane %v314_v10, 4  ;;  %v169_v20 = vld [vmem:[%s5551_s20 + $0x90] sm:$0xf] }
  0x15   : > { %5440 = vmatpush.bf16.msra.mxu3 %v5274_v2  ;;  %724 = vmatpush.bf16.msra.mxu0 %v5274_v2  ;;  %v322_v21 = vrot.slane %v320_v12, 5  ;;  %v399_v22 = vrot.slane %v397_v15, 4  ;;  %v400_v23 = vshll.u32 %v161_v11, 16  ;;  %v406_v24 = vshll.u32 %v162_v13, 16  ;;  %v170_v29 = vld [vmem:[%s5551_s20 + $0x94] sm:$0xf] }
  0x16   : > { %v307_v25 = vor.u32 %v306_v17, %v303_v16  ;;  %v317_v26 = vor.u32 %v316_v19, %v312_v18  ;;  %v410_v27 = vshrl.u32 %v162_v13, 16  ;;  %v416_v28 = vshll.u32 %v193_v14, 16  ;;  %v197_v43 = vld [vmem:[%s5551_s20 + $0x98] sm:$0x1]  ;;  %v145_v59 = vld [vmem:[%s5551_s20] sm:$0xf] }
  0x17   : > { %v402_v33 = vrot.slane %v400_v23, 5  ;;  %v408_v34 = vrot.slane %v406_v24, 5  ;;  %v493_v35 = vshrl.u32 %v169_v20, 16  ;;  %v496_v45 = vshll.u32 %v169_v20, 16  ;;  %v5591_v63 = vld [vmem:[%s5551_s20 + $0x4] sm:$0xf] }
  0x18   : > { %5441 = vmatpush.bf16.msra.mxu1 %v5273_v6  ;;  %5442 = vmatpush.bf16.msra.mxu2 %v5273_v6  ;;  %v308_v38 = vrot.slane %v307_v25, 4  ;;  %v318_v39 = vrot.slane %v317_v26, 4  ;;  %v412_v40 = vrot.slane %v410_v27, 4  ;;  %v418_v41 = vrot.slane %v416_v28, 5  ;;  %v5594_v0 = vld [vmem:[%s5551_s20 + $0x8] sm:$0x1] }
  0x19   : > { %5443 = vmatpush.bf16.msra.mxu3 %v5273_v6  ;;  %725 = vmatpush.bf16.msra.mxu0 %v5273_v6  ;;  %v403_v42 = vor.u32 %v402_v33, %v399_v22  ;;  %v495_v44 = vrot.slane %v493_v35, 4  ;;  %v502_v46 = vshll.u32 %v170_v29, 16  ;;  %v506_v50 = vshrl.u32 %v170_v29, 16  ;;  %v5279_v1 = vld [vmem:[%s6949_s1 + $0x50] sm:$0xff]  ;;  %v155_v10 = vld [vmem:[%s5551_s20 + $0x3c] sm:$0xf] }
  0x1a   : > { %v313_v47 = vsel %vm5572_vm2, %v308_v38, %v312_v18  ;;  %v323_v48 = vsel %vm5572_vm2, %v318_v39, %v322_v21  ;;  %v413_v49 = vor.u32 %v412_v40, %v408_v34  ;;  %v498_v54 = vrot.slane %v496_v45, 5  ;;  %v156_v15 = vld [vmem:[%s5551_s20 + $0x40] sm:$0xf]  ;;  %v5299_v20 = vld [vmem:[%s6949_s1 + $0x70] sm:$0xff]  ;;  %v190_v27 = vld [vmem:[%s5551_s20 + $0x44] sm:$0x1] }
  0x1b   : > { %v605_v51 = vunpack.c.l.b16 %v313_v47  ;;  %v606_v52 = vunpack.c.l.b16 %v323_v48  ;;  %v404_v53 = vrot.slane %v403_v42, 4  ;;  %v504_v56 = vrot.slane %v502_v46, 5  ;;  %v5271_v21 = vld [vmem:[%s6949_s1 + $0x10] sm:$0xff] }
  0x1c   : > { %1344 = vmatpush.bf16.msrb.mxu2 %v5280_v30  ;;  %963 = vmatpush.bf16.msrb.mxu1 %v5272_v36  ;;  %v414_v55 = vrot.slane %v413_v49, 4  ;;  %v508_v57 = vrot.slane %v506_v50, 4  ;;  %v512_v58 = vshll.u32 %v197_v43, 16  ;;  %v499_v62 = vor.u32 %v498_v54, %v495_v44  ;;  %v5303_v22 = vld [vmem:[%s6949_s1 + $0x90] sm:$0xff]  ;;  %v163_v36 = vld [vmem:[%s5551_s20 + $0x6c] sm:$0xf] }
  0x1d   : > { %1659 = vmatpush.bf16.msrb.mxu3 %v5300_v31  ;;  %2341 = vmatpush.bf16.msrb.mxu0 %v5304_v37  ;;  %v633_v60 = vpack.c.b16 %v606_v52, %v605_v51  ;;  %v409_v61 = vsel %vm5572_vm2, %v404_v53, %v408_v34  ;;  %v205_v8 = vshrl.u32 %v145_v59, 16  ;;  %v208_v9 = vshll.u32 %v145_v59, 16  ;;  %v164_v45 = vld [vmem:[%s5551_s20 + $0x70] sm:$0xf]  ;;  %v194_v49 = vld [vmem:[%s5551_s20 + $0x74] sm:$0x1] }
  0x1e   : > { %v419_v2 = vsel %vm5572_vm2, %v414_v55, %v418_v41  ;;  %v613_v3 = vunpack.c.l.b16 %v409_v61  ;;  %v509_v4 = vor.u32 %v508_v57, %v504_v56  ;;  %v514_v5 = vrot.slane %v512_v58, 5 }
  0x1f   : > { %4494 = vmatmul.msk.bf16.vlgmr.msra.gmra.mxu1 %vm669_vm3, %v633_v60  ;;  %v614_v6 = vunpack.c.l.b16 %v419_v2  ;;  %v500_v7 = vrot.slane %v499_v62, 4  ;;  %v214_v12 = vshll.u32 %v5591_v63, 16  ;;  %v218_v13 = vshrl.u32 %v5591_v63, 16 }
  0x20   : > { %1345 = vmatpush.bf16.msrb.mxu2 %v5279_v1  ;;  %v510_v11 = vrot.slane %v509_v4, 4  ;;  %v224_v14 = vshll.u32 %v5594_v0, 16  ;;  %v207_v18 = vrot.slane %v205_v8, 4  ;;  %v210_v19 = vrot.slane %v208_v9, 5  ;;  %964 = vmatpush.bf16.msrb.mxu1 %v5271_v21  ;;  %v171_v1 = vld [vmem:[%s5551_s20 + $0x9c] sm:$0xf] }
  0x21   : > { %v637_v16 = vpack.c.b16 %v614_v6, %v613_v3  ;;  %v505_v17 = vsel %vm5572_vm2, %v500_v7, %v504_v56  ;;  %v216_v25 = vrot.slane %v214_v12, 5  ;;  %v220_v26 = vrot.slane %v218_v13, 4  ;;  %1660 = vmatpush.bf16.msrb.mxu3 %v5299_v20  ;;  %2342 = vmatpush.bf16.msrb.mxu0 %v5303_v22 }
  0x22   : > { %v515_v23 = vsel %vm5572_vm2, %v510_v11, %v514_v5  ;;  %v621_v24 = vunpack.c.l.b16 %v505_v17  ;;  %v211_v29 = vor.u32 %v210_v19, %v207_v18  ;;  %v226_v30 = vrot.slane %v224_v14, 5  ;;  %v172_v5 = vld [vmem:[%s5551_s20 + $0xa0] sm:$0xf]  ;;  %v147_v19 = vld [vmem:[%s5551_s20 + $0xc] sm:$0xf] }
  0x23   : > { %4498 = vmatmul.msk.bf16.vlgmr.msra.gmra.mxu2 %vm669_vm3, %v637_v16  ;;  %v622_v28 = vunpack.c.l.b16 %v515_v23  ;;  %v221_v31 = vor.u32 %v220_v26, %v216_v25  ;;  %v325_v33 = vshrl.u32 %v155_v10, 16  ;;  %v328_v34 = vshll.u32 %v155_v10, 16  ;;  %v198_v10 = vld [vmem:[%s5551_s20 + $0xa4] sm:$0x1] }
  0x24   : > { %v334_v35 = vshll.u32 %v156_v15, 16  ;;  %v212_v38 = vrot.slane %v211_v29, 4  ;;  %v338_v39 = vshrl.u32 %v156_v15, 16  ;;  %v344_v40 = vshll.u32 %v190_v27, 16  ;;  %v5645_v29 = vld [vmem:[%s5551_s20 + $0x10] sm:$0xf] }
  0x25   : > { %v641_v37 = vpack.c.b16 %v622_v28, %v621_v24  ;;  %v222_v41 = vrot.slane %v221_v31, 4  ;;  %v327_v42 = vrot.slane %v325_v33, 4  ;;  %v330_v43 = vrot.slane %v328_v34, 5  ;;  %v5278_v24 = vld [vmem:[%s6949_s1 + $0x48] sm:$0xff]  ;;  %v5648_v34 = vld [vmem:[%s5551_s20 + $0x14] sm:$0x1] }
  0x26   : > { %v336_v44 = vrot.slane %v334_v35, 5  ;;  %v217_v46 = vsel %vm5572_vm2, %v212_v38, %v216_v25  ;;  %v340_v47 = vrot.slane %v338_v39, 4  ;;  %v346_v48 = vrot.slane %v344_v40, 5  ;;  %1346 = vmatpush.bf16.msrb.mxu2 %v5278_v24 }
  0x27   : > { %4502 = vmatmul.msk.bf16.vlgmr.msra.gmra.mxu3 %vm669_vm3, %v641_v37  ;;  %v421_v50 = vshrl.u32 %v163_v36, 16  ;;  %v227_v51 = vsel %vm5572_vm2, %v222_v41, %v226_v30  ;;  %v597_v52 = vunpack.c.l.b16 %v217_v46  ;;  %v331_v53 = vor.u32 %v330_v43, %v327_v42  ;;  %v157_v43 = vld [vmem:[%s5551_s20 + $0x48] sm:$0xf] }
  0x28   : > { %v424_v54 = vshll.u32 %v163_v36, 16  ;;  %v598_v55 = vunpack.c.l.b16 %v227_v51  ;;  %v341_v56 = vor.u32 %v340_v47, %v336_v44  ;;  %v430_v58 = vshll.u32 %v164_v45, 16 }
  0x29   : > { %v423_v57 = vrot.slane %v421_v50, 4  ;;  %v332_v59 = vrot.slane %v331_v53, 4  ;;  %v434_v61 = vshrl.u32 %v164_v45, 16  ;;  %v440_v62 = vshll.u32 %v194_v49, 16  ;;  %v5298_v49 = vld [vmem:[%s6949_s1 + $0x68] sm:$0xff] }
  0x2a   : > { %v426_v60 = vrot.slane %v424_v54, 5  ;;  %v629_v2 = vpack.c.b16 %v598_v55, %v597_v52  ;;  %v342_v3 = vrot.slane %v341_v56, 4  ;;  %v432_v4 = vrot.slane %v430_v58, 5  ;;  %v5270_v50 = vld [vmem:[%s6949_s1 + $0x8] sm:$0xff]  ;;  %1661 = vmatpush.bf16.msrb.mxu3 %v5298_v49 }
  0x2b   : > { %v337_v6 = vsel %vm5572_vm2, %v332_v59, %v336_v44  ;;  %v436_v8 = vrot.slane %v434_v61, 4  ;;  %v442_v9 = vrot.slane %v440_v62, 5  ;;  %v517_v13 = vshrl.u32 %v171_v1, 16  ;;  %v5656_v44 = vld [vmem:[%s5551_s20 + $0x4c] sm:$0xf]  ;;  %965 = vmatpush.bf16.msrb.mxu1 %v5270_v50 }
  0x2c   : > { %v427_v7 = vor.u32 %v426_v60, %v423_v57  ;;  %4490 = vmatmul.msk.bf16.vlgmr.msra.gmra.mxu0 %vm669_vm3, %v629_v2  ;;  %v347_v11 = vsel %vm5572_vm2, %v342_v3, %v346_v48  ;;  %v607_v12 = vunpack.c.l.b16 %v337_v6  ;;  %v520_v14 = vshll.u32 %v171_v1, 16  ;;  %v5302_v55 = vld [vmem:[%s6949_s1 + $0x88] sm:$0xff]  ;;  %v5672_v60 = vld [vmem:[%s5551_s20 + $0x50] sm:$0x1] }
  0x2d   : > { %v608_v15 = vunpack.c.l.b16 %v347_v11  ;;  %v437_v17 = vor.u32 %v436_v8, %v432_v4  ;;  %v526_v18 = vshll.u32 %v172_v5, 16  ;;  %v519_v20 = vrot.slane %v517_v13, 4  ;;  %2343 = vmatpush.bf16.msrb.mxu0 %v5302_v55 }
  0x2e   : > { %v428_v16 = vrot.slane %v427_v7, 4  ;;  %v522_v21 = vrot.slane %v520_v14, 5  ;;  %v530_v22 = vshrl.u32 %v172_v5, 16  ;;  %v536_v23 = vshll.u32 %v198_v10, 16  ;;  %v165_v7 = vld [vmem:[%s5551_s20 + $0x78] sm:$0xf] }
  0x2f   : > { %v634_v25 = vpack.c.b16 %v608_v15, %v607_v12  ;;  %v438_v27 = vrot.slane %v437_v17, 4  ;;  %v528_v28 = vrot.slane %v526_v18, 5  ;;  %v229_v37 = vshrl.u32 %v147_v19, 16  ;;  %v166_v12 = vld [vmem:[%s5551_s20 + $0x7c] sm:$0xf] }
  0x30   : > { %v433_v26 = vsel %vm5572_vm2, %v428_v16, %v432_v4  ;;  %v523_v31 = vor.u32 %v522_v21, %v519_v20  ;;  %v532_v33 = vrot.slane %v530_v22, 4  ;;  %v538_v36 = vrot.slane %v536_v23, 5  ;;  %v195_v20 = vld [vmem:[%s5551_s20 + $0x80] sm:$0x1] }
  0x31   : > { %v615_v30 = vunpack.c.l.b16 %v433_v26  ;;  %4495 = vmatmul.msk.bf16.gmra.mxu1 %vm669_vm3, %v634_v25  ;;  %v443_v35 = vsel %vm5572_vm2, %v438_v27, %v442_v9  ;;  %v232_v38 = vshll.u32 %v147_v19, 16  ;;  %v238_v42 = vshll.u32 %v5645_v29, 16 }
  0x32   : > { %v616_v39 = vunpack.c.l.b16 %v443_v35  ;;  %v524_v40 = vrot.slane %v523_v31, 4  ;;  %v533_v41 = vor.u32 %v532_v33, %v528_v28  ;;  %v231_v45 = vrot.slane %v229_v37, 4  ;;  %v173_v37 = vld [vmem:[%s5551_s20 + $0xa8] sm:$0xf] }
  0x33   : > { %v234_v46 = vrot.slane %v232_v38, 5  ;;  %v242_v47 = vshrl.u32 %v5645_v29, 16  ;;  %v248_v48 = vshll.u32 %v5648_v34, 16  ;;  %v240_v54 = vrot.slane %v238_v42, 5  ;;  %v199_v42 = vld [vmem:[%s5551_s20 + $0xb0] sm:$0x1] }
  0x34   : > { %v638_v51 = vpack.c.b16 %v616_v39, %v615_v30  ;;  %v529_v52 = vsel %vm5572_vm2, %v524_v40, %v528_v28  ;;  %v534_v53 = vrot.slane %v533_v41, 4  ;;  %v349_v62 = vshrl.u32 %v157_v43, 16  ;;  %v174_v41 = vld [vmem:[%s5551_s20 + $0xac] sm:$0xf] }
  0x35   : > { %v623_v56 = vunpack.c.l.b16 %v529_v52  ;;  %v235_v57 = vor.u32 %v234_v46, %v231_v45  ;;  %v244_v58 = vrot.slane %v242_v47, 4  ;;  %v250_v59 = vrot.slane %v248_v48, 5 }
  0x36   : > { %4499 = vmatmul.msk.bf16.gmra.mxu2 %vm669_vm3, %v638_v51  ;;  %v539_v61 = vsel %vm5572_vm2, %v534_v53, %v538_v36  ;;  %v352_v1 = vshll.u32 %v157_v43, 16  ;;  %v358_v2 = vshll.u32 %v5656_v44, 16  ;;  %v362_v6 = vshrl.u32 %v5656_v44, 16 }
  0x37   : > { %v624_v3 = vunpack.c.l.b16 %v539_v61  ;;  %v236_v4 = vrot.slane %v235_v57, 4  ;;  %v245_v5 = vor.u32 %v244_v58, %v240_v54  ;;  %v351_v8 = vrot.slane %v349_v62, 4  ;;  %v149_v61 = vld [vmem:[%s5551_s20 + $0x18] sm:$0xf]  ;;  %v5277_v62 = vld [vmem:[%s6949_s1 + $0x40] sm:$0xff] }
  0x38   : > { %v354_v9 = vrot.slane %v352_v1, 5  ;;  %v360_v10 = vrot.slane %v358_v2, 5  ;;  %v368_v11 = vshll.u32 %v5672_v60, 16  ;;  %v364_v16 = vrot.slane %v362_v6, 4  ;;  %1347 = vmatpush.bf16.msrb.mxu2 %v5277_v62 }
  0x39   : > { %v642_v13 = vpack.c.b16 %v624_v3, %v623_v56  ;;  %v241_v14 = vsel %vm5572_vm2, %v236_v4, %v240_v54  ;;  %v246_v15 = vrot.slane %v245_v5, 4  ;;  %v445_v21 = vshrl.u32 %v165_v7, 16  ;;  %v5703_v4 = vld [vmem:[%s5551_s20 + $0x1c] sm:$0xf]  ;;  %v5706_v5 = vld [vmem:[%s5551_s20 + $0x20] sm:$0x1] }
  0x3a   : > { %v599_v17 = vunpack.c.l.b16 %v241_v14  ;;  %v355_v18 = vor.u32 %v354_v9, %v351_v8  ;;  %v370_v19 = vrot.slane %v368_v11, 5  ;;  %v365_v23 = vor.u32 %v364_v16, %v360_v10  ;;  %v159_v14 = vld [vmem:[%s5551_s20 + $0x54] sm:$0xf] }
  0x3b   : > { %4503 = vmatmul.msk.bf16.gmra.mxu3 %vm669_vm3, %v642_v13  ;;  %v251_v22 = vsel %vm5572_vm2, %v246_v15, %v250_v59  ;;  %v448_v24 = vshll.u32 %v165_v7, 16  ;;  %v454_v25 = vshll.u32 %v166_v12, 16  ;;  %v447_v28 = vrot.slane %v445_v21, 4 }
  0x3c   : > { %v600_v26 = vunpack.c.l.b16 %v251_v22  ;;  %v356_v27 = vrot.slane %v355_v18, 4  ;;  %v458_v30 = vshrl.u32 %v166_v12, 16  ;;  %v366_v31 = vrot.slane %v365_v23, 4 }
  0x3d   : > { %v450_v33 = vrot.slane %v448_v24, 5  ;;  %v456_v35 = vrot.slane %v454_v25, 5  ;;  %v464_v36 = vshll.u32 %v195_v20, 16  ;;  %v541_v50 = vshrl.u32 %v173_v37, 16  ;;  %v5297_v24 = vld [vmem:[%s6949_s1 + $0x60] sm:$0xff] }
  0x3e   : > { %v630_v38 = vpack.c.b16 %v600_v26, %v599_v17  ;;  %v361_v39 = vsel %vm5572_vm2, %v356_v27, %v360_v10  ;;  %v460_v40 = vrot.slane %v458_v30, 4  ;;  %v371_v43 = vsel %vm5572_vm2, %v366_v31, %v370_v19  ;;  %v5716_v19 = vld [vmem:[%s5551_s20 + $0x58] sm:$0xf]  ;;  %v5269_v25 = vld [vmem:[%s6949_s1] sm:$0xff]  ;;  %1662 = vmatpush.bf16.msrb.mxu3 %v5297_v24 }
  0x3f   : > { %v609_v45 = vunpack.c.l.b16 %v361_v39  ;;  %v451_v46 = vor.u32 %v450_v33, %v447_v28  ;;  %v466_v47 = vrot.slane %v464_v36, 5  ;;  %v610_v48 = vunpack.c.l.b16 %v371_v43  ;;  %v5301_v26 = vld [vmem:[%s6949_s1 + $0x80] sm:$0xff]  ;;  %v5730_v33 = vld [vmem:[%s5551_s20 + $0x5c] sm:$0x1]  ;;  %966 = vmatpush.bf16.msrb.mxu1 %v5269_v25 }
  0x40   : > { %4491 = vmatmul.msk.bf16.gmra.mxu0 %vm669_vm3, %v630_v38  ;;  %v461_v49 = vor.u32 %v460_v40, %v456_v35  ;;  %v544_v51 = vshll.u32 %v173_v37, 16  ;;  %v550_v53 = vshll.u32 %v174_v41, 16  ;;  %v554_v54 = vshrl.u32 %v174_v41, 16  ;;  %v167_v43 = vld [vmem:[%s5551_s20 + $0x84] sm:$0xf] }
  0x41   : > { %v452_v52 = vrot.slane %v451_v46, 4  ;;  %v560_v55 = vshll.u32 %v199_v42, 16  ;;  %v635_v56 = vpack.c.b16 %v610_v48, %v609_v45  ;;  %v543_v58 = vrot.slane %v541_v50, 4  ;;  %2344 = vmatpush.bf16.msrb.mxu0 %v5301_v26 }
  0x42   : > { %v462_v57 = vrot.slane %v461_v49, 4  ;;  %v546_v59 = vrot.slane %v544_v51, 5  ;;  %v552_v2 = vrot.slane %v550_v53, 5  ;;  %v556_v3 = vrot.slane %v554_v54, 4  ;;  %v168_v53 = vld [vmem:[%s5551_s20 + $0x88] sm:$0xf] }
  0x43   : > { %v457_v1 = vsel %vm5572_vm2, %v452_v52, %v456_v35  ;;  %4496 = vmatmul.msk.bf16.gmra.mxu1 %vm669_vm3, %v635_v56  ;;  %v562_v9 = vrot.slane %v560_v55, 5  ;;  %v253_v12 = vshrl.u32 %v149_v61, 16  ;;  %v256_v13 = vshll.u32 %v149_v61, 16 }
  0x44   : > { %v467_v6 = vsel %vm5572_vm2, %v462_v57, %v466_v47  ;;  %v617_v7 = vunpack.c.l.b16 %v457_v1  ;;  %v547_v8 = vor.u32 %v546_v59, %v543_v58  ;;  %v557_v11 = vor.u32 %v556_v3, %v552_v2  ;;  %v196_v57 = vld [vmem:[%s5551_s20 + $0x8c] sm:$0x1] }
  0x45   : > { %v618_v10 = vunpack.c.l.b16 %v467_v6  ;;  %v262_v16 = vshll.u32 %v5703_v4, 16  ;;  %v266_v17 = vshrl.u32 %v5703_v4, 16  ;;  %v272_v18 = vshll.u32 %v5706_v5, 16 }
  0x46   : > { %v548_v15 = vrot.slane %v547_v8, 4  ;;  %v558_v21 = vrot.slane %v557_v11, 4  ;;  %v255_v22 = vrot.slane %v253_v12, 4  ;;  %v258_v23 = vrot.slane %v256_v13, 5  ;;  %v175_v12 = vld [vmem:[%s5551_s20 + $0xb4] sm:$0xf] }
  0x47   : > { %v639_v20 = vpack.c.b16 %v618_v10, %v617_v7  ;;  %v264_v28 = vrot.slane %v262_v16, 5  ;;  %v268_v30 = vrot.slane %v266_v17, 4  ;;  %v274_v31 = vrot.slane %v272_v18, 5  ;;  %v176_v16 = vld [vmem:[%s5551_s20 + $0xb8] sm:$0xf] }
  0x48   : > { %v553_v27 = vsel %vm5572_vm2, %v548_v15, %v552_v2  ;;  %v563_v35 = vsel %vm5572_vm2, %v558_v21, %v562_v9  ;;  %v259_v37 = vor.u32 %v258_v23, %v255_v22  ;;  %v373_v38 = vshrl.u32 %v159_v14, 16  ;;  %v200_v22 = vld [vmem:[%s5551_s20 + $0xbc] sm:$0x1] }
  0x49   : > { %4500 = vmatmul.msk.bf16.gmra.mxu2 %vm669_vm3, %v639_v20  ;;  %v625_v36 = vunpack.c.l.b16 %v553_v27  ;;  %v626_v39 = vunpack.c.l.b16 %v563_v35  ;;  %v269_v40 = vor.u32 %v268_v30, %v264_v28  ;;  %v376_v41 = vshll.u32 %v159_v14, 16  ;;  %v5328_v23 = vld [vmem:[%s6949_s1 + $0xd8] sm:$0xff] }
  0x4a   : > { %v382_v42 = vshll.u32 %v5716_v19, 16  ;;  %v260_v45 = vrot.slane %v259_v37, 4  ;;  %v375_v46 = vrot.slane %v373_v38, 4  ;;  %v386_v47 = vshrl.u32 %v5716_v19, 16  ;;  %3082 = vmatpush.bf16.msra.mxu2 %v5328_v23 }
  0x4b   : > { %v392_v48 = vshll.u32 %v5730_v33, 16  ;;  %v643_v49 = vpack.c.b16 %v626_v39, %v625_v36  ;;  %v270_v50 = vrot.slane %v269_v40, 4  ;;  %v378_v51 = vrot.slane %v376_v41, 5  ;;  %v151_v40 = vld [vmem:[%s5551_s20 + $0x24] sm:$0xf] }
  0x4c   : > { %v384_v52 = vrot.slane %v382_v42, 5  ;;  %v265_v54 = vsel %vm5572_vm2, %v260_v45, %v264_v28  ;;  %v388_v55 = vrot.slane %v386_v47, 4  ;;  %v469_v58 = vshrl.u32 %v167_v43, 16  ;;  %v5764_v47 = vld [vmem:[%s5551_s20 + $0x2c] sm:$0x1] }
  0x4d   : > { %v394_v56 = vrot.slane %v392_v48, 5  ;;  %4504 = vmatmul.msk.bf16.gmra.mxu3 %vm669_vm3, %v643_v49  ;;  %v275_v59 = vsel %vm5572_vm2, %v270_v50, %v274_v31  ;;  %v601_v61 = vunpack.c.l.b16 %v265_v54  ;;  %v379_v62 = vor.u32 %v378_v51, %v375_v46  ;;  %v5761_v46 = vld [vmem:[%s5551_s20 + $0x28] sm:$0xf]  ;;  %v5336_v54 = vld [vmem:[%s6949_s1 + $0x118] sm:$0xff] }
  0x4e   : > { %v472_v1 = vshll.u32 %v167_v43, 16  ;;  %v602_v2 = vunpack.c.l.b16 %v275_v59  ;;  %v389_v3 = vor.u32 %v388_v55, %v384_v52  ;;  %v471_v6 = vrot.slane %v469_v58, 4  ;;  %4190 = vmatpush.bf16.msra.mxu0 %v5336_v54 }
  0x4f   : > { %v478_v7 = vshll.u32 %v168_v53, 16  ;;  %v380_v8 = vrot.slane %v379_v62, 4  ;;  %v482_v10 = vshrl.u32 %v168_v53, 16  ;;  %v488_v11 = vshll.u32 %v196_v57, 16  ;;  %v5308_v53 = vld [vmem:[%s6949_s1 + $0xb8] sm:$0xff] }
  0x50   : > { %v474_v9 = vrot.slane %v472_v1, 5  ;;  %v631_v13 = vpack.c.b16 %v602_v2, %v601_v61  ;;  %v390_v14 = vrot.slane %v389_v3, 4  ;;  %v565_v26 = vshrl.u32 %v175_v12, 16  ;;  %2767 = vmatpush.bf16.msra.mxu1 %v5308_v53  ;;  %v5253_v53 = vld [vmem:[%s5551_s20] sm:$0xff] }
  0x51   : > { %v480_v15 = vrot.slane %v478_v7, 5  ;;  %v385_v17 = vsel %vm5572_vm2, %v380_v8, %v384_v52  ;;  %v484_v20 = vrot.slane %v482_v10, 4  ;;  %v490_v21 = vrot.slane %v488_v11, 5  ;;  %v5332_v52 = vld [vmem:[%s6949_s1 + $0xf8] sm:$0xff]  ;;  %v1048_v8 = vld [vmem:[%s5551_s20] sm:$0xe] }
  0x52   : > { %v475_v18 = vor.u32 %v474_v9, %v471_v6  ;;  %4492 = vmatmul.msk.bf16.gmra.mxu0 %vm669_vm3, %v631_v13  ;;  %v395_v24 = vsel %vm5572_vm2, %v390_v14, %v394_v56  ;;  %v611_v25 = vunpack.c.l.b16 %v385_v17  ;;  %v568_v27 = vshll.u32 %v175_v12, 16  ;;  %3764 = vmatpush.bf16.msra.mxu3 %v5332_v52  ;;  %v4794_v17 = vld [vmem:[%s5551_s20 + $0xc] sm:$0xf] }
  0x53   : > { %v612_v28 = vunpack.c.l.b16 %v395_v24  ;;  %v485_v31 = vor.u32 %v484_v20, %v480_v15  ;;  %v574_v35 = vshll.u32 %v176_v16, 16  ;;  %v567_v36 = vrot.slane %v565_v26, 4 }
  0x54   : > { %v476_v30 = vrot.slane %v475_v18, 4  ;;  %v570_v37 = vrot.slane %v568_v27, 5  ;;  %v578_v38 = vshrl.u32 %v176_v16, 16  ;;  %v584_v39 = vshll.u32 %v200_v22, 16  ;;  %v4795_v18 = vld [vmem:[%s5551_s20 + $0x10] sm:$0xf] }
  0x55   : > { %v636_v41 = vpack.c.b16 %v612_v28, %v611_v25  ;;  %v486_v43 = vrot.slane %v485_v31, 4  ;;  %v576_v45 = vrot.slane %v574_v35, 5  ;;  %v1104_v48 = vrot.slane %v5594_v0, 5  ;;  %v4797_v0 = vld [vmem:[%s5551_s20 + $0x18] sm:$0xf] }
  0x56   : > { %v481_v42 = vsel %vm5572_vm2, %v476_v30, %v480_v15  ;;  %v571_v50 = vor.u32 %v570_v37, %v567_v36  ;;  %v580_v51 = vrot.slane %v578_v38, 4  ;;  %v586_v56 = vrot.slane %v584_v39, 5 }
  0x57   : > { %v619_v49 = vunpack.c.l.b16 %v481_v42  ;;  %4497 = vmatmul.msk.bf16.gmra.mxu1 %vm669_vm3, %v636_v41  ;;  %v491_v55 = vsel %vm5572_vm2, %v486_v43, %v490_v21  ;;  %v277_v57 = vshrl.u32 %v151_v40, 16  ;;  %v280_v58 = vshll.u32 %v151_v40, 16  ;;  %v4796_v42 = vld [vmem:[%s5551_s20 + $0x14] sm:$0x1] }
  0x58   : > { %v620_v59 = vunpack.c.l.b16 %v491_v55  ;;  %v572_v61 = vrot.slane %v571_v50, 4  ;;  %v581_v62 = vor.u32 %v580_v51, %v576_v45  ;;  %v286_v1 = vshll.u32 %v5761_v46, 16 }
  0x59   : > { %v279_v2 = vrot.slane %v277_v57, 4  ;;  %v282_v3 = vrot.slane %v280_v58, 5  ;;  %v290_v6 = vshrl.u32 %v5761_v46, 16  ;;  %v296_v7 = vshll.u32 %v5764_v47, 16 }
  0x5a   : > { %v640_v9 = vpack.c.b16 %v620_v59, %v619_v49  ;;  %v577_v10 = vsel %vm5572_vm2, %v572_v61, %v576_v45  ;;  %v582_v11 = vrot.slane %v581_v62, 4  ;;  %v288_v12 = vrot.slane %v286_v1, 5 }
  0x5b   : > { %v627_v13 = vunpack.c.l.b16 %v577_v10  ;;  %v283_v14 = vor.u32 %v282_v3, %v279_v2  ;;  %v292_v15 = vrot.slane %v290_v6, 4  ;;  %v298_v16 = vrot.slane %v296_v7, 5  ;;  %v4798_v2 = vld [vmem:[%s5551_s20 + $0x1c] sm:$0xf]  ;;  %v1049_v3 = vld [vmem:[%s5551_s20 + $0xc] sm:$0xe] }
  0x5c   : > { %4501 = vmatmul.msk.bf16.gmra.mxu2 %vm669_vm3, %v640_v9  ;;  %v587_v20 = vsel %vm5572_vm2, %v582_v11, %v586_v56  ;;  %v4602_v21 = vrot.slane %v1048_v8, 9  ;;  %v1101_v26 = vrot.slane %v5591_v63, 5  ;;  %v1825_v27 = vshrl.u32 %v4794_v17, 16 }
  0x5d   : > { %v628_v22 = vunpack.c.l.b16 %v587_v20  ;;  %v284_v23 = vrot.slane %v283_v14, 4  ;;  %v293_v24 = vor.u32 %v292_v15, %v288_v12  ;;  %v1828_v28 = vshll.u32 %v4794_v17, 16 }
  0x5e   : > { %v1834_v30 = vshll.u32 %v4795_v18, 16  ;;  %v1838_v31 = vshrl.u32 %v4795_v18, 16  ;;  %v1102_v38 = vsel %vm5790_vm6, %v4602_v21, %v1101_v26  ;;  %v1103_v40 = vrot.slane %v1101_v26, 4 }
  0x5f   : > { %v644_v35 = vpack.c.b16 %v628_v22, %v627_v13  ;;  %v289_v36 = vsel %vm5572_vm2, %v284_v23, %v288_v12  ;;  %v294_v37 = vrot.slane %v293_v24, 4  ;;  %v1220_v41 = vunpack.c.l.b16 %v1102_v38  ;;  %v5281_v12 = vld [vmem:[%s5551_s20 + $0xc] sm:$0xff]  ;;  %v4799_v22 = vld [vmem:[%s5551_s20 + $0x20] sm:$0x1] }
  0x60   : > { %v603_v39 = vunpack.c.l.b16 %v289_v36  ;;  %v1827_v43 = vrot.slane %v1825_v27, 4  ;;  %v1830_v45 = vrot.slane %v1828_v28, 5  ;;  %v1836_v49 = vrot.slane %v1834_v30, 5  ;;  %v5254_v27 = vld [vmem:[%s5551_s20 + $0xc] sm:$0xff] }
  0x61   : > { %4505 = vmatmul.msk.bf16.gmra.mxu3 %vm669_vm3, %v644_v35  ;;  %v299_v63 = vsel %vm5572_vm2, %v294_v37, %v298_v16  ;;  %v1840_v50 = vrot.slane %v1838_v31, 4  ;;  %v1105_v52 = vsel %vm5790_vm6, %v1103_v40, %v1104_v48  ;;  %v1844_v57 = vshll.u32 %v4796_v42, 16  ;;  %v4800_v37 = vld [vmem:[%s5551_s20 + $0x24] sm:$0xf]  ;;  %v4801_v40 = vld [vmem:[%s5551_s20 + $0x28] sm:$0xf] }
  0x62   : > { %v604_v51 = vunpack.c.l.b16 %v299_v63  ;;  %v1221_v54 = vunpack.c.l.b16 %v1105_v52  ;;  %v1831_v55 = vor.u32 %v1830_v45, %v1827_v43  ;;  %v1108_v48 = vrot.slane %v5645_v29, 5  ;;  %v1050_v42 = vld [vmem:[%s5551_s20 + $0x18] sm:$0xe] }
  0x63   : > { %v1841_v56 = vor.u32 %v1840_v50, %v1836_v49  ;;  %v1846_v1 = vrot.slane %v1844_v57, 5  ;;  %v1849_v6 = vshrl.u32 %v4797_v0, 16  ;;  %v1852_v7 = vshll.u32 %v4797_v0, 16 }
  0x64   : > { %v632_v58 = vpack.c.b16 %v604_v51, %v603_v39  ;;  %v1252_v59 = vpack.c.b16 %v1221_v54, %v1220_v41  ;;  %v1832_v61 = vrot.slane %v1831_v55, 4  ;;  %v1858_v10 = vshll.u32 %v4798_v2, 16  ;;  %v5282_v54 = vld [vmem:[%s5551_s20 + $0x18] sm:$0xff] }
  0x65   : > { %v1842_v62 = vrot.slane %v1841_v56, 4  ;;  %v1862_v11 = vshrl.u32 %v4798_v2, 16  ;;  %v4603_v13 = vrot.slane %v1049_v3, 9  ;;  %v1110_v14 = vrot.slane %v1108_v48, 4 }
  0x66   : > { %4493 = vmatmul.msk.bf16.gmra.mxu0 %vm669_vm3, %v632_v58  ;;  %v1837_v8 = vsel %vm5572_vm2, %v1832_v61, %v1836_v49  ;;  %v1111_v29 = vrot.slane %v5648_v34, 5  ;;  %v1851_v17 = vrot.slane %v1849_v6, 4  ;;  %v1854_v18 = vrot.slane %v1852_v7, 5  ;;  %v5255_v7 = vld [vmem:[%s5551_s20 + $0x18] sm:$0xff] }
  0x67   : > { %4586 = vmatmul.msk.bf16.vlgmr.msrb.gmra.mxu1 %vm669_vm3, %v5253_v53  ;;  %v1847_v9 = vsel %vm5572_vm2, %v1842_v62, %v1846_v1  ;;  %v2217_v15 = vunpack.c.l.b16 %v1837_v8  ;;  %v1860_v20 = vrot.slane %v1858_v10, 5  ;;  %v1864_v21 = vrot.slane %v1862_v11, 4  ;;  %v4802_v1 = vld [vmem:[%s5551_s20 + $0x2c] sm:$0x1] }
  0x68   : > { %v2218_v16 = vunpack.c.l.b16 %v1847_v9  ;;  %v1109_v23 = vsel %vm5790_vm6, %v4603_v13, %v1108_v48  ;;  %v1112_v24 = vsel %vm5790_vm6, %v1110_v14, %v1111_v29  ;;  %v1855_v34 = vor.u32 %v1854_v18, %v1851_v17  ;;  %v4803_v14 = vld [vmem:[%s5551_s20 + $0x30] sm:$0xf]  ;;  %v4804_v29 = vld [vmem:[%s5551_s20 + $0x34] sm:$0xf]  ;;  %v1051_v18 = vld [vmem:[%s5551_s20 + $0x24] sm:$0xe] }
  0x69   : > { %v1865_v28 = vor.u32 %v1864_v21, %v1860_v20  ;;  %v1868_v30 = vshll.u32 %v4799_v22, 16  ;;  %v1222_v31 = vunpack.c.l.b16 %v1109_v23  ;;  %v1223_v35 = vunpack.c.l.b16 %v1112_v24  ;;  %v5283_v24 = vld [vmem:[%s5551_s20 + $0x24] sm:$0xff] }
  0x6a   : > { %v2249_v26 = vpack.c.b16 %v2218_v16, %v2217_v15  ;;  %v1856_v36 = vrot.slane %v1855_v34, 4  ;;  %v1115_v43 = vrot.slane %v5703_v4, 5  ;;  %v1873_v63 = vshrl.u32 %v4800_v37, 16 }
  0x6b   : > { %v1866_v38 = vrot.slane %v1865_v28, 4  ;;  %v1870_v39 = vrot.slane %v1868_v30, 5  ;;  %v1253_v41 = vpack.c.b16 %v1223_v35, %v1222_v31  ;;  %v1876_v49 = vshll.u32 %v4800_v37, 16  ;;  %v4805_v37 = vld [vmem:[%s5551_s20 + $0x38] sm:$0x1] }
  0x6c   : > { %4642 = vmatmul.msk.bf16.vlgmr.msrb.gmra.mxu2 %vm669_vm3, %v1252_v59  ;;  %v1861_v45 = vsel %vm5572_vm2, %v1856_v36, %v1860_v20  ;;  %v1882_v50 = vshll.u32 %v4801_v40, 16  ;;  %v1886_v51 = vshrl.u32 %v4801_v40, 16  ;;  %v4604_v53 = vrot.slane %v1050_v42, 9 }
  0x6d   : > { %v1871_v52 = vsel %vm5572_vm2, %v1866_v38, %v1870_v39  ;;  %v2219_v55 = vunpack.c.l.b16 %v1861_v45  ;;  %v1117_v56 = vrot.slane %v1115_v43, 4  ;;  %v1118_v4 = vrot.slane %v5706_v5, 5 }
  0x6e   : > { %v1875_v57 = vrot.slane %v1873_v63, 4  ;;  %v2220_v58 = vunpack.c.l.b16 %v1871_v52  ;;  %v1878_v59 = vrot.slane %v1876_v49, 5  ;;  %v1884_v61 = vrot.slane %v1882_v50, 5  ;;  %v4806_v50 = vld [vmem:[%s5551_s20 + $0x3c] sm:$0xf]  ;;  %v5331_v52 = vld [vmem:[%s6949_s1 + $0xf0] sm:$0xff] }
  0x6f   : > { %v1888_v62 = vrot.slane %v1886_v51, 4  ;;  %v1116_v0 = vsel %vm5790_vm6, %v4604_v53, %v1115_v43  ;;  %v1119_v2 = vsel %vm5790_vm6, %v1117_v56, %v1118_v4  ;;  %v1892_v5 = vshll.u32 %v4802_v1, 16  ;;  %v4807_v51 = vld [vmem:[%s5551_s20 + $0x40] sm:$0xf]  ;;  %v5307_v53 = vld [vmem:[%s6949_s1 + $0xb0] sm:$0xff]  ;;  %3765 = vmatpush.bf16.msra.mxu3 %v5331_v52 }
  0x70   : > { %v2250_v48 = vpack.c.b16 %v2220_v58, %v2219_v55  ;;  %v1879_v3 = vor.u32 %v1878_v59, %v1875_v57  ;;  %v1224_v8 = vunpack.c.l.b16 %v1116_v0  ;;  %v1225_v9 = vunpack.c.l.b16 %v1119_v2  ;;  %v5453_v58 = vld [vmem:[%s5551_s20 + $0x34] sm:$0xf]  ;;  %2768 = vmatpush.bf16.msra.mxu1 %v5307_v53  ;;  %v5285_v52 = vld [vmem:[%s5551_s20 + $0x3c] sm:$0xff] }
  0x71   : > { %4778 = vmatmul.msk.bf16.vlgmr.msrb.gmra.mxu3 %vm669_vm3, %v5281_v12  ;;  %v1889_v6 = vor.u32 %v1888_v62, %v1884_v61  ;;  %v1894_v12 = vrot.slane %v1892_v5, 5  ;;  %v1122_v15 = vrot.slane %v5761_v46, 5  ;;  %v1897_v20 = vshrl.u32 %v4803_v14, 16 }
  0x72   : > { %v1880_v10 = vrot.slane %v1879_v3, 4  ;;  %v1254_v13 = vpack.c.b16 %v1225_v9, %v1224_v8  ;;  %v1900_v21 = vshll.u32 %v4803_v14, 16  ;;  %v1906_v22 = vshll.u32 %v4804_v29, 16  ;;  %v5454_v8 = vld [vmem:[%s5551_s20 + $0x38] sm:$0x1] }
  0x73   : > { %v1890_v11 = vrot.slane %v1889_v6, 4  ;;  %v1910_v23 = vshrl.u32 %v4804_v29, 16  ;;  %v1124_v34 = vrot.slane %v1122_v15, 4  ;;  %v1125_v46 = vrot.slane %v5764_v47, 5  ;;  %v5327_v47 = vld [vmem:[%s6949_s1 + $0xd0] sm:$0xff] }
  0x74   : > { %v1885_v16 = vsel %vm5572_vm2, %v1880_v10, %v1884_v61  ;;  %v1899_v30 = vrot.slane %v1897_v20, 4  ;;  %v1902_v31 = vrot.slane %v1900_v21, 5  ;;  %v1908_v35 = vrot.slane %v1906_v22, 5  ;;  %3083 = vmatpush.bf16.msra.mxu2 %v5327_v47  ;;  %v1052_v61 = vld [vmem:[%s5551_s20 + $0x30] sm:$0xe] }
  0x75   : > { %v1895_v17 = vsel %vm5572_vm2, %v1890_v11, %v1894_v12  ;;  %v1912_v36 = vrot.slane %v1910_v23, 4  ;;  %v1126_v39 = vsel %vm5790_vm6, %v1124_v34, %v1125_v46  ;;  %v1916_v63 = vshll.u32 %v4805_v37, 16  ;;  %v5284_v10 = vld [vmem:[%s5551_s20 + $0x30] sm:$0xff] }
  0x76   : > { %4866 = vmatmul.msk.bf16.vlgmr.msrb.gmra.mxu0 %vm669_vm3, %v2249_v26  ;;  %v4605_v26 = vrot.slane %v1051_v18, 9  ;;  %v2222_v28 = vunpack.c.l.b16 %v1895_v17  ;;  %v1903_v42 = vor.u32 %v1902_v31, %v1899_v30  ;;  %v1227_v49 = vunpack.c.l.b16 %v1126_v39 }
  0x77   : > { %4587 = vmatmul.msk.bf16.gmra.mxu1 %vm669_vm3, %v5254_v27  ;;  %v2221_v27 = vunpack.c.l.b16 %v1885_v16  ;;  %v1913_v43 = vor.u32 %v1912_v36, %v1908_v35  ;;  %v1918_v4 = vrot.slane %v1916_v63, 5  ;;  %v1129_v59 = vrot.slane %v5453_v58, 5  ;;  %v4808_v16 = vld [vmem:[%s5551_s20 + $0x44] sm:$0x1]  ;;  %v4810_v36 = vld [vmem:[%s5551_s20 + $0x4c] sm:$0xf] }
  0x78   : > { %v1123_v38 = vsel %vm5790_vm6, %v4605_v26, %v1122_v15  ;;  %v1904_v55 = vrot.slane %v1903_v42, 4  ;;  %v1921_v62 = vshrl.u32 %v4806_v50, 16  ;;  %v1924_v1 = vshll.u32 %v4806_v50, 16 }
  0x79   : > { %v2251_v40 = vpack.c.b16 %v2222_v28, %v2221_v27  ;;  %v1226_v45 = vunpack.c.l.b16 %v1123_v38  ;;  %v1914_v56 = vrot.slane %v1913_v43, 4  ;;  %v1930_v0 = vshll.u32 %v4807_v51, 16  ;;  %v1053_v43 = vld [vmem:[%s5551_s20 + $0x3c] sm:$0xe] }
  0x7a   : > { %v1934_v2 = vshrl.u32 %v4807_v51, 16  ;;  %v1909_v3 = vsel %vm5572_vm2, %v1904_v55, %v1908_v35  ;;  %v4606_v5 = vrot.slane %v1052_v61, 9  ;;  %v1132_v9 = vrot.slane %v5454_v8, 5  ;;  %v4809_v35 = vld [vmem:[%s5551_s20 + $0x48] sm:$0xf] }
  0x7b   : > { %v1255_v57 = vpack.c.b16 %v1227_v49, %v1226_v45  ;;  %v1919_v6 = vsel %vm5572_vm2, %v1914_v56, %v1918_v4  ;;  %v1923_v11 = vrot.slane %v1921_v62, 4  ;;  %v1926_v12 = vrot.slane %v1924_v1, 5  ;;  %v5456_v4 = vld [vmem:[%s5551_s20 + $0x44] sm:$0x1] }
  0x7c   : > { %4643 = vmatmul.msk.bf16.gmra.mxu2 %vm669_vm3, %v1253_v41  ;;  %v5256_v41 = vld [vmem:[%s5551_s20 + $0x24] sm:$0xff]  ;;  %v1936_v14 = vrot.slane %v1934_v2, 4  ;;  %v2223_v29 = vunpack.c.l.b16 %v1909_v3  ;;  %v2224_v15 = vunpack.c.l.b16 %v1919_v6  ;;  %v1130_v17 = vsel %vm5790_vm6, %v4606_v5, %v1129_v59 }
  0x7d   : > { %v1927_v20 = vor.u32 %v1926_v12, %v1923_v11  ;;  %v1940_v22 = vshll.u32 %v4808_v16, 16  ;;  %v1228_v34 = vunpack.c.l.b16 %v1130_v17  ;;  %v1945_v63 = vshrl.u32 %v4809_v35, 16  ;;  %v5258_v11 = vld [vmem:[%s5551_s20 + $0x3c] sm:$0xff] }
  0x7e   : > { %v2252_v23 = vpack.c.b16 %v2224_v15, %v2223_v29  ;;  %v1948_v45 = vshll.u32 %v4809_v35, 16  ;;  %v1954_v49 = vshll.u32 %v4810_v36, 16  ;;  %v1958_v50 = vshrl.u32 %v4810_v36, 16  ;;  %v5286_v36 = vld [vmem:[%s5551_s20 + $0x48] sm:$0xff] }
  0x7f   : > { %v1928_v28 = vrot.slane %v1927_v20, 4  ;;  %v1942_v31 = vrot.slane %v1940_v22, 5  ;;  %v4607_v55 = vrot.slane %v1053_v43, 9  ;;  %v4812_v20 = vld [vmem:[%s5551_s20 + $0x54] sm:$0xf]  ;;  %v1143_v22 = vrot.slane %v5656_v44, 5 }
  0x80   : > { %v1950_v61 = vrot.slane %v1948_v45, 5  ;;  %v1956_v62 = vrot.slane %v1954_v49, 5  ;;  %v1960_v1 = vrot.slane %v1958_v50, 4 }
  0x81   : > { %4779 = vmatmul.msk.bf16.gmra.mxu3 %vm669_vm3, %v5282_v54  ;;  %v5335_v54 = vld [vmem:[%s6949_s1 + $0x110] sm:$0xff] }
  0x82   : > { %4191 = vmatpush.bf16.msra.mxu0 %v5335_v54  ;;  %v1961_v8 = vor.u32 %v1960_v1, %v1956_v62 }
  0x84   : > { %v1962_v29 = vrot.slane %v1961_v8, 4 }
  0x86   : > { %4867 = vmatmul.msk.bf16.gmra.mxu0 %vm669_vm3, %v2250_v48 }
  0x87   : > { %4588 = vmatmul.msk.bf16.gmra.mxu1 %vm669_vm3, %v5255_v7  ;;  %v1131_v7 = vrot.slane %v1129_v59, 4  ;;  %v1947_v59 = vrot.slane %v1945_v63, 4 }
  0x89   : > { %v1133_v18 = vsel %vm5790_vm6, %v1131_v7, %v1132_v9  ;;  %v1951_v7 = vor.u32 %v1950_v61, %v1947_v59 }
  0x8a   : > { %v1229_v46 = vunpack.c.l.b16 %v1133_v18 }
  0x8c   : > { %4644 = vmatmul.msk.bf16.gmra.mxu2 %vm669_vm3, %v1254_v13  ;;  %v1932_v13 = vrot.slane %v1930_v0, 5  ;;  %v1256_v38 = vpack.c.b16 %v1229_v46, %v1228_v34  ;;  %v4811_v0 = vld [vmem:[%s5551_s20 + $0x50] sm:$0x1]  ;;  %v1054_v34 = vld [vmem:[%s5551_s20 + $0x48] sm:$0xe]  ;;  %v1969_v46 = vshrl.u32 %v4812_v20, 16 }
  0x8d   : > { %v1964_v9 = vshll.u32 %v4811_v0, 16  ;;  %v4608_v44 = vrot.slane %v1054_v34, 9  ;;  %v4815_v0 = vld [vmem:[%s5551_s20 + $0x60] sm:$0xf] }
  0x8e   : > { %v1937_v21 = vor.u32 %v1936_v14, %v1932_v13  ;;  %v1933_v39 = vsel %vm5572_vm2, %v1928_v28, %v1932_v13  ;;  %v1952_v14 = vrot.slane %v1951_v7, 4  ;;  %v1972_v28 = vshll.u32 %v4812_v20, 16 }
  0x8f   : > { %v2225_v51 = vunpack.c.l.b16 %v1933_v39  ;;  %v1966_v15 = vrot.slane %v1964_v9, 5  ;;  %v1145_v39 = vrot.slane %v1143_v22, 4  ;;  %v1971_v43 = vrot.slane %v1969_v46, 4  ;;  %v5287_v46 = vld [vmem:[%s5551_s20 + $0x54] sm:$0xff] }
  0x90   : > { %v1938_v30 = vrot.slane %v1937_v21, 4  ;;  %v4813_v21 = vld [vmem:[%s5551_s20 + $0x58] sm:$0xf]  ;;  %v1974_v63 = vrot.slane %v1972_v28, 5 }
  0x91   : > { %4780 = vmatmul.msk.bf16.gmra.mxu3 %vm669_vm3, %v5283_v24  ;;  %v5257_v24 = vld [vmem:[%s5551_s20 + $0x30] sm:$0xff] }
  0x92   : > { %v1943_v47 = vsel %vm5572_vm2, %v1938_v30, %v1942_v31  ;;  %v1978_v30 = vshll.u32 %v4813_v21, 16  ;;  %v1982_v31 = vshrl.u32 %v4813_v21, 16 }
  0x93   : > { %v2226_v53 = vunpack.c.l.b16 %v1943_v47  ;;  %v1146_v47 = vrot.slane %v5672_v60, 5 }
  0x94   : > { %v1980_v45 = vrot.slane %v1978_v30, 5  ;;  %v1984_v49 = vrot.slane %v1982_v31, 4  ;;  %v1153_v30 = vrot.slane %v5730_v33, 5 }
  0x95   : > { %v2253_v6 = vpack.c.b16 %v2226_v53, %v2225_v51  ;;  %v4814_v51 = vld [vmem:[%s5551_s20 + $0x5c] sm:$0x1]  ;;  %v1144_v53 = vsel %vm5790_vm6, %v4608_v44, %v1143_v22  ;;  %v1147_v60 = vsel %vm5790_vm6, %v1145_v39, %v1146_v47  ;;  %v4817_v39 = vld [vmem:[%s5551_s20 + $0x68] sm:$0x1] }
  0x96   : > { %4868 = vmatmul.msk.bf16.gmra.mxu0 %vm669_vm3, %v2251_v40  ;;  %v1988_v59 = vshll.u32 %v4814_v51, 16  ;;  %v1232_v61 = vunpack.c.l.b16 %v1144_v53  ;;  %v5260_v51 = vld [vmem:[%s5551_s20 + $0x54] sm:$0xff]  ;;  %v5326_v53 = vld [vmem:[%s6949_s1 + $0xc8] sm:$0xff] }
  0x97   : > { %4589 = vmatmul.msk.bf16.gmra.mxu1 %vm669_vm3, %v5256_v41  ;;  %v5455_v41 = vld [vmem:[%s5551_s20 + $0x40] sm:$0xf]  ;;  %3084 = vmatpush.bf16.msra.mxu2 %v5326_v53 }
  0x98   : > { %v1136_v42 = vrot.slane %v5455_v41, 5  ;;  %v1990_v8 = vrot.slane %v1988_v59, 5 }
  0x9a   : > { %v1138_v56 = vrot.slane %v1136_v42, 4  ;;  %v1137_v2 = vsel %vm5790_vm6, %v4607_v55, %v1136_v42 }
  0x9b   : > { %v1230_v12 = vunpack.c.l.b16 %v1137_v2  ;;  %v4816_v2 = vld [vmem:[%s5551_s20 + $0x64] sm:$0xf] }
  0x9c   : > { %v5886_v48 = vpop.f32.mrf.mxu1  ;;  %4645 = vmatmul.msk.bf16.gmra.mxu2 %vm669_vm3, %v1255_v57  ;;  %v1139_v57 = vrot.slane %v5456_v4, 5  ;;  %v1975_v4 = vor.u32 %v1974_v63, %v1971_v43 }
  0x9e   : > { %v1140_v3 = vsel %vm5790_vm6, %v1138_v56, %v1139_v57  ;;  %v5259_v56 = vld [vmem:[%s5551_s20 + $0x48] sm:$0xff]  ;;  %v1985_v57 = vor.u32 %v1984_v49, %v1980_v45  ;;  %v2012_v49 = vshll.u32 %v4817_v39, 16 }
  0x9f   : > { %v1231_v13 = vunpack.c.l.b16 %v1140_v3 }
  0xa0   : > { %v1986_v7 = vrot.slane %v1985_v57, 4 }
  0xa1   : > { %4781 = vmatmul.msk.bf16.gmra.mxu3 %vm669_vm3, %v5284_v10  ;;  %v1257_v17 = vpack.c.b16 %v1231_v13, %v1230_v12  ;;  %v1996_v12 = vshll.u32 %v4815_v0, 16  ;;  %v2002_v13 = vshll.u32 %v4816_v2, 16 }
  0xa2   : > { %v1991_v21 = vsel %vm5572_vm2, %v1986_v7, %v1990_v8 }
  0xa3   : > { %v2004_v34 = vrot.slane %v2002_v13, 5  ;;  %v2230_v44 = vunpack.c.l.b16 %v1991_v21 }
  0xa4   : > { %v5902_v26 = vpop.f32.mrf.mxu1 }
  0xa6   : > { %v5904_v27 = vpop.f32.mrf.mxu2  ;;  %4869 = vmatmul.msk.bf16.gmra.mxu0 %vm669_vm3, %v2252_v23  ;;  %v1957_v23 = vsel %vm5572_vm2, %v1952_v14, %v1956_v62  ;;  %v1233_v62 = vunpack.c.l.b16 %v1147_v60  ;;  %v1150_v14 = vrot.slane %v5716_v19, 5 }
  0xa7   : > { %4590 = vmatmul.msk.bf16.gmra.mxu1 %vm669_vm3, %v5257_v24  ;;  %v1967_v24 = vsel %vm5572_vm2, %v1962_v29, %v1966_v15  ;;  %v2227_v41 = vunpack.c.l.b16 %v1957_v23  ;;  %v2006_v29 = vshrl.u32 %v4816_v2, 16  ;;  %v4818_v2 = vld [vmem:[%s5551_s20 + $0x6c] sm:$0xf] }
  0xa8   : > { %v2228_v42 = vunpack.c.l.b16 %v1967_v24  ;;  %v1258_v9 = vpack.c.b16 %v1233_v62, %v1232_v61  ;;  %v1998_v24 = vrot.slane %v1996_v12, 5  ;;  %v1152_v28 = vrot.slane %v1150_v14, 4  ;;  %v5330_v62 = vld [vmem:[%s6949_s1 + $0xe8] sm:$0xff]  ;;  %v5457_v12 = vld [vmem:[%s5551_s20 + $0x64] sm:$0xf] }
  0xa9   : > { %v5910_v37 = vpop.f32.mrf.mxu0  ;;  %v2008_v31 = vrot.slane %v2006_v29, 4  ;;  %v2014_v61 = vrot.slane %v2012_v49, 5  ;;  %3766 = vmatpush.bf16.msra.mxu3 %v5330_v62  ;;  %v1157_v13 = vrot.slane %v5457_v12, 5  ;;  %v1056_v29 = vld [vmem:[%s5551_s20 + $0x60] sm:$0xe] }
  0xaa   : > { %v5916_v40 = vpop.f32.mrf.mxu3  ;;  %v2254_v55 = vpack.c.b16 %v2228_v42, %v2227_v41  ;;  %v1154_v63 = vsel %vm5790_vm6, %v1152_v28, %v1153_v30  ;;  %v5288_v28 = vld [vmem:[%s5551_s20 + $0x60] sm:$0xff]  ;;  %v4820_v49 = vld [vmem:[%s5551_s20 + $0x74] sm:$0x1] }
  0xac   : > { %4646 = vmatmul.msk.bf16.gmra.mxu2 %vm669_vm3, %v1256_v38 }
  0xae   : > { %v5922_v54 = vpop.f32.mrf.mxu1  ;;  %v5925_v58 = vpop.f32.mrf.mxu2 }
  0xb1   : > { %4782 = vmatmul.msk.bf16.gmra.mxu3 %vm669_vm3, %v5285_v52  ;;  %v5933_v5 = vpop.f32.mrf.mxu0 }
  0xb2   : > { %v5935_v10 = vpop.f32.mrf.mxu3 }
  0xb6   : > { %4870 = vmatmul.msk.bf16.gmra.mxu0 %vm669_vm3, %v2253_v6  ;;  %v5939_v16 = vpop.f32.mrf.mxu1  ;;  %v1976_v6 = vrot.slane %v1975_v4, 4 }
  0xb7   : > { %4591 = vmatmul.msk.bf16.gmra.mxu1 %vm669_vm3, %v5258_v11  ;;  %v1993_v11 = vshrl.u32 %v4815_v0, 16  ;;  %v5306_v0 = vld [vmem:[%s6949_s1 + $0xa8] sm:$0xff] }
  0xb8   : > { %v1981_v20 = vsel %vm5572_vm2, %v1976_v6, %v1980_v45  ;;  %v2009_v45 = vor.u32 %v2008_v31, %v2004_v34  ;;  %v4819_v6 = vld [vmem:[%s5551_s20 + $0x70] sm:$0xf]  ;;  %2769 = vmatpush.bf16.msra.mxu1 %v5306_v0 }
  0xb9   : > { %v5942_v18 = vpop.f32.mrf.mxu2  ;;  %v1995_v23 = vrot.slane %v1993_v11, 4  ;;  %v2026_v21 = vshll.u32 %v4819_v6, 16 }
  0xba   : > { %v2010_v59 = vrot.slane %v2009_v45, 4 }
  0xbb   : > { %v1999_v42 = vor.u32 %v1998_v24, %v1995_v23  ;;  %v2030_v23 = vshrl.u32 %v4819_v6, 16  ;;  %v5334_v24 = vld [vmem:[%s6949_s1 + $0x108] sm:$0xff] }
  0xbc   : > { %4647 = vmatmul.msk.bf16.gmra.mxu2 %vm669_vm3, %v1257_v17  ;;  %v1055_v17 = vld [vmem:[%s5551_s20 + $0x54] sm:$0xe]  ;;  %v2015_v11 = vsel %vm5572_vm2, %v2010_v59, %v2014_v61  ;;  %4192 = vmatpush.bf16.msra.mxu0 %v5334_v24  ;;  %v5261_v61 = vld [vmem:[%s5551_s20 + $0x60] sm:$0xff] }
  0xbd   : > { %v5952_v35 = vpop.f32.mrf.mxu0  ;;  %v4609_v19 = vrot.slane %v1055_v17, 9  ;;  %v2000_v57 = vrot.slane %v1999_v42, 4  ;;  %v2017_v17 = vshrl.u32 %v4818_v2, 16  ;;  %v2232_v31 = vunpack.c.l.b16 %v2015_v11 }
  0xbe   : > { %v5956_v38 = vpop.f32.mrf.mxu3 }
  0xbf   : > { %v1151_v43 = vsel %vm5790_vm6, %v4609_v19, %v1150_v14  ;;  %v2019_v39 = vrot.slane %v2017_v17, 4  ;;  %v4821_v17 = vld [vmem:[%s5551_s20 + $0x78] sm:$0xf] }
  0xc0   : > { %v5959_v50 = vpop.f32.mrf.mxu1 }
  0xc1   : > { %4783 = vmatmul.msk.bf16.gmra.mxu3 %vm669_vm3, %v5286_v36  ;;  %v5963_v52 = vpop.f32.mrf.mxu2  ;;  %v2229_v36 = vunpack.c.l.b16 %v1981_v20  ;;  %v2020_v20 = vshll.u32 %v4818_v2, 16 }
  0xc3   : > { %v2255_v33 = vpack.c.b16 %v2230_v44, %v2229_v36  ;;  %v4610_v36 = vrot.slane %v1056_v29, 9  ;;  %v1159_v44 = vrot.slane %v1157_v13, 4  ;;  %v2022_v42 = vrot.slane %v2020_v20, 5  ;;  %v4822_v20 = vld [vmem:[%s5551_s20 + $0x7c] sm:$0xf] }
  0xc5   : > { %v5970_v1 = vpop.f32.mrf.mxu0 }
  0xc6   : > { %4871 = vmatmul.msk.bf16.gmra.mxu0 %vm669_vm3, %v2254_v55  ;;  %v5975_v3 = vpop.f32.mrf.mxu3  ;;  %v1234_v55 = vunpack.c.l.b16 %v1151_v43  ;;  %v2028_v43 = vrot.slane %v2026_v21, 5  ;;  %v5459_v21 = vld [vmem:[%s5551_s20 + $0x70] sm:$0xf] }
  0xc7   : > { %4592 = vmatmul.msk.bf16.gmra.mxu1 %vm669_vm3, %v5259_v56  ;;  %v1235_v56 = vunpack.c.l.b16 %v1154_v63  ;;  %v2032_v63 = vrot.slane %v2030_v23, 4  ;;  %v1164_v23 = vrot.slane %v5459_v21, 5 }
  0xc8   : > { %v5979_v15 = vpop.f32.mrf.mxu1 }
  0xc9   : > { %v1259_v7 = vpack.c.b16 %v1235_v56, %v1234_v55  ;;  %v2023_v55 = vor.u32 %v2022_v42, %v2019_v39  ;;  %v2033_v56 = vor.u32 %v2032_v63, %v2028_v43  ;;  %v5460_v42 = vld [vmem:[%s5551_s20 + $0x74] sm:$0x1] }
  0xca   : > { %v1167_v63 = vrot.slane %v5460_v42, 5 }
  0xcb   : > { %v2034_v11 = vrot.slane %v2033_v56, 4 }
  0xcc   : > { %v5986_v22 = vpop.f32.mrf.mxu2  ;;  %4648 = vmatmul.msk.bf16.gmra.mxu2 %vm669_vm3, %v1258_v9  ;;  %v2005_v9 = vsel %vm5572_vm2, %v2000_v57, %v2004_v34  ;;  %v2036_v57 = vshll.u32 %v4820_v49, 16  ;;  %v5289_v49 = vld [vmem:[%s5551_s20 + $0x6c] sm:$0xff] }
  0xcd   : > { %v2231_v30 = vunpack.c.l.b16 %v2005_v9  ;;  %v2024_v9 = vrot.slane %v2023_v55, 4 }
  0xce   : > { %v2038_v12 = vrot.slane %v2036_v57, 5 }
  0xcf   : > { %v5992_v47 = vpop.f32.mrf.mxu0  ;;  %v2256_v53 = vpack.c.b16 %v2232_v31, %v2231_v30  ;;  %v2029_v24 = vsel %vm5572_vm2, %v2024_v9, %v2028_v43  ;;  %v2044_v30 = vshll.u32 %v4821_v17, 16  ;;  %v2050_v31 = vshll.u32 %v4822_v20, 16  ;;  %v4823_v9 = vld [vmem:[%s5551_s20 + $0x80] sm:$0x1] }
  0xd0   : > { %v5994_v41 = vpop.f32.mrf.mxu3 }
  0xd1   : > { %4784 = vmatmul.msk.bf16.gmra.mxu3 %vm669_vm3, %v5287_v46  ;;  %v5458_v46 = vld [vmem:[%s5551_s20 + $0x68] sm:$0x1] }
  0xd2   : > { %v1160_v19 = vrot.slane %v5458_v46, 5  ;;  %v1057_v46 = vld [vmem:[%s5551_s20 + $0x6c] sm:$0xe] }
  0xd4   : > { %v6005_v60 = vpop.f32.mrf.mxu1  ;;  %v6007_v4 = vpop.f32.mrf.mxu2 }
  0xd6   : > { %4872 = vmatmul.msk.bf16.gmra.mxu0 %vm669_vm3, %v2255_v33  ;;  %v1158_v33 = vsel %vm5790_vm6, %v4610_v36, %v1157_v13  ;;  %v2054_v36 = vshrl.u32 %v4822_v20, 16 }
  0xd7   : > { %4593 = vmatmul.msk.bf16.gmra.mxu1 %vm669_vm3, %v5260_v51  ;;  %v6019_v8 = vpop.f32.mrf.mxu0  ;;  %v1161_v51 = vsel %vm5790_vm6, %v1159_v44, %v1160_v19  ;;  %v1236_v2 = vunpack.c.l.b16 %v1158_v33  ;;  %v4611_v33 = vrot.slane %v1057_v46, 9 }
  0xd8   : > { %v6026_v14 = vpop.f32.mrf.mxu3  ;;  %v1237_v6 = vunpack.c.l.b16 %v1161_v51  ;;  %v1166_v51 = vrot.slane %v1164_v23, 4 }
  0xda   : > { %v1260_v29 = vpack.c.b16 %v1237_v6, %v1236_v2  ;;  %v2056_v2 = vrot.slane %v2054_v36, 4 }
  0xdc   : > { %4649 = vmatmul.msk.bf16.gmra.mxu2 %vm669_vm3, %v1259_v7  ;;  %v6034_v34 = vpop.f32.mrf.mxu1 }
  0xdf   : > { %v6037_v45 = vpop.f32.mrf.mxu2 }
  0xe1   : > { %4785 = vmatmul.msk.bf16.gmra.mxu3 %vm669_vm3, %v5288_v28  ;;  %v2041_v28 = vshrl.u32 %v4821_v17, 16  ;;  %v5262_v17 = vld [vmem:[%s5551_s20 + $0x6c] sm:$0xff] }
  0xe3   : > { %v6045_v59 = vpop.f32.mrf.mxu0  ;;  %v2043_v57 = vrot.slane %v2041_v28, 4 }
  0xe4   : > { %v6048_v62 = vpop.f32.mrf.mxu3  ;;  %v968_v0 = vpop.f32.mrf.mxu1 }
  0xe5   : > { %v969_v7 = vadd.f32 %v968_v0, %v5910_v37  ;;  %v2039_v37 = vsel %vm5572_vm2, %v2034_v11, %v2038_v12  ;;  %v2052_v0 = vrot.slane %v2050_v31, 5  ;;  %v1165_v11 = vsel %vm5790_vm6, %v4611_v33, %v1164_v23 }
  0xe6   : > { %4873 = vmatmul.msk.bf16.gmra.mxu0 %vm669_vm3, %v2256_v53  ;;  %v2233_v53 = vunpack.c.l.b16 %v2029_v24  ;;  %v2234_v55 = vunpack.c.l.b16 %v2039_v37  ;;  %v2060_v24 = vshll.u32 %v4823_v9, 16 }
  0xe7   : > { %v6052_v13 = vpop.f32.mrf.mxu2  ;;  %4594 = vmatmul.msk.bf16.gmra.mxu1 %vm669_vm3, %v5261_v61  ;;  %v2046_v61 = vrot.slane %v2044_v30, 5  ;;  %v2057_v21 = vor.u32 %v2056_v2, %v2052_v0 }
  0xe8   : > { %v2257_v12 = vpack.c.b16 %v2234_v55, %v2233_v53  ;;  %v2062_v42 = vrot.slane %v2060_v24, 5  ;;  %v4825_v53 = vld [vmem:[%s5551_s20 + $0x88] sm:$0xf]  ;;  %v5461_v55 = vld [vmem:[%s5551_s20 + $0x7c] sm:$0xf] }
  0xe9   : > { %v2047_v20 = vor.u32 %v2046_v61, %v2043_v57  ;;  %v1058_v57 = vld [vmem:[%s5551_s20 + $0x78] sm:$0xe] }
  0xeb   : > { %v6063_v19 = vpop.f32.mrf.mxu0  ;;  %v2048_v36 = vrot.slane %v2047_v20, 4 }
  0xec   : > { %v6065_v44 = vpop.f32.mrf.mxu3  ;;  %4650 = vmatmul.msk.bf16.gmra.mxu2 %vm669_vm3, %v1260_v29  ;;  %v970_v39 = vpop.f32.mrf.mxu1 }
  0xed   : > { %v971_v43 = vadd.f32 %v970_v39, %v5933_v5  ;;  %v1168_v5 = vsel %vm5790_vm6, %v1166_v51, %v1167_v63  ;;  %v2058_v39 = vrot.slane %v2057_v21, 4  ;;  %v4824_v63 = vld [vmem:[%s5551_s20 + $0x84] sm:$0xf]  ;;  %v5290_v21 = vld [vmem:[%s5551_s20 + $0x78] sm:$0xff] }
  0xee   : > { %v1239_v28 = vunpack.c.l.b16 %v1168_v5  ;;  %v2068_v61 = vshll.u32 %v4824_v63, 16  ;;  %v2078_v5 = vshrl.u32 %v4825_v53, 16 }
  0xef   : > { %v1349_v56 = vpop.f32.mrf.mxu2  ;;  %v2063_v9 = vsel %vm5572_vm2, %v2058_v39, %v2062_v42 }
  0xf0   : > { %v1429_v6 = vadd.f32 %v1349_v56, %v969_v7  ;;  %v1238_v7 = vunpack.c.l.b16 %v1165_v11  ;;  %v1171_v56 = vrot.slane %v5461_v55, 5  ;;  %v2074_v11 = vshll.u32 %v4825_v53, 16 }
  0xf1   : > { %4786 = vmatmul.msk.bf16.gmra.mxu3 %vm669_vm3, %v5289_v49  ;;  %v2080_v39 = vrot.slane %v2078_v5, 4 }
  0xf2   : > { %v1261_v51 = vpack.c.b16 %v1239_v28, %v1238_v7 }
  0xf3   : > { %v2346_v29 = vpop.f32.mrf.mxu0 }
  0xf4   : > { %v1664_v37 = vpop.f32.mrf.mxu3  ;;  %v973_v46 = vpop.f32.mrf.mxu1 }
  0xf5   : > { %v1744_v30 = vadd.f32 %v1664_v37, %v1429_v6  ;;  %v974_v23 = vadd.f32 %v973_v46, %v5952_v35  ;;  %v2065_v35 = vshrl.u32 %v4824_v63, 16  ;;  %v2053_v6 = vsel %vm5572_vm2, %v2048_v36, %v2052_v0 }
  0xf6   : > { %4874 = vmatmul.msk.bf16.gmra.mxu0 %vm669_vm3, %v2257_v12  ;;  %v5462_v12 = vld [vmem:[%s5551_s20 + $0x80] sm:$0x1]  ;;  %v4612_v37 = vrot.slane %v1058_v57, 9  ;;  %v1173_v46 = vrot.slane %v1171_v56, 4  ;;  %v2235_v7 = vunpack.c.l.b16 %v2053_v6  ;;  %v2236_v0 = vunpack.c.l.b16 %v2063_v9 }
  0xf7   : > { %v1351_v31 = vpop.f32.mrf.mxu2  ;;  %4595 = vmatmul.msk.bf16.gmra.mxu1 %vm669_vm3, %v5262_v17  ;;  %v6082_v49 = vadd.f32 %v2346_v29, %v1744_v30  ;;  %v1174_v29 = vrot.slane %v5462_v12, 5  ;;  %v2067_v28 = vrot.slane %v2065_v35, 4  ;;  %v2070_v30 = vrot.slane %v2068_v61, 5  ;;  %v5263_v35 = vld [vmem:[%s5551_s20 + $0x78] sm:$0xff] }
  0xf8   : > { %v1430_v33 = vadd.f32 %v1351_v31, %v971_v43  ;;  %v2076_v36 = vrot.slane %v2074_v11, 5  ;;  %v2258_v53 = vpack.c.b16 %v2236_v0, %v2235_v7  ;;  %v4828_v7 = vld [vmem:[%s5551_s20 + $0x94] sm:$0xf]  ;;  %v5463_v0 = vld [vmem:[%s5551_s20 + $0x88] sm:$0xf] }
  0xf9   : > { %v2071_v55 = vor.u32 %v2070_v30, %v2067_v28  ;;  %v1178_v28 = vrot.slane %v5463_v0, 5  ;;  %v1059_v30 = vld [vmem:[%s5551_s20 + $0x84] sm:$0xe] }
  0xfa   : > { %v2081_v61 = vor.u32 %v2080_v39, %v2076_v36 }
  0xfb   : > { %v2348_v2 = vpop.f32.mrf.mxu0  ;;  %v2072_v12 = vrot.slane %v2071_v55, 4 }
  0xfc   : > { %v1666_v43 = vpop.f32.mrf.mxu3  ;;  %4651 = vmatmul.msk.bf16.gmra.mxu2 %vm669_vm3, %v1261_v51  ;;  %v975_v17 = vpop.f32.mrf.mxu1  ;;  %v4826_v51 = vld [vmem:[%s5551_s20 + $0x8c] sm:$0x1] }
  0xfd   : > { %v1745_v20 = vadd.f32 %v1666_v43, %v1430_v33  ;;  %v976_v24 = vadd.f32 %v975_v17, %v5970_v1  ;;  %v1172_v33 = vsel %vm5790_vm6, %v4612_v37, %v1171_v56  ;;  %v1175_v1 = vsel %vm5790_vm6, %v1173_v46, %v1174_v29 }
  0xfe   : > { %v2084_v6 = vshll.u32 %v4826_v51, 16  ;;  %v1241_v11 = vunpack.c.l.b16 %v1175_v1  ;;  %v2082_v43 = vrot.slane %v2081_v61, 4  ;;  %v2102_v1 = vshrl.u32 %v4828_v7, 16  ;;  %v5291_v61 = vld [vmem:[%s5551_s20 + $0x84] sm:$0xff] }
  0xff   : > { %v1354_v31 = vpop.f32.mrf.mxu2  ;;  %v6095_v42 = vadd.f32 %v2348_v2, %v1745_v20  ;;  %v4827_v20 = vld [vmem:[%s5551_s20 + $0x90] sm:$0xf] }
 0x100   : > { %v1431_v63 = vadd.f32 %v1354_v31, %v974_v23  ;;  %v1240_v23 = vunpack.c.l.b16 %v1172_v33  ;;  %v2086_v17 = vrot.slane %v2084_v6, 5  ;;  %v2089_v31 = vshrl.u32 %v4827_v20, 16 }
 0x101   : > { %4787 = vmatmul.msk.bf16.gmra.mxu3 %vm669_vm3, %v5290_v21  ;;  %v2092_v51 = vshll.u32 %v4827_v20, 16  ;;  %v2098_v33 = vshll.u32 %v4828_v7, 16  ;;  %v4613_v6 = vrot.slane %v1059_v30, 9 }
 0x102   : > { %v1262_v46 = vpack.c.b16 %v1241_v11, %v1240_v23  ;;  %v2091_v11 = vrot.slane %v2089_v31, 4 }
 0x103   : > { %v2351_v57 = vpop.f32.mrf.mxu0 }
 0x104   : > { %v1669_v9 = vpop.f32.mrf.mxu3  ;;  %v978_v2 = vpop.f32.mrf.mxu1 }
 0x105   : > { %v1746_v5 = vadd.f32 %v1669_v9, %v1431_v63  ;;  %v979_v56 = vadd.f32 %v978_v2, %v5992_v47  ;;  %v2077_v47 = vsel %vm5572_vm2, %v2072_v12, %v2076_v36  ;;  %v2087_v63 = vsel %vm5572_vm2, %v2082_v43, %v2086_v17 }
 0x106   : > { %4875 = vmatmul.msk.bf16.gmra.mxu0 %vm669_vm3, %v2258_v53  ;;  %v5464_v53 = vld [vmem:[%s5551_s20 + $0x8c] sm:$0x1]  ;;  %v1180_v9 = vrot.slane %v1178_v28, 4  ;;  %v2237_v2 = vunpack.c.l.b16 %v2077_v47  ;;  %v2238_v23 = vunpack.c.l.b16 %v2087_v63  ;;  %v2094_v12 = vrot.slane %v2092_v51, 5  ;;  %v5264_v47 = vld [vmem:[%s5551_s20 + $0x84] sm:$0xff] }
 0x107   : > { %v1356_v29 = vpop.f32.mrf.mxu2  ;;  %4596 = vmatmul.msk.bf16.gmra.mxu1 %vm669_vm3, %v5263_v35  ;;  %v6108_v21 = vadd.f32 %v2351_v57, %v1746_v5  ;;  %v1181_v55 = vrot.slane %v5464_v53, 5  ;;  %v2104_v43 = vrot.slane %v2102_v1, 4 }
 0x108   : > { %v1432_v37 = vadd.f32 %v1356_v29, %v976_v24  ;;  %v2100_v29 = vrot.slane %v2098_v33, 5  ;;  %v2259_v7 = vpack.c.b16 %v2238_v23, %v2237_v2  ;;  %v2095_v30 = vor.u32 %v2094_v12, %v2091_v11  ;;  %v4831_v11 = vld [vmem:[%s5551_s20 + $0xa0] sm:$0xf] }
 0x10a   : > { %v2105_v31 = vor.u32 %v2104_v43, %v2100_v29  ;;  %v1060_v43 = vld [vmem:[%s5551_s20 + $0x90] sm:$0xe] }
 0x10b   : > { %v2353_v39 = vpop.f32.mrf.mxu0 }
 0x10c   : > { %v1671_v24 = vpop.f32.mrf.mxu3  ;;  %4652 = vmatmul.msk.bf16.gmra.mxu2 %vm669_vm3, %v1262_v46  ;;  %v980_v57 = vpop.f32.mrf.mxu1  ;;  %v4829_v46 = vld [vmem:[%s5551_s20 + $0x98] sm:$0x1] }
 0x10d   : > { %v1747_v35 = vadd.f32 %v1671_v24, %v1432_v37  ;;  %v981_v36 = vadd.f32 %v980_v57, %v6019_v8  ;;  %v1179_v37 = vsel %vm5790_vm6, %v4613_v6, %v1178_v28  ;;  %v1182_v8 = vsel %vm5790_vm6, %v1180_v9, %v1181_v55  ;;  %v5329_v55 = vld [vmem:[%s6949_s1 + $0xe0] sm:$0xff] }
 0x10e   : > { %v2108_v63 = vshll.u32 %v4829_v46, 16  ;;  %v1242_v33 = vunpack.c.l.b16 %v1179_v37  ;;  %v1243_v1 = vunpack.c.l.b16 %v1182_v8  ;;  %v5305_v24 = vld [vmem:[%s6949_s1 + $0xa0] sm:$0xff]  ;;  %3767 = vmatpush.bf16.msra.mxu3 %v5329_v55 }
 0x10f   : > { %v1359_v5 = vpop.f32.mrf.mxu2  ;;  %v6121_v17 = vadd.f32 %v2353_v39, %v1747_v35  ;;  %v5325_v39 = vld [vmem:[%s6949_s1 + $0xc0] sm:$0xff]  ;;  %v2096_v35 = vrot.slane %v2095_v30, 4  ;;  %2770 = vmatpush.bf16.msra.mxu1 %v5305_v24  ;;  %v5466_v30 = vld [vmem:[%s5551_s20 + $0x98] sm:$0x1] }
 0x110   : > { %v1433_v20 = vadd.f32 %v1359_v5, %v979_v56  ;;  %3085 = vmatpush.bf16.msra.mxu2 %v5325_v39  ;;  %v2110_v6 = vrot.slane %v2108_v63, 5  ;;  %v1263_v23 = vpack.c.b16 %v1243_v1, %v1242_v33  ;;  %v5465_v5 = vld [vmem:[%s5551_s20 + $0x94] sm:$0xf]  ;;  %v4614_v33 = vrot.slane %v1060_v43, 9 }
 0x111   : > { %4788 = vmatmul.msk.bf16.gmra.mxu3 %vm669_vm3, %v5291_v61  ;;  %v2106_v61 = vrot.slane %v2105_v31, 4  ;;  %v1185_v12 = vrot.slane %v5465_v5, 5  ;;  %v2101_v8 = vsel %vm5572_vm2, %v2096_v35, %v2100_v29  ;;  %v1188_v31 = vrot.slane %v5466_v30, 5 }
 0x113   : > { %v2356_v0 = vpop.f32.mrf.mxu0  ;;  %v1187_v1 = vrot.slane %v1185_v12, 4 }
 0x114   : > { %v1674_v56 = vpop.f32.mrf.mxu3  ;;  %v983_v51 = vpop.f32.mrf.mxu1 }
 0x115   : > { %v1748_v28 = vadd.f32 %v1674_v56, %v1433_v20  ;;  %v984_v53 = vadd.f32 %v983_v51, %v6045_v59  ;;  %v4830_v59 = vld [vmem:[%s5551_s20 + $0x9c] sm:$0xf]  ;;  %v5292_v51 = vld [vmem:[%s5551_s20 + $0x90] sm:$0xff] }
 0x116   : > { %4876 = vmatmul.msk.bf16.gmra.mxu0 %vm669_vm3, %v2259_v7  ;;  %v2113_v20 = vshrl.u32 %v4830_v59, 16  ;;  %v2116_v46 = vshll.u32 %v4830_v59, 16  ;;  %v2111_v7 = vsel %vm5572_vm2, %v2106_v61, %v2110_v6 }
 0x117   : > { %v1361_v57 = vpop.f32.mrf.mxu2  ;;  %4597 = vmatmul.msk.bf16.gmra.mxu1 %vm669_vm3, %v5264_v47  ;;  %v6143_v9 = vadd.f32 %v2356_v0, %v1748_v28  ;;  %v2122_v0 = vshll.u32 %v4831_v11, 16  ;;  %v5333_v47 = vld [vmem:[%s6949_s1 + $0x100] sm:$0xff]  ;;  %v2239_v28 = vunpack.c.l.b16 %v2101_v8  ;;  %v2240_v55 = vunpack.c.l.b16 %v2111_v7 }
 0x118   : > { %v1434_v2 = vadd.f32 %v1361_v57, %v981_v36  ;;  %v2126_v36 = vshrl.u32 %v4831_v11, 16  ;;  %4193 = vmatpush.bf16.msra.mxu0 %v5333_v47  ;;  %v2115_v24 = vrot.slane %v2113_v20, 4  ;;  %v2118_v57 = vrot.slane %v2116_v46, 5  ;;  %v4832_v11 = vld [vmem:[%s5551_s20 + $0xa4] sm:$0x1]  ;;  %v5265_v46 = vld [vmem:[%s5551_s20 + $0x90] sm:$0xff] }
 0x119   : > { %v2124_v61 = vrot.slane %v2122_v0, 5  ;;  %v2260_v5 = vpack.c.b16 %v2240_v55, %v2239_v28  ;;  %v2132_v7 = vshll.u32 %v4832_v11, 16  ;;  %v4834_v55 = vld [vmem:[%s5551_s20 + $0xac] sm:$0xf] }
 0x11a   : > { %v2128_v6 = vrot.slane %v2126_v36, 4  ;;  %v2119_v43 = vor.u32 %v2118_v57, %v2115_v24  ;;  %v1061_v24 = vld [vmem:[%s5551_s20 + $0x9c] sm:$0xe] }
 0x11b   : > { %v2358_v37 = vpop.f32.mrf.mxu0 }
 0x11c   : > { %v1676_v63 = vpop.f32.mrf.mxu3  ;;  %4653 = vmatmul.msk.bf16.gmra.mxu2 %vm669_vm3, %v1263_v23  ;;  %v985_v39 = vpop.f32.mrf.mxu1  ;;  %v2129_v8 = vor.u32 %v2128_v6, %v2124_v61 }
 0x11d   : > { %v1749_v56 = vadd.f32 %v1676_v63, %v1434_v2  ;;  %v986_v29 = vadd.f32 %v985_v39, %v6063_v19  ;;  %v1186_v19 = vsel %vm5790_vm6, %v4614_v33, %v1185_v12  ;;  %v1189_v2 = vsel %vm5790_vm6, %v1187_v1, %v1188_v31  ;;  %v4833_v39 = vld [vmem:[%s5551_s20 + $0xa8] sm:$0xf]  ;;  %v5467_v1 = vld [vmem:[%s5551_s20 + $0xa0] sm:$0xf] }
 0x11e   : > { %v1245_v36 = vunpack.c.l.b16 %v1189_v2  ;;  %v2120_v12 = vrot.slane %v2119_v43, 4  ;;  %v2130_v31 = vrot.slane %v2129_v8, 4  ;;  %v2134_v63 = vrot.slane %v2132_v7, 5 }
 0x11f   : > { %v1364_v35 = vpop.f32.mrf.mxu2  ;;  %v6159_v59 = vadd.f32 %v2358_v37, %v1749_v56  ;;  %v1192_v28 = vrot.slane %v5467_v1, 5  ;;  %v2140_v6 = vshll.u32 %v4833_v39, 16  ;;  %v2150_v2 = vshrl.u32 %v4834_v55, 16 }
 0x120   : > { %v1435_v23 = vadd.f32 %v1364_v35, %v984_v53  ;;  %v1244_v53 = vunpack.c.l.b16 %v1186_v19  ;;  %v2125_v57 = vsel %vm5572_vm2, %v2120_v12, %v2124_v61  ;;  %v2137_v35 = vshrl.u32 %v4833_v39, 16 }
 0x121   : > { %4789 = vmatmul.msk.bf16.gmra.mxu3 %vm669_vm3, %v5292_v51  ;;  %v2135_v11 = vsel %vm5572_vm2, %v2130_v31, %v2134_v63  ;;  %v2146_v19 = vshll.u32 %v4834_v55, 16  ;;  %v1194_v8 = vrot.slane %v1192_v28, 4  ;;  %v2241_v61 = vunpack.c.l.b16 %v2125_v57  ;;  %v4835_v55 = vld [vmem:[%s5551_s20 + $0xb0] sm:$0x1]  ;;  %v5266_v57 = vld [vmem:[%s5551_s20 + $0x9c] sm:$0xff] }
 0x122   : > { %v1264_v33 = vpack.c.b16 %v1245_v36, %v1244_v53  ;;  %v2242_v36 = vunpack.c.l.b16 %v2135_v11  ;;  %v2142_v12 = vrot.slane %v2140_v6, 5  ;;  %v2152_v63 = vrot.slane %v2150_v2, 4 }
 0x123   : > { %v2361_v20 = vpop.f32.mrf.mxu0  ;;  %v2148_v31 = vrot.slane %v2146_v19, 5  ;;  %v2156_v11 = vshll.u32 %v4835_v55, 16 }
 0x124   : > { %v1679_v37 = vpop.f32.mrf.mxu3  ;;  %v988_v0 = vpop.f32.mrf.mxu1 }
 0x125   : > { %v1750_v47 = vadd.f32 %v1679_v37, %v1435_v23  ;;  %v5293_v37 = vld [vmem:[%s5551_s20 + $0x9c] sm:$0xff]  ;;  %v989_v53 = vadd.f32 %v988_v0, %v5886_v48  ;;  %v2261_v48 = vpack.c.b16 %v2242_v36, %v2241_v61  ;;  %v2158_v61 = vrot.slane %v2156_v11, 5 }
 0x126   : > { %4877 = vmatmul.msk.bf16.gmra.mxu0 %vm669_vm3, %v2260_v5  ;;  %v5468_v5 = vld [vmem:[%s5551_s20 + $0xa4] sm:$0x1] }
 0x127   : > { %v1366_v30 = vpop.f32.mrf.mxu2  ;;  %4598 = vmatmul.msk.bf16.gmra.mxu1 %vm669_vm3, %v5265_v46  ;;  %v6171_v56 = vadd.f32 %v2361_v20, %v1750_v47  ;;  %v1195_v43 = vrot.slane %v5468_v5, 5  ;;  %v4615_v46 = vrot.slane %v1061_v24, 9  ;;  %v2139_v47 = vrot.slane %v2137_v35, 4 }
 0x128   : > { %v1436_v51 = vadd.f32 %v1366_v30, %v986_v29 }
 0x129   : > { %v2143_v0 = vor.u32 %v2142_v12, %v2139_v47 }
 0x12b   : > { %v2363_v23 = vpop.f32.mrf.mxu0 }
 0x12c   : > { %v1681_v29 = vpop.f32.mrf.mxu3  ;;  %4654 = vmatmul.msk.bf16.gmra.mxu2 %vm669_vm3, %v1264_v33  ;;  %v990_v20 = vpop.f32.mrf.mxu1  ;;  %v1193_v33 = vsel %vm5790_vm6, %v4615_v46, %v1192_v28  ;;  %v4836_v28 = vld [vmem:[%s5551_s20 + $0xb4] sm:$0xf]  ;;  %v2144_v46 = vrot.slane %v2143_v0, 4 }
 0x12d   : > { %v1751_v7 = vadd.f32 %v1681_v29, %v1436_v51  ;;  %v1196_v51 = vsel %vm5790_vm6, %v1194_v8, %v1195_v43  ;;  %v1246_v35 = vunpack.c.l.b16 %v1193_v33  ;;  %v4837_v29 = vld [vmem:[%s5551_s20 + $0xb8] sm:$0xf]  ;;  %v991_v43 = vadd.f32 %v990_v20, %v5902_v26 }
 0x12e   : > { %v1247_v6 = vunpack.c.l.b16 %v1196_v51  ;;  %v2161_v47 = vshrl.u32 %v4836_v28, 16  ;;  %v2164_v12 = vshll.u32 %v4836_v28, 16  ;;  %v2174_v33 = vshrl.u32 %v4837_v29, 16  ;;  %v1062_v51 = vld [vmem:[%s5551_s20 + $0xa8] sm:$0xe] }
 0x12f   : > { %v1369_v30 = vpop.f32.mrf.mxu2  ;;  %v6184_v39 = vadd.f32 %v2363_v23, %v1751_v7  ;;  %v2153_v23 = vor.u32 %v2152_v63, %v2148_v31  ;;  %v5469_v63 = vld [vmem:[%s5551_s20 + $0xac] sm:$0xf]  ;;  %v2149_v20 = vsel %vm5572_vm2, %v2144_v46, %v2148_v31 }
 0x130   : > { %v1437_v1 = vadd.f32 %v1369_v30, %v989_v53  ;;  %v1265_v7 = vpack.c.b16 %v1247_v6, %v1246_v35  ;;  %v2170_v30 = vshll.u32 %v4837_v29, 16  ;;  %v2163_v35 = vrot.slane %v2161_v47, 4 }
 0x131   : > { %4790 = vmatmul.msk.bf16.gmra.mxu3 %vm669_vm3, %v5293_v37  ;;  %v2154_v37 = vrot.slane %v2153_v23, 4  ;;  %v2166_v6 = vrot.slane %v2164_v12, 5  ;;  %v2176_v29 = vrot.slane %v2174_v33, 4  ;;  %v5267_v33 = vld [vmem:[%s5551_s20 + $0xa8] sm:$0xff] }
 0x132   : > { %v2172_v23 = vrot.slane %v2170_v30, 5 }
 0x133   : > { %v2366_v24 = vpop.f32.mrf.mxu0  ;;  %v2159_v55 = vsel %vm5572_vm2, %v2154_v37, %v2158_v61 }
 0x134   : > { %v1684_v19 = vpop.f32.mrf.mxu3  ;;  %v993_v2 = vpop.f32.mrf.mxu1  ;;  %v2244_v46 = vunpack.c.l.b16 %v2159_v55  ;;  %v2177_v12 = vor.u32 %v2176_v29, %v2172_v23 }
 0x135   : > { %v1752_v5 = vadd.f32 %v1684_v19, %v1437_v1  ;;  %v1199_v1 = vrot.slane %v5469_v63, 5  ;;  %v5294_v19 = vld [vmem:[%s5551_s20 + $0xa8] sm:$0xff]  ;;  %v994_v31 = vadd.f32 %v993_v2, %v5922_v54 }
 0x136   : > { %4878 = vmatmul.msk.bf16.gmra.mxu0 %vm669_vm3, %v2261_v48  ;;  %v5470_v48 = vld [vmem:[%s5551_s20 + $0xb0] sm:$0x1] }
 0x137   : > { %v1371_v8 = vpop.f32.mrf.mxu2  ;;  %4599 = vmatmul.msk.bf16.gmra.mxu1 %vm669_vm3, %v5266_v57  ;;  %v6198_v53 = vadd.f32 %v2366_v24, %v1752_v5  ;;  %v1202_v0 = vrot.slane %v5470_v48, 5  ;;  %v4616_v5 = vrot.slane %v1062_v51, 9  ;;  %v1201_v28 = vrot.slane %v1199_v1, 4 }
 0x138   : > { %v1438_v36 = vadd.f32 %v1371_v8, %v991_v43  ;;  %v2243_v43 = vunpack.c.l.b16 %v2149_v20  ;;  %v4838_v8 = vld [vmem:[%s5551_s20 + $0xbc] sm:$0x1] }
 0x139   : > { %v1203_v47 = vsel %vm5790_vm6, %v1201_v28, %v1202_v0  ;;  %v2180_v54 = vshll.u32 %v4838_v8, 16  ;;  %v4840_v28 = vld [vmem:[%s5551_s20 + $0xc4] sm:$0xf] }
 0x13a   : > { %v2262_v2 = vpack.c.b16 %v2244_v46, %v2243_v43  ;;  %v1249_v55 = vunpack.c.l.b16 %v1203_v47  ;;  %v1063_v43 = vld [vmem:[%s5551_s20 + $0xb4] sm:$0xe]  ;;  %v5472_v46 = vld [vmem:[%s5551_s20 + $0xb8] sm:$0xf]  ;;  %v2198_v47 = vshrl.u32 %v4840_v28, 16 }
 0x13b   : > { %v2368_v26 = vpop.f32.mrf.mxu0  ;;  %v1206_v8 = vrot.slane %v5472_v46, 5 }
 0x13c   : > { %v1686_v24 = vpop.f32.mrf.mxu3  ;;  %4655 = vmatmul.msk.bf16.gmra.mxu2 %vm669_vm3, %v1265_v7  ;;  %v995_v57 = vpop.f32.mrf.mxu1  ;;  %v2167_v7 = vor.u32 %v2166_v6, %v2163_v35  ;;  %v2182_v35 = vrot.slane %v2180_v54, 5  ;;  %v4839_v6 = vld [vmem:[%s5551_s20 + $0xc0] sm:$0xf]  ;;  %v5473_v54 = vld [vmem:[%s5551_s20 + $0x14] sm:$0x1] }
 0x13d   : > { %v1753_v11 = vadd.f32 %v1686_v24, %v1438_v36  ;;  %v1200_v36 = vsel %vm5790_vm6, %v4616_v5, %v1199_v1  ;;  %v2178_v1 = vrot.slane %v2177_v12, 4  ;;  %v996_v0 = vadd.f32 %v995_v57, %v5939_v16 }
 0x13e   : > { %v1248_v20 = vunpack.c.l.b16 %v1200_v36  ;;  %v2168_v24 = vrot.slane %v2167_v7, 4  ;;  %v2185_v57 = vshrl.u32 %v4839_v6, 16  ;;  %v2188_v7 = vshll.u32 %v4839_v6, 16  ;;  %v5295_v6 = vld [vmem:[%s5551_s20 + $0xb4] sm:$0xff] }
 0x13f   : > { %v1374_v37 = vpop.f32.mrf.mxu2  ;;  %v6211_v61 = vadd.f32 %v2368_v26, %v1753_v11  ;;  %v5471_v11 = vld [vmem:[%s5551_s20 + $0x10] sm:$0xf]  ;;  %v2183_v16 = vsel %vm5572_vm2, %v2178_v1, %v2182_v35  ;;  %v2194_v36 = vshll.u32 %v4840_v28, 16  ;;  %v1208_v1 = vrot.slane %v1206_v8, 4  ;;  %v4882_v35 = vld [vmem:[%s5551_s20 + $0xc] sm:$0xe] }
 0x140   : > { %v1439_v63 = vadd.f32 %v1374_v37, %v994_v31  ;;  %v1266_v31 = vpack.c.b16 %v1249_v55, %v1248_v20  ;;  %v5474_v20 = vld [vmem:[%s5551_s20 + $0xbc] sm:$0x1]  ;;  %v4898_v28 = vrot.slane %v4882_v35, 9 }
 0x141   : > { %4791 = vmatmul.msk.bf16.gmra.mxu3 %vm669_vm3, %v5294_v19  ;;  %v2524_v19 = vrot.slane %v5471_v11, 5  ;;  %v2187_v11 = vrot.slane %v2185_v57, 4 }
 0x143   : > { %v2371_v30 = vpop.f32.mrf.mxu0  ;;  %v2526_v12 = vrot.slane %v2524_v19, 4 }
 0x144   : > { %v1689_v51 = vpop.f32.mrf.mxu3  ;;  %v998_v26 = vpop.f32.mrf.mxu1 }
 0x145   : > { %v1754_v48 = vadd.f32 %v1689_v51, %v1439_v63  ;;  %v2173_v63 = vsel %vm5572_vm2, %v2168_v24, %v2172_v23  ;;  %v4617_v51 = vrot.slane %v1063_v43, 9  ;;  %v999_v46 = vadd.f32 %v998_v26, %v5959_v50 }
 0x146   : > { %4879 = vmatmul.msk.bf16.gmra.mxu0 %vm669_vm3, %v2262_v2  ;;  %v2527_v2 = vrot.slane %v5473_v54, 5  ;;  %v2245_v23 = vunpack.c.l.b16 %v2173_v63  ;;  %v2196_v43 = vrot.slane %v2194_v36, 5  ;;  %v2200_v54 = vrot.slane %v2198_v47, 4  ;;  %v4841_v63 = vld [vmem:[%s5551_s20 + $0xc8] sm:$0x1] }
 0x147   : > { %v1376_v5 = vpop.f32.mrf.mxu2  ;;  %4600 = vmatmul.msk.bf16.gmra.mxu1 %vm669_vm3, %v5267_v33  ;;  %v6227_v37 = vadd.f32 %v2371_v30, %v1754_v48  ;;  %v1209_v30 = vrot.slane %v5474_v20, 5  ;;  %v2246_v48 = vunpack.c.l.b16 %v2183_v16  ;;  %v2525_v16 = vsel %vm5790_vm6, %v4898_v28, %v2524_v19  ;;  %v5090_v36 = vld [vmem:[%s5551_s20 + $0x18] sm:$0xf] }
 0x148   : > { %v1440_v29 = vadd.f32 %v1376_v5, %v996_v0  ;;  %v2190_v5 = vrot.slane %v2188_v7, 5  ;;  %v2643_v50 = vunpack.c.l.b16 %v2525_v16  ;;  %v2204_v35 = vshll.u32 %v4841_v63, 16 }
 0x149   : > { %v1210_v7 = vsel %vm5790_vm6, %v1208_v1, %v1209_v30  ;;  %v2263_v47 = vpack.c.b16 %v2246_v48, %v2245_v23  ;;  %v3248_v30 = vshrl.u32 %v5090_v36, 16  ;;  %v3251_v1 = vshll.u32 %v5090_v36, 16 }
 0x14b   : > { %v2373_v33 = vpop.f32.mrf.mxu0  ;;  %v3250_v63 = vrot.slane %v3248_v30, 4 }
 0x14c   : > { %v1691_v55 = vpop.f32.mrf.mxu3  ;;  %4656 = vmatmul.msk.bf16.gmra.mxu2 %vm669_vm3, %v1266_v31  ;;  %v1000_v24 = vpop.f32.mrf.mxu1  ;;  %v1207_v31 = vsel %vm5790_vm6, %v4617_v51, %v1206_v8  ;;  %v6251_v8 = vld [vmem:[%s5551_s20 + $0x1c] sm:$0xf]  ;;  %v2201_v51 = vor.u32 %v2200_v54, %v2196_v43 }
 0x14d   : > { %v1755_v0 = vadd.f32 %v1691_v55, %v1440_v29  ;;  %v2528_v29 = vsel %vm5790_vm6, %v2526_v12, %v2527_v2  ;;  %v2191_v55 = vor.u32 %v2190_v5, %v2187_v11  ;;  %v5268_v2 = vld [vmem:[%s5551_s20 + $0xb4] sm:$0xff]  ;;  %v3261_v23 = vshrl.u32 %v6251_v8, 16 }
 0x14e   : > { %v2644_v26 = vunpack.c.l.b16 %v2528_v29  ;;  %v1001_v11 = vadd.f32 %v1000_v24, %v5979_v15 }
 0x14f   : > { %v1379_v20 = vpop.f32.mrf.mxu2  ;;  %v6255_v28 = vadd.f32 %v2373_v33, %v1755_v0  ;;  %v2192_v33 = vrot.slane %v2191_v55, 4  ;;  %v2202_v0 = vrot.slane %v2201_v51, 4  ;;  %v3263_v36 = vrot.slane %v3261_v23, 4 }
 0x150   : > { %v1441_v57 = vadd.f32 %v1379_v20, %v999_v46  ;;  %v6253_v19 = vpack.c.b16 %v2644_v26, %v2643_v50  ;;  %v1250_v46 = vunpack.c.l.b16 %v1207_v31  ;;  %v1251_v20 = vunpack.c.l.b16 %v1210_v7 }
 0x151   : > { %4792 = vmatmul.msk.bf16.gmra.mxu3 %vm669_vm3, %v5295_v6  ;;  %6955 = vst [vmem:[#allocation2_spill] sm:$0xff] %v6255_v28  ;;  %v3257_v6 = vshll.u32 %v6251_v8, 16  ;;  %v2206_v31 = vrot.slane %v2204_v35, 5  ;;  %v3253_v7 = vrot.slane %v3251_v1, 5  ;;  %v2197_v15 = vsel %vm5572_vm2, %v2192_v33, %v2196_v43  ;;  %v5178_v33 = vld [vmem:[%s5551_s20 + $0x18] sm:$0xe] }
 0x152   : > { %v1267_v54 = vpack.c.b16 %v1251_v20, %v1250_v46  ;;  %v5296_v20 = vld [vmem:[%s5551_s20 + $0xc0] sm:$0xff]  ;;  %v2247_v43 = vunpack.c.l.b16 %v2197_v15 }
 0x153   : > { %v2376_v12 = vpop.f32.mrf.mxu0  ;;  %v3259_v26 = vrot.slane %v3257_v6, 5  ;;  %v2207_v24 = vsel %vm5572_vm2, %v2202_v0, %v2206_v31  ;;  %v3254_v35 = vor.u32 %v3253_v7, %v3250_v63  ;;  %v5093_v0 = vld [vmem:[%s5551_s20 + $0x24] sm:$0xf]  ;;  %v6281_v31 = vld [vmem:[%s5551_s20 + $0x28] sm:$0xf] }
 0x154   : > { %v1694_v16 = vpop.f32.mrf.mxu3  ;;  %v1003_v29 = vpop.f32.mrf.mxu1  ;;  %v2248_v1 = vunpack.c.l.b16 %v2207_v24 }
 0x155   : > { %v1756_v48 = vadd.f32 %v1694_v16, %v1441_v57  ;;  %v6266_v57 = vld [vmem:[%s5551_s20 + $0x20] sm:$0x1]  ;;  %v1004_v30 = vadd.f32 %v1003_v29, %v6005_v60  ;;  %v3255_v23 = vrot.slane %v3254_v35, 4  ;;  %v5475_v29 = vld [vmem:[%s5551_s20 + $0x1c] sm:$0xf] }
 0x156   : > { %4880 = vmatmul.msk.bf16.gmra.mxu0 %vm669_vm3, %v2263_v47  ;;  %v2531_v7 = vrot.slane %v5475_v29, 5  ;;  %v4883_v35 = vld [vmem:[%s5551_s20 + $0x18] sm:$0xe] }
 0x157   : > { %v1381_v5 = vpop.f32.mrf.mxu2  ;;  %4601 = vmatmul.msk.bf16.gmra.mxu1 %vm669_vm3, %v5268_v2  ;;  %v6263_v28 = vadd.f32 %v2376_v12, %v1756_v48  ;;  %v3264_v2 = vor.u32 %v3263_v36, %v3259_v26  ;;  %v3267_v12 = vshll.u32 %v6266_v57, 16  ;;  %v3260_v15 = vsel %vm5572_vm2, %v3255_v23, %v3259_v26 }
 0x158   : > { %v1442_v50 = vadd.f32 %v1381_v5, %v1001_v11  ;;  %v2264_v5 = vpack.c.b16 %v2248_v1, %v2247_v43  ;;  %v3950_v26 = vrot.slane %v6266_v57, 5  ;;  %v5476_v43 = vld [vmem:[%s5551_s20 + $0x20] sm:$0x1]  ;;  %v4899_v23 = vrot.slane %v4883_v35, 9 }
 0x159   : > { %v3265_v48 = vrot.slane %v3264_v2, 4  ;;  %v3269_v11 = vrot.slane %v3267_v12, 5  ;;  %v3272_v2 = vshrl.u32 %v5093_v0, 16  ;;  %v3275_v12 = vshll.u32 %v5093_v0, 16 }
 0x15a   : > { %v2534_v1 = vrot.slane %v5476_v43, 5  ;;  %v2532_v35 = vsel %vm5790_vm6, %v4899_v23, %v2531_v7  ;;  %v5096_v23 = vld [vmem:[%s5551_s20 + $0x30] sm:$0xf] }
 0x15b   : > { %v2378_v47 = vpop.f32.mrf.mxu0  ;;  %v3270_v24 = vsel %vm5572_vm2, %v3265_v48, %v3269_v11  ;;  %v2533_v48 = vrot.slane %v2531_v7, 4  ;;  %v3277_v57 = vrot.slane %v3275_v12, 5 }
 0x15c   : > { %v1696_v55 = vpop.f32.mrf.mxu3  ;;  %4657 = vmatmul.msk.bf16.gmra.mxu2 %vm669_vm3, %v1267_v54  ;;  %v1005_v51 = vpop.f32.mrf.mxu1  ;;  %v3947_v54 = vrot.slane %v6251_v8, 5  ;;  %v3641_v0 = vunpack.c.l.b16 %v3270_v24 }
 0x15d   : > { %v1757_v46 = vadd.f32 %v1696_v55, %v1442_v50  ;;  %v5194_v55 = vrot.slane %v5178_v33, 9  ;;  %v5309_v33 = vld [vmem:[%s5551_s20 + $0x18] sm:$0xff]  ;;  %v2535_v24 = vsel %vm5790_vm6, %v2533_v48, %v2534_v1  ;;  %v6321_v48 = vld [vmem:[%s5551_s20 + $0x34] sm:$0xf] }
 0x15f   : > { %v1384_v16 = vpop.f32.mrf.mxu2  ;;  %v6283_v63 = vadd.f32 %v2378_v47, %v1757_v46  ;;  %v3281_v47 = vshll.u32 %v6281_v31, 16  ;;  %v3285_v46 = vshrl.u32 %v6281_v31, 16 }
 0x160   : > { %v1443_v6 = vadd.f32 %v1384_v16, %v1004_v30  ;;  %v3949_v30 = vrot.slane %v3947_v54, 4 }
 0x161   : > { %4793 = vmatmul.msk.bf16.gmra.mxu3 %vm669_vm3, %v5296_v20  ;;  %v1006_v20 = vadd.f32 %v1005_v51, %v6034_v34  ;;  %v3274_v51 = vrot.slane %v3272_v2, 4  ;;  %v6304_v29 = vrot.slane %v3281_v47, 5 }
 0x163   : > { %v2381_v60 = vpop.f32.mrf.mxu0  ;;  %v3278_v47 = vor.u32 %v3277_v57, %v3274_v51  ;;  %v5179_v51 = vld [vmem:[%s5551_s20 + $0x24] sm:$0xe] }
 0x164   : > { %v1699_v50 = vpop.f32.mrf.mxu3  ;;  %v1008_v36 = vpop.f32.mrf.mxu1 }
 0x165   : > { %v1758_v8 = vadd.f32 %v1699_v50, %v1443_v6  ;;  %v3640_v6 = vunpack.c.l.b16 %v3260_v15  ;;  %v3287_v50 = vrot.slane %v3285_v46, 4  ;;  %v1009_v7 = vadd.f32 %v1008_v36, %v5904_v27 }
 0x166   : > { %4881 = vmatmul.msk.bf16.gmra.mxu0 %vm669_vm3, %v2264_v5  ;;  %v3948_v5 = vsel %vm5790_vm6, %v5194_v55, %v3947_v54  ;;  %v3954_v27 = vrot.slane %v6281_v31, 5 }
 0x167   : > { %v1386_v16 = vpop.f32.mrf.mxu2  ;;  %4938 = vmatmul.msk.bf16.vlgmr.msra.gmra.mxu1 %vm669_vm3, %v6253_v19  ;;  %v6302_v34 = vadd.f32 %v2381_v60, %v1758_v8  ;;  %v3951_v19 = vsel %vm5790_vm6, %v3949_v30, %v3950_v26  ;;  %v3672_v60 = vpack.c.b16 %v3641_v0, %v3640_v6  ;;  %v4066_v55 = vunpack.c.l.b16 %v3948_v5 }
 0x168   : > { %v1444_v11 = vadd.f32 %v1386_v16, %v1006_v20  ;;  %v6313_v20 = vld [vmem:[%s5551_s20 + $0x2c] sm:$0x1]  ;;  %v4067_v12 = vunpack.c.l.b16 %v3951_v19  ;;  %v3288_v46 = vor.u32 %v3287_v50, %v6304_v29  ;;  %v2645_v30 = vunpack.c.l.b16 %v2532_v35 }
 0x169   : > { %v2646_v26 = vunpack.c.l.b16 %v2535_v24  ;;  %v3291_v43 = vshll.u32 %v6313_v20, 16  ;;  %v3296_v50 = vshrl.u32 %v5096_v23, 16  ;;  %v3299_v19 = vshll.u32 %v5096_v23, 16 }
 0x16a   : > { %v4098_v6 = vpack.c.b16 %v4067_v12, %v4066_v55  ;;  %v3305_v35 = vshll.u32 %v6321_v48, 16  ;;  %v3309_v24 = vshrl.u32 %v6321_v48, 16  ;;  %v5477_v55 = vld [vmem:[%s5551_s20 + $0x28] sm:$0xf]  ;;  %v3957_v31 = vrot.slane %v6313_v20, 5 }
 0x16b   : > { %v2383_v15 = vpop.f32.mrf.mxu0  ;;  %v2676_v0 = vpack.c.b16 %v2646_v26, %v2645_v30  ;;  %v3293_v5 = vrot.slane %v3291_v43, 5  ;;  %v2538_v12 = vrot.slane %v5477_v55, 5  ;;  %v5195_v30 = vrot.slane %v5179_v51, 9  ;;  %v5310_v55 = vld [vmem:[%s5551_s20 + $0x24] sm:$0xff] }
 0x16c   : > { %v1701_v54 = vpop.f32.mrf.mxu3  ;;  %5074 = vmatmul.msk.bf16.vlgmr.msra.gmra.mxu2 %vm669_vm3, %v5309_v33  ;;  %v1010_v2 = vpop.f32.mrf.mxu1  ;;  %v3289_v33 = vrot.slane %v3288_v46, 4  ;;  %v3301_v51 = vrot.slane %v3299_v19, 5  ;;  %v6342_v20 = vrot.slane %v3305_v35, 5 }
 0x16d   : > { %v1759_v8 = vadd.f32 %v1701_v54, %v1444_v11  ;;  %v3279_v11 = vrot.slane %v3278_v47, 4  ;;  %v5478_v47 = vld [vmem:[%s5551_s20 + $0x2c] sm:$0x1] }
 0x16e   : > { %v2541_v46 = vrot.slane %v5478_v47, 5  ;;  %v3294_v43 = vsel %vm5572_vm2, %v3289_v33, %v3293_v5  ;;  %v3955_v5 = vsel %vm5790_vm6, %v5195_v30, %v3954_v27 }
 0x16f   : > { %v1389_v1 = vpop.f32.mrf.mxu2  ;;  %v6326_v36 = vadd.f32 %v2383_v15, %v1759_v8  ;;  %v4884_v15 = vld [vmem:[%s5551_s20 + $0x24] sm:$0xe]  ;;  %v1011_v8 = vadd.f32 %v1010_v2, %v5925_v58  ;;  %v3284_v26 = vsel %vm5572_vm2, %v3279_v11, %v6304_v29  ;;  %v2540_v2 = vrot.slane %v2538_v12, 4 }
 0x170   : > { %v1445_v16 = vadd.f32 %v1389_v1, %v1009_v7  ;;  %v3956_v1 = vrot.slane %v3954_v27, 4  ;;  %v4900_v58 = vrot.slane %v4884_v15, 9  ;;  %v3642_v29 = vunpack.c.l.b16 %v3284_v26 }
 0x171   : > { %5162 = vmatmul.msk.bf16.vlgmr.msra.gmra.mxu3 %vm669_vm3, %v3672_v60  ;;  %6956 = vst [vmem:[#allocation3_spill] sm:$0xff] %v6326_v36  ;;  %v3643_v11 = vunpack.c.l.b16 %v3294_v43  ;;  %v6348_v36 = vld [vmem:[%s5551_s20 + $0x38] sm:$0x1] }
 0x172   : > { %v3315_v27 = vshll.u32 %v6348_v36, 16 }
 0x173   : > { %v2386_v57 = vpop.f32.mrf.mxu0  ;;  %v3673_v15 = vpack.c.b16 %v3643_v11, %v3642_v29  ;;  %v5479_v11 = vld [vmem:[%s5551_s20 + $0x34] sm:$0xf] }
 0x174   : > { %v1704_v54 = vpop.f32.mrf.mxu3  ;;  %v1013_v60 = vpop.f32.mrf.mxu1 }
 0x175   : > { %v1760_v7 = vadd.f32 %v1704_v54, %v1445_v16  ;;  %v3298_v16 = vrot.slane %v3296_v50, 4  ;;  %v3311_v54 = vrot.slane %v3309_v24, 4  ;;  %v2542_v24 = vsel %vm5790_vm6, %v2540_v2, %v2541_v46  ;;  %v6367_v2 = vld [vmem:[%s5551_s20 + $0x40] sm:$0xf] }
 0x176   : > { %5234 = vmatmul.msk.bf16.vlgmr.msra.gmra.mxu0 %vm669_vm3, %v4098_v6 }
 0x177   : > { %v1391_v23 = vpop.f32.mrf.mxu2  ;;  %4939 = vmatmul.msk.bf16.gmra.mxu1 %vm669_vm3, %v2676_v0  ;;  %v6345_v47 = vadd.f32 %v2386_v57, %v1760_v7  ;;  %v3958_v0 = vsel %vm5790_vm6, %v3956_v1, %v3957_v31  ;;  %v3302_v50 = vor.u32 %v3301_v51, %v3298_v16  ;;  %v2539_v57 = vsel %vm5790_vm6, %v4900_v58, %v2538_v12 }
 0x178   : > { %v1446_v6 = vadd.f32 %v1391_v23, %v1011_v8  ;;  %v3312_v7 = vor.u32 %v3311_v54, %v6342_v20  ;;  %v1014_v31 = vadd.f32 %v1013_v60, %v5942_v18  ;;  %v4068_v8 = vunpack.c.l.b16 %v3955_v5  ;;  %v5180_v54 = vld [vmem:[%s5551_s20 + $0x30] sm:$0xe] }
 0x179   : > { %v4069_v26 = vunpack.c.l.b16 %v3958_v0  ;;  %v2647_v1 = vunpack.c.l.b16 %v2539_v57  ;;  %v2648_v12 = vunpack.c.l.b16 %v2542_v24  ;;  %v3303_v16 = vrot.slane %v3302_v50, 4 }
 0x17a   : > { %v3313_v46 = vrot.slane %v3312_v7, 4  ;;  %v3317_v51 = vrot.slane %v3315_v27, 5  ;;  %v3961_v58 = vrot.slane %v6321_v48, 5  ;;  %v2545_v5 = vrot.slane %v5479_v11, 5  ;;  %v4885_v48 = vld [vmem:[%s5551_s20 + $0x30] sm:$0xe] }
 0x17b   : > { %v2388_v33 = vpop.f32.mrf.mxu0  ;;  %v2677_v29 = vpack.c.b16 %v2648_v12, %v2647_v1  ;;  %v5196_v24 = vrot.slane %v5180_v54, 9 }
 0x17c   : > { %v1706_v19 = vpop.f32.mrf.mxu3  ;;  %5075 = vmatmul.msk.bf16.gmra.mxu2 %vm669_vm3, %v5310_v55  ;;  %v1015_v35 = vpop.f32.mrf.mxu1  ;;  %v5099_v55 = vld [vmem:[%s5551_s20 + $0x3c] sm:$0xf]  ;;  %v3318_v57 = vsel %vm5572_vm2, %v3313_v46, %v3317_v51  ;;  %v5311_v51 = vld [vmem:[%s5551_s20 + $0x30] sm:$0xff] }
 0x17d   : > { %v1761_v30 = vadd.f32 %v1706_v19, %v1446_v6  ;;  %v4099_v6 = vpack.c.b16 %v4069_v26, %v4068_v8  ;;  %v3308_v19 = vsel %vm5572_vm2, %v3303_v16, %v6342_v20  ;;  %v3320_v7 = vshrl.u32 %v5099_v55, 16  ;;  %v5480_v26 = vld [vmem:[%s5551_s20 + $0x38] sm:$0x1] }
 0x17e   : > { %v3963_v8 = vrot.slane %v3961_v58, 4  ;;  %v3964_v20 = vrot.slane %v6348_v36, 5  ;;  %v3644_v12 = vunpack.c.l.b16 %v3308_v19  ;;  %v2547_v16 = vrot.slane %v2545_v5, 4 }
 0x17f   : > { %v1394_v43 = vpop.f32.mrf.mxu2  ;;  %v6369_v18 = vadd.f32 %v2388_v33, %v1761_v30  ;;  %v3323_v33 = vshll.u32 %v5099_v55, 16  ;;  %v3329_v30 = vshll.u32 %v6367_v2, 16  ;;  %v3645_v54 = vunpack.c.l.b16 %v3318_v57 }
 0x180   : > { %v1447_v23 = vadd.f32 %v1394_v43, %v1014_v31  ;;  %v1016_v31 = vadd.f32 %v1015_v35, %v5963_v52  ;;  %v2548_v43 = vrot.slane %v5480_v26, 5  ;;  %v3962_v55 = vsel %vm5790_vm6, %v5196_v24, %v3961_v58 }
 0x181   : > { %5163 = vmatmul.msk.bf16.gmra.mxu3 %vm669_vm3, %v3673_v15  ;;  %v3333_v15 = vshrl.u32 %v6367_v2, 16  ;;  %v3322_v52 = vrot.slane %v3320_v7, 4  ;;  %v3325_v35 = vrot.slane %v3323_v33, 5  ;;  %v6390_v36 = vrot.slane %v3329_v30, 5 }
 0x182   : > { %v2549_v57 = vsel %vm5790_vm6, %v2547_v16, %v2548_v43  ;;  %v4070_v24 = vunpack.c.l.b16 %v3962_v55  ;;  %v5181_v55 = vld [vmem:[%s5551_s20 + $0x3c] sm:$0xe] }
 0x183   : > { %v2391_v60 = vpop.f32.mrf.mxu0  ;;  %v3335_v11 = vrot.slane %v3333_v15, 4  ;;  %v3326_v30 = vor.u32 %v3325_v35, %v3322_v52 }
 0x184   : > { %v1709_v0 = vpop.f32.mrf.mxu3  ;;  %v1018_v50 = vpop.f32.mrf.mxu1 }
 0x185   : > { %v1762_v27 = vadd.f32 %v1709_v0, %v1447_v23  ;;  %v4901_v23 = vrot.slane %v4885_v48, 9  ;;  %v6399_v48 = vld [vmem:[%s5551_s20 + $0x44] sm:$0x1]  ;;  %v3336_v15 = vor.u32 %v3335_v11, %v6390_v36  ;;  %v3327_v16 = vrot.slane %v3326_v30, 4 }
 0x186   : > { %5235 = vmatmul.msk.bf16.gmra.mxu0 %vm669_vm3, %v4099_v6 }
 0x187   : > { %v1396_v1 = vpop.f32.mrf.mxu2  ;;  %4940 = vmatmul.msk.bf16.gmra.mxu1 %vm669_vm3, %v2677_v29  ;;  %v6388_v6 = vadd.f32 %v2391_v60, %v1762_v27  ;;  %v3965_v29 = vsel %vm5790_vm6, %v3963_v8, %v3964_v20  ;;  %v2546_v19 = vsel %vm5790_vm6, %v4901_v23, %v2545_v5  ;;  %v3674_v60 = vpack.c.b16 %v3645_v54, %v3644_v12  ;;  %v6407_v23 = vld [vmem:[%s5551_s20 + $0x4c] sm:$0xf] }
 0x188   : > { %v1448_v46 = vadd.f32 %v1396_v1, %v1016_v31  ;;  %v4071_v33 = vunpack.c.l.b16 %v3965_v29  ;;  %v1019_v5 = vadd.f32 %v1018_v50, %v5986_v22  ;;  %v2649_v31 = vunpack.c.l.b16 %v2546_v19  ;;  %v5102_v1 = vld [vmem:[%s5551_s20 + $0x48] sm:$0xf] }
 0x189   : > { %v2650_v8 = vunpack.c.l.b16 %v2549_v57  ;;  %v3339_v20 = vshll.u32 %v6399_v48, 16  ;;  %v3968_v22 = vrot.slane %v6367_v2, 5  ;;  %v3344_v35 = vshrl.u32 %v5102_v1, 16 }
 0x18a   : > { %v4100_v12 = vpack.c.b16 %v4071_v33, %v4070_v24  ;;  %v3347_v11 = vshll.u32 %v5102_v1, 16  ;;  %v3353_v29 = vshll.u32 %v6407_v23, 16  ;;  %v3357_v19 = vshrl.u32 %v6407_v23, 16  ;;  %v5482_v33 = vld [vmem:[%s5551_s20 + $0x44] sm:$0x1] }
 0x18b   : > { %v2393_v0 = vpop.f32.mrf.mxu0  ;;  %v3341_v54 = vrot.slane %v3339_v20, 5  ;;  %v2555_v30 = vrot.slane %v5482_v33, 5  ;;  %v3971_v2 = vrot.slane %v6399_v48, 5  ;;  %v3970_v20 = vrot.slane %v3968_v22, 4  ;;  %v6434_v33 = vld [vmem:[%s5551_s20 + $0x50] sm:$0x1] }
 0x18c   : > { %v1711_v58 = vpop.f32.mrf.mxu3  ;;  %5076 = vmatmul.msk.bf16.gmra.mxu2 %vm669_vm3, %v5311_v51  ;;  %v1020_v7 = vpop.f32.mrf.mxu1  ;;  %v2678_v51 = vpack.c.b16 %v2650_v8, %v2649_v31  ;;  %v3332_v31 = vsel %vm5572_vm2, %v3327_v16, %v6390_v36  ;;  %v3349_v1 = vrot.slane %v3347_v11, 5  ;;  %v6428_v48 = vrot.slane %v3353_v29, 5 }
 0x18d   : > { %v1763_v27 = vadd.f32 %v1711_v58, %v1448_v46  ;;  %v3337_v46 = vrot.slane %v3336_v15, 4  ;;  %v3646_v36 = vunpack.c.l.b16 %v3332_v31 }
 0x18f   : > { %v1399_v26 = vpop.f32.mrf.mxu2  ;;  %v6412_v50 = vadd.f32 %v2393_v0, %v1763_v27  ;;  %v4886_v0 = vld [vmem:[%s5551_s20 + $0x3c] sm:$0xe]  ;;  %v1021_v27 = vadd.f32 %v1020_v7, %v6007_v4  ;;  %v3342_v8 = vsel %vm5572_vm2, %v3337_v46, %v3341_v54 }
 0x190   : > { %v1449_v43 = vadd.f32 %v1399_v26, %v1019_v5  ;;  %v5197_v5 = vrot.slane %v5181_v55, 9  ;;  %v3359_v55 = vrot.slane %v3357_v19, 4  ;;  %v4902_v4 = vrot.slane %v4886_v0, 9 }
 0x191   : > { %5164 = vmatmul.msk.bf16.gmra.mxu3 %vm669_vm3, %v3674_v60  ;;  %v5481_v60 = vld [vmem:[%s5551_s20 + $0x40] sm:$0xf]  ;;  %v3647_v16 = vunpack.c.l.b16 %v3342_v8 }
 0x192   : > { %v2552_v24 = vrot.slane %v5481_v60, 5  ;;  %v3969_v54 = vsel %vm5790_vm6, %v5197_v5, %v3968_v22  ;;  %v3363_v22 = vshll.u32 %v6434_v33, 16 }
 0x193   : > { %v2396_v52 = vpop.f32.mrf.mxu0  ;;  %v3675_v0 = vpack.c.b16 %v3647_v16, %v3646_v36  ;;  %v5483_v16 = vld [vmem:[%s5551_s20 + $0x4c] sm:$0xf] }
 0x194   : > { %v1714_v57 = vpop.f32.mrf.mxu3  ;;  %v1023_v58 = vpop.f32.mrf.mxu1  ;;  %v2554_v7 = vrot.slane %v2552_v24, 4 }
 0x195   : > { %v1764_v15 = vadd.f32 %v1714_v57, %v1449_v43  ;;  %v3346_v43 = vrot.slane %v3344_v35, 4  ;;  %v5312_v57 = vld [vmem:[%s5551_s20 + $0x3c] sm:$0xff] }
 0x196   : > { %5236 = vmatmul.msk.bf16.gmra.mxu0 %vm669_vm3, %v4100_v12  ;;  %v2556_v19 = vsel %vm5790_vm6, %v2554_v7, %v2555_v30  ;;  %v6453_v7 = vld [vmem:[%s5551_s20 + $0x58] sm:$0xf] }
 0x197   : > { %v1401_v26 = vpop.f32.mrf.mxu2  ;;  %4941 = vmatmul.msk.bf16.gmra.mxu1 %vm669_vm3, %v2678_v51  ;;  %v6431_v60 = vadd.f32 %v2396_v52, %v1764_v15  ;;  %v3972_v51 = vsel %vm5790_vm6, %v3970_v20, %v3971_v2  ;;  %v3350_v35 = vor.u32 %v3349_v1, %v3346_v43  ;;  %v2553_v52 = vsel %vm5790_vm6, %v4902_v4, %v2552_v24 }
 0x198   : > { %v1450_v12 = vadd.f32 %v1401_v26, %v1021_v27  ;;  %v3360_v15 = vor.u32 %v3359_v55, %v6428_v48  ;;  %v1024_v2 = vadd.f32 %v1023_v58, %v6037_v45  ;;  %v4072_v27 = vunpack.c.l.b16 %v3969_v54  ;;  %v5182_v55 = vld [vmem:[%s5551_s20 + $0x48] sm:$0xe] }
 0x199   : > { %v4073_v31 = vunpack.c.l.b16 %v3972_v51  ;;  %v2651_v20 = vunpack.c.l.b16 %v2553_v52  ;;  %v2652_v24 = vunpack.c.l.b16 %v2556_v19  ;;  %v3351_v43 = vrot.slane %v3350_v35, 4 }
 0x19a   : > { %v3361_v30 = vrot.slane %v3360_v15, 4  ;;  %v3365_v1 = vrot.slane %v3363_v22, 5  ;;  %v3975_v4 = vrot.slane %v6407_v23, 5  ;;  %v2559_v54 = vrot.slane %v5483_v16, 5  ;;  %v4887_v23 = vld [vmem:[%s5551_s20 + $0x48] sm:$0xe] }
 0x19b   : > { %v2398_v46 = vpop.f32.mrf.mxu0  ;;  %v2679_v36 = vpack.c.b16 %v2652_v24, %v2651_v20  ;;  %v5198_v19 = vrot.slane %v5182_v55, 9 }
 0x19c   : > { %v1716_v11 = vpop.f32.mrf.mxu3  ;;  %5077 = vmatmul.msk.bf16.gmra.mxu2 %vm669_vm3, %v5312_v57  ;;  %v1025_v29 = vpop.f32.mrf.mxu1  ;;  %v5105_v57 = vld [vmem:[%s5551_s20 + $0x54] sm:$0xf]  ;;  %v3366_v52 = vsel %vm5572_vm2, %v3361_v30, %v3365_v1  ;;  %v5313_v1 = vld [vmem:[%s5551_s20 + $0x48] sm:$0xff] }
 0x19d   : > { %v1765_v5 = vadd.f32 %v1716_v11, %v1450_v12  ;;  %v4101_v12 = vpack.c.b16 %v4073_v31, %v4072_v27  ;;  %v3356_v11 = vsel %vm5572_vm2, %v3351_v43, %v6428_v48  ;;  %v3368_v15 = vshrl.u32 %v5105_v57, 16  ;;  %v5484_v31 = vld [vmem:[%s5551_s20 + $0x50] sm:$0x1] }
 0x19e   : > { %v3977_v27 = vrot.slane %v3975_v4, 4  ;;  %v3978_v48 = vrot.slane %v6434_v33, 5  ;;  %v3648_v24 = vunpack.c.l.b16 %v3356_v11  ;;  %v2561_v43 = vrot.slane %v2559_v54, 4 }
 0x19f   : > { %v1404_v8 = vpop.f32.mrf.mxu2  ;;  %v6455_v45 = vadd.f32 %v2398_v46, %v1765_v5  ;;  %v3371_v46 = vshll.u32 %v5105_v57, 16  ;;  %v3377_v5 = vshll.u32 %v6453_v7, 16  ;;  %v3649_v55 = vunpack.c.l.b16 %v3366_v52 }
 0x1a0   : > { %v1451_v26 = vadd.f32 %v1404_v8, %v1024_v2  ;;  %v1026_v2 = vadd.f32 %v1025_v29, %v6052_v13  ;;  %v2562_v8 = vrot.slane %v5484_v31, 5  ;;  %v3976_v57 = vsel %vm5790_vm6, %v5198_v19, %v3975_v4 }
 0x1a1   : > { %5165 = vmatmul.msk.bf16.gmra.mxu3 %vm669_vm3, %v3675_v0  ;;  %v3381_v0 = vshrl.u32 %v6453_v7, 16  ;;  %v3370_v13 = vrot.slane %v3368_v15, 4  ;;  %v3373_v29 = vrot.slane %v3371_v46, 5  ;;  %v6476_v33 = vrot.slane %v3377_v5, 5 }
 0x1a2   : > { %v2563_v52 = vsel %vm5790_vm6, %v2561_v43, %v2562_v8  ;;  %v4074_v19 = vunpack.c.l.b16 %v3976_v57  ;;  %v5183_v57 = vld [vmem:[%s5551_s20 + $0x54] sm:$0xe] }
 0x1a3   : > { %v2401_v58 = vpop.f32.mrf.mxu0  ;;  %v3383_v16 = vrot.slane %v3381_v0, 4  ;;  %v3374_v5 = vor.u32 %v3373_v29, %v3370_v13 }
 0x1a4   : > { %v1719_v51 = vpop.f32.mrf.mxu3  ;;  %v1028_v35 = vpop.f32.mrf.mxu1 }
 0x1a5   : > { %v1766_v22 = vadd.f32 %v1719_v51, %v1451_v26  ;;  %v4903_v26 = vrot.slane %v4887_v23, 9  ;;  %v6485_v23 = vld [vmem:[%s5551_s20 + $0x5c] sm:$0x1]  ;;  %v3384_v0 = vor.u32 %v3383_v16, %v6476_v33  ;;  %v3375_v43 = vrot.slane %v3374_v5, 4 }
 0x1a6   : > { %5237 = vmatmul.msk.bf16.gmra.mxu0 %vm669_vm3, %v4101_v12 }
 0x1a7   : > { %v1406_v20 = vpop.f32.mrf.mxu2  ;;  %4942 = vmatmul.msk.bf16.gmra.mxu1 %vm669_vm3, %v2679_v36  ;;  %v6474_v12 = vadd.f32 %v2401_v58, %v1766_v22  ;;  %v3979_v36 = vsel %vm5790_vm6, %v3977_v27, %v3978_v48  ;;  %v2560_v11 = vsel %vm5790_vm6, %v4903_v26, %v2559_v54  ;;  %v3676_v58 = vpack.c.b16 %v3649_v55, %v3648_v24  ;;  %v6493_v26 = vld [vmem:[%s5551_s20 + $0x64] sm:$0xf] }
 0x1a8   : > { %v1452_v30 = vadd.f32 %v1406_v20, %v1026_v2  ;;  %v4075_v46 = vunpack.c.l.b16 %v3979_v36  ;;  %v1029_v54 = vadd.f32 %v1028_v35, %v5916_v40  ;;  %v2653_v2 = vunpack.c.l.b16 %v2560_v11  ;;  %v5108_v20 = vld [vmem:[%s5551_s20 + $0x60] sm:$0xf] }
 0x1a9   : > { %v2654_v27 = vunpack.c.l.b16 %v2563_v52  ;;  %v3387_v48 = vshll.u32 %v6485_v23, 16  ;;  %v3982_v40 = vrot.slane %v6453_v7, 5  ;;  %v3392_v29 = vshrl.u32 %v5108_v20, 16 }
 0x1aa   : > { %v4102_v24 = vpack.c.b16 %v4075_v46, %v4074_v19  ;;  %v3395_v16 = vshll.u32 %v5108_v20, 16  ;;  %v3401_v36 = vshll.u32 %v6493_v26, 16  ;;  %v3405_v11 = vshrl.u32 %v6493_v26, 16  ;;  %v5486_v46 = vld [vmem:[%s5551_s20 + $0x5c] sm:$0x1] }
 0x1ab   : > { %v2403_v51 = vpop.f32.mrf.mxu0  ;;  %v3389_v55 = vrot.slane %v3387_v48, 5  ;;  %v2569_v5 = vrot.slane %v5486_v46, 5  ;;  %v3985_v7 = vrot.slane %v6485_v23, 5  ;;  %v3984_v48 = vrot.slane %v3982_v40, 4  ;;  %v6520_v46 = vld [vmem:[%s5551_s20 + $0x68] sm:$0x1] }
 0x1ac   : > { %v1721_v4 = vpop.f32.mrf.mxu3  ;;  %5078 = vmatmul.msk.bf16.gmra.mxu2 %vm669_vm3, %v5313_v1  ;;  %v1030_v15 = vpop.f32.mrf.mxu1  ;;  %v2680_v1 = vpack.c.b16 %v2654_v27, %v2653_v2  ;;  %v3380_v2 = vsel %vm5572_vm2, %v3375_v43, %v6476_v33  ;;  %v3397_v20 = vrot.slane %v3395_v16, 5  ;;  %v6514_v23 = vrot.slane %v3401_v36, 5 }
 0x1ad   : > { %v1767_v22 = vadd.f32 %v1721_v4, %v1452_v30  ;;  %v3385_v30 = vrot.slane %v3384_v0, 4  ;;  %v3650_v33 = vunpack.c.l.b16 %v3380_v2 }
 0x1af   : > { %v1409_v31 = vpop.f32.mrf.mxu2  ;;  %v6498_v35 = vadd.f32 %v2403_v51, %v1767_v22  ;;  %v4888_v51 = vld [vmem:[%s5551_s20 + $0x54] sm:$0xe]  ;;  %v1031_v22 = vadd.f32 %v1030_v15, %v5935_v10  ;;  %v3390_v27 = vsel %vm5572_vm2, %v3385_v30, %v3389_v55 }
 0x1b0   : > { %v1453_v8 = vadd.f32 %v1409_v31, %v1029_v54  ;;  %v5199_v54 = vrot.slane %v5183_v57, 9  ;;  %v3407_v57 = vrot.slane %v3405_v11, 4  ;;  %v4904_v10 = vrot.slane %v4888_v51, 9 }
 0x1b1   : > { %5166 = vmatmul.msk.bf16.gmra.mxu3 %vm669_vm3, %v3676_v58  ;;  %v5485_v58 = vld [vmem:[%s5551_s20 + $0x58] sm:$0xf]  ;;  %v3651_v43 = vunpack.c.l.b16 %v3390_v27 }
 0x1b2   : > { %v2566_v19 = vrot.slane %v5485_v58, 5  ;;  %v3983_v55 = vsel %vm5790_vm6, %v5199_v54, %v3982_v40  ;;  %v3411_v40 = vshll.u32 %v6520_v46, 16 }
 0x1b3   : > { %v2406_v13 = vpop.f32.mrf.mxu0  ;;  %v3677_v51 = vpack.c.b16 %v3651_v43, %v3650_v33 }
 0x1b4   : > { %v1724_v52 = vpop.f32.mrf.mxu3  ;;  %v1033_v4 = vpop.f32.mrf.mxu1  ;;  %v2568_v15 = vrot.slane %v2566_v19, 4 }
 0x1b5   : > { %v1768_v0 = vadd.f32 %v1724_v52, %v1453_v8  ;;  %v3394_v8 = vrot.slane %v3392_v29, 4  ;;  %v5314_v52 = vld [vmem:[%s5551_s20 + $0x54] sm:$0xff] }
 0x1b6   : > { %5238 = vmatmul.msk.bf16.gmra.mxu0 %vm669_vm3, %v4102_v24  ;;  %v2570_v11 = vsel %vm5790_vm6, %v2568_v15, %v2569_v5  ;;  %v3413_v5 = vrot.slane %v3411_v40, 5  ;;  %v6539_v15 = vld [vmem:[%s5551_s20 + $0x70] sm:$0xf]  ;;  %v4889_v40 = vld [vmem:[%s5551_s20 + $0x60] sm:$0xe] }
 0x1b7   : > { %v1411_v31 = vpop.f32.mrf.mxu2  ;;  %4943 = vmatmul.msk.bf16.gmra.mxu1 %vm669_vm3, %v2680_v1  ;;  %v6517_v58 = vadd.f32 %v2406_v13, %v1768_v0  ;;  %v3986_v1 = vsel %vm5790_vm6, %v3984_v48, %v3985_v7  ;;  %v3398_v29 = vor.u32 %v3397_v20, %v3394_v8  ;;  %v2567_v13 = vsel %vm5790_vm6, %v4904_v10, %v2566_v19 }
 0x1b8   : > { %v1454_v24 = vadd.f32 %v1411_v31, %v1031_v22  ;;  %v3408_v0 = vor.u32 %v3407_v57, %v6514_v23  ;;  %v1034_v7 = vadd.f32 %v1033_v4, %v5956_v38  ;;  %v4076_v22 = vunpack.c.l.b16 %v3983_v55  ;;  %v5111_v57 = vld [vmem:[%s5551_s20 + $0x6c] sm:$0xf] }
 0x1b9   : > { %v4077_v2 = vunpack.c.l.b16 %v3986_v1  ;;  %v2655_v48 = vunpack.c.l.b16 %v2567_v13  ;;  %v2656_v31 = vunpack.c.l.b16 %v2570_v11  ;;  %v3399_v8 = vrot.slane %v3398_v29, 4  ;;  %v5487_v13 = vld [vmem:[%s5551_s20 + $0x64] sm:$0xf] }
 0x1ba   : > { %v3409_v20 = vrot.slane %v3408_v0, 4  ;;  %v3989_v10 = vrot.slane %v6493_v26, 5  ;;  %v2573_v11 = vrot.slane %v5487_v13, 5  ;;  %v3416_v26 = vshrl.u32 %v5111_v57, 16 }
 0x1bb   : > { %v2408_v30 = vpop.f32.mrf.mxu0  ;;  %v2681_v33 = vpack.c.b16 %v2656_v31, %v2655_v48  ;;  %v3404_v29 = vsel %vm5572_vm2, %v3399_v8, %v6514_v23  ;;  %v3992_v23 = vrot.slane %v6520_v46, 5 }
 0x1bc   : > { %v1726_v16 = vpop.f32.mrf.mxu3  ;;  %5079 = vmatmul.msk.bf16.gmra.mxu2 %vm669_vm3, %v5314_v52  ;;  %v1035_v36 = vpop.f32.mrf.mxu1  ;;  %v5184_v52 = vld [vmem:[%s5551_s20 + $0x60] sm:$0xe]  ;;  %v3652_v31 = vunpack.c.l.b16 %v3404_v29  ;;  %v6567_v29 = vld [vmem:[%s5551_s20 + $0x74] sm:$0x1] }
 0x1bd   : > { %v1769_v54 = vadd.f32 %v1726_v16, %v1454_v24  ;;  %v4103_v24 = vpack.c.b16 %v4077_v2, %v4076_v22  ;;  %v5200_v43 = vrot.slane %v5184_v52, 9  ;;  %v3414_v16 = vsel %vm5572_vm2, %v3409_v20, %v3413_v5  ;;  %v5488_v2 = vld [vmem:[%s5551_s20 + $0x68] sm:$0x1]  ;;  %v5315_v5 = vld [vmem:[%s5551_s20 + $0x60] sm:$0xff] }
 0x1be   : > { %v3991_v22 = vrot.slane %v3989_v10, 4  ;;  %v4905_v52 = vrot.slane %v4889_v40, 9 }
 0x1bf   : > { %v1414_v27 = vpop.f32.mrf.mxu2  ;;  %v6541_v38 = vadd.f32 %v2408_v30, %v1769_v54  ;;  %v3419_v30 = vshll.u32 %v5111_v57, 16  ;;  %v3425_v54 = vshll.u32 %v6539_v15, 16  ;;  %v3990_v8 = vsel %vm5790_vm6, %v5200_v43, %v3989_v10 }
 0x1c0   : > { %v1455_v19 = vadd.f32 %v1414_v27, %v1034_v7  ;;  %v1036_v7 = vadd.f32 %v1035_v36, %v5975_v3  ;;  %v2576_v27 = vrot.slane %v5488_v2, 5  ;;  %v2575_v57 = vrot.slane %v2573_v11, 4 }
 0x1c1   : > { %5167 = vmatmul.msk.bf16.gmra.mxu3 %vm669_vm3, %v3677_v51  ;;  %v3429_v51 = vshrl.u32 %v6539_v15, 16  ;;  %v3418_v3 = vrot.slane %v3416_v26, 4  ;;  %v3421_v36 = vrot.slane %v3419_v30, 5  ;;  %v6562_v46 = vrot.slane %v3425_v54, 5 }
 0x1c2   : > { %v3993_v13 = vsel %vm5790_vm6, %v3991_v22, %v3992_v23  ;;  %v4078_v43 = vunpack.c.l.b16 %v3990_v8  ;;  %v2574_v26 = vsel %vm5790_vm6, %v4905_v52, %v2573_v11  ;;  %v3435_v22 = vshll.u32 %v6567_v29, 16  ;;  %v6579_v8 = vld [vmem:[%s5551_s20 + $0x7c] sm:$0xf]  ;;  %v5185_v52 = vld [vmem:[%s5551_s20 + $0x6c] sm:$0xe] }
 0x1c3   : > { %v2411_v4 = vpop.f32.mrf.mxu0  ;;  %v4079_v30 = vunpack.c.l.b16 %v3993_v13  ;;  %v3422_v54 = vor.u32 %v3421_v36, %v3418_v3  ;;  %v2657_v2 = vunpack.c.l.b16 %v2574_v26  ;;  %v3449_v13 = vshll.u32 %v6579_v8, 16 }
 0x1c4   : > { %v1729_v55 = vpop.f32.mrf.mxu3  ;;  %v1038_v1 = vpop.f32.mrf.mxu1 }
 0x1c5   : > { %v1770_v0 = vadd.f32 %v1729_v55, %v1455_v19  ;;  %v3653_v19 = vunpack.c.l.b16 %v3414_v16  ;;  %v3431_v55 = vrot.slane %v3429_v51, 4  ;;  %v4104_v11 = vpack.c.b16 %v4079_v30, %v4078_v43  ;;  %v4890_v43 = vld [vmem:[%s5551_s20 + $0x6c] sm:$0xe] }
 0x1c6   : > { %5239 = vmatmul.msk.bf16.gmra.mxu0 %vm669_vm3, %v4103_v24 }
 0x1c7   : > { %v1416_v48 = vpop.f32.mrf.mxu2  ;;  %4944 = vmatmul.msk.bf16.gmra.mxu1 %vm669_vm3, %v2681_v33  ;;  %v6560_v24 = vadd.f32 %v2411_v4, %v1770_v0  ;;  %v3678_v10 = vpack.c.b16 %v3653_v19, %v3652_v31  ;;  %v2577_v0 = vsel %vm5790_vm6, %v2575_v57, %v2576_v27  ;;  %v3432_v51 = vor.u32 %v3431_v55, %v6562_v46  ;;  %v5114_v31 = vld [vmem:[%s5551_s20 + $0x78] sm:$0xf] }
 0x1c8   : > { %v1456_v20 = vadd.f32 %v1416_v48, %v1036_v7  ;;  %v1039_v7 = vadd.f32 %v1038_v1, %v5994_v41  ;;  %v2658_v48 = vunpack.c.l.b16 %v2577_v0  ;;  %v3423_v27 = vrot.slane %v3422_v54, 4  ;;  %v5489_v0 = vld [vmem:[%s5551_s20 + $0x70] sm:$0xf] }
 0x1c9   : > { %v3996_v41 = vrot.slane %v6539_v15, 5  ;;  %v3440_v1 = vshrl.u32 %v5114_v31, 16  ;;  %v3443_v55 = vshll.u32 %v5114_v31, 16  ;;  %v2580_v30 = vrot.slane %v5489_v0, 5 }
 0x1ca   : > { %v2682_v36 = vpack.c.b16 %v2658_v48, %v2657_v2  ;;  %v3428_v15 = vsel %vm5572_vm2, %v3423_v27, %v6562_v46  ;;  %v4906_v48 = vrot.slane %v4890_v43, 9  ;;  %v3451_v46 = vrot.slane %v3449_v13, 5 }
 0x1cb   : > { %v2413_v33 = vpop.f32.mrf.mxu0  ;;  %v3445_v31 = vrot.slane %v3443_v55, 5 }
 0x1cc   : > { %v1731_v16 = vpop.f32.mrf.mxu3  ;;  %5080 = vmatmul.msk.bf16.gmra.mxu2 %vm669_vm3, %v5315_v5  ;;  %v1040_v4 = vpop.f32.mrf.mxu1  ;;  %v3437_v5 = vrot.slane %v3435_v22, 5  ;;  %v3998_v22 = vrot.slane %v3996_v41, 4 }
 0x1cd   : > { %v1771_v40 = vadd.f32 %v1731_v16, %v1456_v20  ;;  %v3433_v20 = vrot.slane %v3432_v51, 4  ;;  %v3453_v16 = vshrl.u32 %v6579_v8, 16  ;;  %v1041_v51 = vadd.f32 %v1040_v4, %v6026_v14 }
 0x1ce   : > { %v3654_v14 = vunpack.c.l.b16 %v3428_v15 }
 0x1cf   : > { %v1419_v23 = vpop.f32.mrf.mxu2  ;;  %v6584_v57 = vadd.f32 %v2413_v33, %v1771_v40  ;;  %v5201_v33 = vrot.slane %v5185_v52, 9  ;;  %v3999_v40 = vrot.slane %v6567_v29, 5  ;;  %v5316_v52 = vld [vmem:[%s5551_s20 + $0x6c] sm:$0xff]  ;;  %v2582_v29 = vrot.slane %v2580_v30, 4 }
 0x1d0   : > { %v1457_v19 = vadd.f32 %v1419_v23, %v1039_v7  ;;  %v3438_v7 = vsel %vm5572_vm2, %v3433_v20, %v3437_v5  ;;  %v3442_v23 = vrot.slane %v3440_v1, 4  ;;  %v6604_v20 = vld [vmem:[%s5551_s20 + $0x80] sm:$0x1] }
 0x1d1   : > { %5168 = vmatmul.msk.bf16.gmra.mxu3 %vm669_vm3, %v3678_v10  ;;  %v3655_v4 = vunpack.c.l.b16 %v3438_v7  ;;  %v3997_v1 = vsel %vm5790_vm6, %v5201_v33, %v3996_v41  ;;  %v3459_v15 = vshll.u32 %v6604_v20, 16 }
 0x1d2   : > { %v3446_v55 = vor.u32 %v3445_v31, %v3442_v23 }
 0x1d3   : > { %v2416_v3 = vpop.f32.mrf.mxu0  ;;  %v3679_v33 = vpack.c.b16 %v3655_v4, %v3654_v14 }
 0x1d4   : > { %v1734_v10 = vpop.f32.mrf.mxu3  ;;  %v1043_v26 = vpop.f32.mrf.mxu1 }
 0x1d5   : > { %v1772_v54 = vadd.f32 %v1734_v10, %v1457_v19  ;;  %v3455_v19 = vrot.slane %v3453_v16, 4  ;;  %v5490_v10 = vld [vmem:[%s5551_s20 + $0x74] sm:$0x1] }
 0x1d6   : > { %5240 = vmatmul.msk.bf16.gmra.mxu0 %vm669_vm3, %v4104_v11  ;;  %v2583_v11 = vrot.slane %v5490_v10, 5 }
 0x1d7   : > { %v1421_v2 = vpop.f32.mrf.mxu2  ;;  %4945 = vmatmul.msk.bf16.gmra.mxu1 %vm669_vm3, %v2682_v36  ;;  %v6601_v0 = vadd.f32 %v2416_v3, %v1772_v54  ;;  %v4000_v36 = vsel %vm5790_vm6, %v3998_v22, %v3999_v40  ;;  %v2581_v3 = vsel %vm5790_vm6, %v4906_v48, %v2580_v30  ;;  %v3456_v54 = vor.u32 %v3455_v19, %v3451_v46 }
 0x1d8   : > { %v1458_v27 = vadd.f32 %v1421_v2, %v1041_v51  ;;  %v2584_v43 = vsel %vm5790_vm6, %v2582_v29, %v2583_v11  ;;  %v1044_v40 = vadd.f32 %v1043_v26, %v6048_v62  ;;  %v4080_v51 = vunpack.c.l.b16 %v3997_v1  ;;  %v5186_v29 = vld [vmem:[%s5551_s20 + $0x78] sm:$0xe]  ;;  %v6622_v11 = vld [vmem:[%s5551_s20 + $0x88] sm:$0xf] }
 0x1d9   : > { %v4081_v7 = vunpack.c.l.b16 %v4000_v36  ;;  %v2659_v23 = vunpack.c.l.b16 %v2581_v3  ;;  %v2660_v2 = vunpack.c.l.b16 %v2584_v43  ;;  %v3447_v30 = vrot.slane %v3446_v55, 4  ;;  %v5491_v36 = vld [vmem:[%s5551_s20 + $0x7c] sm:$0xf] }
 0x1da   : > { %v3457_v31 = vrot.slane %v3456_v54, 4  ;;  %v4003_v19 = vrot.slane %v6579_v8, 5  ;;  %v5202_v1 = vrot.slane %v5186_v29, 9  ;;  %v2587_v55 = vrot.slane %v5491_v36, 5  ;;  %v5119_v36 = vld [vmem:[%s5551_s20 + $0x8c] sm:$0x1] }
 0x1db   : > { %v2418_v5 = vpop.f32.mrf.mxu0  ;;  %v4105_v10 = vpack.c.b16 %v4081_v7, %v4080_v51  ;;  %v2683_v14 = vpack.c.b16 %v2660_v2, %v2659_v23  ;;  %v3452_v4 = vsel %vm5572_vm2, %v3447_v30, %v3451_v46  ;;  %v4006_v54 = vrot.slane %v6604_v20, 5  ;;  %v5492_v30 = vld [vmem:[%s5551_s20 + $0x80] sm:$0x1] }
 0x1dc   : > { %v1736_v13 = vpop.f32.mrf.mxu3  ;;  %5081 = vmatmul.msk.bf16.gmra.mxu2 %vm669_vm3, %v5316_v52  ;;  %v1045_v16 = vpop.f32.mrf.mxu1  ;;  %v3461_v52 = vrot.slane %v3459_v15, 5  ;;  %v4005_v43 = vrot.slane %v4003_v19, 4  ;;  %v4891_v15 = vld [vmem:[%s5551_s20 + $0x78] sm:$0xe]  ;;  %v3477_v46 = vshrl.u32 %v6622_v11, 16  ;;  %v3656_v7 = vunpack.c.l.b16 %v3452_v4 }
 0x1dd   : > { %v1773_v41 = vadd.f32 %v1736_v13, %v1458_v27  ;;  %v5117_v27 = vld [vmem:[%s5551_s20 + $0x84] sm:$0xf]  ;;  %v1046_v51 = vadd.f32 %v1045_v16, %v6065_v44  ;;  %v4004_v20 = vsel %vm5790_vm6, %v5202_v1, %v4003_v19  ;;  %v4907_v23 = vrot.slane %v4891_v15, 9 }
 0x1de   : > { %v3462_v8 = vsel %vm5572_vm2, %v3457_v31, %v3461_v52  ;;  %v2589_v2 = vrot.slane %v2587_v55, 4  ;;  %v5317_v52 = vld [vmem:[%s5551_s20 + $0x78] sm:$0xff] }
 0x1df   : > { %v1424_v22 = vpop.f32.mrf.mxu2  ;;  %v6624_v62 = vadd.f32 %v2418_v5, %v1773_v41  ;;  %v3464_v5 = vshrl.u32 %v5117_v27, 16  ;;  %v3657_v29 = vunpack.c.l.b16 %v3462_v8  ;;  %v2588_v1 = vsel %vm5790_vm6, %v4907_v23, %v2587_v55  ;;  %v5187_v55 = vld [vmem:[%s5551_s20 + $0x84] sm:$0xe] }
 0x1e0   : > { %v1459_v48 = vadd.f32 %v1424_v22, %v1044_v40  ;;  %v3473_v40 = vshll.u32 %v6622_v11, 16 }
 0x1e1   : > { %5169 = vmatmul.msk.bf16.gmra.mxu3 %vm669_vm3, %v3679_v33  ;;  %v3467_v33 = vshll.u32 %v5117_v27, 16  ;;  %v4007_v27 = vsel %vm5790_vm6, %v4005_v43, %v4006_v54  ;;  %v3466_v44 = vrot.slane %v3464_v5, 4  ;;  %v4082_v43 = vunpack.c.l.b16 %v4004_v20 }
 0x1e2   : > { %v6646_v4 = vrot.slane %v3473_v40, 5  ;;  %v4083_v54 = vunpack.c.l.b16 %v4007_v27  ;;  %v3483_v40 = vshll.u32 %v5119_v36, 16 }
 0x1e3   : > { %v2421_v26 = vpop.f32.mrf.mxu0  ;;  %v3469_v16 = vrot.slane %v3467_v33, 5 }
 0x1e4   : > { %v1739_v13 = vpop.f32.mrf.mxu3  ;;  %v2772_v3 = vpop.f32.mrf.mxu1 }
 0x1e5   : > { %v1774_v41 = vadd.f32 %v1739_v13, %v1459_v48  ;;  %v2590_v48 = vrot.slane %v5492_v30, 5  ;;  %v5120_v30 = vld [vmem:[%s5551_s20 + $0x90] sm:$0xf] }
 0x1e6   : > { %5241 = vmatmul.msk.bf16.gmra.mxu0 %vm669_vm3, %v4105_v10 }
 0x1e7   : > { %v1426_v22 = vpop.f32.mrf.mxu2  ;;  %4946 = vmatmul.msk.bf16.gmra.mxu1 %vm669_vm3, %v2683_v14  ;;  %v6644_v10 = vadd.f32 %v2421_v26, %v1774_v41  ;;  %v3479_v14 = vrot.slane %v3477_v46, 4  ;;  %v2591_v13 = vsel %vm5790_vm6, %v2589_v2, %v2590_v48  ;;  %v3680_v26 = vpack.c.b16 %v3657_v29, %v3656_v7  ;;  %v6659_v48 = vld [vmem:[%s5551_s20 + $0x94] sm:$0xf] }
 0x1e8   : > { %v1460_v31 = vadd.f32 %v1426_v22, %v1046_v51  ;;  %v3470_v41 = vor.u32 %v3469_v16, %v3466_v44  ;;  %v2661_v46 = vunpack.c.l.b16 %v2588_v1  ;;  %v2662_v51 = vunpack.c.l.b16 %v2591_v13 }
 0x1e9   : > { %v3480_v33 = vor.u32 %v3479_v14, %v6646_v4  ;;  %v4010_v22 = vrot.slane %v6622_v11, 5  ;;  %v4106_v2 = vpack.c.b16 %v4083_v54, %v4082_v43  ;;  %v4013_v44 = vrot.slane %v5119_v36, 5  ;;  %v5493_v54 = vld [vmem:[%s5551_s20 + $0x88] sm:$0xf]  ;;  %v4892_v36 = vld [vmem:[%s5551_s20 + $0x84] sm:$0xe] }
 0x1ea   : > { %v3471_v7 = vrot.slane %v3470_v41, 4  ;;  %v2684_v29 = vpack.c.b16 %v2662_v51, %v2661_v46  ;;  %v2852_v11 = vadd.f32 %v2772_v3, %v6082_v49  ;;  %v3488_v1 = vshrl.u32 %v5120_v30, 16 }
 0x1eb   : > { %v2423_v19 = vpop.f32.mrf.mxu0  ;;  %v3481_v20 = vrot.slane %v3480_v33, 4  ;;  %v4012_v27 = vrot.slane %v4010_v22, 4  ;;  %v3491_v13 = vshll.u32 %v5120_v30, 16  ;;  %v2594_v41 = vrot.slane %v5493_v54, 5 }
 0x1ec   : > { %v1741_v8 = vpop.f32.mrf.mxu3  ;;  %5082 = vmatmul.msk.bf16.gmra.mxu2 %vm669_vm3, %v5317_v52  ;;  %v2774_v15 = vpop.f32.mrf.mxu1  ;;  %v5203_v52 = vrot.slane %v5187_v55, 9  ;;  %v3501_v33 = vshrl.u32 %v6659_v48, 16  ;;  %v3476_v49 = vsel %vm5572_vm2, %v3471_v7, %v6646_v4  ;;  %v3490_v55 = vrot.slane %v3488_v1, 4  ;;  %v5318_v4 = vld [vmem:[%s5551_s20 + $0x84] sm:$0xff] }
 0x1ed   : > { %v1775_v5 = vadd.f32 %v1741_v8, %v1460_v31  ;;  %v3485_v31 = vrot.slane %v3483_v40, 5  ;;  %v3497_v8 = vshll.u32 %v6659_v48, 16  ;;  %v2853_v46 = vadd.f32 %v2774_v15, %v6095_v42  ;;  %v6688_v42 = vld [vmem:[%s5551_s20 + $0x98] sm:$0x1] }
 0x1ee   : > { %v4908_v30 = vrot.slane %v4892_v36, 9  ;;  %v2596_v7 = vrot.slane %v2594_v41, 4  ;;  %v3658_v54 = vunpack.c.l.b16 %v3476_v49 }
 0x1ef   : > { %v3087_v23 = vpop.f32.mrf.mxu2  ;;  %v6662_v16 = vadd.f32 %v2423_v19, %v1775_v5  ;;  %v3486_v3 = vsel %vm5572_vm2, %v3481_v20, %v3485_v31  ;;  %v4011_v19 = vsel %vm5790_vm6, %v5203_v52, %v4010_v22  ;;  %v4014_v5 = vsel %vm5790_vm6, %v4012_v27, %v4013_v44  ;;  %v5494_v20 = vld [vmem:[%s5551_s20 + $0x8c] sm:$0x1] }
 0x1f0   : > { %v3167_v40 = vadd.f32 %v3087_v23, %v2852_v11  ;;  %v3493_v23 = vrot.slane %v3491_v13, 5  ;;  %v2597_v31 = vrot.slane %v5494_v20, 5  ;;  %v3503_v11 = vrot.slane %v3501_v33, 4  ;;  %v5123_v20 = vld [vmem:[%s5551_s20 + $0x9c] sm:$0xf] }
 0x1f1   : > { %5170 = vmatmul.msk.bf16.gmra.mxu3 %vm669_vm3, %v3680_v26  ;;  %6957 = vst [vmem:[#allocation4_spill] sm:$0xff] %v6662_v16  ;;  %v3659_v27 = vunpack.c.l.b16 %v3486_v3  ;;  %v4084_v44 = vunpack.c.l.b16 %v4011_v19  ;;  %v3507_v19 = vshll.u32 %v6688_v42, 16  ;;  %v6700_v16 = vld [vmem:[%s5551_s20 + $0xa0] sm:$0xf] }
 0x1f2   : > { %v3494_v33 = vor.u32 %v3493_v23, %v3490_v55 }
 0x1f3   : > { %v4195_v14 = vpop.f32.mrf.mxu0  ;;  %v3681_v3 = vpack.c.b16 %v3659_v27, %v3658_v54  ;;  %v3521_v54 = vshll.u32 %v6700_v16, 16  ;;  %v3525_v27 = vshrl.u32 %v6700_v16, 16 }
 0x1f4   : > { %v3769_v43 = vpop.f32.mrf.mxu3  ;;  %v6666_v26 = vpop.f32.mrf.mxu1 }
 0x1f5   : > { %v3849_v22 = vadd.f32 %v3769_v43, %v3167_v40  ;;  %v2598_v43 = vsel %vm5790_vm6, %v2596_v7, %v2597_v31  ;;  %v5188_v31 = vld [vmem:[%s5551_s20 + $0x90] sm:$0xe] }
 0x1f6   : > { %5242 = vmatmul.msk.bf16.gmra.mxu0 %vm669_vm3, %v4106_v2  ;;  %v6683_v2 = vrot.slane %v3497_v8, 5  ;;  %v2595_v8 = vsel %vm5790_vm6, %v4908_v30, %v2594_v41  ;;  %v3495_v30 = vrot.slane %v3494_v33, 4  ;;  %v4020_v33 = vrot.slane %v6688_v42, 5 }
 0x1f7   : > { %v3089_v51 = vpop.f32.mrf.mxu2  ;;  %4947 = vmatmul.msk.bf16.gmra.mxu1 %vm669_vm3, %v2684_v29  ;;  %v4085_v29 = vunpack.c.l.b16 %v4014_v5  ;;  %v4275_v36 = vadd.f32 %v4195_v14, %v3849_v22  ;;  %v3509_v14 = vrot.slane %v3507_v19, 5  ;;  %v3512_v22 = vshrl.u32 %v5123_v20, 16  ;;  %v4893_v19 = vld [vmem:[%s5551_s20 + $0x90] sm:$0xe] }
 0x1f8   : > { %v3168_v52 = vadd.f32 %v3089_v51, %v2853_v46  ;;  %v3504_v40 = vor.u32 %v3503_v11, %v6683_v2  ;;  %v2663_v51 = vunpack.c.l.b16 %v2595_v8  ;;  %v4017_v11 = vrot.slane %v6659_v48, 5 }
 0x1f9   : > { %v4107_v41 = vpack.c.b16 %v4085_v29, %v4084_v44  ;;  %v4307_v55 = vmax.f32 %v4275_v36, 0.0  ;;  %v2854_v44 = vadd.f32 %v6666_v26, %v6108_v21 }
 0x1fa   : > { %v3505_v7 = vrot.slane %v3504_v40, 4  ;;  %v5495_v40 = vld [vmem:[%s5551_s20 + $0x94] sm:$0xf]  ;;  %v4019_v26 = vrot.slane %v4017_v11, 4 }
 0x1fb   : > { %v4197_v15 = vpop.f32.mrf.mxu0  ;;  %v2601_v36 = vrot.slane %v5495_v40, 5 }
 0x1fc   : > { %v3771_v1 = vpop.f32.mrf.mxu3  ;;  %5083 = vmatmul.msk.bf16.gmra.mxu2 %vm669_vm3, %v5318_v4  ;;  %v2779_v13 = vpop.f32.mrf.mxu1  ;;  %v2664_v4 = vunpack.c.l.b16 %v2598_v43  ;;  %v5204_v43 = vrot.slane %v5188_v31, 9  ;;  %v3510_v21 = vsel %vm5572_vm2, %v3505_v7, %v3509_v14  ;;  %v4909_v7 = vrot.slane %v4893_v19, 9  ;;  %v5496_v14 = vld [vmem:[%s5551_s20 + $0x98] sm:$0x1] }
 0x1fd   : > { %v3850_v49 = vadd.f32 %v3771_v1, %v3168_v52  ;;  %v3515_v52 = vshll.u32 %v5123_v20, 16  ;;  %v2855_v20 = vadd.f32 %v2779_v13, %v6121_v17  ;;  %v2604_v31 = vrot.slane %v5496_v14, 5 }
 0x1fe   : > { %v2685_v1 = vpack.c.b16 %v2664_v4, %v2663_v51  ;;  %v6726_v51 = vrot.slane %v3521_v54, 5  ;;  %v3527_v4 = vrot.slane %v3525_v27, 4  ;;  %v4021_v17 = vsel %vm5790_vm6, %v4019_v26, %v4020_v33 }
 0x1ff   : > { %v4276_v5 = vadd.f32 %v4197_v15, %v3850_v49  ;;  %v3092_v46 = vpop.f32.mrf.mxu2  ;;  %v3517_v42 = vrot.slane %v3515_v52, 5  ;;  %v4018_v52 = vsel %vm5790_vm6, %v5204_v43, %v4017_v11 }
 0x200   : > { %v3169_v49 = vadd.f32 %v3092_v46, %v2854_v44  ;;  %v3528_v54 = vor.u32 %v3527_v4, %v6726_v51  ;;  %v4086_v40 = vunpack.c.l.b16 %v4018_v52  ;;  %v4024_v4 = vrot.slane %v6700_v16, 5  ;;  %v5126_v52 = vld [vmem:[%s5551_s20 + $0xa8] sm:$0xf] }
 0x201   : > { %v4308_v23 = vmax.f32 %v4276_v5, 0.0  ;;  %5171 = vmatmul.msk.bf16.gmra.mxu3 %vm669_vm3, %v3681_v3  ;;  %v3500_v3 = vsel %vm5572_vm2, %v3495_v30, %v6683_v2  ;;  %v3514_v5 = vrot.slane %v3512_v22, 4  ;;  %v5319_v2 = vld [vmem:[%s5551_s20 + $0x90] sm:$0xff]  ;;  %v3661_v22 = vunpack.c.l.b16 %v3510_v21 }
 0x202   : > { %v3660_v30 = vunpack.c.l.b16 %v3500_v3  ;;  %v4087_v21 = vunpack.c.l.b16 %v4021_v17  ;;  %v3529_v19 = vrot.slane %v3528_v54, 4 }
 0x203   : > { %v5340_v15 = vpack.c.bf16 %v4308_v23, %v4307_v55  ;;  %v4200_v29 = vpop.f32.mrf.mxu0  ;;  %v6731_v55 = vld [vmem:[%s5551_s20 + $0xa4] sm:$0x1]  ;;  %v2603_v23 = vrot.slane %v2601_v36, 4  ;;  %v3518_v13 = vor.u32 %v3517_v42, %v3514_v5  ;;  %v5189_v42 = vld [vmem:[%s5551_s20 + $0x9c] sm:$0xe] }
 0x204   : > { %v3774_v48 = vpop.f32.mrf.mxu3  ;;  %v6714_v8 = vpop.f32.mrf.mxu1  ;;  %v3531_v27 = vshll.u32 %v6731_v55, 16  ;;  %v3682_v3 = vpack.c.b16 %v3661_v22, %v3660_v30  ;;  %v5205_v30 = vrot.slane %v5189_v42, 9  ;;  %v5320_v42 = vld [vmem:[%s5551_s20 + $0x9c] sm:$0xff] }
 0x205   : > { %5341 = vst [vmem:[%s6708_s13] sm:$0xff] %v5340_v15   ;;  %v3851_v15 = vadd.f32 %v3774_v48, %v3169_v49  ;;  %v2602_v49 = vsel %vm5790_vm6, %v4909_v7, %v2601_v36  ;;  %v2605_v11 = vsel %vm5790_vm6, %v2603_v23, %v2604_v31  ;;  %v3519_v26 = vrot.slane %v3518_v13, 4 }
 0x206   : > { %5243 = vmatmul.msk.bf16.gmra.mxu0 %vm669_vm3, %v4107_v41  ;;  %v3533_v5 = vrot.slane %v3531_v27, 5  ;;  %v2666_v14 = vunpack.c.l.b16 %v2605_v11  ;;  %v4026_v31 = vrot.slane %v4024_v4, 4  ;;  %v2856_v17 = vadd.f32 %v6714_v8, %v6143_v9 }
 0x207   : > { %v3094_v46 = vpop.f32.mrf.mxu2  ;;  %4948 = vmatmul.msk.bf16.gmra.mxu1 %vm669_vm3, %v2685_v1  ;;  %v4277_v43 = vadd.f32 %v4200_v29, %v3851_v15  ;;  %v4108_v29 = vpack.c.b16 %v4087_v21, %v4086_v40  ;;  %v3524_v23 = vsel %vm5572_vm2, %v3519_v26, %v6726_v51  ;;  %v4027_v15 = vrot.slane %v6731_v55, 5  ;;  %v5497_v40 = vld [vmem:[%s5551_s20 + $0xa0] sm:$0xf] }
 0x208   : > { %v3170_v41 = vadd.f32 %v3094_v46, %v2855_v20  ;;  %v3534_v16 = vsel %vm5572_vm2, %v3529_v19, %v3533_v5  ;;  %v3536_v27 = vshrl.u32 %v5126_v52, 16  ;;  %v2608_v51 = vrot.slane %v5497_v40, 5 }
 0x209   : > { %v4309_v36 = vmax.f32 %v4277_v43, 0.0  ;;  %v4894_v43 = vld [vmem:[%s5551_s20 + $0x9c] sm:$0xe]  ;;  %v3662_v9 = vunpack.c.l.b16 %v3524_v23  ;;  %v3663_v8 = vunpack.c.l.b16 %v3534_v16  ;;  %v4025_v26 = vsel %vm5790_vm6, %v5205_v30, %v4024_v4 }
 0x20a   : > { %v4028_v19 = vsel %vm5790_vm6, %v4026_v31, %v4027_v15  ;;  %v3538_v5 = vrot.slane %v3536_v27, 4  ;;  %v4088_v4 = vunpack.c.l.b16 %v4025_v26 }
 0x20b   : > { %v4202_v44 = vpop.f32.mrf.mxu0  ;;  %v3683_v16 = vpack.c.b16 %v3663_v8, %v3662_v9  ;;  %v4089_v31 = vunpack.c.l.b16 %v4028_v19  ;;  %v5129_v9 = vld [vmem:[%s5551_s20 + $0xb4] sm:$0xf]  ;;  %v6789_v8 = vld [vmem:[%s5551_s20 + $0xb8] sm:$0xf] }
 0x20c   : > { %v3776_v1 = vpop.f32.mrf.mxu3  ;;  %5084 = vmatmul.msk.bf16.gmra.mxu2 %vm669_vm3, %v5319_v2  ;;  %v2784_v48 = vpop.f32.mrf.mxu1  ;;  %v2665_v2 = vunpack.c.l.b16 %v2602_v49  ;;  %v3539_v49 = vshll.u32 %v5126_v52, 16 }
 0x20d   : > { %v3852_v33 = vadd.f32 %v3776_v1, %v3170_v41  ;;  %v6757_v41 = vld [vmem:[%s5551_s20 + $0xac] sm:$0xf] }
 0x20e   : > { %v2686_v54 = vpack.c.b16 %v2666_v14, %v2665_v2  ;;  %v3545_v55 = vshll.u32 %v6757_v41, 16  ;;  %v5498_v2 = vld [vmem:[%s5551_s20 + $0xa4] sm:$0x1]  ;;  %v3541_v52 = vrot.slane %v3539_v49, 5 }
 0x20f   : > { %v4278_v20 = vadd.f32 %v4202_v44, %v3852_v33  ;;  %v3097_v46 = vpop.f32.mrf.mxu2  ;;  %v3549_v33 = vshrl.u32 %v6757_v41, 16  ;;  %v2611_v14 = vrot.slane %v5498_v2, 5  ;;  %v3573_v2 = vshrl.u32 %v6789_v8, 16 }
 0x210   : > { %v3171_v11 = vadd.f32 %v3097_v46, %v2856_v17  ;;  %v2610_v46 = vrot.slane %v2608_v51, 4 }
 0x211   : > { %v4310_v7 = vmax.f32 %v4278_v20, 0.0  ;;  %5172 = vmatmul.msk.bf16.gmra.mxu3 %vm669_vm3, %v3682_v3  ;;  %v2857_v3 = vadd.f32 %v2784_v48, %v6159_v59  ;;  %v4910_v20 = vrot.slane %v4894_v43, 9  ;;  %v6775_v59 = vrot.slane %v3545_v55, 5 }
 0x212   : > { %v3551_v48 = vrot.slane %v3549_v33, 4  ;;  %v2612_v17 = vsel %vm5790_vm6, %v2610_v46, %v2611_v14  ;;  %v3569_v46 = vshll.u32 %v6789_v8, 16 }
 0x213   : > { %v5345_v22 = vpack.c.bf16 %v4310_v7, %v4309_v36  ;;  %v4205_v13 = vpop.f32.mrf.mxu0  ;;  %v2668_v33 = vunpack.c.l.b16 %v2612_v17 }
 0x214   : > { %v3779_v44 = vpop.f32.mrf.mxu3  ;;  %v2787_v1 = vpop.f32.mrf.mxu1  ;;  %v3552_v40 = vor.u32 %v3551_v48, %v6775_v59  ;;  %v4031_v48 = vrot.slane %v6757_v41, 5 }
 0x215   : > { %5417 = vst [vmem:[%s6708_s13 + $0x8] sm:$0xff] %v5345_v22   ;;  %v3853_v36 = vadd.f32 %v3779_v44, %v3171_v11  ;;  %v2609_v22 = vsel %vm5790_vm6, %v4910_v20, %v2608_v51  ;;  %v3563_v20 = vshll.u32 %v5129_v9, 16 }
 0x216   : > { %5244 = vmatmul.msk.bf16.gmra.mxu0 %vm669_vm3, %v4108_v29  ;;  %v6778_v29 = vld [vmem:[%s5551_s20 + $0xb0] sm:$0x1]  ;;  %v2667_v55 = vunpack.c.l.b16 %v2609_v22 }
 0x217   : > { %v3099_v21 = vpop.f32.mrf.mxu2  ;;  %4949 = vmatmul.msk.bf16.gmra.mxu1 %vm669_vm3, %v2686_v54  ;;  %v3542_v54 = vor.u32 %v3541_v52, %v3538_v5  ;;  %v4279_v27 = vadd.f32 %v4205_v13, %v3853_v36  ;;  %v3555_v49 = vshll.u32 %v6778_v29, 16  ;;  %v3553_v13 = vrot.slane %v3552_v40, 4  ;;  %v5190_v5 = vld [vmem:[%s5551_s20 + $0xa8] sm:$0xe] }
 0x218   : > { %v3172_v7 = vadd.f32 %v3099_v21, %v2857_v3  ;;  %v4109_v3 = vpack.c.b16 %v4089_v31, %v4088_v4  ;;  %v2858_v52 = vadd.f32 %v2787_v1, %v6171_v56  ;;  %v5499_v4 = vld [vmem:[%s5551_s20 + $0xac] sm:$0xf]  ;;  %v5206_v56 = vrot.slane %v5190_v5, 9  ;;  %v4895_v1 = vld [vmem:[%s5551_s20 + $0xa8] sm:$0xe] }
 0x219   : > { %v3543_v51 = vrot.slane %v3542_v54, 4  ;;  %v4311_v21 = vmax.f32 %v4279_v27, 0.0  ;;  %v3557_v19 = vrot.slane %v3555_v49, 5  ;;  %v3565_v54 = vrot.slane %v3563_v20, 5 }
 0x21a   : > { %v6806_v27 = vrot.slane %v3569_v46, 5 }
 0x21b   : > { %v4207_v23 = vpop.f32.mrf.mxu0  ;;  %v3548_v22 = vsel %vm5572_vm2, %v3543_v51, %v6775_v59  ;;  %v3558_v17 = vsel %vm5572_vm2, %v3553_v13, %v3557_v19  ;;  %v4034_v59 = vrot.slane %v6778_v29, 5  ;;  %v5500_v51 = vld [vmem:[%s5551_s20 + $0xb0] sm:$0x1] }
 0x21c   : > { %v3781_v30 = vpop.f32.mrf.mxu3  ;;  %5085 = vmatmul.msk.bf16.gmra.mxu2 %vm669_vm3, %v5320_v42  ;;  %v2789_v15 = vpop.f32.mrf.mxu1  ;;  %v3560_v42 = vshrl.u32 %v5129_v9, 16  ;;  %v3664_v13 = vunpack.c.l.b16 %v3548_v22  ;;  %v3665_v19 = vunpack.c.l.b16 %v3558_v17 }
 0x21d   : > { %v3854_v44 = vadd.f32 %v3781_v30, %v3172_v7  ;;  %v2687_v7 = vpack.c.b16 %v2668_v33, %v2667_v55  ;;  %v2615_v30 = vrot.slane %v5499_v4, 5  ;;  %v2859_v40 = vadd.f32 %v2789_v15, %v6184_v39  ;;  %v5321_v55 = vld [vmem:[%s5551_s20 + $0xa8] sm:$0xff] }
 0x21e   : > { %v3562_v41 = vrot.slane %v3560_v42, 4  ;;  %v4911_v33 = vrot.slane %v4895_v1, 9  ;;  %v4032_v39 = vsel %vm5790_vm6, %v5206_v56, %v4031_v48 }
 0x21f   : > { %v4280_v11 = vadd.f32 %v4207_v23, %v3854_v44  ;;  %v3102_v43 = vpop.f32.mrf.mxu2  ;;  %v3575_v44 = vrot.slane %v3573_v2, 4  ;;  %v2617_v9 = vrot.slane %v2615_v30, 4  ;;  %v4090_v4 = vunpack.c.l.b16 %v4032_v39 }
 0x220   : > { %v3173_v31 = vadd.f32 %v3102_v43, %v2858_v52  ;;  %v6812_v43 = vld [vmem:[%s5551_s20 + $0xbc] sm:$0x1]  ;;  %v3566_v15 = vor.u32 %v3565_v54, %v3562_v41 }
 0x221   : > { %v4312_v26 = vmax.f32 %v4280_v11, 0.0  ;;  %5173 = vmatmul.msk.bf16.gmra.mxu3 %vm669_vm3, %v3683_v16  ;;  %v4033_v11 = vrot.slane %v4031_v48, 4  ;;  %v3576_v5 = vor.u32 %v3575_v44, %v6806_v27  ;;  %v3579_v42 = vshll.u32 %v6812_v43, 16 }
 0x222   : > { %v3567_v22 = vrot.slane %v3566_v15, 4  ;;  %v5501_v15 = vld [vmem:[%s5551_s20 + $0xb8] sm:$0xf] }
 0x223   : > { %v5350_v14 = vpack.c.bf16 %v4312_v26, %v4311_v21  ;;  %v4210_v36 = vpop.f32.mrf.mxu0  ;;  %v4035_v20 = vsel %vm5790_vm6, %v4033_v11, %v4034_v59  ;;  %v3577_v17 = vrot.slane %v3576_v5, 4  ;;  %v3581_v56 = vrot.slane %v3579_v42, 5 }
 0x224   : > { %v3784_v23 = vpop.f32.mrf.mxu3  ;;  %v2792_v16 = vpop.f32.mrf.mxu1  ;;  %v3572_v11 = vsel %vm5572_vm2, %v3567_v22, %v6806_v27  ;;  %v2622_v5 = vrot.slane %v5501_v15, 5 }
 0x225   : > { %5418 = vst [vmem:[%s6708_s13 + $0x10] sm:$0xff] %v5350_v14   ;;  %v3855_v21 = vadd.f32 %v3784_v23, %v3173_v31  ;;  %v2616_v14 = vsel %vm5790_vm6, %v4911_v33, %v2615_v30  ;;  %v3684_v23 = vpack.c.b16 %v3665_v19, %v3664_v13  ;;  %v4091_v31 = vunpack.c.l.b16 %v4035_v20  ;;  %v6836_v33 = vld [vmem:[%s5551_s20 + $0xc4] sm:$0xf] }
 0x226   : > { %5245 = vmatmul.msk.bf16.gmra.mxu0 %vm669_vm3, %v4109_v3  ;;  %v2618_v3 = vrot.slane %v5500_v51, 5  ;;  %v2669_v54 = vunpack.c.l.b16 %v2616_v14  ;;  %v3582_v59 = vsel %vm5572_vm2, %v3577_v17, %v3581_v56  ;;  %v2860_v51 = vadd.f32 %v2792_v16, %v6198_v53  ;;  %v5502_v17 = vld [vmem:[%s5551_s20 + $0xbc] sm:$0x1] }
 0x227   : > { %v3104_v49 = vpop.f32.mrf.mxu2  ;;  %4950 = vmatmul.msk.bf16.gmra.mxu1 %vm669_vm3, %v2687_v7  ;;  %v4281_v7 = vadd.f32 %v4210_v36, %v3855_v21  ;;  %v4110_v36 = vpack.c.b16 %v4091_v31, %v4090_v4  ;;  %v3597_v20 = vshrl.u32 %v6836_v33, 16  ;;  %v3666_v53 = vunpack.c.l.b16 %v3572_v11  ;;  %v5322_v4 = vld [vmem:[%s5551_s20 + $0xb4] sm:$0xff] }
 0x228   : > { %v3174_v26 = vadd.f32 %v3104_v49, %v2859_v40  ;;  %v2619_v52 = vsel %vm5790_vm6, %v2617_v9, %v2618_v3  ;;  %v5132_v40 = vld [vmem:[%s5551_s20 + $0xc0] sm:$0xf]  ;;  %v3667_v16 = vunpack.c.l.b16 %v3582_v59  ;;  %v2624_v22 = vrot.slane %v2622_v5, 4 }
 0x229   : > { %v2670_v44 = vunpack.c.l.b16 %v2619_v52  ;;  %v4313_v49 = vmax.f32 %v4281_v7, 0.0  ;;  %v3584_v13 = vshrl.u32 %v5132_v40, 16  ;;  %v3587_v27 = vshll.u32 %v5132_v40, 16 }
 0x22a   : > { %v2625_v56 = vrot.slane %v5502_v17, 5  ;;  %v3599_v40 = vrot.slane %v3597_v20, 4 }
 0x22b   : > { %v4212_v29 = vpop.f32.mrf.mxu0  ;;  %v2688_v21 = vpack.c.b16 %v2670_v44, %v2669_v54 }
 0x22c   : > { %v3786_v46 = vpop.f32.mrf.mxu3  ;;  %5086 = vmatmul.msk.bf16.gmra.mxu2 %vm669_vm3, %v5321_v55  ;;  %v2794_v2 = vpop.f32.mrf.mxu1  ;;  %v4038_v55 = vrot.slane %v6789_v8, 5  ;;  %v3593_v8 = vshll.u32 %v6836_v33, 16 }
 0x22d   : > { %v3856_v48 = vadd.f32 %v3786_v46, %v3174_v26  ;;  %v5191_v26 = vld [vmem:[%s5551_s20 + $0xb4] sm:$0xe]  ;;  %v2861_v14 = vadd.f32 %v2794_v2, %v6211_v61 }
 0x22e   : > { %v5207_v46 = vrot.slane %v5191_v26, 9  ;;  %v4040_v7 = vrot.slane %v4038_v55, 4  ;;  %v3595_v44 = vrot.slane %v3593_v8, 5 }
 0x22f   : > { %v4282_v1 = vadd.f32 %v4212_v29, %v3856_v48  ;;  %v3107_v41 = vpop.f32.mrf.mxu2  ;;  %v4896_v29 = vld [vmem:[%s5551_s20 + $0xb4] sm:$0xe]  ;;  %v4041_v48 = vrot.slane %v6812_v43, 5 }
 0x230   : > { %v3175_v42 = vadd.f32 %v3107_v41, %v2860_v51  ;;  %v4912_v31 = vrot.slane %v4896_v29, 9  ;;  %v4039_v2 = vsel %vm5790_vm6, %v5207_v46, %v4038_v55 }
 0x231   : > { %v4314_v30 = vmax.f32 %v4282_v1, 0.0  ;;  %5174 = vmatmul.msk.bf16.gmra.mxu3 %vm669_vm3, %v3684_v23  ;;  %v3586_v23 = vrot.slane %v3584_v13, 4  ;;  %v3589_v1 = vrot.slane %v3587_v27, 5  ;;  %v4042_v43 = vsel %vm5790_vm6, %v4040_v7, %v4041_v48 }
 0x232   : > { %v2623_v59 = vsel %vm5790_vm6, %v4912_v31, %v2622_v5  ;;  %v3600_v13 = vor.u32 %v3599_v40, %v3595_v44  ;;  %v4093_v15 = vunpack.c.l.b16 %v4042_v43  ;;  %v5135_v31 = vld [vmem:[%s5551_s20 + $0xcc] sm:$0xf] }
 0x233   : > { %v5355_v9 = vpack.c.bf16 %v4314_v30, %v4313_v49  ;;  %v4215_v3 = vpop.f32.mrf.mxu0  ;;  %v6852_v49 = vld [vmem:[%s5551_s20 + $0xc8] sm:$0x1]  ;;  %v3590_v51 = vor.u32 %v3589_v1, %v3586_v23  ;;  %v2671_v29 = vunpack.c.l.b16 %v2623_v59  ;;  %v5503_v1 = vld [vmem:[%s5551_s20 + $0xc4] sm:$0xf] }
 0x234   : > { %v3789_v19 = vpop.f32.mrf.mxu3  ;;  %v2797_v39 = vpop.f32.mrf.mxu1  ;;  %v3603_v55 = vshll.u32 %v6852_v49, 16 }
 0x235   : > { %5419 = vst [vmem:[%s6708_s13 + $0x18] sm:$0xff] %v5355_v9   ;;  %v3857_v41 = vadd.f32 %v3789_v19, %v3175_v42  ;;  %v2626_v9 = vsel %vm5790_vm6, %v2624_v22, %v2625_v56  ;;  %v4092_v19 = vunpack.c.l.b16 %v4039_v2  ;;  %v3591_v20 = vrot.slane %v3590_v51, 4  ;;  %v6870_v22 = vld [vmem:[%s5551_s20 + $0xd0] sm:$0xf] }
 0x236   : > { %5246 = vmatmul.msk.bf16.gmra.mxu0 %vm669_vm3, %v4110_v36  ;;  %v3685_v36 = vpack.c.b16 %v3667_v16, %v3666_v53  ;;  %v2672_v8 = vunpack.c.l.b16 %v2626_v9  ;;  %v3605_v16 = vrot.slane %v3603_v55, 5  ;;  %v2862_v7 = vadd.f32 %v2797_v39, %v6227_v37 }
 0x237   : > { %v3109_v52 = vpop.f32.mrf.mxu2  ;;  %4951 = vmatmul.msk.bf16.gmra.mxu1 %vm669_vm3, %v2688_v21  ;;  %v4283_v21 = vadd.f32 %v4215_v3, %v3857_v41  ;;  %v3601_v3 = vrot.slane %v3600_v13, 4  ;;  %v4111_v46 = vpack.c.b16 %v4093_v15, %v4092_v19  ;;  %v2629_v41 = vrot.slane %v5503_v1, 5  ;;  %v5504_v19 = vld [vmem:[%s5551_s20 + $0xc8] sm:$0x1] }
 0x238   : > { %v3176_v54 = vadd.f32 %v3109_v52, %v2861_v14  ;;  %v5192_v14 = vld [vmem:[%s5551_s20 + $0xc0] sm:$0xe]  ;;  %v2689_v23 = vpack.c.b16 %v2672_v8, %v2671_v29  ;;  %v3596_v40 = vsel %vm5572_vm2, %v3591_v20, %v3595_v44  ;;  %v3611_v2 = vshll.u32 %v5135_v31, 16 }
 0x239   : > { %v4315_v5 = vmax.f32 %v4283_v21, 0.0  ;;  %v3606_v37 = vsel %vm5572_vm2, %v3601_v3, %v3605_v16  ;;  %v5208_v39 = vrot.slane %v5192_v14, 9  ;;  %v3617_v43 = vshll.u32 %v6870_v22, 16  ;;  %v5323_v21 = vld [vmem:[%s5551_s20 + $0xc0] sm:$0xff]  ;;  %v5137_v16 = vld [vmem:[%s5551_s20 + $0xd4] sm:$0x1] }
 0x23a   : > { %v4048_v51 = vrot.slane %v6852_v49, 5  ;;  %v2631_v55 = vrot.slane %v2629_v41, 4  ;;  %v2632_v15 = vrot.slane %v5504_v19, 5  ;;  %v3669_v29 = vunpack.c.l.b16 %v3606_v37  ;;  %v5193_v19 = vld [vmem:[%s5551_s20 + $0xcc] sm:$0xe] }
 0x23b   : > { %v4217_v61 = vpop.f32.mrf.mxu0  ;;  %v3613_v20 = vrot.slane %v3611_v2, 5  ;;  %v3627_v37 = vshll.u32 %v5137_v16, 16 }
 0x23c   : > { %v3791_v30 = vpop.f32.mrf.mxu3  ;;  %5087 = vmatmul.msk.bf16.gmra.mxu2 %vm669_vm3, %v5322_v4  ;;  %v2799_v11 = vpop.f32.mrf.mxu1  ;;  %v4045_v4 = vrot.slane %v6836_v33, 5  ;;  %v3608_v33 = vshrl.u32 %v5135_v31, 16 }
 0x23d   : > { %v3858_v26 = vadd.f32 %v3791_v30, %v3176_v54  ;;  %v3621_v30 = vshrl.u32 %v6870_v22, 16 }
 0x23e   : > { %v4047_v44 = vrot.slane %v4045_v4, 4  ;;  %v4046_v8 = vsel %vm5790_vm6, %v5208_v39, %v4045_v4 }
 0x23f   : > { %v4284_v27 = vadd.f32 %v4217_v61, %v3858_v26  ;;  %v3112_v42 = vpop.f32.mrf.mxu2  ;;  %v4897_v61 = vld [vmem:[%s5551_s20 + $0xc0] sm:$0xe]  ;;  %v3668_v26 = vunpack.c.l.b16 %v3596_v40 }
 0x240   : > { %v3177_v54 = vadd.f32 %v3112_v42, %v2862_v7  ;;  %v4913_v13 = vrot.slane %v4897_v61, 9  ;;  %v4049_v49 = vsel %vm5790_vm6, %v4047_v44, %v4048_v51  ;;  %v2633_v7 = vsel %vm5790_vm6, %v2631_v55, %v2632_v15 }
 0x241   : > { %v4316_v53 = vmax.f32 %v4284_v27, 0.0  ;;  %5175 = vmatmul.msk.bf16.gmra.mxu3 %vm669_vm3, %v3685_v36  ;;  %v6958_v36 = vld [vmem:[#allocation2_spill] sm:$0xff]  ;;  %v3686_v31 = vpack.c.b16 %v3669_v29, %v3668_v26  ;;  %v4095_v1 = vunpack.c.l.b16 %v4049_v49  ;;  %v2674_v2 = vunpack.c.l.b16 %v2633_v7 }
 0x242   : > { %v2863_v59 = vadd.f32 %v2799_v11, %v6958_v36  ;;  %v3610_v11 = vrot.slane %v3608_v33, 4  ;;  %v4052_v26 = vrot.slane %v6870_v22, 5  ;;  %v5209_v29 = vrot.slane %v5193_v19, 9 }
 0x243   : > { %v5360_v52 = vpack.c.bf16 %v4316_v53, %v4315_v5  ;;  %v4220_v48 = vpop.f32.mrf.mxu0  ;;  %v3619_v5 = vrot.slane %v3617_v43, 5  ;;  %v3623_v53 = vrot.slane %v3621_v30, 4 }
 0x244   : > { %v3794_v17 = vpop.f32.mrf.mxu3  ;;  %v2802_v56 = vpop.f32.mrf.mxu1  ;;  %v4054_v22 = vrot.slane %v4052_v26, 4 }
 0x245   : > { %5420 = vst [vmem:[%s6708_s13 + $0x20] sm:$0xff] %v5360_v52   ;;  %v3859_v27 = vadd.f32 %v3794_v17, %v3177_v54  ;;  %v2630_v52 = vsel %vm5790_vm6, %v4913_v13, %v2629_v41  ;;  %v4094_v17 = vunpack.c.l.b16 %v4046_v8  ;;  %v3614_v54 = vor.u32 %v3613_v20, %v3610_v11  ;;  %v5324_v11 = vld [vmem:[%s5551_s20 + $0xcc] sm:$0xff] }
 0x246   : > { %5247 = vmatmul.msk.bf16.gmra.mxu0 %vm669_vm3, %v4111_v46  ;;  %v3624_v40 = vor.u32 %v3623_v53, %v3619_v5  ;;  %v2673_v33 = vunpack.c.l.b16 %v2630_v52  ;;  %v2864_v44 = vadd.f32 %v2802_v56, %v6263_v28  ;;  %v4055_v8 = vrot.slane %v5137_v16, 5 }
 0x247   : > { %v3114_v9 = vpop.f32.mrf.mxu2  ;;  %4952 = vmatmul.msk.bf16.gmra.mxu1 %vm669_vm3, %v2689_v23  ;;  %v4285_v23 = vadd.f32 %v4220_v48, %v3859_v27  ;;  %v4112_v41 = vpack.c.b16 %v4095_v1, %v4094_v17  ;;  %v3615_v36 = vrot.slane %v3614_v54, 4 }
 0x248   : > { %v3178_v42 = vadd.f32 %v3114_v9, %v2863_v59  ;;  %v3625_v48 = vrot.slane %v3624_v40, 4  ;;  %v3629_v59 = vrot.slane %v3627_v37, 5  ;;  %v4056_v32 = vsel %vm5790_vm6, %v4054_v22, %v4055_v8 }
 0x249   : > { %v4317_v43 = vmax.f32 %v4285_v23, 0.0  ;;  %v3620_v27 = vsel %vm5572_vm2, %v3615_v36, %v3619_v5  ;;  %v4053_v5 = vsel %vm5790_vm6, %v5209_v29, %v4052_v26 }
 0x24a   : > { %v4096_v23 = vunpack.c.l.b16 %v4053_v5 }
 0x24b   : > { %v4222_v3 = vpop.f32.mrf.mxu0 }
 0x24c   : > { %v3796_v46 = vpop.f32.mrf.mxu3  ;;  %5088 = vmatmul.msk.bf16.gmra.mxu2 %vm669_vm3, %v5323_v21  ;;  %v2804_v14 = vpop.f32.mrf.mxu1  ;;  %v2690_v21 = vpack.c.b16 %v2674_v2, %v2673_v33 }
 0x24d   : > { %v3860_v4 = vadd.f32 %v3796_v46, %v3178_v42  ;;  %v3630_v42 = vsel %vm5572_vm2, %v3625_v48, %v3629_v59  ;;  %v2865_v28 = vadd.f32 %v2804_v14, %v6283_v63 }
 0x24e   : > { %v3671_v49 = vunpack.c.l.b16 %v3630_v42 }
 0x24f   : > { %v4286_v39 = vadd.f32 %v4222_v3, %v3860_v4  ;;  %v3117_v61 = vpop.f32.mrf.mxu2  ;;  %v3670_v3 = vunpack.c.l.b16 %v3620_v27  ;;  %v4097_v4 = vunpack.c.l.b16 %v4056_v32 }
 0x250   : > { %v3179_v15 = vadd.f32 %v3117_v61, %v2864_v44 }
 0x251   : > { %v4318_v30 = vmax.f32 %v4286_v39, 0.0  ;;  %5176 = vmatmul.msk.bf16.gmra.mxu3 %vm669_vm3, %v3686_v31  ;;  %v3687_v16 = vpack.c.b16 %v3671_v49, %v3670_v3  ;;  %v4113_v40 = vpack.c.b16 %v4097_v4, %v4096_v23 }
 0x253   : > { %v5365_v9 = vpack.c.bf16 %v4318_v30, %v4317_v43  ;;  %v4225_v51 = vpop.f32.mrf.mxu0  ;;  %v6959_v43 = vld [vmem:[#allocation3_spill] sm:$0xff] }
 0x254   : > { %v3799_v13 = vpop.f32.mrf.mxu3  ;;  %v2807_v55 = vpop.f32.mrf.mxu1 }
 0x255   : > { %5421 = vst [vmem:[%s6708_s13 + $0x28] sm:$0xff] %v5365_v9   ;;  %v3861_v20 = vadd.f32 %v3799_v13, %v3179_v15  ;;  %v2866_v25 = vadd.f32 %v2807_v55, %v6302_v34 }
 0x256   : > { %5248 = vmatmul.msk.bf16.gmra.mxu0 %vm669_vm3, %v4112_v41 }
 0x257   : > { %v3119_v56 = vpop.f32.mrf.mxu2  ;;  %4953 = vmatmul.msk.bf16.gmra.mxu1 %vm669_vm3, %v2690_v21  ;;  %v4287_v14 = vadd.f32 %v4225_v51, %v3861_v20 }
 0x258   : > { %v3180_v53 = vadd.f32 %v3119_v56, %v2865_v28 }
 0x259   : > { %v4319_v1 = vmax.f32 %v4287_v14, 0.0 }
 0x25b   : > { %v4227_v46 = vpop.f32.mrf.mxu0 }
 0x25c   : > { %v3801_v52 = vpop.f32.mrf.mxu3  ;;  %5089 = vmatmul.msk.bf16.gmra.mxu2 %vm669_vm3, %v5324_v11  ;;  %v2809_v63 = vpop.f32.mrf.mxu1 }
 0x25d   : > { %v3862_v7 = vadd.f32 %v3801_v52, %v3180_v53  ;;  %v2867_v30 = vadd.f32 %v2809_v63, %v6959_v43 }
 0x25f   : > { %v4288_v31 = vadd.f32 %v4227_v46, %v3862_v7  ;;  %v3122_v17 = vpop.f32.mrf.mxu2 }
 0x260   : > { %v3181_v2 = vadd.f32 %v3122_v17, %v2866_v25 }
 0x261   : > { %v4320_v54 = vmax.f32 %v4288_v31, 0.0  ;;  %5177 = vmatmul.msk.bf16.gmra.mxu3 %vm669_vm3, %v3687_v16 }
 0x263   : > { %v5370_v37 = vpack.c.bf16 %v4320_v54, %v4319_v1  ;;  %v4230_v39 = vpop.f32.mrf.mxu0 }
 0x264   : > { %v3804_v61 = vpop.f32.mrf.mxu3  ;;  %v2812_v33 = vpop.f32.mrf.mxu1 }
 0x265   : > { %5422 = vst [vmem:[%s6708_s13 + $0x30] sm:$0xff] %v5370_v37   ;;  %v3863_v36 = vadd.f32 %v3804_v61, %v3181_v2  ;;  %v2868_v15 = vadd.f32 %v2812_v33, %v6345_v47 }
 0x266   : > { %5249 = vmatmul.msk.bf16.gmra.mxu0 %vm669_vm3, %v4113_v40 }
 0x267   : > { %v3124_v41 = vpop.f32.mrf.mxu2  ;;  %v4289_v51 = vadd.f32 %v4230_v39, %v3863_v36 }
 0x268   : > { %v3182_v48 = vadd.f32 %v3124_v41, %v2867_v30 }
 0x269   : > { %v4321_v13 = vmax.f32 %v4289_v51, 0.0 }
 0x26b   : > { %v4232_v59 = vpop.f32.mrf.mxu0 }
 0x26c   : > { %v3806_v9 = vpop.f32.mrf.mxu3  ;;  %v2814_v44 = vpop.f32.mrf.mxu1 }
 0x26d   : > { %v3864_v21 = vadd.f32 %v3806_v9, %v3182_v48  ;;  %v2869_v29 = vadd.f32 %v2814_v44, %v6369_v18 }
 0x26f   : > { %v4290_v26 = vadd.f32 %v4232_v59, %v3864_v21  ;;  %v3127_v34 = vpop.f32.mrf.mxu2 }
 0x270   : > { %v3183_v56 = vadd.f32 %v3127_v34, %v2868_v15 }
 0x271   : > { %v4322_v55 = vmax.f32 %v4290_v26, 0.0 }
 0x273   : > { %v5375_v19 = vpack.c.bf16 %v4322_v55, %v4321_v13  ;;  %v4235_v27 = vpop.f32.mrf.mxu0 }
 0x274   : > { %v3809_v42 = vpop.f32.mrf.mxu3  ;;  %v2817_v28 = vpop.f32.mrf.mxu1 }
 0x275   : > { %5423 = vst [vmem:[%s6708_s13 + $0x38] sm:$0xff] %v5375_v19   ;;  %v3865_v8 = vadd.f32 %v3809_v42, %v3183_v56  ;;  %v2870_v14 = vadd.f32 %v2817_v28, %v6388_v6 }
 0x277   : > { %v3129_v22 = vpop.f32.mrf.mxu2  ;;  %v4291_v49 = vadd.f32 %v4235_v27, %v3865_v8 }
 0x278   : > { %v3184_v11 = vadd.f32 %v3129_v22, %v2869_v29 }
 0x279   : > { %v4323_v52 = vmax.f32 %v4291_v49, 0.0 }
 0x27b   : > { %v4237_v20 = vpop.f32.mrf.mxu0 }
 0x27c   : > { %v3811_v53 = vpop.f32.mrf.mxu3  ;;  %v2819_v3 = vpop.f32.mrf.mxu1 }
 0x27d   : > { %v3866_v46 = vadd.f32 %v3811_v53, %v3184_v11  ;;  %v2871_v4 = vadd.f32 %v2819_v3, %v6412_v50 }
 0x27f   : > { %v4292_v5 = vadd.f32 %v4237_v20, %v3866_v46  ;;  %v3132_v32 = vpop.f32.mrf.mxu2 }
 0x280   : > { %v3185_v18 = vadd.f32 %v3132_v32, %v2870_v14 }
 0x281   : > { %v4324_v47 = vmax.f32 %v4292_v5, 0.0 }
 0x283   : > { %v5380_v63 = vpack.c.bf16 %v4324_v47, %v4323_v52  ;;  %v4240_v7 = vpop.f32.mrf.mxu0 }
 0x284   : > { %v3814_v16 = vpop.f32.mrf.mxu3  ;;  %v2822_v23 = vpop.f32.mrf.mxu1 }
 0x285   : > { %5424 = vst [vmem:[%s6708_s13 + $0x40] sm:$0xff] %v5380_v63   ;;  %v3867_v17 = vadd.f32 %v3814_v16, %v3185_v18  ;;  %v2872_v30 = vadd.f32 %v2822_v23, %v6431_v60 }
 0x287   : > { %v3134_v31 = vpop.f32.mrf.mxu2  ;;  %v4293_v25 = vadd.f32 %v4240_v7, %v3867_v17 }
 0x288   : > { %v3186_v1 = vadd.f32 %v3134_v31, %v2871_v4 }
 0x289   : > { %v4325_v2 = vmax.f32 %v4293_v25, 0.0 }
 0x28b   : > { %v4242_v54 = vpop.f32.mrf.mxu0 }
 0x28c   : > { %v3816_v40 = vpop.f32.mrf.mxu3  ;;  %v2824_v37 = vpop.f32.mrf.mxu1 }
 0x28d   : > { %v3868_v39 = vadd.f32 %v3816_v40, %v3186_v1  ;;  %v2873_v59 = vadd.f32 %v2824_v37, %v6455_v45 }
 0x28f   : > { %v4294_v61 = vadd.f32 %v4242_v54, %v3868_v39  ;;  %v3137_v33 = vpop.f32.mrf.mxu2 }
 0x290   : > { %v3187_v50 = vadd.f32 %v3137_v33, %v2872_v30 }
 0x291   : > { %v4326_v6 = vmax.f32 %v4294_v61, 0.0 }
 0x293   : > { %v5385_v43 = vpack.c.bf16 %v4326_v6, %v4325_v2  ;;  %v4245_v41 = vpop.f32.mrf.mxu0 }
 0x294   : > { %v3819_v36 = vpop.f32.mrf.mxu3  ;;  %v2827_v48 = vpop.f32.mrf.mxu1 }
 0x295   : > { %5425 = vst [vmem:[%s6708_s13 + $0x48] sm:$0xff] %v5385_v43   ;;  %v3869_v44 = vadd.f32 %v3819_v36, %v3187_v50  ;;  %v2874_v28 = vadd.f32 %v2827_v48, %v6474_v12 }
 0x297   : > { %v3139_v9 = vpop.f32.mrf.mxu2  ;;  %v4295_v13 = vadd.f32 %v4245_v41, %v3869_v44 }
 0x298   : > { %v3188_v51 = vadd.f32 %v3139_v9, %v2873_v59 }
 0x299   : > { %v4327_v27 = vmax.f32 %v4295_v13, 0.0 }
 0x29b   : > { %v4247_v21 = vpop.f32.mrf.mxu0 }
 0x29c   : > { %v3821_v26 = vpop.f32.mrf.mxu3  ;;  %v2829_v34 = vpop.f32.mrf.mxu1 }
 0x29d   : > { %v3870_v55 = vadd.f32 %v3821_v26, %v3188_v51  ;;  %v2875_v8 = vadd.f32 %v2829_v34, %v6498_v35 }
 0x29f   : > { %v4296_v19 = vadd.f32 %v4247_v21, %v3870_v55  ;;  %v3142_v15 = vpop.f32.mrf.mxu2 }
 0x2a0   : > { %v3189_v45 = vadd.f32 %v3142_v15, %v2874_v28 }
 0x2a1   : > { %v4328_v60 = vmax.f32 %v4296_v19, 0.0 }
 0x2a3   : > { %v5390_v42 = vpack.c.bf16 %v4328_v60, %v4327_v27  ;;  %v4250_v56 = vpop.f32.mrf.mxu0 }
 0x2a4   : > { %v3824_v29 = vpop.f32.mrf.mxu3  ;;  %v2832_v22 = vpop.f32.mrf.mxu1 }
 0x2a5   : > { %5426 = vst [vmem:[%s6708_s13 + $0x50] sm:$0xff] %v5390_v42   ;;  %v3871_v20 = vadd.f32 %v3824_v29, %v3189_v45  ;;  %v2876_v7 = vadd.f32 %v2832_v22, %v6517_v58 }
 0x2a7   : > { %v3144_v11 = vpop.f32.mrf.mxu2  ;;  %v4297_v5 = vadd.f32 %v4250_v56, %v3871_v20 }
 0x2a8   : > { %v3190_v53 = vadd.f32 %v3144_v11, %v2875_v8 }
 0x2a9   : > { %v4329_v63 = vmax.f32 %v4297_v5, 0.0 }
 0x2ab   : > { %v4252_v3 = vpop.f32.mrf.mxu0 }
 0x2ac   : > { %v3826_v49 = vpop.f32.mrf.mxu3  ;;  %v2834_v46 = vpop.f32.mrf.mxu1 }
 0x2ad   : > { %v3872_v32 = vadd.f32 %v3826_v49, %v3190_v53  ;;  %v2877_v4 = vadd.f32 %v2834_v46, %v6541_v38 }
 0x2af   : > { %v4298_v52 = vadd.f32 %v4252_v3, %v3872_v32  ;;  %v3147_v47 = vpop.f32.mrf.mxu2 }
 0x2b0   : > { %v3191_v35 = vadd.f32 %v3147_v47, %v2876_v7 }
 0x2b1   : > { %v4330_v12 = vmax.f32 %v4298_v52, 0.0 }
 0x2b3   : > { %v5395_v14 = vpack.c.bf16 %v4330_v12, %v4329_v63  ;;  %v4255_v16 = vpop.f32.mrf.mxu0  ;;  %v6960_v12 = vld [vmem:[#allocation4_spill] sm:$0xff] }
 0x2b4   : > { %v3829_v23 = vpop.f32.mrf.mxu3  ;;  %v2837_v18 = vpop.f32.mrf.mxu1 }
 0x2b5   : > { %5427 = vst [vmem:[%s6708_s13 + $0x58] sm:$0xff] %v5395_v14   ;;  %v3873_v17 = vadd.f32 %v3829_v23, %v3191_v35  ;;  %v2878_v43 = vadd.f32 %v2837_v18, %v6560_v24 }
 0x2b7   : > { %v3149_v31 = vpop.f32.mrf.mxu2  ;;  %v4299_v25 = vadd.f32 %v4255_v16, %v3873_v17 }
 0x2b8   : > { %v3192_v1 = vadd.f32 %v3149_v31, %v2877_v4 }
 0x2b9   : > { %v4331_v2 = vmax.f32 %v4299_v25, 0.0 }
 0x2bb   : > { %v4257_v54 = vpop.f32.mrf.mxu0 }
 0x2bc   : > { %v3831_v40 = vpop.f32.mrf.mxu3  ;;  %v2839_v37 = vpop.f32.mrf.mxu1 }
 0x2bd   : > { %v3874_v39 = vadd.f32 %v3831_v40, %v3192_v1  ;;  %v2879_v48 = vadd.f32 %v2839_v37, %v6584_v57 }
 0x2bf   : > { %v4300_v61 = vadd.f32 %v4257_v54, %v3874_v39  ;;  %v3152_v33 = vpop.f32.mrf.mxu2 }
 0x2c0   : > { %v3193_v38 = vadd.f32 %v3152_v33, %v2878_v43 }
 0x2c1   : > { %v4332_v58 = vmax.f32 %v4300_v61, 0.0 }
 0x2c3   : > { %v5400_v6 = vpack.c.bf16 %v4332_v58, %v4331_v2  ;;  %v4260_v30 = vpop.f32.mrf.mxu0 }
 0x2c4   : > { %v3834_v41 = vpop.f32.mrf.mxu3  ;;  %v2842_v36 = vpop.f32.mrf.mxu1 }
 0x2c5   : > { %5428 = vst [vmem:[%s6708_s13 + $0x60] sm:$0xff] %v5400_v6   ;;  %v3875_v59 = vadd.f32 %v3834_v41, %v3193_v38  ;;  %v2880_v27 = vadd.f32 %v2842_v36, %v6601_v0 }
 0x2c7   : > { %v3154_v50 = vpop.f32.mrf.mxu2  ;;  %v4301_v21 = vadd.f32 %v4260_v30, %v3875_v59 }
 0x2c8   : > { %v3194_v9 = vadd.f32 %v3154_v50, %v2879_v48 }
 0x2c9   : > { %v4333_v19 = vmax.f32 %v4301_v21, 0.0 }
 0x2cb   : > { %v4262_v44 = vpop.f32.mrf.mxu0 }
 0x2cc   : > { %v3836_v51 = vpop.f32.mrf.mxu3  ;;  %v2844_v55 = vpop.f32.mrf.mxu1 }
 0x2cd   : > { %v3876_v26 = vadd.f32 %v3836_v51, %v3194_v9  ;;  %v2881_v28 = vadd.f32 %v2844_v55, %v6624_v62 }
 0x2cf   : > { %v4302_v34 = vadd.f32 %v4262_v44, %v3876_v26  ;;  %v3157_v13 = vpop.f32.mrf.mxu2 }
 0x2d0   : > { %v3195_v57 = vadd.f32 %v3157_v13, %v2880_v27 }
 0x2d1   : > { %v4334_v24 = vmax.f32 %v4302_v34, 0.0 }
 0x2d3   : > { %v5405_v15 = vpack.c.bf16 %v4334_v24, %v4333_v19  ;;  %v4265_v60 = vpop.f32.mrf.mxu0 }
 0x2d4   : > { %v3839_v42 = vpop.f32.mrf.mxu3  ;;  %v2847_v45 = vpop.f32.mrf.mxu1 }
 0x2d5   : > { %5429 = vst [vmem:[%s6708_s13 + $0x68] sm:$0xff] %v5405_v15   ;;  %v3877_v29 = vadd.f32 %v3839_v42, %v3195_v57  ;;  %v2882_v32 = vadd.f32 %v2847_v45, %v6644_v10 }
 0x2d7   : > { %v3159_v56 = vpop.f32.mrf.mxu2  ;;  %v4303_v20 = vadd.f32 %v4265_v60, %v3877_v29 }
 0x2d8   : > { %v3196_v22 = vadd.f32 %v3159_v56, %v2881_v28 }
 0x2d9   : > { %v4335_v46 = vmax.f32 %v4303_v20, 0.0 }
 0x2db   : > { %v4267_v8 = vpop.f32.mrf.mxu0 }
 0x2dc   : > { %v3841_v11 = vpop.f32.mrf.mxu3  ;;  %v2849_v52 = vpop.f32.mrf.mxu1 }
 0x2dd   : > { %v3878_v53 = vadd.f32 %v3841_v11, %v3196_v22  ;;  %v2883_v14 = vadd.f32 %v2849_v52, %v6960_v12 }
 0x2df   : > { %v4304_v3 = vadd.f32 %v4267_v8, %v3878_v53  ;;  %v3162_v49 = vpop.f32.mrf.mxu2 }
 0x2e0   : > { %v3197_v63 = vadd.f32 %v3162_v49, %v2882_v32 }
 0x2e1   : > { %v4336_v5 = vmax.f32 %v4304_v3, 0.0 }
 0x2e3   : > { %v5410_v0 = vpack.c.bf16 %v4336_v5, %v4335_v46  ;;  %v4270_v47 = vpop.f32.mrf.mxu0 }
 0x2e4   : > { %v3844_v62 = vpop.f32.mrf.mxu3 }
 0x2e5   : > { %5430 = vst [vmem:[%s6708_s13 + $0x70] sm:$0xff] %v5410_v0   ;;  %v3879_v16 = vadd.f32 %v3844_v62, %v3197_v63 }
 0x2e7   : > { %v3164_v7 = vpop.f32.mrf.mxu2  ;;  %v4305_v35 = vadd.f32 %v4270_v47, %v3879_v16 }
 0x2e8   : > { %v3198_v23 = vadd.f32 %v3164_v7, %v2883_v14 }
 0x2e9   : > { %v4337_v1 = vmax.f32 %v4305_v35, 0.0 }
 0x2eb   : > { %v4272_v31 = vpop.f32.mrf.mxu0 }
 0x2ec   : > { %v3846_v18 = vpop.f32.mrf.mxu3 }
 0x2ed   : > { %v3880_v4 = vadd.f32 %v3846_v18, %v3198_v23 }
 0x2ef   : > { %v4306_v17 = vadd.f32 %v4272_v31, %v3880_v4 }
 0x2f1   : > { %v4338_v54 = vmax.f32 %v4306_v17, 0.0 }
 0x2f3   : > { %v5415_v40 = vpack.c.bf16 %v4338_v54, %v4337_v1 }
 0x2f5   : > { %5431 = vst [vmem:[%s6708_s13 + $0x78] sm:$0xff] %v5415_v40  }
 0x2f6 PF: > { %s12_s9 = sadd.s32 1, %s5511_s9  }
 0x2f7   : > { %p9_p4 = scmp.ge.s32.totalorder %s12_s9, 4  }
 0x2f9   :  { %11 = sbr.rel (!%p9_p4) target bundleno = 1 (0x1), region = 68 }

// kernel: cct_forward.5
= control target key start
LH: loop header
LB: loop body
LE: loop exit
PB: predicated region body
PF: predicated region fallthrough
CT: control target
= control target key end

     0   :  { %s6843_s0 = inlined_call_operand.vmem [shape: bf16[2,64,128], index: 0, kind: input, shape index: {}]   ;;  %s6844_s1 = inlined_call_operand.vmem [shape: f32[1,64,128], index: 1, kind: input, shape index: {}]   ;;  %s6845_s2 = inlined_call_operand.vmem [shape: f32[2,1,128], index: 2, kind: input, shape index: {}]   ;;  %s6846_s3 = inlined_call_operand.vmem [shape: f32[2,1,128], index: 3, kind: input, shape index: {}]   ;;  %s6847_s4 = inlined_call_operand.vmem [shape: bf16[2,128,128], index: 4, kind: input, shape index: {}]   ;;  %s6848_s5 = inlined_call_operand.vmem [shape: bf16[2,128,128], index: 5, kind: input, shape index: {}]   ;;  %s6849_s6 = inlined_call_operand.vmem [shape: bf16[2,128,128], index: 6, kind: input, shape index: {}]   ;;  %s6850_s7 = inlined_call_operand.vmem [shape: bf16[2,128,128], index: 7, kind: input, shape index: {}]   ;;  %s6851_s8 = inlined_call_operand.vmem [shape: f32[2,1,128], index: 8, kind: input, shape index: {}]   ;;  %s6852_s9 = inlined_call_operand.vmem [shape: f32[2,1,128], index: 9, kind: input, shape index: {}]   ;;  %s6853_s10 = inlined_call_operand.vmem [shape: f32[2,1,128], index: 10, kind: input, shape index: {}]   ;;  %s6854_s11 = inlined_call_operand.vmem [shape: bf16[2,128,128], index: 11, kind: input, shape index: {}]   ;;  %s6855_s12 = inlined_call_operand.vmem [shape: f32[2,1,128], index: 12, kind: input, shape index: {}]   ;;  %s6856_s13 = inlined_call_operand.vmem [shape: bf16[2,128,128], index: 13, kind: input, shape index: {}]   ;;  %s6857_s14 = inlined_call_operand.vmem [shape: f32[2,1,128], index: 14, kind: input, shape index: {}]   ;;  %s6858_s15 = inlined_call_operand.vmem [shape: f32[1,128], index: 15, kind: input, shape index: {}]   ;;  %s6859_s16 = inlined_call_operand.vmem [shape: f32[1,128], index: 16, kind: input, shape index: {}]   ;;  %s6860_s17 = inlined_call_operand.vmem [shape: f32[1,128], index: 17, kind: input, shape index: {}]   ;;  %s6861_s18 = inlined_call_operand.vmem [shape: bf16[128,128], index: 18, kind: input, shape index: {}]   ;;  %s6862_s19 = inlined_call_operand.vmem [shape: f32[1,128], index: 19, kind: input, shape index: {}]   ;;  %s6863_s20 = inlined_call_operand.hbm [shape: f32[2,1,128], index: 20, kind: output, shape index: {}]  }
   0x1   :  { %6878 = sst [smem:[#allocation12_spill]] %s6843_s0 }
   0x2   :  { %6879 = sst [smem:[#allocation13_spill]] %s6844_s1 }
   0x3   :  { %6880 = sst [smem:[#allocation14_spill]] %s6845_s2 }
   0x4   :  { %6881 = sst [smem:[#allocation15_spill]] %s6846_s3 }
   0x5   :  { %6882 = sst [smem:[#allocation16_spill]] %s6847_s4 }
   0x6   :  { %6883 = sst [smem:[#allocation17_spill]] %s6848_s5 }
   0x7   :  { %6884 = sst [smem:[#allocation18_spill]] %s6849_s6 }
   0x8   :  { %6885 = sst [smem:[#allocation19_spill]] %s6862_s19 }
   0x9   :  { %25 = vsyncpa [#allocation4], 0 }
   0xa   :  { %27 = vsyncpa [#allocation4 + $0x1], 0  ;;  %s5338_s1 = smov 0   ;;  %s5340_s22 = smov 0  }
   0xb   :  { %s5342_s23 = smov 0   ;;  %s5344_s24 = smov 0  }
   0xc LB: > { %6886 = sst [smem:[#allocation6_spill]] %s5217_s1  ;;  %s5359_s2 = sadd.s32 4294967295, %s5229_s24   ;;  %s5229_s24 = sphi %s5344_s24, %s6909_s24   ;;  %s5225_s23 = sphi %s5342_s23, %s6911_s23   ;;  %s5221_s22 = sphi %s5340_s22, %s6913_s22   ;;  %s5217_s1 = sphi %s5338_s1, %s6912_s1  }
   0xd   : > { %6887 = sst [smem:[#allocation7_spill]] %s5225_s23  ;;  %s4166_s25 = sadd.s32 4294967294, %s5229_s24  }
   0xe   : > { %6888 = sst [smem:[#allocation8_spill]] %s5229_s24  ;;  %s5363_s3 = sadd.s32 1, %s5229_s24  }
   0xf   : > { %6889 = sst [smem:[#allocation9_spill]] %s5363_s3  ;;  %s465_s26 = sadd.s32 1, %s5225_s23 }
  0x10   : > { %s462_s27 = ssub.s32 %s5229_s24, %s5363_s3  ;;  %p475_p0 = scmp.ne.s32.totalorder %s5225_s23, %s5221_s22 }
  0x11   : > { %p463_p1 = scmp.eq.s32.totalorder %s462_s27, 0  ;;  %p476_p2 = scmp.eq.s32.totalorder %s5359_s2, 1 }
  0x12   : > { %p481_p3 = scmp.ne.s32.totalorder %s5221_s22, %s5217_s1  ;;  %p482_p4 = scmp.eq.s32.totalorder %s4166_s25, 1 }
  0x13   : > { %s5374_s28 = scalar_select %p463_p1, %s5225_s23, %s465_s26  }
  0x14   : > { %p5376_p5 = por %p476_p2, %p475_p0  ;;  %p5380_p6 = por %p482_p4, %p481_p3 }
  0x15   : > { %6890 = sst [smem:[#allocation10_spill]] %s5374_s28  ;;  %p4169_p7 = scmp.ge.s32.totalorder %s5229_s24, 1 }
  0x16   : > { %s6892_s29 = scalar_select %p5380_p6, 1, 0 }
  0x17   : > { %p565_p8 = scmp.lt.s32.totalorder %s5229_s24, 3 }
  0x18   : > { %6893 = sst [smem:[#allocation11_spill]] %s6892_s29 }
  0x19   : > { %p566_p9 = pnand %p4169_p7, %p565_p8 }
  0x1a   : > { %p622_p10 = scmp.lt.s32.totalorder (!%p566_p9), %s5359_s2, 1  ;;  %s6894_s26 = sld [smem:[#allocation13_spill]] (!%p566_p9) }
  0x1b   : > { %569 = sbr.rel (%p566_p9) target bundleno = 4883 (0x1313), region = 100  ;;  %s6895_s24 = sld [smem:[#allocation12_spill]] (!%p566_p9) }
  0x1c   : > { %s6896_s1 = sld [smem:[#allocation16_spill]] (!%p566_p9)  ;;  %s6874_s25 = smov (!%p566_p9), 64  }
  0x1d   : > { %s6898_s5 = sld [smem:[#allocation17_spill]] (!%p566_p9)  ;;  %s6904_s28 = smov (!%p566_p9), 64  }
  0x1e   : > { %s6899_s6 = sld [smem:[#allocation18_spill]] (!%p566_p9) }
  0x1f   : > { %s6903_s21 = sld [smem:[#allocation15_spill]] (!%p566_p9) }
  0x20   : > { %s623_s30 = scalar_select %p622_p10, %s5359_s2, 1  ;;  %v648_v0 = vld [vmem:[%s6894_s26 + $0x20] sm:$0xff]  ;;  %v646_v1 = vld [vmem:[%s6894_s26 + $0x10] sm:$0xff]  ;;  %v649_v14 = vld [vmem:[%s6894_s26 + $0x28] sm:$0xff]  ;;  %v5231_v25 = vmov 128.0  }
  0x21   : > { %v644_v2 = vld [vmem:[%s6894_s26] sm:$0xff]  ;;  %v647_v15 = vld [vmem:[%s6894_s26 + $0x18] sm:$0xff]  ;;  %v645_v17 = vld [vmem:[%s6894_s26 + $0x8] sm:$0xff]  ;;  %4907 = vrcp.f32 %v5231_v25 }
  0x22   : > { %s4725_s0 = sshll.u32 %s623_s30, 5  ;;  %v650_v23 = vld [vmem:[%s6894_s26 + $0x30] sm:$0xff]  ;;  %v651_v43 = vld [vmem:[%s6894_s26 + $0x38] sm:$0xff]  ;;  %s6897_s3 = smov %s6896_s1 }
  0x23   : > { %s626_s19 = scalar_lea.vmem %s6895_s24, %s4725_s0  ;;  %v4733_v63 = vld [vmem:[%s6896_s1 + $0x38] sm:$0xff]  ;;  %v4735_v25 = vld [vmem:[%s6898_s5 + $0x8] sm:$0xff]  ;;  %s6902_s30 = sld [smem:[#allocation14_spill]] }
  0x24   : > { %v4847_v3 = vld [vmem:[%s626_s19 + $0x10] sm:$0xff]   ;;  %v4846_v4 = vld [vmem:[%s626_s19 + $0x8] sm:$0xff]   ;;  %v4831_v5 = vld [vmem:[%s626_s19] sm:$0xff]   ;;  %919 = vmatpush.bf16.msra.mxu0 %v4733_v63  ;;  %s620_s0 = sand.u32 1, %s5221_s22   ;;  %s5187_s26 = scalar_lea.hbm %s6863_s20, 2 }
  0x25   : > { %v4840_v6 = vunpack.c.l.bf16 %v4847_v3  ;;  %v4836_v7 = vunpack.c.l.bf16 %v4846_v4  ;;  %v4832_v8 = vunpack.c.l.bf16 %v4831_v5  ;;  %v4841_v12 = vunpack.c.h.bf16 %v4847_v3  ;;  %v4848_v21 = vld [vmem:[%s626_s19 + $0x18] sm:$0xff]   ;;  %v4740_v3 = vld [vmem:[%s6898_s5 + $0x30] sm:$0xff]  ;;  %s621_s23 = scalar_lea.vmem [#allocation3], %s620_s0 }
  0x26   : > { %v4837_v13 = vunpack.c.h.bf16 %v4846_v4  ;;  %v4833_v16 = vunpack.c.h.bf16 %v4831_v5  ;;  %v4844_v22 = vunpack.c.l.bf16 %v4848_v21  ;;  %v4845_v40 = vunpack.c.h.bf16 %v4848_v21  ;;  %v4748_v4 = vld [vmem:[%s6899_s6 + $0x30] sm:$0xff]  ;;  %v4731_v5 = vld [vmem:[%s6897_s3 + $0x28] sm:$0xff]  ;;  %s4109_s24 = sshll.u32 %s621_s23, 4  ;;  %s4110_s24 = int_to_ptr.vmem [resolvable:$true] %s4109_s24 }
  0x27   : > { %v5400_v9 = vadd.f32 %v4840_v6, %v648_v0  ;;  %v5402_v10 = vadd.f32 %v4836_v7, %v646_v1  ;;  %v5404_v11 = vadd.f32 %v4832_v8, %v644_v2  ;;  %v5418_v18 = vadd.f32 %v4841_v12, %v649_v14  ;;  %v4908_v26 = vpop.eup %4907  ;;  %v4741_v0 = vld [vmem:[%s6898_s5 + $0x38] sm:$0xff]  ;;  %v4732_v2 = vld [vmem:[%s6897_s3 + $0x30] sm:$0xff]  ;;  %v4739_v6 = vld [vmem:[%s6898_s5 + $0x28] sm:$0xff] }
  0x28   : > { %v5420_v19 = vadd.f32 %v4837_v13, %v647_v15  ;;  %v5422_v20 = vadd.f32 %v4833_v16, %v645_v17  ;;  %v5430_v24 = vadd.f32 %v4844_v22, %v650_v23  ;;  %v679_v27 = vmul.f32 128.0, %v4908_v26  ;;  %v4749_v1 = vld [vmem:[%s6899_s6 + $0x38] sm:$0xff]  ;;  %1012 = vmatpush.bf16.msra.mxu1 %v4741_v0  ;;  %920 = vmatpush.bf16.msra.mxu0 %v4732_v2  ;;  %v4747_v7 = vld [vmem:[%s6899_s6 + $0x28] sm:$0xff]  ;;  %v4730_v8 = vld [vmem:[%s6897_s3 + $0x20] sm:$0xff] }
  0x29   : > { %670 = vadd.xlane.f32.xlu2 %v5400_v9  ;;  %666 = vadd.xlane.f32.xlu1 %v5402_v10  ;;  %vm683_vm0 = vweird.f32 %v4908_v26  ;;  %v5451_v48 = vadd.f32 %v4845_v40, %v651_v43  ;;  %v4738_v12 = vld [vmem:[%s6898_s5 + $0x20] sm:$0xff]  ;;  %v4729_v14 = vld [vmem:[%s6897_s3 + $0x18] sm:$0xff]  ;;  %v4728_v17 = vld [vmem:[%s6897_s3 + $0x10] sm:$0xff] }
  0x2a   : > { %662 = vadd.xlane.f32.xlu0 %v5404_v11  ;;  %v680_v28 = vsub.f32 1.0, %v679_v27  ;;  %1105 = vmatpush.bf16.msra.mxu2 %v4749_v1  ;;  %v4746_v13 = vld [vmem:[%s6899_s6 + $0x20] sm:$0xff]  ;;  %v4737_v15 = vld [vmem:[%s6898_s5 + $0x18] sm:$0xff]  ;;  %v4736_v21 = vld [vmem:[%s6898_s5 + $0x10] sm:$0xff] }
  0x2b   : > { %v4745_v16 = vld [vmem:[%s6899_s6 + $0x18] sm:$0xff]  ;;  %v4744_v22 = vld [vmem:[%s6899_s6 + $0x10] sm:$0xff]  ;;  %v4727_v23 = vld [vmem:[%s6897_s3 + $0x8] sm:$0xff] }
  0x2c   : > { %v681_v29 = vmul.f32 %v4908_v26, %v680_v28  ;;  %1013 = vmatpush.bf16.msra.mxu1 %v4740_v3  ;;  %921 = vmatpush.bf16.msra.mxu0 %v4731_v5 }
  0x2e   : > { %v682_v30 = vadd.f32 %v4908_v26, %v681_v29  ;;  %1106 = vmatpush.bf16.msra.mxu2 %v4748_v4 }
  0x30   : > { %v5433_v31 = vsel %vm683_vm0, %v4908_v26, %v682_v30  ;;  %1014 = vmatpush.bf16.msra.mxu1 %v4739_v6  ;;  %922 = vmatpush.bf16.msra.mxu0 %v4730_v8  ;;  %v4743_v26 = vld [vmem:[%s6899_s6 + $0x8] sm:$0xff]  ;;  %v4726_v30 = vld [vmem:[%s6897_s3] sm:$0xff] }
  0x31   : > { %672 = vadd.xlane.f32.xlu2 %v5418_v18  ;;  %668 = vadd.xlane.f32.xlu1 %v5420_v19 }
  0x32   : > { %664 = vadd.xlane.f32.xlu0 %v5422_v20  ;;  %1107 = vmatpush.bf16.msra.mxu2 %v4747_v7 }
  0x34   : > { %1015 = vmatpush.bf16.msra.mxu1 %v4738_v12  ;;  %923 = vmatpush.bf16.msra.mxu0 %v4729_v14 }
  0x36   : > { %1108 = vmatpush.bf16.msra.mxu2 %v4746_v13 }
  0x38   : > { %1016 = vmatpush.bf16.msra.mxu1 %v4737_v15  ;;  %924 = vmatpush.bf16.msra.mxu0 %v4728_v17 }
  0x39   : > { %674 = vadd.xlane.f32.xlu2 %v5430_v24 }
  0x3a   : > { %1109 = vmatpush.bf16.msra.mxu2 %v4745_v16 }
  0x3c   : > { %1017 = vmatpush.bf16.msra.mxu1 %v4736_v21  ;;  %925 = vmatpush.bf16.msra.mxu0 %v4727_v23  ;;  %v5588_v23 = vld [vmem:[%s6902_s30] ss:$0 sm:$0xff] }
  0x3e   : > { %1110 = vmatpush.bf16.msra.mxu2 %v4744_v22 }
  0x40   : > { %1018 = vmatpush.bf16.msra.mxu1 %v4735_v25  ;;  %926 = vmatpush.bf16.msra.mxu0 %v4726_v30 }
  0x42   : > { %1111 = vmatpush.bf16.msra.mxu2 %v4743_v26 }
  0x9c   : > { %v671_v32 = vpop.xlane.xlu2 %670  ;;  %v667_v33 = vpop.xlane.xlu1 %666 }
  0x9d   : > { %v663_v34 = vpop.xlane.xlu0 %662  ;;  %v689_v46 = vmul.f32 %v5433_v31, %v671_v32  ;;  %v687_v47 = vmul.f32 %v5433_v31, %v667_v33  ;;  %v4734_v32 = vld [vmem:[%s6898_s5] sm:$0xff] }
  0x9e   : > { %v685_v35 = vmul.f32 %v5433_v31, %v663_v34  ;;  %v4742_v33 = vld [vmem:[%s6899_s6] sm:$0xff]  ;;  %1019 = vmatpush.bf16.msra.mxu1 %v4734_v32 }
  0x9f   : > { %v5462_v53 = vsub.f32 %v5400_v9, %v689_v46  ;;  %v5465_v54 = vsub.f32 %v5402_v10, %v687_v47  ;;  %1112 = vmatpush.bf16.msra.mxu2 %v4742_v33  ;;  %v5595_v32 = vld [vmem:[%s6903_s21] ss:$0 sm:$0xff] }
  0xa0   : > { %v5437_v36 = vsub.f32 %v5404_v11, %v685_v35 }
  0xa1   : > { %v705_v58 = vmul.f32 %v5462_v53, %v5462_v53  ;;  %v703_v59 = vmul.f32 %v5465_v54, %v5465_v54 }
  0xa2   : > { %v701_v37 = vmul.f32 %v5437_v36, %v5437_v36 }
  0xa4   : > { %709 = vadd.xlane.f32.xlu0 %v701_v37  ;;  %v673_v38 = vpop.xlane.xlu2 %672  ;;  %v669_v39 = vpop.xlane.xlu1 %668 }
  0xa5   : > { %v688_v41 = vmul.f32 %v5433_v31, %v669_v39  ;;  %v665_v42 = vpop.xlane.xlu0 %664  ;;  %v690_v57 = vmul.f32 %v5433_v31, %v673_v38 }
  0xa6   : > { %v686_v44 = vmul.f32 %v5433_v31, %v665_v42 }
  0xa7   : > { %v5447_v45 = vsub.f32 %v5420_v19, %v688_v41  ;;  %v5479_v61 = vsub.f32 %v5418_v18, %v690_v57 }
  0xa8   : > { %v5454_v49 = vsub.f32 %v5422_v20, %v686_v44 }
  0xa9   : > { %v704_v50 = vmul.f32 %v5447_v45, %v5447_v45  ;;  %v706_v62 = vmul.f32 %v5479_v61, %v5479_v61 }
  0xaa   : > { %v702_v51 = vmul.f32 %v5454_v49, %v5454_v49 }
  0xab   : > { %715 = vadd.xlane.f32.xlu2 %v704_v50 }
  0xac   : > { %676 = vadd.xlane.f32.xlu0 %v5451_v48  ;;  %711 = vadd.xlane.f32.xlu1 %v702_v51  ;;  %v675_v52 = vpop.xlane.xlu2 %674 }
  0xad   : > { %v691_v55 = vmul.f32 %v5433_v31, %v675_v52 }
  0xaf   : > { %v5469_v56 = vsub.f32 %v5430_v24, %v691_v55 }
  0xb1   : > { %v707_v60 = vmul.f32 %v5469_v56, %v5469_v56 }
  0xb3   : > { %721 = vadd.xlane.f32.xlu2 %v707_v60 }
  0xb4   : > { %717 = vadd.xlane.f32.xlu0 %v705_v58  ;;  %713 = vadd.xlane.f32.xlu1 %v703_v59 }
  0xbc   : > { %719 = vadd.xlane.f32.xlu1 %v706_v62 }
 0x117   : > { %v710_v27 = vpop.xlane.xlu0 %709 }
 0x118   : > { %v725_v28 = vmul.f32 %v710_v27, %v5433_v31 }
 0x11a   : > { %v733_v29 = vadd.f32 1e-05, %v725_v28 }
 0x11c   : > { %4909 = vrsqrt.f32 %v733_v29  ;;  %vm747_vm2 = vweird.f32 %v733_v29 }
 0x11e   : > { %v716_v34 = vpop.xlane.xlu2 %715 }
 0x11f   : > { %v728_v35 = vmul.f32 %v716_v34, %v5433_v31  ;;  %v712_v37 = vpop.xlane.xlu1 %711  ;;  %v677_v38 = vpop.xlane.xlu0 %676 }
 0x120   : > { %v726_v39 = vmul.f32 %v712_v37, %v5433_v31  ;;  %v692_v40 = vmul.f32 %v5433_v31, %v677_v38 }
 0x121   : > { %v5559_v41 = vadd.f32 1e-05, %v728_v35 }
 0x122   : > { %v4910_v42 = vpop.eup %4909  ;;  %v734_v43 = vadd.f32 1e-05, %v726_v39  ;;  %v5562_v44 = vsub.f32 %v5451_v48, %v692_v40 }
 0x123   : > { %v742_v46 = vmul.f32 %v4910_v42, %v733_v29  ;;  %4911 = vrsqrt.f32 %v5559_v41  ;;  %vm748_vm1 = vweird.f32 %v4910_v42  ;;  %vm777_vm9 = vweird.f32 %v5559_v41 }
 0x124   : > { %4913 = vrsqrt.f32 %v734_v43  ;;  %v708_v47 = vmul.f32 %v5562_v44, %v5562_v44  ;;  %vm5573_vm3 = vmor %vm747_vm2, %vm748_vm1  ;;  %vm757_vm4 = vweird.f32 %v734_v43 }
 0x125   : > { %v743_v50 = vmul.f32 %v4910_v42, %v742_v46 }
 0x126   : > { %723 = vadd.xlane.f32.xlu0 %v708_v47 }
 0x127   : > { %v744_v51 = vmul.f32 0.5, %v743_v50  ;;  %v714_v52 = vpop.xlane.xlu1 %713  ;;  %v718_v57 = vpop.xlane.xlu0 %717 }
 0x128   : > { %v727_v55 = vmul.f32 %v714_v52, %v5433_v31  ;;  %v729_v0 = vmul.f32 %v718_v57, %v5433_v31 }
 0x129   : > { %v5568_v58 = vpop.eup %4911  ;;  %v745_v59 = vsub.f32 1.5, %v744_v51 }
 0x12a   : > { %v4914_v60 = vpop.eup %4913  ;;  %v735_v62 = vadd.f32 1e-05, %v727_v55  ;;  %v772_v2 = vmul.f32 %v5568_v58, %v5559_v41  ;;  %v5577_v6 = vadd.f32 1e-05, %v729_v0  ;;  %vm778_vm10 = vweird.f32 %v5568_v58 }
 0x12b   : > { %v752_v63 = vmul.f32 %v4914_v60, %v734_v43  ;;  %v746_v1 = vmul.f32 %v4910_v42, %v745_v59  ;;  %vm758_vm5 = vweird.f32 %v4914_v60  ;;  %vm779_vm12 = vmor %vm777_vm9, %vm778_vm10  ;;  %vm1146_vm9 = vcmask 523264  }
 0x12c   : > { %4915 = vrsqrt.f32 %v735_v62  ;;  %v773_v12 = vmul.f32 %v5568_v58, %v772_v2  ;;  %vm759_vm6 = vmor %vm757_vm4, %vm758_vm5  ;;  %vm767_vm7 = vweird.f32 %v735_v62  ;;  %vm787_vm15 = vweird.f32 %v5577_v6 }
 0x12d   : > { %v753_v3 = vmul.f32 %v4914_v60, %v752_v63  ;;  %v750_v8 = vsel %vm5573_vm3, %v4910_v42, %v746_v1  ;;  %4917 = vrsqrt.f32 %v5577_v6  ;;  %vm1599_vm10 = vcmask 1048064  }
 0x12e   : > { %v821_v22 = vmul.f32 %v750_v8, %v5437_v36  ;;  %v774_v25 = vmul.f32 0.5, %v773_v12 }
 0x12f   : > { %v754_v5 = vmul.f32 0.5, %v753_v3  ;;  %v720_v7 = vpop.xlane.xlu1 %719 }
 0x130   : > { %v730_v13 = vmul.f32 %v720_v7, %v5433_v31  ;;  %v832_v30 = vmul.f32 %v5588_v23, %v821_v22  ;;  %v775_v36 = vsub.f32 1.5, %v774_v25 }
 0x131   : > { %v755_v14 = vsub.f32 1.5, %v754_v5 }
 0x132   : > { %v4916_v15 = vpop.eup %4915  ;;  %v738_v16 = vadd.f32 1e-05, %v730_v13  ;;  %v843_v39 = vadd.f32 %v5595_v32, %v832_v30  ;;  %v776_v40 = vmul.f32 %v5568_v58, %v775_v36 }
 0x133   : > { %v756_v17 = vmul.f32 %v4914_v60, %v755_v14  ;;  %v762_v21 = vmul.f32 %v4916_v15, %v735_v62  ;;  %vm768_vm8 = vweird.f32 %v4916_v15  ;;  %v4918_v34 = vpop.eup %4917 }
 0x134   : > { %4919 = vrsqrt.f32 %v738_v16  ;;  %vm769_vm11 = vmor %vm767_vm7, %vm768_vm8  ;;  %v782_v42 = vmul.f32 %v4918_v34, %v5577_v6  ;;  %v780_v41 = vsel %vm779_vm12, %v5568_v58, %v776_v40  ;;  %vm797_vm13 = vweird.f32 %v738_v16 }
 0x135   : > { %v760_v26 = vsel %vm759_vm6, %v4914_v60, %v756_v17  ;;  %v763_v27 = vmul.f32 %v4916_v15, %v762_v21  ;;  %v824_v57 = vmul.f32 %v780_v41, %v5447_v45  ;;  %vm788_vm0 = vweird.f32 %v4918_v34 }
 0x136   : > { %v822_v28 = vmul.f32 %v760_v26, %v5454_v49  ;;  %v783_v51 = vmul.f32 %v4918_v34, %v782_v42  ;;  %vm789_vm2 = vmor %vm787_vm15, %vm788_vm0 }
 0x137   : > { %v764_v29 = vmul.f32 0.5, %v763_v27  ;;  %v835_v63 = vmul.f32 %v5588_v23, %v824_v57 }
 0x138   : > { %v833_v33 = vmul.f32 %v5588_v23, %v822_v28  ;;  %v784_v59 = vmul.f32 0.5, %v783_v51 }
 0x139   : > { %v765_v35 = vsub.f32 1.5, %v764_v29 }
 0x13a   : > { %v844_v49 = vadd.f32 %v5595_v32, %v833_v33  ;;  %v4920_v37 = vpop.eup %4919  ;;  %v785_v0 = vsub.f32 1.5, %v784_v59 }
 0x13b   : > { %v766_v38 = vmul.f32 %v4916_v15, %v765_v35  ;;  %v792_v43 = vmul.f32 %v4920_v37, %v738_v16  ;;  %vm798_vm14 = vweird.f32 %v4920_v37 }
 0x13c   : > { %v851_v46 = vpack.c.bf16 %v844_v49, %v843_v39  ;;  %vm799_vm1 = vmor %vm797_vm13, %vm798_vm14  ;;  %v786_v2 = vmul.f32 %v4918_v34, %v785_v0 }
 0x13d   : > { %v770_v47 = vsel %vm769_vm11, %v4916_v15, %v766_v38  ;;  %v793_v50 = vmul.f32 %v4920_v37, %v792_v43  ;;  %v722_v15 = vpop.xlane.xlu2 %721 }
 0x13e   : > { %927 = vmatmul.bf16.vlgmr.msra.gmra.mxu0 %v851_v46  ;;  %1020 = vmatmul.bf16.vlgmr.msra.gmra.mxu1 %v851_v46  ;;  %v823_v52 = vmul.f32 %v770_v47, %v5465_v54  ;;  %v846_v54 = vadd.f32 %v5595_v32, %v835_v63  ;;  %v790_v4 = vsel %vm789_vm2, %v4918_v34, %v786_v2 }
 0x13f   : > { %1113 = vmatmul.bf16.vlgmr.msra.gmra.mxu2 %v851_v46  ;;  %v794_v55 = vmul.f32 0.5, %v793_v50  ;;  %v825_v7 = vmul.f32 %v790_v4, %v5462_v53  ;;  %v731_v16 = vmul.f32 %v722_v15, %v5433_v31 }
 0x140   : > { %v834_v60 = vmul.f32 %v5588_v23, %v823_v52 }
 0x141   : > { %v795_v62 = vsub.f32 1.5, %v794_v55  ;;  %v836_v6 = vmul.f32 %v5588_v23, %v825_v7  ;;  %v739_v17 = vadd.f32 1e-05, %v731_v16 }
 0x142   : > { %v845_v1 = vadd.f32 %v5595_v32, %v834_v60 }
 0x143   : > { %v796_v58 = vmul.f32 %v4920_v37, %v795_v62  ;;  %v847_v13 = vadd.f32 %v5595_v32, %v836_v6  ;;  %4921 = vrsqrt.f32 %v739_v17  ;;  %vm807_vm3 = vweird.f32 %v739_v17 }
 0x144   : > { %v852_v45 = vpack.c.bf16 %v846_v54, %v845_v1 }
 0x145   : > { %v800_v3 = vsel %vm799_vm1, %v4920_v37, %v796_v58 }
 0x146   : > { %v826_v5 = vmul.f32 %v800_v3, %v5479_v61 }
 0x148   : > { %v837_v8 = vmul.f32 %v5588_v23, %v826_v5 }
 0x149   : > { %v4922_v61 = vpop.eup %4921 }
 0x14a   : > { %v848_v12 = vadd.f32 %v5595_v32, %v837_v8  ;;  %v802_v21 = vmul.f32 %v4922_v61, %v739_v17  ;;  %vm808_vm4 = vweird.f32 %v4922_v61 }
 0x14b   : > { %vm809_vm5 = vmor %vm807_vm3, %vm808_vm4 }
 0x14c   : > { %v853_v14 = vpack.c.bf16 %v848_v12, %v847_v13  ;;  %v803_v53 = vmul.f32 %v4922_v61, %v802_v21 }
 0x14e   : > { %932 = vmatmul.bf16.gmra.mxu0 %v852_v45  ;;  %1025 = vmatmul.bf16.gmra.mxu1 %v852_v45  ;;  %v804_v27 = vmul.f32 0.5, %v803_v53 }
 0x14f   : > { %1118 = vmatmul.bf16.gmra.mxu2 %v852_v45 }
 0x150   : > { %v805_v28 = vsub.f32 1.5, %v804_v27 }
 0x152   : > { %v806_v30 = vmul.f32 %v4922_v61, %v805_v28 }
 0x154   : > { %v810_v34 = vsel %vm809_vm5, %v4922_v61, %v806_v30 }
 0x155   : > { %v827_v37 = vmul.f32 %v810_v34, %v5469_v56 }
 0x157   : > { %v838_v42 = vmul.f32 %v5588_v23, %v827_v37 }
 0x159   : > { %v849_v46 = vadd.f32 %v5595_v32, %v838_v42 }
 0x15e   : > { %937 = vmatmul.bf16.gmra.mxu0 %v853_v14  ;;  %1030 = vmatmul.bf16.gmra.mxu1 %v853_v14 }
 0x15f   : > { %1123 = vmatmul.bf16.gmra.mxu2 %v853_v14 }
 0x199   : > { %v724_v22 = vpop.xlane.xlu0 %723 }
 0x19a   : > { %v732_v25 = vmul.f32 %v724_v22, %v5433_v31 }
 0x19c   : > { %v740_v26 = vadd.f32 1e-05, %v732_v25 }
 0x19e   : > { %4923 = vrsqrt.f32 %v740_v26  ;;  %vm817_vm7 = vweird.f32 %v740_v26 }
 0x1a4   : > { %v4924_v29 = vpop.eup %4923 }
 0x1a5   : > { %v812_v36 = vmul.f32 %v4924_v29, %v740_v26  ;;  %vm818_vm6 = vweird.f32 %v4924_v29 }
 0x1a6   : > { %vm819_vm8 = vmor %vm817_vm7, %vm818_vm6 }
 0x1a7   : > { %v813_v33 = vmul.f32 %v4924_v29, %v812_v36 }
 0x1a9   : > { %v814_v35 = vmul.f32 0.5, %v813_v33 }
 0x1ab   : > { %v815_v49 = vsub.f32 1.5, %v814_v35 }
 0x1ad   : > { %v816_v38 = vmul.f32 %v4924_v29, %v815_v49 }
 0x1af   : > { %v820_v39 = vsel %vm819_vm8, %v4924_v29, %v816_v38 }
 0x1b0   : > { %v828_v40 = vmul.f32 %v820_v39, %v5562_v44 }
 0x1b2   : > { %v839_v43 = vmul.f32 %v5588_v23, %v828_v40 }
 0x1b4   : > { %v850_v47 = vadd.f32 %v5595_v32, %v839_v43 }
 0x1b6   : > { %v854_v50 = vpack.c.bf16 %v850_v47, %v849_v46 }
 0x1b8   : > { %942 = vmatmul.bf16.gmra.mxu0 %v854_v50  ;;  %1035 = vmatmul.bf16.gmra.mxu1 %v854_v50 }
 0x1b9   : > { %1128 = vmatmul.bf16.gmra.mxu2 %v854_v50 }
 0x1bb   : > { %v928_v41 = vpop.f32.mrf.mxu0  ;;  %v1021_v56 = vpop.f32.mrf.mxu1 }
 0x1c2   : > { %v1114_v2 = vpop.f32.mrf.mxu2 }
 0x1c3   : > { %v1023_v51 = vpop.f32.mrf.mxu1  ;;  %v930_v52 = vpop.f32.mrf.mxu0 }
 0x1c4   : > { %v1138_v1 = vpack.c.bf16 %v1023_v51, %v1021_v56  ;;  %v1134_v61 = vpack.c.bf16 %v930_v52, %v928_v41 }
 0x1c6   : > { %v1160_v29 = vsel %vm1146_vm9, %v1138_v1, 0 }
 0x1ca   : > { %v1116_v45 = vpop.f32.mrf.mxu2 }
 0x1cb   : > { %v1026_v55 = vpop.f32.mrf.mxu1  ;;  %v933_v57 = vpop.f32.mrf.mxu0  ;;  %v5640_v28 = vpack.c.bf16 %v1116_v45, %v1114_v2 }
 0x1d2   : > { %v1119_v3 = vpop.f32.mrf.mxu2 }
 0x1d3   : > { %v1028_v59 = vpop.f32.mrf.mxu1  ;;  %v935_v23 = vpop.f32.mrf.mxu0 }
 0x1d4   : > { %v1139_v44 = vpack.c.bf16 %v1028_v59, %v1026_v55  ;;  %v1135_v62 = vpack.c.bf16 %v935_v23, %v933_v57 }
 0x1d6   : > { %1359 = vrot.lane.b32.xlu0 %v1139_v44, %s6874_s25  ;;  %v1163_v27 = vsel %vm1146_vm9, %v1139_v44, 0 }
 0x1da   : > { %v1121_v4 = vpop.f32.mrf.mxu2 }
 0x1db   : > { %v1031_v60 = vpop.f32.mrf.mxu1  ;;  %v938_v0 = vpop.f32.mrf.mxu0  ;;  %v1143_v25 = vpack.c.bf16 %v1121_v4, %v1119_v3 }
 0x1de   : > { %1347 = vrot.lane.b32.xlu0 %v1135_v62, %s6874_s25 }
 0x1e2   : > { %v1124_v5 = vpop.f32.mrf.mxu2 }
 0x1e3   : > { %v1033_v32 = vpop.f32.mrf.mxu1  ;;  %v940_v58 = vpop.f32.mrf.mxu0 }
 0x1e4   : > { %v1140_v63 = vpack.c.bf16 %v1033_v32, %v1031_v60  ;;  %v1136_v54 = vpack.c.bf16 %v940_v58, %v938_v0 }
 0x1e6   : > { %1361 = vrot.lane.b32.xlu2 %v1140_v63, %s6874_s25  ;;  %v1166_v21 = vsel %vm1146_vm9, %v1140_v63, 0 }
 0x1ea   : > { %v1126_v7 = vpop.f32.mrf.mxu2 }
 0x1eb   : > { %v1144_v53 = vpack.c.bf16 %v1126_v7, %v1124_v5 }
 0x1ee   : > { %1357 = vrot.lane.b32.xlu2 %v1138_v1, %s6874_s25 }
 0x1f6   : > { %1349 = vrot.lane.b32.xlu2 %v1136_v54, %s6874_s25 }
 0x235   : > { %v1036_v8 = vpop.f32.mrf.mxu1  ;;  %v943_v15 = vpop.f32.mrf.mxu0 }
 0x23c   : > { %v1129_v6 = vpop.f32.mrf.mxu2 }
 0x23d   : > { %v1038_v12 = vpop.f32.mrf.mxu1  ;;  %v945_v22 = vpop.f32.mrf.mxu0 }
 0x23e   : > { %v1141_v13 = vpack.c.bf16 %v1038_v12, %v1036_v8  ;;  %v1137_v26 = vpack.c.bf16 %v945_v22, %v943_v15 }
 0x240   : > { %1363 = vrot.lane.b32.xlu1 %v1141_v13, %s6874_s25  ;;  %v1169_v14 = vsel %vm1146_vm9, %v1141_v13, 0  ;;  %v1362_v33 = vpop.permute.xlu2 %1361 }
 0x241   : > { %1175 = vmatpush.bf16.xpose.msra.mxu3 %v1169_v14  ;;  %v1384_v34 = vsel %vm1146_vm9, %v1362_v33, 0 }
 0x244   : > { %v1131_v16 = vpop.f32.mrf.mxu2 }
 0x245   : > { %v5633_v17 = vpack.c.bf16 %v1131_v16, %v1129_v6 }
 0x247   : > { %1308 = vmatpush.bf16.msrb.mxu0 %v5633_v17 }
 0x248   : > { %1345 = vrot.lane.b32.xlu1 %v1134_v61, %s6874_s25  ;;  %v1360_v35 = vpop.permute.xlu0 %1359  ;;  %v1358_v37 = vpop.permute.xlu2 %1357 }
 0x249   : > { %1176 = vmatpush.bf16.xpose.msra.mxu3 %v1166_v21  ;;  %v1381_v49 = vsel %vm1146_vm9, %v1360_v35, 0  ;;  %v1378_v38 = vsel %vm1146_vm9, %v1358_v37, 0 }
 0x24b   : > { %1309 = vmatpush.bf16.msrb.mxu0 %v1144_v53 }
 0x24f   : > { %1310 = vmatpush.bf16.msrb.mxu0 %v1143_v25 }
 0x250   : > { %1351 = vrot.lane.b32.xlu1 %v1137_v26, %s6874_s25  ;;  %v1348_v40 = vpop.permute.xlu0 %1347  ;;  %v1350_v50 = vpop.permute.xlu2 %1349 }
 0x251   : > { %1177 = vmatpush.bf16.xpose.msra.mxu3 %v1163_v27 }
 0x253   : > { %1311 = vmatpush.bf16.msrb.mxu0 %v5640_v28 }
 0x259   : > { %1178 = vmatpush.bf16.xpose.msra.mxu3 %v1160_v29 }
 0x260   : > { %4268 = vmatmul.msk.bf16.vlgmr.msra.gmra.mxu3 %vm1146_vm9, %v1134_v61 }
 0x270   : > { %4269 = vmatmul.msk.bf16.gmra.mxu3 %vm1146_vm9, %v1135_v62 }
 0x280   : > { %4270 = vmatmul.msk.bf16.gmra.mxu3 %vm1146_vm9, %v1136_v54 }
 0x290   : > { %4271 = vmatmul.msk.bf16.gmra.mxu3 %vm1146_vm9, %v1137_v26 }
 0x2b2   : > { %v1364_v30 = vpop.permute.xlu1 %1363 }
 0x2b3   : > { %v1387_v36 = vsel %vm1146_vm9, %v1364_v30, 0 }
 0x2b4   : > { %1393 = vmatpush.bf16.xpose.msrb.mxu1 %v1387_v36 }
 0x2ba   : > { %v1346_v39 = vpop.permute.xlu1 %1345 }
 0x2bc   : > { %1394 = vmatpush.bf16.xpose.msrb.mxu1 %v1384_v34 }
 0x2c2   : > { %v1352_v41 = vpop.permute.xlu1 %1351 }
 0x2c4   : > { %1395 = vmatpush.bf16.xpose.msrb.mxu1 %v1381_v49 }
 0x2cc   : > { %1396 = vmatpush.bf16.xpose.msrb.mxu1 %v1378_v38 }
 0x2d3   : > { %4276 = vmatmul.msk.bf16.vlgmr.msrb.gmra.mxu1 %vm1146_vm9, %v1346_v39 }
 0x2e3   : > { %v5653_v42 = vpop.f32.mrf.mxu3  ;;  %4277 = vmatmul.msk.bf16.gmra.mxu1 %vm1146_vm9, %v1348_v40 }
 0x2e4   : > { %v1200_v43 = vsel %vm1146_vm9, %v5653_v42, -inf }
 0x2e5   : > { %1201 = vmax.xlane.f32.xlu0 %v1200_v43 }
 0x2eb   : > { %v5658_v46 = vpop.f32.mrf.mxu3 }
 0x2ec   : > { %v1203_v47 = vsel %vm1146_vm9, %v5658_v46, -inf }
 0x2ed   : > { %1204 = vmax.xlane.f32.xlu2 %v1203_v47 }
 0x2f3   : > { %4278 = vmatmul.msk.bf16.gmra.mxu1 %vm1146_vm9, %v1350_v50  ;;  %v5688_v2 = vpop.f32.mrf.mxu3 }
 0x2f4   : > { %v1206_v45 = vsel %vm1146_vm9, %v5688_v2, -inf }
 0x2fb   : > { %v5698_v16 = vpop.f32.mrf.mxu3 }
 0x2fc   : > { %v1209_v26 = vsel %vm1146_vm9, %v5698_v16, -inf }
 0x303   : > { %4279 = vmatmul.msk.bf16.gmra.mxu1 %vm1146_vm9, %v1352_v41  ;;  %v5704_v21 = vpop.f32.mrf.mxu3 }
 0x304   : > { %v1212_v39 = vsel %vm1146_vm9, %v5704_v21, -inf }
 0x30b   : > { %v5708_v29 = vpop.f32.mrf.mxu3 }
 0x30c   : > { %v1215_v34 = vsel %vm1146_vm9, %v5708_v29, -inf }
 0x313   : > { %v5720_v40 = vpop.f32.mrf.mxu3 }
 0x350   : > { %v1398_v56 = vpop.f32.mrf.mxu1 }
 0x351   : > { %v1418_v51 = vsel %vm1146_vm9, %v1398_v56, -inf }
 0x352   : > { %1419 = vmax.xlane.f32.xlu0 %v1418_v51 }
 0x358   : > { %v1400_v52 = vpop.f32.mrf.mxu1  ;;  %v5692_v3 = vpop.xlane.xlu0 %1201 }
 0x359   : > { %v1421_v55 = vsel %vm1146_vm9, %v1400_v52, -inf }
 0x35a   : > { %1422 = vmax.xlane.f32.xlu2 %v1421_v55 }
 0x360   : > { %v5666_v57 = vpop.f32.mrf.mxu1  ;;  %v1205_v4 = vpop.xlane.xlu2 %1204 }
 0x361   : > { %v1424_v59 = vsel %vm1146_vm9, %v5666_v57, -inf  ;;  %v1225_v55 = vsub.f32 %v5658_v46, %v1205_v4 }
 0x362   : > { %1425 = vmax.xlane.f32.xlu1 %v1424_v59 }
 0x368   : > { %v1405_v44 = vpop.f32.mrf.mxu1 }
 0x369   : > { %v1427_v23 = vsel %vm1146_vm9, %v1405_v44, -inf }
 0x36a   : > { %1428 = vmax.xlane.f32.xlu0 %v1427_v23 }
 0x370   : > { %v1408_v60 = vpop.f32.mrf.mxu1 }
 0x371   : > { %v1430_v62 = vsel %vm1146_vm9, %v1408_v60, -inf }
 0x372   : > { %1431 = vmax.xlane.f32.xlu2 %v1430_v62  ;;  %v1224_v62 = vsub.f32 %v5653_v42, %v5692_v3 }
 0x378   : > { %v5676_v32 = vpop.f32.mrf.mxu1 }
 0x379   : > { %v1433_v1 = vsel %vm1146_vm9, %v5676_v32, -inf }
 0x37b   : > { %1518 = vrot.lane.b32.xlu1 %v1144_v53, %s6874_s25 }
 0x37e   : > { %1516 = vrot.lane.b32.xlu0 %v1143_v25, %s6874_s25 }
 0x380   : > { %v5678_v63 = vpop.f32.mrf.mxu1 }
 0x381   : > { %v1436_v54 = vsel %vm1146_vm9, %v5678_v63, -inf }
 0x388   : > { %v5680_v0 = vpop.f32.mrf.mxu1 }
 0x389   : > { %v1439_v58 = vsel %vm1146_vm9, %v5680_v0, -inf }
 0x38a   : > { %1520 = vrot.lane.b32.xlu2 %v5633_v17, %s6874_s25 }
 0x3a5   : > { %1434 = vmax.xlane.f32.xlu1 %v1433_v1 }
 0x3a8   : > { %1440 = vmax.xlane.f32.xlu0 %v1439_v58  ;;  %v1232_v58 = vmul.f32 1.442695, %v1224_v62 }
 0x3ad   : > { %1437 = vmax.xlane.f32.xlu1 %v1436_v54 }
 0x3b3   : > { %1207 = vmax.xlane.f32.xlu2 %v1206_v45 }
 0x3c5   : > { %v1420_v5 = vpop.xlane.xlu0 %1419 }
 0x3c6   : > { %v1442_v7 = vsub.f32 %v1398_v56, %v1420_v5 }
 0x3c8   : > { %v1450_v8 = vmul.f32 1.442695, %v1442_v7 }
 0x3ca   : > { %4925 = vpow2.f32 %v1450_v8 }
 0x3cd   : > { %v1423_v6 = vpop.xlane.xlu2 %1422 }
 0x3ce   : > { %v1443_v12 = vsub.f32 %v1400_v52, %v1423_v6 }
 0x3d0   : > { %v5694_v13 = vpop.eup %4925  ;;  %v1452_v14 = vmul.f32 1.442695, %v1443_v12 }
 0x3d1   : > { %v1466_v15 = vsel %vm1146_vm9, %v5694_v13, 0.0 }
 0x3d2   : > { %4927 = vpow2.f32 %v1452_v14  ;;  %1467 = vadd.xlane.f32.xlu1 %v1466_v15 }
 0x3d5   : > { %v1426_v33 = vpop.xlane.xlu1 %1425 }
 0x3d6   : > { %v1444_v56 = vsub.f32 %v5666_v57, %v1426_v33  ;;  %v1218_v57 = vsel %vm1146_vm9, %v5720_v40, -inf }
 0x3d8   : > { %v5700_v17 = vpop.eup %4927  ;;  %v1454_v51 = vmul.f32 1.442695, %v1444_v56 }
 0x3d9   : > { %v1469_v61 = vsel %vm1146_vm9, %v5700_v17, 0.0 }
 0x3da   : > { %1470 = vadd.xlane.f32.xlu0 %v1469_v61 }
 0x3dd   : > { %v1429_v53 = vpop.xlane.xlu0 %1428 }
 0x3de   : > { %v1445_v22 = vsub.f32 %v1405_v44, %v1429_v53  ;;  %v1234_v44 = vmul.f32 1.442695, %v1225_v55 }
 0x3e0   : > { %v1456_v25 = vmul.f32 1.442695, %v1445_v22 }
 0x3e2   : > { %4929 = vpow2.f32 %v1456_v25  ;;  %1210 = vmax.xlane.f32.xlu0 %v1209_v26 }
 0x3e5   : > { %v1432_v27 = vpop.xlane.xlu2 %1431 }
 0x3e6   : > { %v1446_v36 = vsub.f32 %v1408_v60, %v1432_v27 }
 0x3e8   : > { %v5710_v30 = vpop.eup %4929  ;;  %v1458_v49 = vmul.f32 1.442695, %v1446_v36 }
 0x3e9   : > { %v1475_v35 = vsel %vm1146_vm9, %v5710_v30, 0.0 }
 0x3ea   : > { %1216 = vmax.xlane.f32.xlu0 %v1215_v34  ;;  %1476 = vadd.xlane.f32.xlu2 %v1475_v35  ;;  %4931 = vpow2.f32 %v1458_v49 }
 0x3eb   : > { %1514 = vrot.lane.b32.xlu1 %v5640_v28, %s6874_s25  ;;  %v5726_v28 = vpop.f32.mrf.mxu3  ;;  %4933 = vpow2.f32 %v1454_v51 }
 0x3ec   : > { %v1221_v41 = vsel %vm1146_vm9, %v5726_v28, -inf  ;;  %4935 = vpow2.f32 %v1234_v44 }
 0x3ed   : > { %v1521_v37 = vpop.permute.xlu2 %1520  ;;  %v1519_v38 = vpop.permute.xlu1 %1518 }
 0x3ee   : > { %1542 = vmatpush.bf16.msrb.mxu2 %v1521_v37 }
 0x3f0   : > { %v1517_v43 = vpop.permute.xlu0 %1516  ;;  %v5722_v47 = vpop.eup %4931 }
 0x3f1   : > { %v1478_v50 = vsel %vm1146_vm9, %v5722_v47, 0.0  ;;  %v5731_v52 = vpop.eup %4933 }
 0x3f2   : > { %1543 = vmatpush.bf16.msrb.mxu2 %v1519_v38  ;;  %1213 = vmax.xlane.f32.xlu2 %v1212_v39  ;;  %v1472_v59 = vsel %vm1146_vm9, %v5731_v52, 0.0  ;;  %v5741_v45 = vpop.eup %4935 }
 0x3f3   : > { %v1251_v7 = vsel %vm1146_vm9, %v5741_v45, 0.0 }
 0x3f6   : > { %1544 = vmatpush.bf16.msrb.mxu2 %v1517_v43 }
 0x3fa   : > { %1479 = vadd.xlane.f32.xlu2 %v1478_v50 }
 0x402   : > { %1222 = vmax.xlane.f32.xlu2 %v1221_v41 }
 0x415   : > { %1473 = vadd.xlane.f32.xlu1 %v1472_v59 }
 0x418   : > { %v1435_v23 = vpop.xlane.xlu1 %1434 }
 0x419   : > { %v1447_v60 = vsub.f32 %v5676_v32, %v1435_v23 }
 0x41b   : > { %v1460_v1 = vmul.f32 1.442695, %v1447_v60  ;;  %v1441_v46 = vpop.xlane.xlu0 %1440 }
 0x41c   : > { %v1449_v5 = vsub.f32 %v5680_v0, %v1441_v46 }
 0x41d   : > { %4937 = vpow2.f32 %v1460_v1  ;;  %1219 = vmax.xlane.f32.xlu1 %v1218_v57 }
 0x41e   : > { %4939 = vpow2.f32 %v1232_v58  ;;  %v1464_v8 = vmul.f32 1.442695, %v1449_v5 }
 0x420   : > { %v1438_v54 = vpop.xlane.xlu1 %1437 }
 0x421   : > { %v1448_v4 = vsub.f32 %v5678_v63, %v1438_v54 }
 0x423   : > { %v5745_v32 = vpop.eup %4937  ;;  %v1462_v42 = vmul.f32 1.442695, %v1448_v4 }
 0x424   : > { %v1481_v3 = vsel %vm1146_vm9, %v5745_v32, 0.0  ;;  %v5752_v63 = vpop.eup %4939 }
 0x425   : > { %4941 = vpow2.f32 %v1462_v42  ;;  %1482 = vadd.xlane.f32.xlu0 %v1481_v3  ;;  %1252 = vadd.xlane.f32.xlu1 %v1251_v7  ;;  %v1248_v15 = vsel %vm1146_vm9, %v5752_v63, 0.0 }
 0x426   : > { %v1208_v6 = vpop.xlane.xlu2 %1207  ;;  %4943 = vpow2.f32 %v1464_v8 }
 0x427   : > { %v1226_v12 = vsub.f32 %v5688_v2, %v1208_v6 }
 0x429   : > { %v1236_v0 = vmul.f32 1.442695, %v1226_v12 }
 0x42b   : > { %v5754_v14 = vpop.eup %4941  ;;  %4945 = vpow2.f32 %v1236_v0 }
 0x42c   : > { %v1484_v61 = vsel %vm1146_vm9, %v5754_v14, 0.0  ;;  %v5760_v53 = vpop.eup %4943 }
 0x42d   : > { %1249 = vadd.xlane.f32.xlu0 %v1248_v15  ;;  %1485 = vadd.xlane.f32.xlu2 %v1484_v61  ;;  %v1487_v25 = vsel %vm1146_vm9, %v5760_v53, 0.0 }
 0x431   : > { %v5762_v22 = vpop.eup %4945 }
 0x432   : > { %v1254_v2 = vsel %vm1146_vm9, %v5762_v22, 0.0 }
 0x433   : > { %1255 = vadd.xlane.f32.xlu1 %v1254_v2 }
 0x435   : > { %1488 = vadd.xlane.f32.xlu0 %v1487_v25 }
 0x445   : > { %v1468_v27 = vpop.xlane.xlu1 %1467 }
 0x44d   : > { %v1471_v26 = vpop.xlane.xlu0 %1470 }
 0x44e   : > { %4947 = vrcp.f32 %v1471_v26 }
 0x44f   : > { %4949 = vrcp.f32 %v1468_v27 }
 0x454   : > { %v4948_v34 = vpop.eup %4947 }
 0x455   : > { %v1211_v36 = vpop.xlane.xlu0 %1210  ;;  %v4950_v49 = vpop.eup %4949  ;;  %v1499_v37 = vmul.f32 %v4948_v34, %v5700_v17 }
 0x456   : > { %v1227_v33 = vsub.f32 %v5698_v16, %v1211_v36  ;;  %v1498_v38 = vmul.f32 %v4950_v49, %v5694_v13 }
 0x458   : > { %v1238_v35 = vmul.f32 1.442695, %v1227_v33  ;;  %v1506_v56 = vpack.c.bf16 %v1499_v37, %v1498_v38 }
 0x45a   : > { %4951 = vpow2.f32 %v1238_v35 }
 0x45d   : > { %v1515_v39 = vpop.permute.xlu1 %1514  ;;  %v1477_v43 = vpop.xlane.xlu2 %1476 }
 0x45e   : > { %v1217_v50 = vpop.xlane.xlu0 %1216  ;;  %1545 = vmatpush.bf16.msrb.mxu2 %v1515_v39 }
 0x45f   : > { %v1229_v41 = vsub.f32 %v5708_v29, %v1217_v50 }
 0x460   : > { %v5772_v51 = vpop.eup %4951 }
 0x461   : > { %v1242_v55 = vmul.f32 1.442695, %v1229_v41  ;;  %4280 = vmatmul.msk.bf16.vlgmr.msrb.gmra.mxu2 %vm1146_vm9, %v1506_v56  ;;  %v1257_v16 = vsel %vm1146_vm9, %v5772_v51, 0.0 }
 0x462   : > { %1258 = vadd.xlane.f32.xlu2 %v1257_v16 }
 0x463   : > { %4953 = vpow2.f32 %v1242_v55 }
 0x465   : > { %v1214_v17 = vpop.xlane.xlu2 %1213 }
 0x466   : > { %v1228_v13 = vsub.f32 %v5704_v21, %v1214_v17 }
 0x468   : > { %v1240_v59 = vmul.f32 1.442695, %v1228_v13 }
 0x469   : > { %v5778_v44 = vpop.eup %4953 }
 0x46a   : > { %4955 = vpow2.f32 %v1240_v59  ;;  %v1263_v29 = vsel %vm1146_vm9, %v5778_v44, 0.0 }
 0x46b   : > { %1264 = vadd.xlane.f32.xlu1 %v1263_v29 }
 0x46d   : > { %v1480_v23 = vpop.xlane.xlu2 %1479 }
 0x470   : > { %v5782_v60 = vpop.eup %4955 }
 0x471   : > { %v1260_v62 = vsel %vm1146_vm9, %v5782_v60, 0.0 }
 0x472   : > { %1261 = vadd.xlane.f32.xlu0 %v1260_v62 }
 0x475   : > { %v1223_v1 = vpop.xlane.xlu2 %1222 }
 0x476   : > { %v1231_v57 = vsub.f32 %v5726_v28, %v1223_v1 }
 0x478   : > { %v1246_v58 = vmul.f32 1.442695, %v1231_v57 }
 0x47a   : > { %4957 = vpow2.f32 %v1246_v58 }
 0x47b   : > { %4959 = vrcp.f32 %v1477_v43 }
 0x480   : > { %v5787_v21 = vpop.eup %4957 }
 0x481   : > { %v1269_v46 = vsel %vm1146_vm9, %v5787_v21, 0.0  ;;  %v4960_v4 = vpop.eup %4959 }
 0x482   : > { %1270 = vadd.xlane.f32.xlu0 %v1269_v46  ;;  %v1501_v7 = vmul.f32 %v4960_v4, %v5710_v30 }
 0x488   : > { %v1474_v54 = vpop.xlane.xlu1 %1473 }
 0x489   : > { %4961 = vrcp.f32 %v1474_v54 }
 0x48f   : > { %v4962_v5 = vpop.eup %4961 }
 0x490   : > { %v1220_v42 = vpop.xlane.xlu1 %1219  ;;  %v1500_v3 = vmul.f32 %v4962_v5, %v5731_v52 }
 0x491   : > { %v1230_v28 = vsub.f32 %v5720_v40, %v1220_v42  ;;  %v4756_v42 = vld [vmem:[%s6850_s7 + $0x30] sm:$0xff] }
 0x492   : > { %v1507_v8 = vpack.c.bf16 %v1501_v7, %v1500_v3 }
 0x493   : > { %v1244_v6 = vmul.f32 1.442695, %v1230_v28  ;;  %v4754_v28 = vld [vmem:[%s6850_s7 + $0x20] sm:$0xff] }
 0x494   : > { %4281 = vmatmul.msk.bf16.gmra.mxu2 %vm1146_vm9, %v1507_v8  ;;  %v4753_v8 = vld [vmem:[%s6850_s7 + $0x18] sm:$0xff] }
 0x495   : > { %4963 = vpow2.f32 %v1244_v6 }
 0x496   : > { %4965 = vrcp.f32 %v1480_v23 }
 0x498   : > { %v1483_v12 = vpop.xlane.xlu0 %1482  ;;  %v1253_v61 = vpop.xlane.xlu1 %1252 }
 0x499   : > { %4967 = vrcp.f32 %v1483_v12 }
 0x49a   : > { %4969 = vrcp.f32 %v1253_v61  ;;  %v4751_v61 = vld [vmem:[%s6850_s7 + $0x8] sm:$0xff] }
 0x49b   : > { %v4964_v0 = vpop.eup %4963 }
 0x49c   : > { %v1266_v15 = vsel %vm1146_vm9, %v4964_v0, 0.0  ;;  %v4966_v2 = vpop.eup %4965 }
 0x49d   : > { %1267 = vadd.xlane.f32.xlu2 %v1266_v15  ;;  %v1502_v30 = vmul.f32 %v4966_v2, %v5722_v47  ;;  %v4750_v2 = vld [vmem:[%s6850_s7] sm:$0xff] }
 0x49f   : > { %v4968_v25 = vpop.eup %4967 }
 0x4a0   : > { %v1250_v52 = vpop.xlane.xlu0 %1249  ;;  %v1503_v40 = vmul.f32 %v4968_v25, %v5745_v32  ;;  %v1486_v27 = vpop.xlane.xlu2 %1485 }
 0x4a1   : > { %4971 = vrcp.f32 %v1250_v52  ;;  %v4970_v36 = vpop.eup %4969 }
 0x4a2   : > { %v1508_v26 = vpack.c.bf16 %v1503_v40, %v1502_v30  ;;  %4973 = vrcp.f32 %v1486_v27  ;;  %v1281_v35 = vmul.f32 %v4970_v36, %v5741_v45 }
 0x4a4   : > { %4282 = vmatmul.msk.bf16.gmra.mxu2 %vm1146_vm9, %v1508_v26 }
 0x4a6   : > { %v1256_v50 = vpop.xlane.xlu1 %1255 }
 0x4a7   : > { %v4972_v33 = vpop.eup %4971 }
 0x4a8   : > { %v1489_v34 = vpop.xlane.xlu0 %1488  ;;  %v1280_v49 = vmul.f32 %v4972_v33, %v5752_v63  ;;  %v4974_v38 = vpop.eup %4973 }
 0x4a9   : > { %4975 = vrcp.f32 %v1489_v34  ;;  %v1504_v32 = vmul.f32 %v4974_v38, %v5754_v14 }
 0x4aa   : > { %v1288_v37 = vpack.c.bf16 %v1281_v35, %v1280_v49  ;;  %4977 = vrcp.f32 %v1256_v50 }
 0x4ac   : > { %4272 = vmatmul.msk.bf16.vlgmr.msrb.gmra.mxu0 %vm1146_vm9, %v1288_v37 }
 0x4af   : > { %v4976_v47 = vpop.eup %4975 }
 0x4b0   : > { %v1505_v39 = vmul.f32 %v4976_v47, %v5760_v53  ;;  %v4978_v45 = vpop.eup %4977 }
 0x4b1   : > { %v1282_v63 = vmul.f32 %v4978_v45, %v5762_v22 }
 0x4b2   : > { %v1509_v43 = vpack.c.bf16 %v1505_v39, %v1504_v32 }
 0x4b4   : > { %4283 = vmatmul.msk.bf16.gmra.mxu2 %vm1146_vm9, %v1509_v43 }
 0x4d5   : > { %v1259_v41 = vpop.xlane.xlu2 %1258 }
 0x4d6   : > { %4979 = vrcp.f32 %v1259_v41 }
 0x4dc   : > { %v4980_v56 = vpop.eup %4979 }
 0x4dd   : > { %v1283_v55 = vmul.f32 %v4980_v56, %v5772_v51 }
 0x4de   : > { %v1265_v17 = vpop.xlane.xlu1 %1264 }
 0x4df   : > { %v1289_v16 = vpack.c.bf16 %v1283_v55, %v1282_v63  ;;  %4981 = vrcp.f32 %v1265_v17 }
 0x4e1   : > { %4273 = vmatmul.msk.bf16.gmra.mxu0 %vm1146_vm9, %v1289_v16 }
 0x4e4   : > { %v1547_v14 = vpop.f32.mrf.mxu2 }
 0x4e5   : > { %1575 = vrot.lane.b32.xlu1 %v1547_v14, %s6874_s25  ;;  %v1262_v53 = vpop.xlane.xlu0 %1261  ;;  %v4982_v13 = vpop.eup %4981 }
 0x4e6   : > { %4983 = vrcp.f32 %v1262_v53  ;;  %v1285_v22 = vmul.f32 %v4982_v13, %v5778_v44  ;;  %v4757_v44 = vld [vmem:[%s6850_s7 + $0x38] sm:$0xff]  ;;  %v4892_v13 = vld [vmem:[%s6851_s8] ss:$0 sm:$0xff] }
 0x4e7   : > { %1688 = vmatpush.bf16.msrb.mxu3 %v4757_v44 }
 0x4eb   : > { %1689 = vmatpush.bf16.msrb.mxu3 %v4756_v42 }
 0x4ec   : > { %v4984_v59 = vpop.eup %4983  ;;  %v1549_v29 = vpop.f32.mrf.mxu2 }
 0x4ed   : > { %1577 = vrot.lane.b32.xlu2 %v1549_v29, %s6874_s25  ;;  %v1284_v23 = vmul.f32 %v4984_v59, %v5782_v60 }
 0x4ef   : > { %v1290_v51 = vpack.c.bf16 %v1285_v22, %v1284_v23 }
 0x4f1   : > { %4274 = vmatmul.msk.bf16.gmra.mxu0 %vm1146_vm9, %v1290_v51 }
 0x4f5   : > { %v1271_v62 = vpop.xlane.xlu0 %1270 }
 0x4f6   : > { %4985 = vrcp.f32 %v1271_v62 }
 0x4fc   : > { %v4986_v57 = vpop.eup %4985 }
 0x4fd   : > { %v1287_v4 = vmul.f32 %v4986_v57, %v5787_v21  ;;  %v4755_v21 = vld [vmem:[%s6850_s7 + $0x28] sm:$0xff] }
 0x4fe   : > { %1690 = vmatpush.bf16.msrb.mxu3 %v4755_v21 }
 0x502   : > { %1691 = vmatpush.bf16.msrb.mxu3 %v4754_v28 }
 0x506   : > { %1692 = vmatpush.bf16.msrb.mxu3 %v4753_v8 }
 0x510   : > { %v1268_v1 = vpop.xlane.xlu2 %1267 }
 0x511   : > { %4987 = vrcp.f32 %v1268_v1 }
 0x517   : > { %v4988_v58 = vpop.eup %4987  ;;  %v1552_v46 = vpop.f32.mrf.mxu2 }
 0x518   : > { %1579 = vrot.lane.b32.xlu0 %v1552_v46, %s6874_s25  ;;  %v1286_v54 = vmul.f32 %v4988_v58, %v4964_v0  ;;  %v4752_v0 = vld [vmem:[%s6850_s7 + $0x10] sm:$0xff] }
 0x519   : > { %1693 = vmatpush.bf16.msrb.mxu3 %v4752_v0 }
 0x51a   : > { %v1291_v5 = vpack.c.bf16 %v1287_v4, %v1286_v54 }
 0x51c   : > { %4275 = vmatmul.msk.bf16.gmra.mxu0 %vm1146_vm9, %v1291_v5 }
 0x51d   : > { %1694 = vmatpush.bf16.msrb.mxu3 %v4751_v61 }
 0x51f   : > { %v1554_v60 = vpop.f32.mrf.mxu2 }
 0x520   : > { %1581 = vrot.lane.b32.xlu1 %v1554_v60, %s6874_s25 }
 0x521   : > { %1695 = vmatpush.bf16.msrb.mxu3 %v4750_v2 }
 0x527   : > { %v1557_v3 = vpop.f32.mrf.mxu2 }
 0x528   : > { %1583 = vrot.lane.b32.xlu0 %v1557_v3, %s6874_s25 }
 0x529   : > { %v1313_v7 = vpop.f32.mrf.mxu0 }
 0x52a   : > { %1333 = vst.msk [vmem:[#allocation2] sm:$0xff] %vm1146_vm9, %v1313_v7 }
 0x52f   : > { %v1559_v6 = vpop.f32.mrf.mxu2 }
 0x530   : > { %1585 = vrot.lane.b32.xlu2 %v1559_v6, %s6874_s25 }
 0x531   : > { %v1315_v12 = vpop.f32.mrf.mxu0 }
 0x532   : > { %1334 = vst.msk [vmem:[#allocation2 + $0x8] sm:$0xff] %vm1146_vm9, %v1315_v12 }
 0x537   : > { %v1562_v15 = vpop.f32.mrf.mxu2 }
 0x538   : > { %1587 = vrot.lane.b32.xlu1 %v1562_v15, %s6874_s25 }
 0x53f   : > { %v1564_v25 = vpop.f32.mrf.mxu2 }
 0x540   : > { %1589 = vrot.lane.b32.xlu0 %v1564_v25, %s6874_s25  ;;  %s4107_s25 = scalar_lea.hbm %s6863_s20, %s5359_s2 }
 0x541   : > { %s4111_s29 = sshll.u32 %s4107_s25, 4  ;;  %s4112_s29 = int_to_ptr.hbm [resolvable:$true] %s4111_s29 }
 0x547   : > { %v1578_v52 = vpop.permute.xlu2 %1577 }
 0x548   : > { %1601 = vst.msk [vmem:[#allocation2 + $0x8] sm:$0xff] %vm1599_vm10, %v1578_v52 }
 0x54f   : > { %v1609_v27 = vld [vmem:[#allocation2 + $0x8] sm:$0xff] }
 0x557   : > { %v1576_v30 = vpop.permute.xlu1 %1575 }
 0x558   : > { %1600 = vst.msk [vmem:[#allocation2] sm:$0xff] %vm1599_vm10, %v1576_v30 }
 0x55e   : > { %v1318_v40 = vpop.f32.mrf.mxu0 }
 0x55f   : > { %1335 = vst.msk [vmem:[#allocation2 + $0x10] sm:$0xff] %vm1146_vm9, %v1318_v40  ;;  %v1608_v26 = vld [vmem:[#allocation2] sm:$0xff] }
 0x560   : > { %v1616_v36 = vpack.c.bf16 %v1609_v27, %v1608_v26 }
 0x562   : > { %1696 = vmatmul.bf16.vlgmr.msrb.gmra.mxu3 %v1616_v36 }
 0x566   : > { %v1320_v33 = vpop.f32.mrf.mxu0 }
 0x567   : > { %1336 = vst.msk [vmem:[#allocation2 + $0x18] sm:$0xff] %vm1146_vm9, %v1320_v33 }
 0x56e   : > { %v1323_v34 = vpop.f32.mrf.mxu0 }
 0x56f   : > { %1337 = vst.msk [vmem:[#allocation2 + $0x20] sm:$0xff] %vm1146_vm9, %v1323_v34 }
 0x576   : > { %v1325_v35 = vpop.f32.mrf.mxu0 }
 0x577   : > { %1338 = vst.msk [vmem:[#allocation2 + $0x28] sm:$0xff] %vm1146_vm9, %v1325_v35 }
 0x58a   : > { %v1580_v49 = vpop.permute.xlu0 %1579  ;;  %v1586_v37 = vpop.permute.xlu2 %1585 }
 0x58b   : > { %1602 = vst.msk [vmem:[#allocation2 + $0x10] sm:$0xff] %vm1599_vm10, %v1580_v49 }
 0x58c   : > { %1605 = vst.msk [vmem:[#allocation2 + $0x28] sm:$0xff] %vm1599_vm10, %v1586_v37 }
 0x592   : > { %v1582_v38 = vpop.permute.xlu1 %1581  ;;  %v1610_v32 = vld [vmem:[#allocation2 + $0x10] sm:$0xff] }
 0x593   : > { %1603 = vst.msk [vmem:[#allocation2 + $0x18] sm:$0xff] %vm1599_vm10, %v1582_v38  ;;  %v1613_v56 = vld [vmem:[#allocation2 + $0x28] sm:$0xff] }
 0x599   : > { %v1328_v47 = vpop.f32.mrf.mxu0 }
 0x59a   : > { %1339 = vst.msk [vmem:[#allocation2 + $0x30] sm:$0xff] %vm1146_vm9, %v1328_v47  ;;  %v1611_v39 = vld [vmem:[#allocation2 + $0x18] sm:$0xff]  ;;  %v1584_v43 = vpop.permute.xlu0 %1583 }
 0x59b   : > { %v1617_v50 = vpack.c.bf16 %v1611_v39, %v1610_v32  ;;  %1604 = vst.msk [vmem:[#allocation2 + $0x20] sm:$0xff] %vm1599_vm10, %v1584_v43 }
 0x59d   : > { %1701 = vmatmul.bf16.gmra.mxu3 %v1617_v50  ;;  %v4765_v50 = vld [vmem:[%s6854_s11 + $0x38] sm:$0xff] }
 0x59e   : > { %1981 = vmatpush.bf16.msra.mxu0 %v4765_v50 }
 0x5a1   : > { %v1330_v41 = vpop.f32.mrf.mxu0 }
 0x5a2   : > { %1340 = vst.msk [vmem:[#allocation2 + $0x38] sm:$0xff] %vm1146_vm9, %v1330_v41  ;;  %v1612_v45 = vld [vmem:[#allocation2 + $0x20] sm:$0xff]  ;;  %v4764_v41 = vld [vmem:[%s6854_s11 + $0x30] sm:$0xff] }
 0x5a3   : > { %v1618_v55 = vpack.c.bf16 %v1613_v56, %v1612_v45  ;;  %1982 = vmatpush.bf16.msra.mxu0 %v4764_v41  ;;  %v4763_v45 = vld [vmem:[%s6854_s11 + $0x28] sm:$0xff]  ;;  %v4762_v56 = vld [vmem:[%s6854_s11 + $0x20] sm:$0xff] }
 0x5a7   : > { %1983 = vmatpush.bf16.msra.mxu0 %v4763_v45 }
 0x5aa   : > { %v1588_v63 = vpop.permute.xlu1 %1587 }
 0x5ab   : > { %1606 = vst.msk [vmem:[#allocation2 + $0x30] sm:$0xff] %vm1599_vm10, %v1588_v63  ;;  %1984 = vmatpush.bf16.msra.mxu0 %v4762_v56  ;;  %v4761_v63 = vld [vmem:[%s6854_s11 + $0x18] sm:$0xff] }
 0x5ad   : > { %1706 = vmatmul.bf16.gmra.mxu3 %v1618_v55  ;;  %v4760_v55 = vld [vmem:[%s6854_s11 + $0x10] sm:$0xff] }
 0x5af   : > { %1985 = vmatpush.bf16.msra.mxu0 %v4761_v63 }
 0x5b2   : > { %v1590_v16 = vpop.permute.xlu0 %1589  ;;  %v1614_v17 = vld [vmem:[#allocation2 + $0x30] sm:$0xff] }
 0x5b3   : > { %1607 = vst.msk [vmem:[#allocation2 + $0x38] sm:$0xff] %vm1599_vm10, %v1590_v16  ;;  %1986 = vmatpush.bf16.msra.mxu0 %v4760_v55  ;;  %v4759_v16 = vld [vmem:[%s6854_s11 + $0x8] sm:$0xff] }
 0x5b7   : > { %1987 = vmatpush.bf16.msra.mxu0 %v4759_v16 }
 0x5ba   : > { %v1615_v14 = vld [vmem:[#allocation2 + $0x38] sm:$0xff] }
 0x5bb   : > { %v1619_v53 = vpack.c.bf16 %v1615_v14, %v1614_v17 }
 0x5bd   : > { %1711 = vmatmul.bf16.gmra.mxu3 %v1619_v53  ;;  %v4758_v53 = vld [vmem:[%s6854_s11] sm:$0xff] }
 0x5be   : > { %1988 = vmatpush.bf16.msra.mxu0 %v4758_v53 }
 0x5e5   : > { %v1697_v59 = vpop.f32.mrf.mxu3 }
 0x5e6   : > { %v1698_v29 = vadd.f32 %v4892_v13, %v1697_v59 }
 0x5e8   : > { %v1717_v23 = vadd.f32 %v1698_v29, %v5404_v11 }
 0x5ea   : > { %1727 = vadd.xlane.f32.xlu2 %v1717_v23 }
 0x5ed   : > { %v1699_v22 = vpop.f32.mrf.mxu3 }
 0x5ee   : > { %v1700_v51 = vadd.f32 %v4892_v13, %v1699_v22 }
 0x5f0   : > { %v1718_v62 = vadd.f32 %v1700_v51, %v5422_v20 }
 0x5f2   : > { %1729 = vadd.xlane.f32.xlu1 %v1718_v62 }
 0x620   : > { %v1702_v1 = vpop.f32.mrf.mxu3 }
 0x621   : > { %v1703_v57 = vadd.f32 %v4892_v13, %v1702_v1 }
 0x623   : > { %v1719_v58 = vadd.f32 %v1703_v57, %v5402_v10 }
 0x625   : > { %1731 = vadd.xlane.f32.xlu0 %v1719_v58 }
 0x628   : > { %v1704_v46 = vpop.f32.mrf.mxu3 }
 0x629   : > { %v1705_v54 = vadd.f32 %v4892_v13, %v1704_v46 }
 0x62b   : > { %v1720_v4 = vadd.f32 %v1705_v54, %v5420_v19 }
 0x62d   : > { %1733 = vadd.xlane.f32.xlu2 %v1720_v4 }
 0x630   : > { %v1707_v5 = vpop.f32.mrf.mxu3 }
 0x631   : > { %v1708_v60 = vadd.f32 %v4892_v13, %v1707_v5 }
 0x633   : > { %v1721_v11 = vadd.f32 %v1708_v60, %v5400_v9 }
 0x635   : > { %1735 = vadd.xlane.f32.xlu1 %v1721_v11 }
 0x638   : > { %v1709_v44 = vpop.f32.mrf.mxu3 }
 0x639   : > { %v1710_v42 = vadd.f32 %v4892_v13, %v1709_v44 }
 0x63b   : > { %v1722_v20 = vadd.f32 %v1710_v42, %v5418_v18 }
 0x63d   : > { %1737 = vadd.xlane.f32.xlu0 %v1722_v20 }
 0x640   : > { %v1712_v3 = vpop.f32.mrf.mxu3 }
 0x641   : > { %v1713_v21 = vadd.f32 %v4892_v13, %v1712_v3 }
 0x643   : > { %v1723_v10 = vadd.f32 %v1713_v21, %v5430_v24 }
 0x645   : > { %1739 = vadd.xlane.f32.xlu0 %v1723_v10 }
 0x648   : > { %v1714_v9 = vpop.f32.mrf.mxu3 }
 0x649   : > { %v1715_v12 = vadd.f32 %v4892_v13, %v1714_v9 }
 0x64b   : > { %v1724_v15 = vadd.f32 %v1715_v12, %v5451_v48 }
 0x65d   : > { %v1728_v7 = vpop.xlane.xlu2 %1727 }
 0x65e   : > { %v1743_v28 = vmul.f32 %v1728_v7, %v5433_v31 }
 0x660   : > { %v5872_v19 = vsub.f32 %v1717_v23, %v1743_v28 }
 0x662   : > { %v1759_v8 = vmul.f32 %v5872_v19, %v5872_v19 }
 0x664   : > { %1767 = vadd.xlane.f32.xlu2 %v1759_v8 }
 0x665   : > { %v1730_v6 = vpop.xlane.xlu1 %1729 }
 0x666   : > { %v1744_v18 = vmul.f32 %v1730_v6, %v5433_v31  ;;  %v5949_v6 = vld [vmem:[%s6853_s10] ss:$0 sm:$0xff] }
 0x668   : > { %v5877_v0 = vsub.f32 %v1718_v62, %v1744_v18 }
 0x66a   : > { %v1760_v24 = vmul.f32 %v5877_v0, %v5877_v0 }
 0x66c   : > { %1769 = vadd.xlane.f32.xlu1 %v1760_v24  ;;  %1741 = vadd.xlane.f32.xlu2 %v1724_v15 }
 0x698   : > { %v1732_v61 = vpop.xlane.xlu0 %1731 }
 0x699   : > { %v1745_v2 = vmul.f32 %v1732_v61, %v5433_v31 }
 0x69b   : > { %v5883_v25 = vsub.f32 %v1719_v58, %v1745_v2 }
 0x69d   : > { %v1761_v52 = vmul.f32 %v5883_v25, %v5883_v25 }
 0x69f   : > { %1771 = vadd.xlane.f32.xlu1 %v1761_v52 }
 0x6a0   : > { %v1734_v30 = vpop.xlane.xlu2 %1733 }
 0x6a1   : > { %v1746_v40 = vmul.f32 %v1734_v30, %v5433_v31 }
 0x6a3   : > { %v5888_v26 = vsub.f32 %v1720_v4, %v1746_v40 }
 0x6a5   : > { %v1762_v27 = vmul.f32 %v5888_v26, %v5888_v26 }
 0x6a7   : > { %1773 = vadd.xlane.f32.xlu0 %v1762_v27 }
 0x6a8   : > { %v1736_v48 = vpop.xlane.xlu1 %1735 }
 0x6a9   : > { %v1747_v36 = vmul.f32 %v1736_v48, %v5433_v31 }
 0x6ab   : > { %v5893_v33 = vsub.f32 %v1721_v11, %v1747_v36 }
 0x6ad   : > { %v1763_v34 = vmul.f32 %v5893_v33, %v5893_v33 }
 0x6af   : > { %1775 = vadd.xlane.f32.xlu2 %v1763_v34 }
 0x6b0   : > { %v1738_v35 = vpop.xlane.xlu0 %1737 }
 0x6b1   : > { %v1748_v49 = vmul.f32 %v1738_v35, %v5433_v31 }
 0x6b3   : > { %v5898_v37 = vsub.f32 %v1722_v20, %v1748_v49 }
 0x6b5   : > { %v1764_v38 = vmul.f32 %v5898_v37, %v5898_v37 }
 0x6b7   : > { %1777 = vadd.xlane.f32.xlu1 %v1764_v38 }
 0x6b8   : > { %v1740_v47 = vpop.xlane.xlu0 %1739 }
 0x6b9   : > { %v1749_v32 = vmul.f32 %v1740_v47, %v5433_v31 }
 0x6bb   : > { %v5903_v39 = vsub.f32 %v1723_v10, %v1749_v32  ;;  %v5942_v10 = vld [vmem:[%s6852_s9] ss:$0 sm:$0xff] }
 0x6bd   : > { %v1765_v43 = vmul.f32 %v5903_v39, %v5903_v39 }
 0x6bf   : > { %1779 = vadd.xlane.f32.xlu0 %v1765_v43 }
 0x6d7   : > { %v1768_v17 = vpop.xlane.xlu2 %1767 }
 0x6d8   : > { %v1783_v14 = vmul.f32 %v1768_v17, %v5433_v31 }
 0x6da   : > { %v1791_v13 = vadd.f32 1e-05, %v1783_v14 }
 0x6dc   : > { %4989 = vrsqrt.f32 %v1791_v13  ;;  %vm1805_vm12 = vweird.f32 %v1791_v13 }
 0x6df   : > { %v1770_v59 = vpop.xlane.xlu1 %1769  ;;  %v1742_v29 = vpop.xlane.xlu2 %1741 }
 0x6e0   : > { %v1784_v23 = vmul.f32 %v1770_v59, %v5433_v31  ;;  %v1750_v22 = vmul.f32 %v1742_v29, %v5433_v31 }
 0x6e2   : > { %v4990_v51 = vpop.eup %4989  ;;  %v1792_v62 = vadd.f32 1e-05, %v1784_v23  ;;  %v5934_v1 = vsub.f32 %v1724_v15, %v1750_v22 }
 0x6e3   : > { %v1800_v57 = vmul.f32 %v4990_v51, %v1791_v13  ;;  %vm1806_vm11 = vweird.f32 %v4990_v51 }
 0x6e4   : > { %4991 = vrsqrt.f32 %v1792_v62  ;;  %v1766_v58 = vmul.f32 %v5934_v1, %v5934_v1  ;;  %vm1807_vm13 = vmor %vm1805_vm12, %vm1806_vm11  ;;  %vm1815_vm15 = vweird.f32 %v1792_v62 }
 0x6e5   : > { %v1801_v46 = vmul.f32 %v4990_v51, %v1800_v57 }
 0x6e6   : > { %1781 = vadd.xlane.f32.xlu2 %v1766_v58 }
 0x6e7   : > { %v1802_v54 = vmul.f32 0.5, %v1801_v46 }
 0x6e9   : > { %v1803_v4 = vsub.f32 1.5, %v1802_v54 }
 0x6ea   : > { %v4992_v5 = vpop.eup %4991 }
 0x6eb   : > { %v1804_v60 = vmul.f32 %v4990_v51, %v1803_v4  ;;  %v1810_v11 = vmul.f32 %v4992_v5, %v1792_v62  ;;  %vm1816_vm14 = vweird.f32 %v4992_v5 }
 0x6ec   : > { %vm1817_vm0 = vmor %vm1815_vm15, %vm1816_vm14 }
 0x6ed   : > { %v1811_v44 = vmul.f32 %v4992_v5, %v1810_v11  ;;  %v1808_v42 = vsel %vm1807_vm13, %v4990_v51, %v1804_v60 }
 0x6ee   : > { %v1879_v21 = vmul.f32 %v1808_v42, %v5872_v19 }
 0x6ef   : > { %v1812_v20 = vmul.f32 0.5, %v1811_v44 }
 0x6f0   : > { %v1890_v9 = vmul.f32 %v5942_v10, %v1879_v21 }
 0x6f1   : > { %v1813_v3 = vsub.f32 1.5, %v1812_v20 }
 0x6f2   : > { %v5953_v12 = vadd.f32 %v5949_v6, %v1890_v9 }
 0x6f3   : > { %v1814_v7 = vmul.f32 %v4992_v5, %v1813_v3 }
 0x6f5   : > { %v1818_v28 = vsel %vm1817_vm0, %v4992_v5, %v1814_v7 }
 0x6f6   : > { %v1880_v8 = vmul.f32 %v1818_v28, %v5877_v0 }
 0x6f8   : > { %v1891_v19 = vmul.f32 %v5942_v10, %v1880_v8 }
 0x6fa   : > { %v5956_v18 = vadd.f32 %v5949_v6, %v1891_v19 }
 0x6fc   : > { %v1909_v24 = vpack.c.bf16 %v5956_v18, %v5953_v12 }
 0x6fe   : > { %1989 = vmatmul.bf16.vlgmr.msra.gmra.mxu0 %v1909_v24 }
 0x712   : > { %v1772_v0 = vpop.xlane.xlu1 %1771 }
 0x713   : > { %v1785_v15 = vmul.f32 %v1772_v0, %v5433_v31 }
 0x715   : > { %v1793_v61 = vadd.f32 1e-05, %v1785_v15 }
 0x717   : > { %4993 = vrsqrt.f32 %v1793_v61  ;;  %vm1825_vm2 = vweird.f32 %v1793_v61 }
 0x71a   : > { %v1774_v2 = vpop.xlane.xlu0 %1773 }
 0x71b   : > { %v1786_v52 = vmul.f32 %v1774_v2, %v5433_v31 }
 0x71d   : > { %v4994_v30 = vpop.eup %4993  ;;  %v1794_v40 = vadd.f32 1e-05, %v1786_v52 }
 0x71e   : > { %v1820_v27 = vmul.f32 %v4994_v30, %v1793_v61  ;;  %vm1826_vm1 = vweird.f32 %v4994_v30 }
 0x71f   : > { %4995 = vrsqrt.f32 %v1794_v40  ;;  %vm1827_vm3 = vmor %vm1825_vm2, %vm1826_vm1  ;;  %vm1835_vm5 = vweird.f32 %v1794_v40 }
 0x720   : > { %v1821_v48 = vmul.f32 %v4994_v30, %v1820_v27  ;;  %v4773_v27 = vld [vmem:[%s6856_s13 + $0x38] sm:$0xff] }
 0x721   : > { %2154 = vmatpush.bf16.msra.mxu1 %v4773_v27 }
 0x722   : > { %v1822_v36 = vmul.f32 0.5, %v1821_v48  ;;  %v1776_v34 = vpop.xlane.xlu2 %1775 }
 0x723   : > { %v1787_v35 = vmul.f32 %v1776_v34, %v5433_v31  ;;  %v4772_v34 = vld [vmem:[%s6856_s13 + $0x30] sm:$0xff] }
 0x724   : > { %v1823_v49 = vsub.f32 1.5, %v1822_v36 }
 0x725   : > { %v4996_v38 = vpop.eup %4995  ;;  %v1795_v47 = vadd.f32 1e-05, %v1787_v35  ;;  %2155 = vmatpush.bf16.msra.mxu1 %v4772_v34 }
 0x726   : > { %v1824_v32 = vmul.f32 %v4994_v30, %v1823_v49  ;;  %v1830_v43 = vmul.f32 %v4996_v38, %v1794_v40  ;;  %vm1836_vm4 = vweird.f32 %v4996_v38 }
 0x727   : > { %4997 = vrsqrt.f32 %v1795_v47  ;;  %vm1837_vm6 = vmor %vm1835_vm5, %vm1836_vm4  ;;  %vm1845_vm8 = vweird.f32 %v1795_v47 }
 0x728   : > { %v1831_v50 = vmul.f32 %v4996_v38, %v1830_v43  ;;  %v1828_v56 = vsel %vm1827_vm3, %v4994_v30, %v1824_v32 }
 0x729   : > { %v1881_v14 = vmul.f32 %v1828_v56, %v5883_v25 }
 0x72a   : > { %v1832_v41 = vmul.f32 0.5, %v1831_v50  ;;  %v1778_v45 = vpop.xlane.xlu1 %1777 }
 0x72b   : > { %v1788_v63 = vmul.f32 %v1778_v45, %v5433_v31  ;;  %v1892_v22 = vmul.f32 %v5942_v10, %v1881_v14  ;;  %v4770_v45 = vld [vmem:[%s6856_s13 + $0x20] sm:$0xff] }
 0x72c   : > { %v1833_v55 = vsub.f32 1.5, %v1832_v41 }
 0x72d   : > { %v4998_v16 = vpop.eup %4997  ;;  %v1796_v17 = vadd.f32 1e-05, %v1788_v63  ;;  %v5969_v46 = vadd.f32 %v5949_v6, %v1892_v22 }
 0x72e   : > { %v1834_v53 = vmul.f32 %v4996_v38, %v1833_v55  ;;  %v1840_v13 = vmul.f32 %v4998_v16, %v1795_v47  ;;  %vm1846_vm7 = vweird.f32 %v4998_v16  ;;  %v4771_v47 = vld [vmem:[%s6856_s13 + $0x28] sm:$0xff] }
 0x72f   : > { %4999 = vrsqrt.f32 %v1796_v17  ;;  %vm1847_vm11 = vmor %vm1845_vm8, %vm1846_vm7  ;;  %vm1855_vm13 = vweird.f32 %v1796_v17  ;;  %2156 = vmatpush.bf16.msra.mxu1 %v4771_v47 }
 0x730   : > { %v1841_v59 = vmul.f32 %v4998_v16, %v1840_v13  ;;  %v1838_v29 = vsel %vm1837_vm6, %v4996_v38, %v1834_v53 }
 0x731   : > { %v1882_v23 = vmul.f32 %v1838_v29, %v5888_v26 }
 0x732   : > { %v1842_v51 = vmul.f32 0.5, %v1841_v59  ;;  %v1780_v21 = vpop.xlane.xlu0 %1779  ;;  %v4767_v59 = vld [vmem:[%s6856_s13 + $0x8] sm:$0xff] }
 0x733   : > { %v1893_v62 = vmul.f32 %v5942_v10, %v1882_v23  ;;  %v1789_v9 = vmul.f32 %v1780_v21, %v5433_v31  ;;  %2157 = vmatpush.bf16.msra.mxu1 %v4770_v45 }
 0x734   : > { %v1843_v57 = vsub.f32 1.5, %v1842_v51 }
 0x735   : > { %v5000_v58 = vpop.eup %4999  ;;  %v5972_v25 = vadd.f32 %v5949_v6, %v1893_v62  ;;  %v1797_v0 = vadd.f32 1e-05, %v1789_v9 }
 0x736   : > { %v1844_v54 = vmul.f32 %v4998_v16, %v1843_v57  ;;  %v1850_v4 = vmul.f32 %v5000_v58, %v1796_v17  ;;  %vm1856_vm12 = vweird.f32 %v5000_v58  ;;  %v4769_v17 = vld [vmem:[%s6856_s13 + $0x18] sm:$0xff] }
 0x737   : > { %v1910_v5 = vpack.c.bf16 %v5972_v25, %v5969_v46  ;;  %vm1857_vm14 = vmor %vm1855_vm13, %vm1856_vm12  ;;  %5001 = vrsqrt.f32 %v1797_v0  ;;  %vm1865_vm0 = vweird.f32 %v1797_v0  ;;  %2158 = vmatpush.bf16.msra.mxu1 %v4769_v17 }
 0x738   : > { %v1851_v26 = vmul.f32 %v5000_v58, %v1850_v4  ;;  %v1848_v11 = vsel %vm1847_vm11, %v4998_v16, %v1844_v54 }
 0x739   : > { %1994 = vmatmul.bf16.gmra.mxu0 %v1910_v5  ;;  %v1883_v42 = vmul.f32 %v1848_v11, %v5893_v33 }
 0x73a   : > { %v1852_v60 = vmul.f32 0.5, %v1851_v26 }
 0x73b   : > { %v1894_v28 = vmul.f32 %v5942_v10, %v1883_v42 }
 0x73c   : > { %v1853_v44 = vsub.f32 1.5, %v1852_v60 }
 0x73d   : > { %v5982_v19 = vadd.f32 %v5949_v6, %v1894_v28  ;;  %v5002_v15 = vpop.eup %5001 }
 0x73e   : > { %v1854_v20 = vmul.f32 %v5000_v58, %v1853_v44  ;;  %vm1866_vm15 = vweird.f32 %v5002_v15 }
 0x73f   : > { %vm1867_vm1 = vmor %vm1865_vm0, %vm1866_vm15 }
 0x740   : > { %v1858_v3 = vsel %vm1857_vm14, %v5000_v58, %v1854_v20 }
 0x741   : > { %v1884_v7 = vmul.f32 %v1858_v3, %v5898_v37  ;;  %v1860_v37 = vmul.f32 %v5002_v15, %v1797_v0 }
 0x743   : > { %v1895_v8 = vmul.f32 %v5942_v10, %v1884_v7  ;;  %v1861_v61 = vmul.f32 %v5002_v15, %v1860_v37 }
 0x745   : > { %v5985_v24 = vadd.f32 %v5949_v6, %v1895_v8  ;;  %v1862_v40 = vmul.f32 0.5, %v1861_v61 }
 0x747   : > { %v1911_v33 = vpack.c.bf16 %v5985_v24, %v5982_v19  ;;  %v1863_v48 = vsub.f32 1.5, %v1862_v40 }
 0x749   : > { %1999 = vmatmul.bf16.gmra.mxu0 %v1911_v33  ;;  %v1864_v35 = vmul.f32 %v5002_v15, %v1863_v48 }
 0x74b   : > { %v1868_v43 = vsel %vm1867_vm1, %v5002_v15, %v1864_v35 }
 0x74c   : > { %v1885_v41 = vmul.f32 %v1868_v43, %v5903_v39  ;;  %v4768_v39 = vld [vmem:[%s6856_s13 + $0x10] sm:$0xff] }
 0x74d   : > { %2159 = vmatpush.bf16.msra.mxu1 %v4768_v39 }
 0x74e   : > { %v1896_v16 = vmul.f32 %v5942_v10, %v1885_v41 }
 0x750   : > { %v6013_v53 = vadd.f32 %v5949_v6, %v1896_v16 }
 0x751   : > { %2160 = vmatpush.bf16.msra.mxu1 %v4767_v59 }
 0x759   : > { %v1782_v2 = vpop.xlane.xlu2 %1781 }
 0x75a   : > { %v1790_v52 = vmul.f32 %v1782_v2, %v5433_v31 }
 0x75c   : > { %v1798_v30 = vadd.f32 1e-05, %v1790_v52 }
 0x75e   : > { %5003 = vrsqrt.f32 %v1798_v30  ;;  %vm1875_vm3 = vweird.f32 %v1798_v30 }
 0x764   : > { %v5004_v36 = vpop.eup %5003 }
 0x765   : > { %v1870_v49 = vmul.f32 %v5004_v36, %v1798_v30  ;;  %vm1876_vm2 = vweird.f32 %v5004_v36 }
 0x766   : > { %vm1877_vm4 = vmor %vm1875_vm3, %vm1876_vm2 }
 0x767   : > { %v1871_v38 = vmul.f32 %v5004_v36, %v1870_v49 }
 0x769   : > { %v1872_v32 = vmul.f32 0.5, %v1871_v38 }
 0x76b   : > { %v1873_v50 = vsub.f32 1.5, %v1872_v32 }
 0x76d   : > { %v1874_v56 = vmul.f32 %v5004_v36, %v1873_v50 }
 0x76f   : > { %v1878_v63 = vsel %vm1877_vm4, %v5004_v36, %v1874_v56 }
 0x770   : > { %v1886_v55 = vmul.f32 %v1878_v63, %v5934_v1 }
 0x772   : > { %v1897_v14 = vmul.f32 %v5942_v10, %v1886_v55  ;;  %v6026_v10 = vld [vmem:[%s6855_s12] ss:$0 sm:$0xff] }
 0x774   : > { %v6016_v13 = vadd.f32 %v5949_v6, %v1897_v14  ;;  %v4766_v6 = vld [vmem:[%s6856_s13] sm:$0xff] }
 0x775   : > { %2161 = vmatpush.bf16.msra.mxu1 %v4766_v6 }
 0x776   : > { %v1912_v1 = vpack.c.bf16 %v6016_v13, %v6013_v53 }
 0x778   : > { %2004 = vmatmul.bf16.gmra.mxu0 %v1912_v1 }
 0x77b   : > { %v1990_v29 = vpop.f32.mrf.mxu0 }
 0x77c   : > { %v1991_v23 = vadd.f32 %v6026_v10, %v1990_v29 }
 0x77e   : > { %v2010_v22 = vmul.f32 %v1991_v23, %v1991_v23 }
 0x780   : > { %v2018_v51 = vmul.f32 %v2010_v22, %v1991_v23 }
 0x782   : > { %v2026_v62 = vmul.f32 0.044715, %v2018_v51 }
 0x783   : > { %v1992_v57 = vpop.f32.mrf.mxu0 }
 0x784   : > { %v2034_v58 = vadd.f32 %v2026_v62, %v1991_v23  ;;  %v1993_v54 = vadd.f32 %v6026_v10, %v1992_v57 }
 0x786   : > { %v2042_v4 = vmul.f32 0.7978846, %v2034_v58  ;;  %v2011_v5 = vmul.f32 %v1993_v54, %v1993_v54 }
 0x788   : > { %v2019_v26 = vmul.f32 %v2011_v5, %v1993_v54  ;;  %5005 = vtanh.f32 %v2042_v4 }
 0x78a   : > { %v2027_v60 = vmul.f32 0.044715, %v2019_v26 }
 0x78c   : > { %v2035_v11 = vadd.f32 %v2027_v60, %v1993_v54 }
 0x78e   : > { %v2043_v44 = vmul.f32 0.7978846, %v2035_v11  ;;  %v5006_v42 = vpop.eup %5005 }
 0x78f   : > { %v2058_v20 = vadd.f32 1.0, %v5006_v42 }
 0x790   : > { %5007 = vtanh.f32 %v2043_v44 }
 0x791   : > { %v2066_v21 = vmul.f32 0.5, %v2058_v20 }
 0x793   : > { %v2074_v8 = vmul.f32 %v2066_v21, %v1991_v23 }
 0x796   : > { %v5008_v3 = vpop.eup %5007 }
 0x797   : > { %v2059_v7 = vadd.f32 1.0, %v5008_v3 }
 0x799   : > { %v2067_v28 = vmul.f32 0.5, %v2059_v7 }
 0x79b   : > { %v2075_v9 = vmul.f32 %v2067_v28, %v1993_v54 }
 0x79d   : > { %v2082_v33 = vpack.c.bf16 %v2075_v9, %v2074_v8 }
 0x79f   : > { %2162 = vmatmul.bf16.vlgmr.msra.gmra.mxu1 %v2082_v33 }
 0x7b6   : > { %v1995_v0 = vpop.f32.mrf.mxu0 }
 0x7b7   : > { %v1996_v15 = vadd.f32 %v6026_v10, %v1995_v0 }
 0x7b9   : > { %v2012_v37 = vmul.f32 %v1996_v15, %v1996_v15 }
 0x7bb   : > { %v2020_v61 = vmul.f32 %v2012_v37, %v1996_v15 }
 0x7bd   : > { %v2028_v2 = vmul.f32 0.044715, %v2020_v61 }
 0x7be   : > { %v1997_v52 = vpop.f32.mrf.mxu0 }
 0x7bf   : > { %v2036_v30 = vadd.f32 %v2028_v2, %v1996_v15  ;;  %v1998_v40 = vadd.f32 %v6026_v10, %v1997_v52 }
 0x7c1   : > { %v2013_v27 = vmul.f32 %v1998_v40, %v1998_v40  ;;  %v2044_v48 = vmul.f32 0.7978846, %v2036_v30 }
 0x7c3   : > { %v2021_v36 = vmul.f32 %v2013_v27, %v1998_v40  ;;  %5009 = vtanh.f32 %v2044_v48 }
 0x7c5   : > { %v2029_v34 = vmul.f32 0.044715, %v2021_v36 }
 0x7c6   : > { %v2000_v35 = vpop.f32.mrf.mxu0 }
 0x7c7   : > { %v2037_v49 = vadd.f32 %v2029_v34, %v1998_v40  ;;  %v2001_v38 = vadd.f32 %v6026_v10, %v2000_v35 }
 0x7c9   : > { %v2014_v47 = vmul.f32 %v2001_v38, %v2001_v38  ;;  %v2045_v32 = vmul.f32 0.7978846, %v2037_v49  ;;  %v5010_v43 = vpop.eup %5009 }
 0x7ca   : > { %v2060_v56 = vadd.f32 1.0, %v5010_v43 }
 0x7cb   : > { %v2022_v50 = vmul.f32 %v2014_v47, %v2001_v38  ;;  %5011 = vtanh.f32 %v2045_v32 }
 0x7cc   : > { %v2068_v1 = vmul.f32 0.5, %v2060_v56 }
 0x7cd   : > { %v2030_v41 = vmul.f32 0.044715, %v2022_v50 }
 0x7ce   : > { %v2002_v45 = vpop.f32.mrf.mxu0  ;;  %v2076_v23 = vmul.f32 %v2068_v1, %v1996_v15 }
 0x7cf   : > { %v2038_v63 = vadd.f32 %v2030_v41, %v2001_v38  ;;  %v2003_v55 = vadd.f32 %v6026_v10, %v2002_v45 }
 0x7d1   : > { %v5012_v16 = vpop.eup %5011  ;;  %v2015_v17 = vmul.f32 %v2003_v55, %v2003_v55  ;;  %v2046_v14 = vmul.f32 0.7978846, %v2038_v63 }
 0x7d2   : > { %v2061_v39 = vadd.f32 1.0, %v5012_v16 }
 0x7d3   : > { %v2023_v59 = vmul.f32 %v2015_v17, %v2003_v55  ;;  %5013 = vtanh.f32 %v2046_v14 }
 0x7d4   : > { %v2069_v6 = vmul.f32 0.5, %v2061_v39 }
 0x7d5   : > { %v2031_v29 = vmul.f32 0.044715, %v2023_v59 }
 0x7d6   : > { %v2077_v22 = vmul.f32 %v2069_v6, %v1998_v40 }
 0x7d7   : > { %v2039_v51 = vadd.f32 %v2031_v29, %v2003_v55 }
 0x7d8   : > { %v2083_v62 = vpack.c.bf16 %v2077_v22, %v2076_v23 }
 0x7d9   : > { %v2047_v57 = vmul.f32 0.7978846, %v2039_v51  ;;  %v5014_v58 = vpop.eup %5013 }
 0x7da   : > { %2167 = vmatmul.bf16.gmra.mxu1 %v2083_v62  ;;  %v2062_v54 = vadd.f32 1.0, %v5014_v58 }
 0x7db   : > { %5015 = vtanh.f32 %v2047_v57 }
 0x7dc   : > { %v2070_v26 = vmul.f32 0.5, %v2062_v54 }
 0x7de   : > { %v2078_v11 = vmul.f32 %v2070_v26, %v2001_v38 }
 0x7e1   : > { %v5016_v4 = vpop.eup %5015 }
 0x7e2   : > { %v2063_v5 = vadd.f32 1.0, %v5016_v4 }
 0x7e4   : > { %v2071_v60 = vmul.f32 0.5, %v2063_v5 }
 0x7e6   : > { %v2079_v44 = vmul.f32 %v2071_v60, %v2003_v55 }
 0x7e8   : > { %v2084_v42 = vpack.c.bf16 %v2079_v44, %v2078_v11 }
 0x7ea   : > { %2172 = vmatmul.bf16.gmra.mxu1 %v2084_v42 }
 0x7f5   : > { %v2005_v20 = vpop.f32.mrf.mxu0 }
 0x7f6   : > { %v2006_v3 = vadd.f32 %v6026_v10, %v2005_v20 }
 0x7f8   : > { %v2016_v21 = vmul.f32 %v2006_v3, %v2006_v3 }
 0x7fa   : > { %v2024_v7 = vmul.f32 %v2016_v21, %v2006_v3 }
 0x7fc   : > { %v2032_v28 = vmul.f32 0.044715, %v2024_v7 }
 0x7fd   : > { %v2007_v8 = vpop.f32.mrf.mxu0 }
 0x7fe   : > { %v2040_v9 = vadd.f32 %v2032_v28, %v2006_v3  ;;  %v2008_v33 = vadd.f32 %v6026_v10, %v2007_v8  ;;  %v4896_v10 = vld [vmem:[%s6857_s14] ss:$0 sm:$0xff] }
 0x800   : > { %v2017_v0 = vmul.f32 %v2008_v33, %v2008_v33  ;;  %v2048_v15 = vmul.f32 0.7978846, %v2040_v9 }
 0x802   : > { %v2025_v37 = vmul.f32 %v2017_v0, %v2008_v33  ;;  %5017 = vtanh.f32 %v2048_v15  ;;  %v4781_v15 = vld [vmem:[%s6897_s3 + $0x78] sm:$0xff] }
 0x803   : > { %2446 = vmatpush.bf16.msra.mxu2 %v4781_v15 }
 0x804   : > { %v2033_v61 = vmul.f32 0.044715, %v2025_v37  ;;  %v4789_v37 = vld [vmem:[%s6898_s5 + $0x78] sm:$0xff] }
 0x805   : > { %2540 = vmatpush.bf16.msra.mxu3 %v4789_v37 }
 0x806   : > { %v2041_v2 = vadd.f32 %v2033_v61, %v2008_v33  ;;  %v4797_v61 = vld [vmem:[%s6899_s6 + $0x78] sm:$0xff] }
 0x807   : > { %2634 = vmatpush.bf16.msrb.mxu0 %v4797_v61  ;;  %v6200_v61 = vld [vmem:[%s6902_s30 + $0x1] ss:$0 sm:$0xff] }
 0x808   : > { %v2049_v52 = vmul.f32 0.7978846, %v2041_v2  ;;  %v5018_v30 = vpop.eup %5017  ;;  %v4780_v2 = vld [vmem:[%s6897_s3 + $0x70] sm:$0xff] }
 0x809   : > { %v2064_v40 = vadd.f32 1.0, %v5018_v30  ;;  %v4796_v30 = vld [vmem:[%s6899_s6 + $0x70] sm:$0xff]  ;;  %2447 = vmatpush.bf16.msra.mxu2 %v4780_v2 }
 0x80a   : > { %5019 = vtanh.f32 %v2049_v52  ;;  %v4788_v52 = vld [vmem:[%s6898_s5 + $0x70] sm:$0xff] }
 0x80b   : > { %v2072_v36 = vmul.f32 0.5, %v2064_v40  ;;  %2541 = vmatpush.bf16.msra.mxu3 %v4788_v52  ;;  %2635 = vmatpush.bf16.msrb.mxu0 %v4796_v30  ;;  %v4779_v40 = vld [vmem:[%s6897_s3 + $0x68] sm:$0xff] }
 0x80d   : > { %v2080_v35 = vmul.f32 %v2072_v36, %v2006_v3  ;;  %2448 = vmatpush.bf16.msra.mxu2 %v4779_v40  ;;  %v4778_v36 = vld [vmem:[%s6897_s3 + $0x60] sm:$0xff] }
 0x810   : > { %v5020_v27 = vpop.eup %5019 }
 0x811   : > { %v2065_v48 = vadd.f32 1.0, %v5020_v27  ;;  %v4787_v27 = vld [vmem:[%s6898_s5 + $0x68] sm:$0xff]  ;;  %2449 = vmatpush.bf16.msra.mxu2 %v4778_v36 }
 0x812   : > { %2542 = vmatpush.bf16.msra.mxu3 %v4787_v27  ;;  %v6207_v27 = vld [vmem:[%s6903_s21 + $0x1] ss:$0 sm:$0xff] }
 0x813   : > { %v2073_v34 = vmul.f32 0.5, %v2065_v48  ;;  %v4795_v48 = vld [vmem:[%s6899_s6 + $0x68] sm:$0xff] }
 0x814   : > { %2636 = vmatpush.bf16.msrb.mxu0 %v4795_v48 }
 0x815   : > { %v2081_v49 = vmul.f32 %v2073_v34, %v2008_v33  ;;  %v4786_v34 = vld [vmem:[%s6898_s5 + $0x60] sm:$0xff] }
 0x816   : > { %2543 = vmatpush.bf16.msra.mxu3 %v4786_v34 }
 0x817   : > { %v2085_v38 = vpack.c.bf16 %v2081_v49, %v2080_v35  ;;  %v4794_v35 = vld [vmem:[%s6899_s6 + $0x60] sm:$0xff]  ;;  %v4777_v49 = vld [vmem:[%s6897_s3 + $0x58] sm:$0xff] }
 0x818   : > { %2637 = vmatpush.bf16.msrb.mxu0 %v4794_v35  ;;  %2450 = vmatpush.bf16.msra.mxu2 %v4777_v49 }
 0x819   : > { %2177 = vmatmul.bf16.gmra.mxu1 %v2085_v38  ;;  %v4785_v38 = vld [vmem:[%s6898_s5 + $0x58] sm:$0xff] }
 0x81a   : > { %2544 = vmatpush.bf16.msra.mxu3 %v4785_v38 }
 0x81c   : > { %v2163_v47 = vpop.f32.mrf.mxu1 }
 0x81d   : > { %v2164_v32 = vadd.f32 %v4896_v10, %v2163_v47  ;;  %v4776_v47 = vld [vmem:[%s6897_s3 + $0x50] sm:$0xff] }
 0x81e   : > { %2451 = vmatpush.bf16.msra.mxu2 %v4776_v47 }
 0x81f   : > { %v6043_v43 = vadd.f32 %v2164_v32, %v5953_v12  ;;  %v4784_v32 = vld [vmem:[%s6898_s5 + $0x50] sm:$0xff] }
 0x820   : > { %2545 = vmatpush.bf16.msra.mxu3 %v4784_v32 }
 0x821   : > { %2195 = vadd.xlane.f32.xlu1 %v6043_v43 }
 0x824   : > { %v2165_v50 = vpop.f32.mrf.mxu1 }
 0x825   : > { %v2166_v41 = vadd.f32 %v4896_v10, %v2165_v50  ;;  %v4792_v50 = vld [vmem:[%s6899_s6 + $0x50] sm:$0xff] }
 0x827   : > { %v6047_v45 = vadd.f32 %v2166_v41, %v5956_v18  ;;  %v4775_v41 = vld [vmem:[%s6897_s3 + $0x48] sm:$0xff] }
 0x828   : > { %2452 = vmatpush.bf16.msra.mxu2 %v4775_v41 }
 0x829   : > { %2197 = vadd.xlane.f32.xlu0 %v6047_v45 }
 0x857   : > { %v2168_v56 = vpop.f32.mrf.mxu1 }
 0x858   : > { %v2169_v63 = vadd.f32 %v4896_v10, %v2168_v56  ;;  %v4783_v56 = vld [vmem:[%s6898_s5 + $0x48] sm:$0xff] }
 0x859   : > { %2546 = vmatpush.bf16.msra.mxu3 %v4783_v56 }
 0x85a   : > { %v6051_v55 = vadd.f32 %v2169_v63, %v5969_v46  ;;  %v4791_v63 = vld [vmem:[%s6899_s6 + $0x48] sm:$0xff] }
 0x85c   : > { %2199 = vadd.xlane.f32.xlu2 %v6051_v55 }
 0x85f   : > { %v2170_v16 = vpop.f32.mrf.mxu1 }
 0x860   : > { %v2171_v17 = vadd.f32 %v4896_v10, %v2170_v16 }
 0x862   : > { %v6055_v12 = vadd.f32 %v2171_v17, %v5972_v25 }
 0x864   : > { %2201 = vadd.xlane.f32.xlu1 %v6055_v12 }
 0x867   : > { %v2173_v14 = vpop.f32.mrf.mxu1 }
 0x868   : > { %v2174_v39 = vadd.f32 %v4896_v10, %v2173_v14 }
 0x86a   : > { %v6059_v18 = vadd.f32 %v2174_v39, %v5982_v19 }
 0x86c   : > { %2203 = vadd.xlane.f32.xlu0 %v6059_v18 }
 0x86f   : > { %v2175_v1 = vpop.f32.mrf.mxu1 }
 0x870   : > { %v2176_v59 = vadd.f32 %v4896_v10, %v2175_v1  ;;  %v4774_v1 = vld [vmem:[%s6897_s3 + $0x40] sm:$0xff]  ;;  %s4099_s3 = scalar_lea.sflag [#allocation4], %s620_s0 }
 0x871   : > { %2453 = vmatpush.bf16.msra.mxu2 %v4774_v1 }
 0x872   : > { %v6063_v46 = vadd.f32 %v2176_v59, %v5985_v24  ;;  %v4782_v59 = vld [vmem:[%s6898_s5 + $0x40] sm:$0xff]  ;;  %s5181_s5 = sshra.s32 %s4112_s29, 4  ;;  %s5182_s5 = int_to_ptr.hbm [resolvable:$true] %s5181_s5 }
 0x873   : > { %2547 = vmatpush.bf16.msra.mxu3 %v4782_v59  ;;  %p5188_p0 = scmp.lt.s32.totalorder %s5182_s5, %s6863_s20 }
 0x874   : > { %2205 = vadd.xlane.f32.xlu2 %v6063_v46 }
 0x894   : > { %v2196_v6 = vpop.xlane.xlu1 %2195 }
 0x895   : > { %v2211_v25 = vmul.f32 %v2196_v6, %v5433_v31 }
 0x896   : > { %v2178_v29 = vpop.f32.mrf.mxu1 }
 0x897   : > { %v6068_v23 = vsub.f32 %v6043_v43, %v2211_v25  ;;  %v2179_v22 = vadd.f32 %v4896_v10, %v2178_v29  ;;  %v4790_v29 = vld [vmem:[%s6899_s6 + $0x40] sm:$0xff] }
 0x899   : > { %v6071_v19 = vadd.f32 %v2179_v22, %v6013_v53  ;;  %v2227_v51 = vmul.f32 %v6068_v23, %v6068_v23 }
 0x89b   : > { %2235 = vadd.xlane.f32.xlu1 %v2227_v51  ;;  %2207 = vadd.xlane.f32.xlu2 %v6071_v19 }
 0x89c   : > { %v2198_v24 = vpop.xlane.xlu0 %2197 }
 0x89d   : > { %v2212_v62 = vmul.f32 %v2198_v24, %v5433_v31 }
 0x89e   : > { %v2180_v57 = vpop.f32.mrf.mxu1 }
 0x89f   : > { %v6078_v58 = vsub.f32 %v6047_v45, %v2212_v62  ;;  %v2181_v54 = vadd.f32 %v4896_v10, %v2180_v57  ;;  %v4793_v10 = vld [vmem:[%s6899_s6 + $0x58] sm:$0xff]  ;;  %s5183_s6 = scalar_lea.hbm %s5182_s5, 1 }
 0x8a0   : > { %2638 = vmatpush.bf16.msrb.mxu0 %v4793_v10  ;;  %p5184_p11 = scmp.ne.s32.totalorder %s5182_s5, %s5183_s6  ;;  %p5189_p1 = scmp.lt.s32.totalorder %s5187_s26, %s5183_s6 }
 0x8a1   : > { %v6081_v4 = vadd.f32 %v2181_v54, %v6016_v13  ;;  %v2228_v53 = vmul.f32 %v6078_v58, %v6078_v58 }
 0x8a2   : > { %p5185_p12 = pnand %p5184_p11, %p5376_p5  ;;  %p5190_p2 = por %p5189_p1, %p5188_p0 }
 0x8a3   : > { %2209 = vadd.xlane.f32.xlu1 %v6081_v4  ;;  %2237 = vadd.xlane.f32.xlu0 %v2228_v53 }
 0x8a4   : > { %2639 = vmatpush.bf16.msrb.mxu0 %v4792_v50  ;;  %p5186_p13 = pneg %p5185_p12 }
 0x8a6   : > { %p5191_p3 = pnand %p5190_p2, %p5186_p13 }
 0x8a8   : > { %2640 = vmatpush.bf16.msrb.mxu0 %v4791_v63 }
 0x8ac   : > { %2641 = vmatpush.bf16.msrb.mxu0 %v4790_v29 }
 0x8cf   : > { %v2200_v5 = vpop.xlane.xlu2 %2199 }
 0x8d0   : > { %v2213_v26 = vmul.f32 %v2200_v5, %v5433_v31 }
 0x8d2   : > { %v6088_v60 = vsub.f32 %v6051_v55, %v2213_v26 }
 0x8d4   : > { %v2229_v11 = vmul.f32 %v6088_v60, %v6088_v60 }
 0x8d6   : > { %2239 = vadd.xlane.f32.xlu0 %v2229_v11 }
 0x8d7   : > { %v2202_v44 = vpop.xlane.xlu1 %2201 }
 0x8d8   : > { %v2214_v13 = vmul.f32 %v2202_v44, %v5433_v31 }
 0x8da   : > { %v6094_v42 = vsub.f32 %v6055_v12, %v2214_v13 }
 0x8dc   : > { %v2230_v20 = vmul.f32 %v6094_v42, %v6094_v42 }
 0x8de   : > { %2241 = vadd.xlane.f32.xlu2 %v2230_v20 }
 0x8df   : > { %v2204_v3 = vpop.xlane.xlu0 %2203 }
 0x8e0   : > { %v2215_v21 = vmul.f32 %v2204_v3, %v5433_v31 }
 0x8e2   : > { %v6100_v7 = vsub.f32 %v6059_v18, %v2215_v21 }
 0x8e4   : > { %v2231_v28 = vmul.f32 %v6100_v7, %v6100_v7 }
 0x8e6   : > { %2243 = vadd.xlane.f32.xlu1 %v2231_v28 }
 0x8e7   : > { %v2206_v8 = vpop.xlane.xlu2 %2205 }
 0x8e8   : > { %v2216_v9 = vmul.f32 %v2206_v8, %v5433_v31 }
 0x8ea   : > { %v6106_v33 = vsub.f32 %v6063_v46, %v2216_v9 }
 0x8ec   : > { %v2232_v0 = vmul.f32 %v6106_v33, %v6106_v33 }
 0x8ee   : > { %2245 = vadd.xlane.f32.xlu0 %v2232_v0 }
 0x90e   : > { %v2236_v16 = vpop.xlane.xlu1 %2235  ;;  %v2208_v17 = vpop.xlane.xlu2 %2207 }
 0x90f   : > { %v2251_v14 = vmul.f32 %v2236_v16, %v5433_v31  ;;  %v2217_v39 = vmul.f32 %v2208_v17, %v5433_v31 }
 0x911   : > { %v2259_v6 = vadd.f32 1e-05, %v2251_v14  ;;  %v6182_v25 = vsub.f32 %v6071_v19, %v2217_v39 }
 0x913   : > { %5021 = vrsqrt.f32 %v2259_v6  ;;  %v2233_v22 = vmul.f32 %v6182_v25, %v6182_v25  ;;  %vm2273_vm6 = vweird.f32 %v2259_v6 }
 0x915   : > { %2247 = vadd.xlane.f32.xlu2 %v2233_v22 }
 0x916   : > { %v2210_v51 = vpop.xlane.xlu1 %2209  ;;  %v2238_v24 = vpop.xlane.xlu0 %2237 }
 0x917   : > { %v2218_v62 = vmul.f32 %v2210_v51, %v5433_v31  ;;  %v2252_v57 = vmul.f32 %v2238_v24, %v5433_v31 }
 0x919   : > { %v5022_v54 = vpop.eup %5021  ;;  %v6192_v53 = vsub.f32 %v6081_v4, %v2218_v62  ;;  %v2260_v5 = vadd.f32 1e-05, %v2252_v57 }
 0x91a   : > { %v2268_v26 = vmul.f32 %v5022_v54, %v2259_v6  ;;  %vm2274_vm5 = vweird.f32 %v5022_v54 }
 0x91b   : > { %5023 = vrsqrt.f32 %v2260_v5  ;;  %v2234_v11 = vmul.f32 %v6192_v53, %v6192_v53  ;;  %vm2275_vm7 = vmor %vm2273_vm6, %vm2274_vm5  ;;  %vm2283_vm11 = vweird.f32 %v2260_v5 }
 0x91c   : > { %v2269_v44 = vmul.f32 %v5022_v54, %v2268_v26 }
 0x91d   : > { %2249 = vadd.xlane.f32.xlu1 %v2234_v11 }
 0x91e   : > { %v2270_v13 = vmul.f32 0.5, %v2269_v44 }
 0x920   : > { %v2271_v20 = vsub.f32 1.5, %v2270_v13 }
 0x921   : > { %v5024_v3 = vpop.eup %5023 }
 0x922   : > { %v2272_v21 = vmul.f32 %v5022_v54, %v2271_v20  ;;  %v2278_v28 = vmul.f32 %v5024_v3, %v2260_v5  ;;  %vm2284_vm8 = vweird.f32 %v5024_v3 }
 0x923   : > { %vm2285_vm12 = vmor %vm2283_vm11, %vm2284_vm8 }
 0x924   : > { %v2279_v8 = vmul.f32 %v5024_v3, %v2278_v28  ;;  %v2276_v9 = vsel %vm2275_vm7, %v5022_v54, %v2272_v21 }
 0x925   : > { %v2347_v37 = vmul.f32 %v2276_v9, %v6068_v23 }
 0x926   : > { %v2280_v0 = vmul.f32 0.5, %v2279_v8 }
 0x927   : > { %v2358_v40 = vmul.f32 %v6200_v61, %v2347_v37 }
 0x928   : > { %v2281_v15 = vsub.f32 1.5, %v2280_v0 }
 0x929   : > { %v2369_v48 = vadd.f32 %v6207_v27, %v2358_v40 }
 0x92a   : > { %v2282_v2 = vmul.f32 %v5024_v3, %v2281_v15 }
 0x92c   : > { %v2286_v52 = vsel %vm2285_vm12, %v5024_v3, %v2282_v2 }
 0x92d   : > { %v2348_v30 = vmul.f32 %v2286_v52, %v6078_v58 }
 0x92f   : > { %v2359_v23 = vmul.f32 %v6200_v61, %v2348_v30 }
 0x931   : > { %v2370_v36 = vadd.f32 %v6207_v27, %v2359_v23 }
 0x933   : > { %v2377_v34 = vpack.c.bf16 %v2370_v36, %v2369_v48 }
 0x935   : > { %2454 = vmatmul.bf16.vlgmr.msra.gmra.mxu2 %v2377_v34  ;;  %2548 = vmatmul.bf16.vlgmr.msra.gmra.mxu3 %v2377_v34 }
 0x936   : > { %2642 = vmatmul.bf16.vlgmr.msrb.gmra.mxu0 %v2377_v34 }
 0x949   : > { %v2240_v35 = vpop.xlane.xlu0 %2239 }
 0x94a   : > { %v2253_v58 = vmul.f32 %v2240_v35, %v5433_v31 }
 0x94c   : > { %v2261_v49 = vadd.f32 1e-05, %v2253_v58 }
 0x94e   : > { %5025 = vrsqrt.f32 %v2261_v49  ;;  %vm2293_vm14 = vweird.f32 %v2261_v49 }
 0x951   : > { %v2242_v38 = vpop.xlane.xlu2 %2241 }
 0x952   : > { %v2254_v10 = vmul.f32 %v2242_v38, %v5433_v31 }
 0x954   : > { %v5026_v47 = vpop.eup %5025  ;;  %v2262_v32 = vadd.f32 1e-05, %v2254_v10 }
 0x955   : > { %v2288_v50 = vmul.f32 %v5026_v47, %v2261_v49  ;;  %vm2294_vm13 = vweird.f32 %v5026_v47 }
 0x956   : > { %5027 = vrsqrt.f32 %v2262_v32  ;;  %vm2295_vm15 = vmor %vm2293_vm14, %vm2294_vm13  ;;  %vm2303_vm1 = vweird.f32 %v2262_v32 }
 0x957   : > { %v2289_v41 = vmul.f32 %v5026_v47, %v2288_v50 }
 0x959   : > { %v2290_v56 = vmul.f32 0.5, %v2289_v41  ;;  %v2244_v63 = vpop.xlane.xlu1 %2243 }
 0x95a   : > { %v2255_v16 = vmul.f32 %v2244_v63, %v5433_v31 }
 0x95b   : > { %v2291_v17 = vsub.f32 1.5, %v2290_v56 }
 0x95c   : > { %v5028_v14 = vpop.eup %5027  ;;  %v2263_v39 = vadd.f32 1e-05, %v2255_v16 }
 0x95d   : > { %v2292_v1 = vmul.f32 %v5026_v47, %v2291_v17  ;;  %v2298_v59 = vmul.f32 %v5028_v14, %v2262_v32  ;;  %vm2304_vm0 = vweird.f32 %v5028_v14 }
 0x95e   : > { %5029 = vrsqrt.f32 %v2263_v39  ;;  %vm2305_vm2 = vmor %vm2303_vm1, %vm2304_vm0  ;;  %vm2313_vm4 = vweird.f32 %v2263_v39 }
 0x95f   : > { %v2299_v6 = vmul.f32 %v5028_v14, %v2298_v59  ;;  %v2296_v29 = vsel %vm2295_vm15, %v5026_v47, %v2292_v1 }
 0x960   : > { %v2349_v54 = vmul.f32 %v2296_v29, %v6088_v60 }
 0x961   : > { %v2300_v22 = vmul.f32 0.5, %v2299_v6  ;;  %v2246_v51 = vpop.xlane.xlu0 %2245 }
 0x962   : > { %v2256_v24 = vmul.f32 %v2246_v51, %v5433_v31  ;;  %v2360_v3 = vmul.f32 %v6200_v61, %v2349_v54 }
 0x963   : > { %v2301_v62 = vsub.f32 1.5, %v2300_v22 }
 0x964   : > { %v5030_v57 = vpop.eup %5029  ;;  %v2264_v5 = vadd.f32 1e-05, %v2256_v24  ;;  %v2371_v0 = vadd.f32 %v6207_v27, %v2360_v3 }
 0x965   : > { %v2302_v26 = vmul.f32 %v5028_v14, %v2301_v62  ;;  %v2308_v11 = vmul.f32 %v5030_v57, %v2263_v39  ;;  %vm2314_vm3 = vweird.f32 %v5030_v57 }
 0x966   : > { %5031 = vrsqrt.f32 %v2264_v5  ;;  %vm2315_vm5 = vmor %vm2313_vm4, %vm2314_vm3  ;;  %vm2323_vm7 = vweird.f32 %v2264_v5 }
 0x967   : > { %v2306_v44 = vsel %vm2305_vm2, %v5028_v14, %v2302_v26  ;;  %v2309_v13 = vmul.f32 %v5030_v57, %v2308_v11 }
 0x968   : > { %v2350_v20 = vmul.f32 %v2306_v44, %v6094_v42 }
 0x969   : > { %v2310_v21 = vmul.f32 0.5, %v2309_v13 }
 0x96a   : > { %v2361_v28 = vmul.f32 %v6200_v61, %v2350_v20 }
 0x96b   : > { %v2311_v8 = vsub.f32 1.5, %v2310_v21 }
 0x96c   : > { %v5032_v9 = vpop.eup %5031  ;;  %v2372_v60 = vadd.f32 %v6207_v27, %v2361_v28 }
 0x96d   : > { %v2312_v15 = vmul.f32 %v5030_v57, %v2311_v8  ;;  %v2318_v37 = vmul.f32 %v5032_v9, %v2264_v5  ;;  %vm2324_vm6 = vweird.f32 %v5032_v9 }
 0x96e   : > { %v2378_v2 = vpack.c.bf16 %v2372_v60, %v2371_v0  ;;  %vm2325_vm8 = vmor %vm2323_vm7, %vm2324_vm6 }
 0x96f   : > { %v2319_v52 = vmul.f32 %v5032_v9, %v2318_v37  ;;  %v2316_v42 = vsel %vm2315_vm5, %v5030_v57, %v2312_v15 }
 0x970   : > { %2459 = vmatmul.bf16.gmra.mxu2 %v2378_v2  ;;  %2553 = vmatmul.bf16.gmra.mxu3 %v2378_v2  ;;  %v2351_v23 = vmul.f32 %v2316_v42, %v6100_v7 }
 0x971   : > { %v2320_v30 = vmul.f32 0.5, %v2319_v52  ;;  %2647 = vmatmul.bf16.gmra.mxu0 %v2378_v2 }
 0x972   : > { %v2362_v35 = vmul.f32 %v6200_v61, %v2351_v23 }
 0x973   : > { %v2321_v40 = vsub.f32 1.5, %v2320_v30 }
 0x974   : > { %v2373_v49 = vadd.f32 %v6207_v27, %v2362_v35 }
 0x975   : > { %v2322_v48 = vmul.f32 %v5032_v9, %v2321_v40 }
 0x977   : > { %v2326_v36 = vsel %vm2325_vm8, %v5032_v9, %v2322_v48 }
 0x978   : > { %v2352_v34 = vmul.f32 %v2326_v36, %v6106_v33 }
 0x97a   : > { %v2363_v58 = vmul.f32 %v6200_v61, %v2352_v34 }
 0x97c   : > { %v2374_v38 = vadd.f32 %v6207_v27, %v2363_v58 }
 0x97e   : > { %v2379_v10 = vpack.c.bf16 %v2374_v38, %v2373_v49 }
 0x980   : > { %2464 = vmatmul.bf16.gmra.mxu2 %v2379_v10  ;;  %2558 = vmatmul.bf16.gmra.mxu3 %v2379_v10 }
 0x981   : > { %2652 = vmatmul.bf16.gmra.mxu0 %v2379_v10 }
 0x988   : > { %v2248_v47 = vpop.xlane.xlu2 %2247 }
 0x989   : > { %v2257_v7 = vmul.f32 %v2248_v47, %v5433_v31 }
 0x98b   : > { %v2265_v32 = vadd.f32 1e-05, %v2257_v7 }
 0x98d   : > { %5033 = vrsqrt.f32 %v2265_v32  ;;  %vm2333_vm12 = vweird.f32 %v2265_v32 }
 0x990   : > { %v2250_v50 = vpop.xlane.xlu1 %2249 }
 0x991   : > { %v2258_v33 = vmul.f32 %v2250_v50, %v5433_v31 }
 0x993   : > { %v5034_v41 = vpop.eup %5033  ;;  %v2266_v56 = vadd.f32 1e-05, %v2258_v33 }
 0x994   : > { %v2328_v63 = vmul.f32 %v5034_v41, %v2265_v32  ;;  %vm2334_vm11 = vweird.f32 %v5034_v41 }
 0x995   : > { %5035 = vrsqrt.f32 %v2266_v56  ;;  %vm2335_vm13 = vmor %vm2333_vm12, %vm2334_vm11  ;;  %vm2343_vm15 = vweird.f32 %v2266_v56 }
 0x996   : > { %v2329_v16 = vmul.f32 %v5034_v41, %v2328_v63 }
 0x998   : > { %v2330_v17 = vmul.f32 0.5, %v2329_v16 }
 0x99a   : > { %v2331_v14 = vsub.f32 1.5, %v2330_v17 }
 0x99b   : > { %v5036_v39 = vpop.eup %5035 }
 0x99c   : > { %v2332_v1 = vmul.f32 %v5034_v41, %v2331_v14  ;;  %v2338_v59 = vmul.f32 %v5036_v39, %v2266_v56  ;;  %vm2344_vm14 = vweird.f32 %v5036_v39 }
 0x99d   : > { %vm2345_vm0 = vmor %vm2343_vm15, %vm2344_vm14 }
 0x99e   : > { %v2339_v6 = vmul.f32 %v5036_v39, %v2338_v59  ;;  %v2336_v29 = vsel %vm2335_vm13, %v5034_v41, %v2332_v1 }
 0x99f   : > { %v2353_v24 = vmul.f32 %v2336_v29, %v6182_v25 }
 0x9a0   : > { %v2340_v22 = vmul.f32 0.5, %v2339_v6 }
 0x9a1   : > { %v2364_v5 = vmul.f32 %v6200_v61, %v2353_v24 }
 0x9a2   : > { %v2341_v51 = vsub.f32 1.5, %v2340_v22 }
 0x9a3   : > { %v2375_v11 = vadd.f32 %v6207_v27, %v2364_v5 }
 0x9a4   : > { %v2342_v62 = vmul.f32 %v5036_v39, %v2341_v51 }
 0x9a6   : > { %v2346_v57 = vsel %vm2345_vm0, %v5036_v39, %v2342_v62 }
 0x9a7   : > { %v2354_v54 = vmul.f32 %v2346_v57, %v6192_v53 }
 0x9a9   : > { %v2365_v26 = vmul.f32 %v6200_v61, %v2354_v54 }
 0x9ab   : > { %v2376_v44 = vadd.f32 %v6207_v27, %v2365_v26 }
 0x9ad   : > { %v2380_v13 = vpack.c.bf16 %v2376_v44, %v2375_v11 }
 0x9af   : > { %2469 = vmatmul.bf16.gmra.mxu2 %v2380_v13  ;;  %2563 = vmatmul.bf16.gmra.mxu3 %v2380_v13 }
 0x9b0   : > { %2657 = vmatmul.bf16.gmra.mxu0 %v2380_v13 }
 0x9b3   : > { %v2643_v53 = vpop.f32.mrf.mxu0 }
 0x9b8   : > { %v2549_v20 = vpop.f32.mrf.mxu3  ;;  %v2455_v21 = vpop.f32.mrf.mxu2 }
 0x9bb   : > { %v2645_v37 = vpop.f32.mrf.mxu0 }
 0x9bc   : > { %v6249_v16 = vpack.c.bf16 %v2645_v37, %v2643_v53 }
 0x9c0   : > { %v2551_v25 = vpop.f32.mrf.mxu3  ;;  %v2457_v28 = vpop.f32.mrf.mxu2 }
 0x9c1   : > { %v2667_v3 = vpack.c.bf16 %v2551_v25, %v2549_v20  ;;  %v2663_v36 = vpack.c.bf16 %v2457_v28, %v2455_v21 }
 0x9c3   : > { %v2688_v39 = vsel %vm1146_vm9, %v2667_v3, 0 }
 0x9ee   : > { %v2648_v52 = vpop.f32.mrf.mxu0 }
 0x9f3   : > { %v2460_v8 = vpop.f32.mrf.mxu2  ;;  %v2554_v9 = vpop.f32.mrf.mxu3 }
 0x9f6   : > { %v2650_v48 = vpop.f32.mrf.mxu0 }
 0x9f7   : > { %v6246_v63 = vpack.c.bf16 %v2650_v48, %v2648_v52 }
 0x9fb   : > { %v2462_v0 = vpop.f32.mrf.mxu2  ;;  %v2556_v60 = vpop.f32.mrf.mxu3 }
 0x9fc   : > { %v2664_v15 = vpack.c.bf16 %v2462_v0, %v2460_v8  ;;  %v2668_v61 = vpack.c.bf16 %v2556_v60, %v2554_v9 }
 0x9fe   : > { %2887 = vrot.lane.b32.xlu1 %v2668_v61, %s6904_s28  ;;  %v2653_v34 = vpop.f32.mrf.mxu0  ;;  %v2691_v14 = vsel %vm1146_vm9, %v2668_v61, 0 }
 0xa03   : > { %v2465_v27 = vpop.f32.mrf.mxu2  ;;  %v2559_v2 = vpop.f32.mrf.mxu3 }
 0xa06   : > { %v2655_v35 = vpop.f32.mrf.mxu0 }
 0xa07   : > { %v6240_v7 = vpack.c.bf16 %v2655_v35, %v2653_v34 }
 0xa0b   : > { %v2467_v42 = vpop.f32.mrf.mxu2  ;;  %v2561_v30 = vpop.f32.mrf.mxu3 }
 0xa0c   : > { %v2665_v40 = vpack.c.bf16 %v2467_v42, %v2465_v27  ;;  %v2669_v23 = vpack.c.bf16 %v2561_v30, %v2559_v2 }
 0xa0e   : > { %2889 = vrot.lane.b32.xlu2 %v2669_v23, %s6904_s28  ;;  %2877 = vrot.lane.b32.xlu1 %v2665_v40, %s6904_s28  ;;  %v2694_v17 = vsel %vm1146_vm9, %v2669_v23, 0 }
 0xa16   : > { %2873 = vrot.lane.b32.xlu2 %v2663_v36, %s6904_s28 }
 0xa2d   : > { %v2658_v58 = vpop.f32.mrf.mxu0 }
 0xa32   : > { %v2470_v49 = vpop.f32.mrf.mxu2  ;;  %v2564_v38 = vpop.f32.mrf.mxu3 }
 0xa35   : > { %v2660_v10 = vpop.f32.mrf.mxu0 }
 0xa36   : > { %v2674_v47 = vpack.c.bf16 %v2660_v10, %v2658_v58 }
 0xa38   : > { %2836 = vmatpush.bf16.msrb.mxu2 %v2674_v47 }
 0xa3a   : > { %v2472_v32 = vpop.f32.mrf.mxu2  ;;  %v2566_v50 = vpop.f32.mrf.mxu3 }
 0xa3b   : > { %v2666_v33 = vpack.c.bf16 %v2472_v32, %v2470_v49  ;;  %v2670_v41 = vpack.c.bf16 %v2566_v50, %v2564_v38 }
 0xa3c   : > { %2837 = vmatpush.bf16.msrb.mxu2 %v6240_v7 }
 0xa3d   : > { %v2697_v56 = vsel %vm1146_vm9, %v2670_v41, 0  ;;  %2891 = vrot.lane.b32.xlu0 %v2670_v41, %s6904_s28  ;;  %2879 = vrot.lane.b32.xlu2 %v2666_v33, %s6904_s28 }
 0xa3e   : > { %2703 = vmatpush.bf16.xpose.msrb.mxu1 %v2697_v56 }
 0xa40   : > { %2838 = vmatpush.bf16.msrb.mxu2 %v6246_v63 }
 0xa44   : > { %2839 = vmatpush.bf16.msrb.mxu2 %v6249_v16 }
 0xa45   : > { %2885 = vrot.lane.b32.xlu0 %v2667_v3, %s6904_s28 }
 0xa46   : > { %2704 = vmatpush.bf16.xpose.msrb.mxu1 %v2694_v17 }
 0xa4d   : > { %2875 = vrot.lane.b32.xlu0 %v2664_v15, %s6904_s28 }
 0xa4e   : > { %2705 = vmatpush.bf16.xpose.msrb.mxu1 %v2691_v14 }
 0xa55   : > { %3048 = vrot.lane.b32.xlu0 %v2674_v47, %s6904_s28 }
 0xa56   : > { %2706 = vmatpush.bf16.xpose.msrb.mxu1 %v2688_v39 }
 0xa5d   : > { %4526 = vmatmul.msk.bf16.vlgmr.msrb.gmra.mxu1 %vm1146_vm9, %v2663_v36 }
 0xa68   : > { %v2890_v6 = vpop.permute.xlu2 %2889 }
 0xa69   : > { %v2912_v22 = vsel %vm1146_vm9, %v2890_v6, 0 }
 0xa6d   : > { %4527 = vmatmul.msk.bf16.gmra.mxu1 %vm1146_vm9, %v2664_v15 }
 0xa70   : > { %v2888_v51 = vpop.permute.xlu1 %2887  ;;  %v2874_v5 = vpop.permute.xlu2 %2873 }
 0xa71   : > { %v2909_v62 = vsel %vm1146_vm9, %v2888_v51, 0 }
 0xa7d   : > { %4528 = vmatmul.msk.bf16.gmra.mxu1 %vm1146_vm9, %v2665_v40 }
 0xa80   : > { %v2878_v3 = vpop.permute.xlu1 %2877 }
 0xa8d   : > { %4529 = vmatmul.msk.bf16.gmra.mxu1 %vm1146_vm9, %v2666_v33 }
 0xa97   : > { %v2880_v8 = vpop.permute.xlu2 %2879 }
 0xaaf   : > { %v2892_v1 = vpop.permute.xlu0 %2891 }
 0xab0   : > { %v2915_v59 = vsel %vm1146_vm9, %v2892_v1, 0 }
 0xab1   : > { %2921 = vmatpush.bf16.xpose.msrb.mxu3 %v2915_v59 }
 0xab7   : > { %v2886_v29 = vpop.permute.xlu0 %2885 }
 0xab8   : > { %v2906_v54 = vsel %vm1146_vm9, %v2886_v29, 0 }
 0xab9   : > { %2922 = vmatpush.bf16.xpose.msrb.mxu3 %v2912_v22 }
 0xabf   : > { %v2876_v24 = vpop.permute.xlu0 %2875 }
 0xac1   : > { %2923 = vmatpush.bf16.xpose.msrb.mxu3 %v2909_v62 }
 0xac7   : > { %v3049_v57 = vpop.permute.xlu0 %3048 }
 0xac8   : > { %3070 = vmatpush.bf16.msra.mxu0 %v3049_v57 }
 0xac9   : > { %2924 = vmatpush.bf16.xpose.msrb.mxu3 %v2906_v54 }
 0xad0   : > { %4534 = vmatmul.msk.bf16.vlgmr.msrb.gmra.mxu3 %vm1146_vm9, %v2874_v5 }
 0xada   : > { %v6267_v26 = vpop.f32.mrf.mxu1 }
 0xadb   : > { %v2728_v11 = vsel %vm1146_vm9, %v6267_v26, -inf }
 0xadc   : > { %2729 = vmax.xlane.f32.xlu1 %v2728_v11 }
 0xae0   : > { %4535 = vmatmul.msk.bf16.gmra.mxu3 %vm1146_vm9, %v2876_v24 }
 0xae2   : > { %v6272_v44 = vpop.f32.mrf.mxu1 }
 0xae3   : > { %v2731_v13 = vsel %vm1146_vm9, %v6272_v44, -inf }
 0xae4   : > { %2732 = vmax.xlane.f32.xlu2 %v2731_v13 }
 0xaea   : > { %v6276_v20 = vpop.f32.mrf.mxu1 }
 0xaeb   : > { %v2734_v25 = vsel %vm1146_vm9, %v6276_v20, -inf }
 0xaec   : > { %2735 = vmax.xlane.f32.xlu2 %v2734_v25 }
 0xaf0   : > { %4536 = vmatmul.msk.bf16.gmra.mxu3 %vm1146_vm9, %v2878_v3 }
 0xaf2   : > { %v6281_v21 = vpop.f32.mrf.mxu1 }
 0xaf3   : > { %v2737_v28 = vsel %vm1146_vm9, %v6281_v21, -inf }
 0xaf4   : > { %2738 = vmax.xlane.f32.xlu0 %v2737_v28 }
 0xafa   : > { %v6308_v34 = vpop.f32.mrf.mxu1 }
 0xafb   : > { %v2740_v35 = vsel %vm1146_vm9, %v6308_v34, -inf }
 0xb00   : > { %4537 = vmatmul.msk.bf16.gmra.mxu3 %vm1146_vm9, %v2880_v8 }
 0xb02   : > { %v6320_v14 = vpop.f32.mrf.mxu1 }
 0xb0a   : > { %v6322_v6 = vpop.f32.mrf.mxu1 }
 0xb12   : > { %v6330_v57 = vpop.f32.mrf.mxu1 }
 0xb13   : > { %v2749_v11 = vsel %vm1146_vm9, %v6330_v57, -inf }
 0xb4f   : > { %v2730_v49 = vpop.xlane.xlu1 %2729 }
 0xb53   : > { %v2926_v9 = vpop.f32.mrf.mxu3 }
 0xb54   : > { %v2946_v53 = vsel %vm1146_vm9, %v2926_v9, -inf }
 0xb55   : > { %2947 = vmax.xlane.f32.xlu0 %v2946_v53  ;;  %v2752_v53 = vsub.f32 %v6267_v26, %v2730_v49  ;;  %v2743_v26 = vsel %vm1146_vm9, %v6320_v14, -inf }
 0xb57   : > { %v2733_v54 = vpop.xlane.xlu2 %2732 }
 0xb5b   : > { %v2928_v0 = vpop.f32.mrf.mxu3 }
 0xb5c   : > { %v2949_v60 = vsel %vm1146_vm9, %v2928_v0, -inf }
 0xb5d   : > { %2950 = vmax.xlane.f32.xlu1 %v2949_v60  ;;  %v2760_v60 = vmul.f32 1.442695, %v2752_v53 }
 0xb5f   : > { %v2736_v3 = vpop.xlane.xlu2 %2735 }
 0xb63   : > { %v6288_v15 = vpop.f32.mrf.mxu3 }
 0xb64   : > { %v2952_v61 = vsel %vm1146_vm9, %v6288_v15, -inf }
 0xb65   : > { %2953 = vmax.xlane.f32.xlu2 %v2952_v61 }
 0xb67   : > { %v2739_v58 = vpop.xlane.xlu0 %2738 }
 0xb68   : > { %v2755_v5 = vsub.f32 %v6281_v21, %v2739_v58 }
 0xb6a   : > { %v2766_v13 = vmul.f32 1.442695, %v2755_v5 }
 0xb6b   : > { %v2933_v37 = vpop.f32.mrf.mxu3 }
 0xb6c   : > { %v2955_v27 = vsel %vm1146_vm9, %v2933_v37, -inf }
 0xb6d   : > { %2956 = vmax.xlane.f32.xlu0 %v2955_v27 }
 0xb73   : > { %v2936_v2 = vpop.f32.mrf.mxu3 }
 0xb74   : > { %v2958_v52 = vsel %vm1146_vm9, %v2936_v2, -inf }
 0xb75   : > { %2959 = vmax.xlane.f32.xlu0 %v2958_v52 }
 0xb7b   : > { %v6294_v42 = vpop.f32.mrf.mxu3 }
 0xb7c   : > { %v2961_v30 = vsel %vm1146_vm9, %v6294_v42, -inf }
 0xb7d   : > { %2962 = vmax.xlane.f32.xlu1 %v2961_v30 }
 0xb83   : > { %v6298_v40 = vpop.f32.mrf.mxu3 }
 0xb84   : > { %v2964_v23 = vsel %vm1146_vm9, %v6298_v40, -inf }
 0xb85   : > { %2965 = vmax.xlane.f32.xlu1 %v2964_v23 }
 0xb89   : > { %3042 = vrot.lane.b32.xlu0 %v6249_v16, %s6904_s28 }
 0xb8b   : > { %v6304_v48 = vpop.f32.mrf.mxu3 }
 0xb8c   : > { %v2967_v36 = vsel %vm1146_vm9, %v6304_v48, -inf }
 0xb8d   : > { %2968 = vmax.xlane.f32.xlu2 %v2967_v36 }
 0xbb3   : > { %2741 = vmax.xlane.f32.xlu0 %v2740_v35 }
 0xbc8   : > { %v2948_v38 = vpop.xlane.xlu0 %2947 }
 0xbc9   : > { %v2970_v10 = vsub.f32 %v2926_v9, %v2948_v38  ;;  %v2754_v38 = vsub.f32 %v6276_v20, %v2736_v3 }
 0xbcb   : > { %v2978_v47 = vmul.f32 1.442695, %v2970_v10 }
 0xbcd   : > { %5037 = vpow2.f32 %v2978_v47 }
 0xbd0   : > { %v2951_v32 = vpop.xlane.xlu1 %2950 }
 0xbd1   : > { %v2971_v50 = vsub.f32 %v2928_v0, %v2951_v32  ;;  %v2764_v32 = vmul.f32 1.442695, %v2754_v38 }
 0xbd3   : > { %v6312_v33 = vpop.eup %5037  ;;  %v2980_v41 = vmul.f32 1.442695, %v2971_v50 }
 0xbd4   : > { %v2994_v56 = vsel %vm1146_vm9, %v6312_v33, 0.0 }
 0xbd5   : > { %5039 = vpow2.f32 %v2980_v41  ;;  %2995 = vadd.xlane.f32.xlu1 %v2994_v56 }
 0xbd8   : > { %v2954_v21 = vpop.xlane.xlu2 %2953 }
 0xbd9   : > { %v2972_v9 = vsub.f32 %v6288_v15, %v2954_v21  ;;  %v2753_v15 = vsub.f32 %v6272_v44, %v2733_v54  ;;  %v2746_v44 = vsel %vm1146_vm9, %v6322_v6, -inf }
 0xbdb   : > { %v6316_v16 = vpop.eup %5039  ;;  %v2762_v35 = vmul.f32 1.442695, %v2753_v15 }
 0xbdc   : > { %v2997_v17 = vsel %vm1146_vm9, %v6316_v16, 0.0 }
 0xbdd   : > { %2998 = vadd.xlane.f32.xlu2 %v2997_v17 }
 0xbe0   : > { %v2957_v39 = vpop.xlane.xlu0 %2956 }
 0xbe1   : > { %v2973_v1 = vsub.f32 %v2933_v37, %v2957_v39 }
 0xbe3   : > { %v2984_v59 = vmul.f32 1.442695, %v2973_v1 }
 0xbe5   : > { %5041 = vpow2.f32 %v2984_v59 }
 0xbe8   : > { %v2960_v29 = vpop.xlane.xlu0 %2959 }
 0xbe9   : > { %v2974_v51 = vsub.f32 %v2936_v2, %v2960_v29 }
 0xbeb   : > { %v6324_v22 = vpop.eup %5041  ;;  %v2986_v62 = vmul.f32 1.442695, %v2974_v51 }
 0xbec   : > { %v3003_v24 = vsel %vm1146_vm9, %v6324_v22, 0.0 }
 0xbed   : > { %3004 = vadd.xlane.f32.xlu0 %v3003_v24  ;;  %5043 = vpow2.f32 %v2986_v62 }
 0xbee   : > { %3046 = vrot.lane.b32.xlu1 %v6240_v7, %s6904_s28  ;;  %5045 = vpow2.f32 %v2766_v13 }
 0xbf0   : > { %v2963_v0 = vpop.xlane.xlu1 %2962 }
 0xbf1   : > { %v2975_v37 = vsub.f32 %v6294_v42, %v2963_v0 }
 0xbf3   : > { %v6337_v25 = vpop.eup %5043  ;;  %v2988_v2 = vmul.f32 1.442695, %v2975_v37 }
 0xbf4   : > { %v3006_v7 = vsel %vm1146_vm9, %v6337_v25, 0.0  ;;  %v6341_v28 = vpop.eup %5045 }
 0xbf5   : > { %3044 = vrot.lane.b32.xlu2 %v6246_v63, %s6904_s28  ;;  %2750 = vmax.xlane.f32.xlu0 %v2749_v11  ;;  %v2785_v8 = vsel %vm1146_vm9, %v6341_v28, 0.0  ;;  %v2982_v63 = vmul.f32 1.442695, %v2972_v9 }
 0xbf7   : > { %5047 = vpow2.f32 %v2982_v63 }
 0xbf8   : > { %5049 = vpow2.f32 %v2760_v60  ;;  %v2966_v52 = vpop.xlane.xlu1 %2965 }
 0xbf9   : > { %5051 = vpow2.f32 %v2988_v2  ;;  %v2976_v23 = vsub.f32 %v6298_v40, %v2966_v52 }
 0xbfa   : > { %5053 = vpow2.f32 %v2762_v35 }
 0xbfb   : > { %v3043_v36 = vpop.permute.xlu0 %3042  ;;  %v2990_v58 = vmul.f32 1.442695, %v2976_v23 }
 0xbfd   : > { %3007 = vadd.xlane.f32.xlu0 %v3006_v7  ;;  %v6347_v61 = vpop.eup %5047  ;;  %5055 = vpow2.f32 %v2990_v58 }
 0xbfe   : > { %v3000_v27 = vsel %vm1146_vm9, %v6347_v61, 0.0  ;;  %v6352_v30 = vpop.eup %5049 }
 0xbff   : > { %v2776_v42 = vsel %vm1146_vm9, %v6352_v30, 0.0  ;;  %v6360_v49 = vpop.eup %5051 }
 0xc00   : > { %v3009_v47 = vsel %vm1146_vm9, %v6360_v49, 0.0  ;;  %v2969_v50 = vpop.xlane.xlu2 %2968  ;;  %v6368_v56 = vpop.eup %5053 }
 0xc01   : > { %v2977_v20 = vsub.f32 %v6304_v48, %v2969_v50  ;;  %v2779_v39 = vsel %vm1146_vm9, %v6368_v56, 0.0 }
 0xc03   : > { %v6370_v17 = vpop.eup %5055  ;;  %v2992_v1 = vmul.f32 1.442695, %v2977_v20 }
 0xc05   : > { %2786 = vadd.xlane.f32.xlu0 %v2785_v8 }
 0xc18   : > { %3001 = vadd.xlane.f32.xlu1 %v3000_v27 }
 0xc1e   : > { %2744 = vmax.xlane.f32.xlu2 %v2743_v26 }
 0xc20   : > { %2777 = vadd.xlane.f32.xlu1 %v2776_v42 }
 0xc26   : > { %v2742_v10 = vpop.xlane.xlu0 %2741  ;;  %2747 = vmax.xlane.f32.xlu2 %v2746_v44 }
 0xc27   : > { %v2756_v40 = vsub.f32 %v6308_v34, %v2742_v10  ;;  %v3012_v34 = vsel %vm1146_vm9, %v6370_v17, 0.0 }
 0xc28   : > { %3010 = vadd.xlane.f32.xlu1 %v3009_v47 }
 0xc29   : > { %v2768_v41 = vmul.f32 1.442695, %v2756_v40 }
 0xc2b   : > { %5057 = vpow2.f32 %v2768_v41 }
 0xc2c   : > { %5059 = vpow2.f32 %v2764_v32 }
 0xc2d   : > { %5061 = vpow2.f32 %v2992_v1 }
 0xc2e   : > { %2780 = vadd.xlane.f32.xlu2 %v2779_v39 }
 0xc30   : > { %3013 = vadd.xlane.f32.xlu1 %v3012_v34 }
 0xc31   : > { %v6377_v59 = vpop.eup %5057 }
 0xc32   : > { %v6379_v29 = vpop.eup %5059  ;;  %v2788_v51 = vsel %vm1146_vm9, %v6377_v59, 0.0 }
 0xc33   : > { %2789 = vadd.xlane.f32.xlu0 %v2788_v51  ;;  %v2782_v48 = vsel %vm1146_vm9, %v6379_v29, 0.0  ;;  %v6385_v24 = vpop.eup %5061 }
 0xc34   : > { %v3015_v62 = vsel %vm1146_vm9, %v6385_v24, 0.0 }
 0xc36   : > { %2783 = vadd.xlane.f32.xlu2 %v2782_v48 }
 0xc3e   : > { %3016 = vadd.xlane.f32.xlu2 %v3015_v62 }
 0xc48   : > { %v2996_v54 = vpop.xlane.xlu1 %2995 }
 0xc50   : > { %v2999_v5 = vpop.xlane.xlu2 %2998 }
 0xc51   : > { %5063 = vrcp.f32 %v2999_v5 }
 0xc52   : > { %5065 = vrcp.f32 %v2996_v54 }
 0xc57   : > { %v5064_v3 = vpop.eup %5063 }
 0xc58   : > { %v3045_v7 = vpop.permute.xlu2 %3044  ;;  %v5066_v21 = vpop.eup %5065  ;;  %v3027_v8 = vmul.f32 %v5064_v3, %v6316_v16 }
 0xc59   : > { %v3026_v9 = vmul.f32 %v5066_v21, %v6312_v33 }
 0xc5b   : > { %v3034_v0 = vpack.c.bf16 %v3027_v8, %v3026_v9 }
 0xc60   : > { %v3005_v11 = vpop.xlane.xlu0 %3004  ;;  %v3047_v13 = vpop.permute.xlu1 %3046 }
 0xc61   : > { %3071 = vmatpush.bf16.msra.mxu0 %v3047_v13 }
 0xc65   : > { %3072 = vmatpush.bf16.msra.mxu0 %v3045_v7 }
 0xc68   : > { %v2751_v63 = vpop.xlane.xlu0 %2750 }
 0xc69   : > { %v2759_v53 = vsub.f32 %v6330_v57, %v2751_v63  ;;  %3073 = vmatpush.bf16.msra.mxu0 %v3043_v36 }
 0xc6b   : > { %v2774_v60 = vmul.f32 1.442695, %v2759_v53 }
 0xc6c   : > { %4538 = vmatmul.msk.bf16.vlgmr.msra.gmra.mxu0 %vm1146_vm9, %v3034_v0 }
 0xc6d   : > { %5067 = vpow2.f32 %v2774_v60 }
 0xc6e   : > { %5069 = vrcp.f32 %v3005_v11 }
 0xc70   : > { %v3008_v35 = vpop.xlane.xlu0 %3007 }
 0xc73   : > { %v6393_v37 = vpop.eup %5067 }
 0xc74   : > { %v2797_v27 = vsel %vm1146_vm9, %v6393_v37, 0.0  ;;  %v5070_v16 = vpop.eup %5069 }
 0xc75   : > { %2798 = vadd.xlane.f32.xlu0 %v2797_v27  ;;  %v3029_v15 = vmul.f32 %v5070_v16, %v6324_v22 }
 0xc78   : > { %v2787_v54 = vpop.xlane.xlu0 %2786 }
 0xc8b   : > { %v3002_v2 = vpop.xlane.xlu1 %3001 }
 0xc8c   : > { %5071 = vrcp.f32 %v3002_v2 }
 0xc91   : > { %v2745_v33 = vpop.xlane.xlu2 %2744 }
 0xc92   : > { %v5072_v52 = vpop.eup %5071  ;;  %v2757_v57 = vsub.f32 %v6320_v14, %v2745_v33 }
 0xc93   : > { %v3028_v26 = vmul.f32 %v5072_v52, %v6347_v61  ;;  %v2778_v23 = vpop.xlane.xlu1 %2777 }
 0xc94   : > { %v2770_v36 = vmul.f32 1.442695, %v2757_v57 }
 0xc95   : > { %v3035_v42 = vpack.c.bf16 %v3029_v15, %v3028_v26 }
 0xc96   : > { %5073 = vpow2.f32 %v2770_v36 }
 0xc97   : > { %4539 = vmatmul.msk.bf16.gmra.mxu0 %vm1146_vm9, %v3035_v42  ;;  %5075 = vrcp.f32 %v3008_v35  ;;  %v4804_v42 = vld [vmem:[%s6850_s7 + $0x70] sm:$0xff] }
 0xc99   : > { %v2748_v58 = vpop.xlane.xlu2 %2747 }
 0xc9a   : > { %v2758_v38 = vsub.f32 %v6322_v6, %v2748_v58 }
 0xc9b   : > { %v3011_v44 = vpop.xlane.xlu1 %3010 }
 0xc9c   : > { %v5074_v10 = vpop.eup %5073  ;;  %v2772_v40 = vmul.f32 1.442695, %v2758_v38  ;;  %5077 = vrcp.f32 %v3011_v44  ;;  %v4803_v38 = vld [vmem:[%s6850_s7 + $0x68] sm:$0xff] }
 0xc9d   : > { %v2791_v14 = vsel %vm1146_vm9, %v5074_v10, 0.0  ;;  %v5076_v22 = vpop.eup %5075 }
 0xc9e   : > { %5079 = vpow2.f32 %v2772_v40  ;;  %2792 = vadd.xlane.f32.xlu1 %v2791_v14  ;;  %v3030_v32 = vmul.f32 %v5076_v22, %v6337_v25  ;;  %v4800_v22 = vld [vmem:[%s6850_s7 + $0x50] sm:$0xff] }
 0xc9f   : > { %5081 = vrcp.f32 %v2778_v23 }
 0xca1   : > { %v2781_v61 = vpop.xlane.xlu2 %2780 }
 0xca2   : > { %v5078_v47 = vpop.eup %5077  ;;  %5083 = vrcp.f32 %v2781_v61  ;;  %v4799_v61 = vld [vmem:[%s6850_s7 + $0x48] sm:$0xff] }
 0xca3   : > { %v3031_v50 = vmul.f32 %v5078_v47, %v6360_v49  ;;  %v3014_v5 = vpop.xlane.xlu1 %3013 }
 0xca4   : > { %v5080_v41 = vpop.eup %5079 }
 0xca5   : > { %v2794_v6 = vsel %vm1146_vm9, %v5080_v41, 0.0  ;;  %v3036_v20 = vpack.c.bf16 %v3031_v50, %v3030_v32  ;;  %v5082_v39 = vpop.eup %5081  ;;  %v4798_v50 = vld [vmem:[%s6850_s7 + $0x40] sm:$0xff] }
 0xca6   : > { %2795 = vadd.xlane.f32.xlu2 %v2794_v6  ;;  %v2808_v1 = vmul.f32 %v5082_v39, %v6352_v30 }
 0xca7   : > { %4540 = vmatmul.msk.bf16.gmra.mxu0 %vm1146_vm9, %v3036_v20 }
 0xca8   : > { %v5084_v34 = vpop.eup %5083 }
 0xca9   : > { %v2809_v51 = vmul.f32 %v5084_v34, %v6368_v56  ;;  %v2784_v48 = vpop.xlane.xlu2 %2783 }
 0xcaa   : > { %5085 = vrcp.f32 %v2784_v48 }
 0xcab   : > { %v2816_v62 = vpack.c.bf16 %v2809_v51, %v2808_v1  ;;  %5087 = vrcp.f32 %v2787_v54 }
 0xcac   : > { %5089 = vrcp.f32 %v3014_v5 }
 0xcad   : > { %4530 = vmatmul.msk.bf16.vlgmr.msrb.gmra.mxu2 %vm1146_vm9, %v2816_v62 }
 0xcb0   : > { %v5086_v49 = vpop.eup %5085 }
 0xcb1   : > { %v3017_v25 = vpop.xlane.xlu2 %3016  ;;  %v5088_v11 = vpop.eup %5087  ;;  %v2810_v3 = vmul.f32 %v5086_v49, %v6379_v29 }
 0xcb2   : > { %5091 = vrcp.f32 %v3017_v25  ;;  %v5090_v13 = vpop.eup %5089  ;;  %v2811_v30 = vmul.f32 %v5088_v11, %v6341_v28  ;;  %v2790_v29 = vpop.xlane.xlu0 %2789 }
 0xcb3   : > { %v3032_v56 = vmul.f32 %v5090_v13, %v6370_v17  ;;  %5093 = vrcp.f32 %v2790_v29 }
 0xcb4   : > { %v2817_v8 = vpack.c.bf16 %v2811_v30, %v2810_v3 }
 0xcb8   : > { %v5092_v7 = vpop.eup %5091 }
 0xcb9   : > { %v3033_v21 = vmul.f32 %v5092_v7, %v6385_v24  ;;  %v5094_v17 = vpop.eup %5093 }
 0xcba   : > { %v2812_v60 = vmul.f32 %v5094_v17, %v6377_v59  ;;  %v4805_v59 = vld [vmem:[%s6850_s7 + $0x78] sm:$0xff] }
 0xcbb   : > { %v3037_v9 = vpack.c.bf16 %v3033_v21, %v3032_v56  ;;  %3217 = vmatpush.bf16.msra.mxu1 %v4805_v59 }
 0xcbd   : > { %4531 = vmatmul.msk.bf16.gmra.mxu2 %vm1146_vm9, %v2817_v8  ;;  %4541 = vmatmul.msk.bf16.gmra.mxu0 %vm1146_vm9, %v3037_v9 }
 0xcbf   : > { %3218 = vmatpush.bf16.msra.mxu1 %v4804_v42 }
 0xcc3   : > { %3219 = vmatpush.bf16.msra.mxu1 %v4803_v38 }
 0xce8   : > { %v2799_v52 = vpop.xlane.xlu0 %2798 }
 0xce9   : > { %v3075_v63 = vpop.f32.mrf.mxu0 }
 0xcea   : > { %3103 = vrot.lane.b32.xlu1 %v3075_v63, %s6904_s28 }
 0xcf1   : > { %v3077_v53 = vpop.f32.mrf.mxu0 }
 0xcf2   : > { %3105 = vrot.lane.b32.xlu2 %v3077_v53, %s6904_s28 }
 0xd11   : > { %v2793_v0 = vpop.xlane.xlu1 %2792 }
 0xd12   : > { %5095 = vrcp.f32 %v2793_v0  ;;  %v4899_v0 = vld [vmem:[%s6851_s8 + $0x1] ss:$0 sm:$0xff] }
 0xd14   : > { %v3080_v28 = vpop.f32.mrf.mxu0 }
 0xd15   : > { %3107 = vrot.lane.b32.xlu0 %v3080_v28, %s6904_s28 }
 0xd18   : > { %v5096_v24 = vpop.eup %5095 }
 0xd19   : > { %v2813_v27 = vmul.f32 %v5096_v24, %v5074_v10  ;;  %v2796_v2 = vpop.xlane.xlu2 %2795  ;;  %v4801_v10 = vld [vmem:[%s6850_s7 + $0x58] sm:$0xff] }
 0xd1a   : > { %5097 = vrcp.f32 %v2796_v2 }
 0xd1b   : > { %v2818_v16 = vpack.c.bf16 %v2813_v27, %v2812_v60  ;;  %5099 = vrcp.f32 %v2799_v52 }
 0xd1c   : > { %v3082_v33 = vpop.f32.mrf.mxu0 }
 0xd1d   : > { %3109 = vrot.lane.b32.xlu1 %v3082_v33, %s6904_s28  ;;  %4532 = vmatmul.msk.bf16.gmra.mxu2 %vm1146_vm9, %v2818_v16 }
 0xd20   : > { %v5098_v57 = vpop.eup %5097 }
 0xd21   : > { %v5100_v26 = vpop.eup %5099  ;;  %v2814_v23 = vmul.f32 %v5098_v57, %v5080_v41 }
 0xd22   : > { %v2815_v36 = vmul.f32 %v5100_v26, %v6393_v37  ;;  %v4802_v37 = vld [vmem:[%s6850_s7 + $0x60] sm:$0xff] }
 0xd23   : > { %3220 = vmatpush.bf16.msra.mxu1 %v4802_v37 }
 0xd24   : > { %v3085_v15 = vpop.f32.mrf.mxu0  ;;  %v2819_v35 = vpack.c.bf16 %v2815_v36, %v2814_v23 }
 0xd25   : > { %3111 = vrot.lane.b32.xlu0 %v3085_v15, %s6904_s28 }
 0xd27   : > { %3221 = vmatpush.bf16.msra.mxu1 %v4801_v10 }
 0xd2b   : > { %3222 = vmatpush.bf16.msra.mxu1 %v4800_v22 }
 0xd2c   : > { %v3087_v58 = vpop.f32.mrf.mxu0 }
 0xd2d   : > { %3113 = vrot.lane.b32.xlu2 %v3087_v58, %s6904_s28  ;;  %4533 = vmatmul.msk.bf16.gmra.mxu2 %vm1146_vm9, %v2819_v35 }
 0xd2f   : > { %3223 = vmatpush.bf16.msra.mxu1 %v4799_v61 }
 0xd30   : > { %v2841_v44 = vpop.f32.mrf.mxu2 }
 0xd31   : > { %2861 = vst.msk [vmem:[#allocation2] sm:$0xff] %vm1146_vm9, %v2841_v44 }
 0xd33   : > { %3224 = vmatpush.bf16.msra.mxu1 %v4798_v50 }
 0xd38   : > { %v2843_v40 = vpop.f32.mrf.mxu2 }
 0xd39   : > { %2862 = vst.msk [vmem:[#allocation2 + $0x8] sm:$0xff] %vm1146_vm9, %v2843_v40 }
 0xd3a   : > { %v3090_v14 = vpop.f32.mrf.mxu0 }
 0xd3b   : > { %3115 = vrot.lane.b32.xlu1 %v3090_v14, %s6904_s28 }
 0xd40   : > { %v2846_v47 = vpop.f32.mrf.mxu2 }
 0xd41   : > { %2863 = vst.msk [vmem:[#allocation2 + $0x10] sm:$0xff] %vm1146_vm9, %v2846_v47 }
 0xd42   : > { %v3092_v32 = vpop.f32.mrf.mxu0 }
 0xd43   : > { %3117 = vrot.lane.b32.xlu0 %v3092_v32, %s6904_s28  ;;  %s6905_s28 = sld [smem:[#allocation19_spill]] }
 0xd48   : > { %v2848_v41 = vpop.f32.mrf.mxu2 }
 0xd49   : > { %2864 = vst.msk [vmem:[#allocation2 + $0x18] sm:$0xff] %vm1146_vm9, %v2848_v41 }
 0xd4c   : > { %v3106_v6 = vpop.permute.xlu2 %3105 }
 0xd4d   : > { %3128 = vst.msk [vmem:[#allocation2 + $0x8] sm:$0xff] %vm1599_vm10, %v3106_v6 }
 0xd54   : > { %v3136_v34 = vld [vmem:[#allocation2 + $0x8] sm:$0xff] }
 0xd5c   : > { %v3104_v20 = vpop.permute.xlu1 %3103 }
 0xd5d   : > { %3127 = vst.msk [vmem:[#allocation2] sm:$0xff] %vm1599_vm10, %v3104_v20 }
 0xd64   : > { %v3135_v39 = vld [vmem:[#allocation2] sm:$0xff] }
 0xd65   : > { %v3143_v1 = vpack.c.bf16 %v3136_v34, %v3135_v39 }
 0xd67   : > { %3225 = vmatmul.bf16.vlgmr.msra.gmra.mxu1 %v3143_v1 }
 0xd87   : > { %v3108_v51 = vpop.permute.xlu0 %3107  ;;  %v3114_v13 = vpop.permute.xlu2 %3113 }
 0xd88   : > { %3129 = vst.msk [vmem:[#allocation2 + $0x10] sm:$0xff] %vm1599_vm10, %v3108_v51 }
 0xd8f   : > { %v3110_v48 = vpop.permute.xlu1 %3109  ;;  %v3137_v62 = vld [vmem:[#allocation2 + $0x10] sm:$0xff] }
 0xd90   : > { %3130 = vst.msk [vmem:[#allocation2 + $0x18] sm:$0xff] %vm1599_vm10, %v3110_v48 }
 0xd97   : > { %v3138_v54 = vld [vmem:[#allocation2 + $0x18] sm:$0xff]  ;;  %v3112_v49 = vpop.permute.xlu0 %3111 }
 0xd98   : > { %v3144_v5 = vpack.c.bf16 %v3138_v54, %v3137_v62 }
 0xd9a   : > { %3230 = vmatmul.bf16.gmra.mxu1 %v3144_v5 }
 0xda0   : > { %v2851_v25 = vpop.f32.mrf.mxu2 }
 0xda1   : > { %2865 = vst.msk [vmem:[#allocation2 + $0x20] sm:$0xff] %vm1146_vm9, %v2851_v25 }
 0xda2   : > { %3131 = vst.msk [vmem:[#allocation2 + $0x20] sm:$0xff] %vm1599_vm10, %v3112_v49 }
 0xda8   : > { %v2853_v11 = vpop.f32.mrf.mxu2 }
 0xda9   : > { %2866 = vst.msk [vmem:[#allocation2 + $0x28] sm:$0xff] %vm1146_vm9, %v2853_v11  ;;  %v3139_v30 = vld [vmem:[#allocation2 + $0x20] sm:$0xff] }
 0xdaa   : > { %3132 = vst.msk [vmem:[#allocation2 + $0x28] sm:$0xff] %vm1599_vm10, %v3114_v13 }
 0xdad   : > { %v3116_v7 = vpop.permute.xlu1 %3115 }
 0xdb0   : > { %v2856_v3 = vpop.f32.mrf.mxu2 }
 0xdb1   : > { %2867 = vst.msk [vmem:[#allocation2 + $0x30] sm:$0xff] %vm1146_vm9, %v2856_v3  ;;  %v3140_v56 = vld [vmem:[#allocation2 + $0x28] sm:$0xff]  ;;  %v4813_v3 = vld [vmem:[%s6854_s11 + $0x78] sm:$0xff] }
 0xdb2   : > { %3133 = vst.msk [vmem:[#allocation2 + $0x30] sm:$0xff] %vm1599_vm10, %v3116_v7  ;;  %v3145_v21 = vpack.c.bf16 %v3140_v56, %v3139_v30  ;;  %3514 = vmatpush.bf16.msra.mxu2 %v4813_v3  ;;  %v4812_v7 = vld [vmem:[%s6854_s11 + $0x70] sm:$0xff]  ;;  %v4811_v30 = vld [vmem:[%s6854_s11 + $0x68] sm:$0xff]  ;;  %v4810_v56 = vld [vmem:[%s6854_s11 + $0x60] sm:$0xff] }
 0xdb4   : > { %3235 = vmatmul.bf16.gmra.mxu1 %v3145_v21  ;;  %v4809_v21 = vld [vmem:[%s6854_s11 + $0x58] sm:$0xff] }
 0xdb5   : > { %v3118_v9 = vpop.permute.xlu0 %3117 }
 0xdb6   : > { %3515 = vmatpush.bf16.msra.mxu2 %v4812_v7 }
 0xdb8   : > { %v2858_v8 = vpop.f32.mrf.mxu2 }
 0xdb9   : > { %2868 = vst.msk [vmem:[#allocation2 + $0x38] sm:$0xff] %vm1146_vm9, %v2858_v8  ;;  %v3141_v63 = vld [vmem:[#allocation2 + $0x30] sm:$0xff] }
 0xdba   : > { %3134 = vst.msk [vmem:[#allocation2 + $0x38] sm:$0xff] %vm1599_vm10, %v3118_v9  ;;  %3516 = vmatpush.bf16.msra.mxu2 %v4811_v30  ;;  %v4808_v8 = vld [vmem:[%s6854_s11 + $0x50] sm:$0xff] }
 0xdbe   : > { %3517 = vmatpush.bf16.msra.mxu2 %v4810_v56 }
 0xdc1   : > { %v3142_v53 = vld [vmem:[#allocation2 + $0x38] sm:$0xff] }
 0xdc2   : > { %v3146_v29 = vpack.c.bf16 %v3142_v53, %v3141_v63  ;;  %3518 = vmatpush.bf16.msra.mxu2 %v4809_v21  ;;  %v4807_v63 = vld [vmem:[%s6854_s11 + $0x48] sm:$0xff] }
 0xdc4   : > { %3240 = vmatmul.bf16.gmra.mxu1 %v3146_v29 }
 0xdc6   : > { %3519 = vmatpush.bf16.msra.mxu2 %v4808_v8 }
 0xdca   : > { %3520 = vmatpush.bf16.msra.mxu2 %v4807_v63 }
 0xde4   : > { %v3226_v28 = vpop.f32.mrf.mxu1 }
 0xde5   : > { %v3227_v17 = vadd.f32 %v4899_v0, %v3226_v28 }
 0xde7   : > { %v3246_v24 = vadd.f32 %v3227_v17, %v6043_v43 }
 0xde9   : > { %3258 = vadd.xlane.f32.xlu2 %v3246_v24 }
 0xdec   : > { %v3228_v60 = vpop.f32.mrf.mxu1 }
 0xded   : > { %v3229_v27 = vadd.f32 %v4899_v0, %v3228_v60 }
 0xdef   : > { %v3247_v2 = vadd.f32 %v3229_v27, %v6047_v45 }
 0xdf1   : > { %3260 = vadd.xlane.f32.xlu1 %v3247_v2 }
 0xe17   : > { %v3231_v16 = vpop.f32.mrf.mxu1 }
 0xe18   : > { %v3232_v33 = vadd.f32 %v4899_v0, %v3231_v16 }
 0xe1a   : > { %v3248_v52 = vadd.f32 %v3232_v33, %v6051_v55 }
 0xe1c   : > { %3262 = vadd.xlane.f32.xlu0 %v3248_v52 }
 0xe1f   : > { %v3233_v57 = vpop.f32.mrf.mxu1 }
 0xe20   : > { %v3234_v15 = vadd.f32 %v4899_v0, %v3233_v57 }
 0xe22   : > { %v3249_v26 = vadd.f32 %v3234_v15, %v6055_v12 }
 0xe24   : > { %3264 = vadd.xlane.f32.xlu2 %v3249_v26 }
 0xe31   : > { %v3236_v23 = vpop.f32.mrf.mxu1 }
 0xe32   : > { %v3237_v59 = vadd.f32 %v4899_v0, %v3236_v23 }
 0xe34   : > { %v3250_v43 = vadd.f32 %v3237_v59, %v6059_v18 }
 0xe36   : > { %3266 = vadd.xlane.f32.xlu1 %v3250_v43 }
 0xe39   : > { %v3238_v36 = vpop.f32.mrf.mxu1 }
 0xe3a   : > { %v3239_v42 = vadd.f32 %v4899_v0, %v3238_v36 }
 0xe3c   : > { %v3251_v45 = vadd.f32 %v3239_v42, %v6063_v46 }
 0xe3e   : > { %3268 = vadd.xlane.f32.xlu0 %v3251_v45 }
 0xe41   : > { %v3241_v35 = vpop.f32.mrf.mxu1 }
 0xe42   : > { %v3242_v58 = vadd.f32 %v4899_v0, %v3241_v35 }
 0xe44   : > { %v3252_v55 = vadd.f32 %v3242_v58, %v6071_v19  ;;  %v6548_v58 = vld [vmem:[%s6852_s9 + $0x1] ss:$0 sm:$0xff] }
 0xe46   : > { %3270 = vadd.xlane.f32.xlu0 %v3252_v55 }
 0xe49   : > { %v3243_v18 = vpop.f32.mrf.mxu1 }
 0xe4a   : > { %v3244_v40 = vadd.f32 %v4899_v0, %v3243_v18  ;;  %v4806_v0 = vld [vmem:[%s6854_s11 + $0x40] sm:$0xff] }
 0xe4b   : > { %3521 = vmatpush.bf16.msra.mxu2 %v4806_v0 }
 0xe4c   : > { %v3253_v22 = vadd.f32 %v3244_v40, %v6081_v4 }
 0xe5c   : > { %v3259_v38 = vpop.xlane.xlu2 %3258 }
 0xe5d   : > { %v3274_v44 = vmul.f32 %v3259_v38, %v5433_v31 }
 0xe5f   : > { %v6479_v12 = vsub.f32 %v3246_v24, %v3274_v44 }
 0xe61   : > { %v3290_v37 = vmul.f32 %v6479_v12, %v6479_v12 }
 0xe63   : > { %3298 = vadd.xlane.f32.xlu2 %v3290_v37  ;;  %v6554_v37 = vld [vmem:[%s6853_s10 + $0x1] ss:$0 sm:$0xff] }
 0xe64   : > { %v3261_v10 = vpop.xlane.xlu1 %3260 }
 0xe65   : > { %v3275_v46 = vmul.f32 %v3261_v10, %v5433_v31 }
 0xe67   : > { %v6484_v14 = vsub.f32 %v3247_v2, %v3275_v46 }
 0xe69   : > { %v3291_v19 = vmul.f32 %v6484_v14, %v6484_v14 }
 0xe6b   : > { %3300 = vadd.xlane.f32.xlu1 %v3291_v19  ;;  %3272 = vadd.xlane.f32.xlu2 %v3253_v22 }
 0xe8f   : > { %v3263_v61 = vpop.xlane.xlu0 %3262 }
 0xe90   : > { %v3276_v47 = vmul.f32 %v3263_v61, %v5433_v31 }
 0xe92   : > { %v6490_v32 = vsub.f32 %v3248_v52, %v3276_v47 }
 0xe94   : > { %v3292_v50 = vmul.f32 %v6490_v32, %v6490_v32 }
 0xe96   : > { %3302 = vadd.xlane.f32.xlu1 %v3292_v50 }
 0xe97   : > { %v3265_v41 = vpop.xlane.xlu2 %3264 }
 0xe98   : > { %v3277_v6 = vmul.f32 %v3265_v41, %v5433_v31 }
 0xe9a   : > { %v6495_v20 = vsub.f32 %v3249_v26, %v3277_v6 }
 0xe9c   : > { %v3293_v4 = vmul.f32 %v6495_v20, %v6495_v20 }
 0xe9e   : > { %3304 = vadd.xlane.f32.xlu0 %v3293_v4 }
 0xea9   : > { %v3267_v39 = vpop.xlane.xlu1 %3266 }
 0xeaa   : > { %v3278_v34 = vmul.f32 %v3267_v39, %v5433_v31 }
 0xeac   : > { %v6500_v1 = vsub.f32 %v3250_v43, %v3278_v34 }
 0xeae   : > { %v3294_v51 = vmul.f32 %v6500_v1, %v6500_v1 }
 0xeb0   : > { %3306 = vadd.xlane.f32.xlu2 %v3294_v51 }
 0xeb1   : > { %v3269_v48 = vpop.xlane.xlu0 %3268 }
 0xeb2   : > { %v3279_v62 = vmul.f32 %v3269_v48, %v5433_v31 }
 0xeb4   : > { %v6505_v54 = vsub.f32 %v3251_v45, %v3279_v62 }
 0xeb6   : > { %v3295_v5 = vmul.f32 %v6505_v54, %v6505_v54 }
 0xeb8   : > { %3308 = vadd.xlane.f32.xlu1 %v3295_v5 }
 0xeb9   : > { %v3271_v25 = vpop.xlane.xlu0 %3270 }
 0xeba   : > { %v3280_v49 = vmul.f32 %v3271_v25, %v5433_v31 }
 0xebc   : > { %v6510_v11 = vsub.f32 %v3252_v55, %v3280_v49 }
 0xebe   : > { %v3296_v13 = vmul.f32 %v6510_v11, %v6510_v11 }
 0xec0   : > { %3310 = vadd.xlane.f32.xlu0 %v3296_v13 }
 0xed6   : > { %v3299_v9 = vpop.xlane.xlu2 %3298 }
 0xed7   : > { %v3314_v53 = vmul.f32 %v3299_v9, %v5433_v31 }
 0xed9   : > { %v3322_v29 = vadd.f32 1e-05, %v3314_v53 }
 0xedb   : > { %5101 = vrsqrt.f32 %v3322_v29  ;;  %vm3336_vm10 = vweird.f32 %v3322_v29 }
 0xede   : > { %v3301_v28 = vpop.xlane.xlu1 %3300  ;;  %v3273_v17 = vpop.xlane.xlu2 %3272 }
 0xedf   : > { %v3315_v24 = vmul.f32 %v3301_v28, %v5433_v31  ;;  %v3281_v60 = vmul.f32 %v3273_v17, %v5433_v31 }
 0xee1   : > { %v5102_v27 = vpop.eup %5101  ;;  %v3323_v2 = vadd.f32 1e-05, %v3315_v24  ;;  %v6541_v16 = vsub.f32 %v3253_v22, %v3281_v60 }
 0xee2   : > { %v3331_v33 = vmul.f32 %v5102_v27, %v3322_v29  ;;  %vm3337_vm9 = vweird.f32 %v5102_v27 }
 0xee3   : > { %5103 = vrsqrt.f32 %v3323_v2  ;;  %v3297_v52 = vmul.f32 %v6541_v16, %v6541_v16  ;;  %vm3338_vm1 = vmor %vm3336_vm10, %vm3337_vm9  ;;  %vm3346_vm3 = vweird.f32 %v3323_v2 }
 0xee4   : > { %v3332_v57 = vmul.f32 %v5102_v27, %v3331_v33 }
 0xee5   : > { %3312 = vadd.xlane.f32.xlu2 %v3297_v52 }
 0xee6   : > { %v3333_v15 = vmul.f32 0.5, %v3332_v57 }
 0xee8   : > { %v3334_v26 = vsub.f32 1.5, %v3333_v15 }
 0xee9   : > { %v5104_v23 = vpop.eup %5103 }
 0xeea   : > { %v3335_v59 = vmul.f32 %v5102_v27, %v3334_v26  ;;  %v3341_v43 = vmul.f32 %v5104_v23, %v3323_v2  ;;  %vm3347_vm2 = vweird.f32 %v5104_v23 }
 0xeeb   : > { %vm3348_vm4 = vmor %vm3346_vm3, %vm3347_vm2 }
 0xeec   : > { %v3342_v36 = vmul.f32 %v5104_v23, %v3341_v43  ;;  %v3339_v42 = vsel %vm3338_vm1, %v5102_v27, %v3335_v59 }
 0xeed   : > { %v3410_v55 = vmul.f32 %v3339_v42, %v6479_v12 }
 0xeee   : > { %v3343_v45 = vmul.f32 0.5, %v3342_v36 }
 0xeef   : > { %v3421_v18 = vmul.f32 %v6548_v58, %v3410_v55 }
 0xef0   : > { %v3344_v35 = vsub.f32 1.5, %v3343_v45 }
 0xef1   : > { %v6560_v46 = vadd.f32 %v6554_v37, %v3421_v18 }
 0xef2   : > { %v3345_v38 = vmul.f32 %v5104_v23, %v3344_v35 }
 0xef4   : > { %v3349_v44 = vsel %vm3348_vm4, %v5104_v23, %v3345_v38 }
 0xef5   : > { %v3411_v10 = vmul.f32 %v3349_v44, %v6484_v14 }
 0xef7   : > { %v3422_v40 = vmul.f32 %v6548_v58, %v3411_v10 }
 0xef9   : > { %v6563_v12 = vadd.f32 %v6554_v37, %v3422_v40 }
 0xefb   : > { %v3440_v22 = vpack.c.bf16 %v6563_v12, %v6560_v46 }
 0xefd   : > { %3522 = vmatmul.bf16.vlgmr.msra.gmra.mxu2 %v3440_v22 }
 0xf09   : > { %v3303_v19 = vpop.xlane.xlu1 %3302 }
 0xf0a   : > { %v3316_v61 = vmul.f32 %v3303_v19, %v5433_v31 }
 0xf0c   : > { %v3324_v47 = vadd.f32 1e-05, %v3316_v61 }
 0xf0e   : > { %5105 = vrsqrt.f32 %v3324_v47  ;;  %vm3356_vm6 = vweird.f32 %v3324_v47 }
 0xf11   : > { %v3305_v50 = vpop.xlane.xlu0 %3304 }
 0xf12   : > { %v3317_v14 = vmul.f32 %v3305_v50, %v5433_v31 }
 0xf14   : > { %v5106_v41 = vpop.eup %5105  ;;  %v3325_v6 = vadd.f32 1e-05, %v3317_v14 }
 0xf15   : > { %v3351_v4 = vmul.f32 %v5106_v41, %v3324_v47  ;;  %vm3357_vm5 = vweird.f32 %v5106_v41 }
 0xf16   : > { %5107 = vrsqrt.f32 %v3325_v6  ;;  %vm3358_vm7 = vmor %vm3356_vm6, %vm3357_vm5  ;;  %vm3366_vm11 = vweird.f32 %v3325_v6 }
 0xf17   : > { %v3352_v39 = vmul.f32 %v5106_v41, %v3351_v4 }
 0xf19   : > { %v3353_v34 = vmul.f32 0.5, %v3352_v39 }
 0xf1b   : > { %v3354_v51 = vsub.f32 1.5, %v3353_v34 }
 0xf1c   : > { %v5108_v48 = vpop.eup %5107 }
 0xf1d   : > { %v3355_v62 = vmul.f32 %v5106_v41, %v3354_v51  ;;  %v3361_v5 = vmul.f32 %v5108_v48, %v3325_v6  ;;  %vm3367_vm8 = vweird.f32 %v5108_v48 }
 0xf1e   : > { %vm3368_vm12 = vmor %vm3366_vm11, %vm3367_vm8 }
 0xf1f   : > { %v3362_v25 = vmul.f32 %v5108_v48, %v3361_v5  ;;  %v3359_v49 = vsel %vm3358_vm7, %v5106_v41, %v3355_v62 }
 0xf20   : > { %v3412_v30 = vmul.f32 %v3359_v49, %v6490_v32  ;;  %v4820_v49 = vld [vmem:[%s6856_s13 + $0x70] sm:$0xff] }
 0xf21   : > { %v3363_v13 = vmul.f32 0.5, %v3362_v25 }
 0xf22   : > { %v3423_v53 = vmul.f32 %v6548_v58, %v3412_v30  ;;  %v4819_v30 = vld [vmem:[%s6856_s13 + $0x68] sm:$0xff] }
 0xf23   : > { %v3364_v3 = vsub.f32 1.5, %v3363_v13  ;;  %v3307_v7 = vpop.xlane.xlu2 %3306 }
 0xf24   : > { %v3318_v56 = vmul.f32 %v3307_v7, %v5433_v31  ;;  %v6576_v17 = vadd.f32 %v6554_v37, %v3423_v53 }
 0xf25   : > { %v3365_v21 = vmul.f32 %v5108_v48, %v3364_v3 }
 0xf26   : > { %v3326_v8 = vadd.f32 1e-05, %v3318_v56 }
 0xf27   : > { %v3369_v9 = vsel %vm3368_vm12, %v5108_v48, %v3365_v21  ;;  %v4821_v48 = vld [vmem:[%s6856_s13 + $0x78] sm:$0xff] }
 0xf28   : > { %v3413_v63 = vmul.f32 %v3369_v9, %v6495_v20  ;;  %5109 = vrsqrt.f32 %v3326_v8  ;;  %vm3376_vm14 = vweird.f32 %v3326_v8  ;;  %3689 = vmatpush.bf16.msra.mxu3 %v4821_v48 }
 0xf2a   : > { %v3424_v29 = vmul.f32 %v6548_v58, %v3413_v63 }
 0xf2b   : > { %v3309_v0 = vpop.xlane.xlu1 %3308 }
 0xf2c   : > { %v3319_v28 = vmul.f32 %v3309_v0, %v5433_v31  ;;  %v6579_v32 = vadd.f32 %v6554_v37, %v3424_v29  ;;  %3690 = vmatpush.bf16.msra.mxu3 %v4820_v49  ;;  %v4815_v0 = vld [vmem:[%s6856_s13 + $0x48] sm:$0xff] }
 0xf2e   : > { %v5110_v24 = vpop.eup %5109  ;;  %v3327_v60 = vadd.f32 1e-05, %v3319_v28  ;;  %v3441_v27 = vpack.c.bf16 %v6579_v32, %v6576_v17 }
 0xf2f   : > { %v3371_v20 = vmul.f32 %v5110_v24, %v3326_v8  ;;  %vm3377_vm13 = vweird.f32 %v5110_v24 }
 0xf30   : > { %5111 = vrsqrt.f32 %v3327_v60  ;;  %3527 = vmatmul.bf16.gmra.mxu2 %v3441_v27  ;;  %vm3378_vm15 = vmor %vm3376_vm14, %vm3377_vm13  ;;  %vm3386_vm9 = vweird.f32 %v3327_v60  ;;  %3691 = vmatpush.bf16.msra.mxu3 %v4819_v30 }
 0xf31   : > { %v3372_v2 = vmul.f32 %v5110_v24, %v3371_v20 }
 0xf33   : > { %v3373_v33 = vmul.f32 0.5, %v3372_v2  ;;  %v3311_v35 = vpop.xlane.xlu0 %3310 }
 0xf34   : > { %v3320_v18 = vmul.f32 %v3311_v35, %v5433_v31 }
 0xf35   : > { %v3374_v52 = vsub.f32 1.5, %v3373_v33 }
 0xf36   : > { %v5112_v57 = vpop.eup %5111 }
 0xf37   : > { %v3375_v15 = vmul.f32 %v5110_v24, %v3374_v52  ;;  %v3381_v26 = vmul.f32 %v5112_v57, %v3327_v60  ;;  %vm3387_vm0 = vweird.f32 %v5112_v57  ;;  %v4814_v60 = vld [vmem:[%s6856_s13 + $0x40] sm:$0xff] }
 0xf38   : > { %vm3388_vm10 = vmor %vm3386_vm9, %vm3387_vm0 }
 0xf39   : > { %v3382_v23 = vmul.f32 %v5112_v57, %v3381_v26  ;;  %v3379_v59 = vsel %vm3378_vm15, %v5110_v24, %v3375_v15 }
 0xf3a   : > { %v3414_v42 = vmul.f32 %v3379_v59, %v6500_v1  ;;  %v3328_v1 = vadd.f32 1e-05, %v3320_v18 }
 0xf3b   : > { %v3383_v43 = vmul.f32 0.5, %v3382_v23 }
 0xf3c   : > { %v3425_v44 = vmul.f32 %v6548_v58, %v3414_v42  ;;  %5113 = vrsqrt.f32 %v3328_v1  ;;  %vm3396_vm2 = vweird.f32 %v3328_v1 }
 0xf3d   : > { %v3384_v36 = vsub.f32 1.5, %v3383_v43 }
 0xf3e   : > { %v6589_v40 = vadd.f32 %v6554_v37, %v3425_v44 }
 0xf3f   : > { %v3385_v45 = vmul.f32 %v5112_v57, %v3384_v36 }
 0xf41   : > { %v3389_v55 = vsel %vm3388_vm10, %v5112_v57, %v3385_v45 }
 0xf42   : > { %v3415_v38 = vmul.f32 %v3389_v55, %v6505_v54  ;;  %v5114_v61 = vpop.eup %5113 }
 0xf43   : > { %v3391_v54 = vmul.f32 %v5114_v61, %v3328_v1  ;;  %vm3397_vm1 = vweird.f32 %v5114_v61 }
 0xf44   : > { %v3426_v10 = vmul.f32 %v6548_v58, %v3415_v38  ;;  %vm3398_vm3 = vmor %vm3396_vm2, %vm3397_vm1 }
 0xf45   : > { %v3392_v47 = vmul.f32 %v5114_v61, %v3391_v54 }
 0xf46   : > { %v6592_v22 = vadd.f32 %v6554_v37, %v3426_v10 }
 0xf47   : > { %v3393_v6 = vmul.f32 0.5, %v3392_v47 }
 0xf48   : > { %v3442_v19 = vpack.c.bf16 %v6592_v22, %v6589_v40 }
 0xf49   : > { %v3394_v4 = vsub.f32 1.5, %v3393_v6 }
 0xf4a   : > { %3532 = vmatmul.bf16.gmra.mxu2 %v3442_v19 }
 0xf4b   : > { %v3395_v34 = vmul.f32 %v5114_v61, %v3394_v4 }
 0xf4d   : > { %v3399_v5 = vsel %vm3398_vm3, %v5114_v61, %v3395_v34 }
 0xf4e   : > { %v3416_v3 = vmul.f32 %v3399_v5, %v6510_v11  ;;  %v4818_v11 = vld [vmem:[%s6856_s13 + $0x60] sm:$0xff] }
 0xf4f   : > { %3692 = vmatpush.bf16.msra.mxu3 %v4818_v11 }
 0xf50   : > { %v3427_v8 = vmul.f32 %v6548_v58, %v3416_v3 }
 0xf52   : > { %v6614_v63 = vadd.f32 %v6554_v37, %v3427_v8 }
 0xf58   : > { %v3313_v50 = vpop.xlane.xlu2 %3312 }
 0xf59   : > { %v3321_v14 = vmul.f32 %v3313_v50, %v5433_v31 }
 0xf5b   : > { %v3329_v41 = vadd.f32 1e-05, %v3321_v14 }
 0xf5d   : > { %5115 = vrsqrt.f32 %v3329_v41  ;;  %vm3406_vm5 = vweird.f32 %v3329_v41 }
 0xf63   : > { %v5116_v39 = vpop.eup %5115 }
 0xf64   : > { %v3401_v51 = vmul.f32 %v5116_v39, %v3329_v41  ;;  %vm3407_vm4 = vweird.f32 %v5116_v39 }
 0xf65   : > { %vm3408_vm6 = vmor %vm3406_vm5, %vm3407_vm4 }
 0xf66   : > { %v3402_v62 = vmul.f32 %v5116_v39, %v3401_v51 }
 0xf68   : > { %v3403_v25 = vmul.f32 0.5, %v3402_v62 }
 0xf6a   : > { %v3404_v13 = vsub.f32 1.5, %v3403_v25 }
 0xf6c   : > { %v3405_v7 = vmul.f32 %v5116_v39, %v3404_v13 }
 0xf6e   : > { %v3409_v56 = vsel %vm3408_vm6, %v5116_v39, %v3405_v7 }
 0xf6f   : > { %v3417_v21 = vmul.f32 %v3409_v56, %v6541_v16  ;;  %v4817_v16 = vld [vmem:[%s6856_s13 + $0x58] sm:$0xff] }
 0xf70   : > { %3693 = vmatpush.bf16.msra.mxu3 %v4817_v16 }
 0xf71   : > { %v3428_v9 = vmul.f32 %v6548_v58, %v3417_v21  ;;  %v4816_v58 = vld [vmem:[%s6856_s13 + $0x50] sm:$0xff] }
 0xf73   : > { %v6617_v53 = vadd.f32 %v6554_v37, %v3428_v9  ;;  %v6630_v37 = vld [vmem:[%s6855_s12 + $0x1] ss:$0 sm:$0xff] }
 0xf74   : > { %3694 = vmatpush.bf16.msra.mxu3 %v4816_v58 }
 0xf75   : > { %v3443_v29 = vpack.c.bf16 %v6617_v53, %v6614_v63 }
 0xf77   : > { %3537 = vmatmul.bf16.gmra.mxu2 %v3443_v29 }
 0xf78   : > { %3695 = vmatpush.bf16.msra.mxu3 %v4815_v0 }
 0xf7c   : > { %3696 = vmatpush.bf16.msra.mxu3 %v4814_v60 }
 0xf80   : > { %v3523_v28 = vpop.f32.mrf.mxu2 }
 0xf81   : > { %v3524_v24 = vadd.f32 %v6630_v37, %v3523_v28 }
 0xf83   : > { %v3543_v27 = vmul.f32 %v3524_v24, %v3524_v24 }
 0xf85   : > { %v3551_v20 = vmul.f32 %v3543_v27, %v3524_v24 }
 0xf87   : > { %v3559_v2 = vmul.f32 0.044715, %v3551_v20 }
 0xf88   : > { %v3525_v33 = vpop.f32.mrf.mxu2 }
 0xf89   : > { %v3567_v52 = vadd.f32 %v3559_v2, %v3524_v24  ;;  %v3526_v57 = vadd.f32 %v6630_v37, %v3525_v33 }
 0xf8b   : > { %v3575_v15 = vmul.f32 0.7978846, %v3567_v52  ;;  %v3544_v26 = vmul.f32 %v3526_v57, %v3526_v57 }
 0xf8d   : > { %v3552_v23 = vmul.f32 %v3544_v26, %v3526_v57  ;;  %5117 = vtanh.f32 %v3575_v15 }
 0xf8f   : > { %v3560_v59 = vmul.f32 0.044715, %v3552_v23 }
 0xf91   : > { %v3568_v43 = vadd.f32 %v3560_v59, %v3526_v57 }
 0xf93   : > { %v3576_v36 = vmul.f32 0.7978846, %v3568_v43  ;;  %v5118_v42 = vpop.eup %5117 }
 0xf94   : > { %v3591_v45 = vadd.f32 1.0, %v5118_v42 }
 0xf95   : > { %5119 = vtanh.f32 %v3576_v36 }
 0xf96   : > { %v3599_v55 = vmul.f32 0.5, %v3591_v45 }
 0xf98   : > { %v3607_v18 = vmul.f32 %v3599_v55, %v3524_v24 }
 0xf9b   : > { %v5120_v35 = vpop.eup %5119 }
 0xf9c   : > { %v3592_v38 = vadd.f32 1.0, %v5120_v35 }
 0xf9e   : > { %v3600_v44 = vmul.f32 0.5, %v3592_v38 }
 0xfa0   : > { %v3608_v10 = vmul.f32 %v3600_v44, %v3526_v57 }
 0xfa2   : > { %v3615_v1 = vpack.c.bf16 %v3608_v10, %v3607_v18 }
 0xfa4   : > { %3697 = vmatmul.bf16.vlgmr.msra.gmra.mxu3 %v3615_v1 }
 0xfb3   : > { %v3528_v19 = vpop.f32.mrf.mxu2 }
 0xfb4   : > { %v3529_v61 = vadd.f32 %v6630_v37, %v3528_v19 }
 0xfb6   : > { %v3545_v54 = vmul.f32 %v3529_v61, %v3529_v61 }
 0xfb8   : > { %v3553_v47 = vmul.f32 %v3545_v54, %v3529_v61 }
 0xfba   : > { %v3561_v50 = vmul.f32 0.044715, %v3553_v47 }
 0xfbb   : > { %v3530_v14 = vpop.f32.mrf.mxu2 }
 0xfbc   : > { %v3569_v41 = vadd.f32 %v3561_v50, %v3529_v61  ;;  %v3531_v6 = vadd.f32 %v6630_v37, %v3530_v14 }
 0xfbe   : > { %v3577_v4 = vmul.f32 0.7978846, %v3569_v41  ;;  %v3546_v39 = vmul.f32 %v3531_v6, %v3531_v6 }
 0xfc0   : > { %v3554_v34 = vmul.f32 %v3546_v39, %v3531_v6  ;;  %5121 = vtanh.f32 %v3577_v4 }
 0xfc2   : > { %v3562_v51 = vmul.f32 0.044715, %v3554_v34 }
 0xfc4   : > { %v3570_v48 = vadd.f32 %v3562_v51, %v3531_v6 }
 0xfc6   : > { %v3578_v62 = vmul.f32 0.7978846, %v3570_v48  ;;  %v5122_v5 = vpop.eup %5121 }
 0xfc7   : > { %v3593_v25 = vadd.f32 1.0, %v5122_v5 }
 0xfc8   : > { %5123 = vtanh.f32 %v3578_v62 }
 0xfc9   : > { %v3601_v30 = vmul.f32 0.5, %v3593_v25 }
 0xfcb   : > { %v3609_v9 = vmul.f32 %v3601_v30, %v3529_v61 }
 0xfcd   : > { %v3533_v49 = vpop.f32.mrf.mxu2 }
 0xfce   : > { %v5124_v13 = vpop.eup %5123  ;;  %v3534_v3 = vadd.f32 %v6630_v37, %v3533_v49 }
 0xfcf   : > { %v3594_v7 = vadd.f32 1.0, %v5124_v13 }
 0xfd0   : > { %v3547_v56 = vmul.f32 %v3534_v3, %v3534_v3 }
 0xfd1   : > { %v3602_v21 = vmul.f32 0.5, %v3594_v7 }
 0xfd2   : > { %v3555_v8 = vmul.f32 %v3547_v56, %v3534_v3 }
 0xfd3   : > { %v3610_v11 = vmul.f32 %v3602_v21, %v3531_v6 }
 0xfd4   : > { %v3563_v29 = vmul.f32 0.044715, %v3555_v8 }
 0xfd5   : > { %v3535_v16 = vpop.f32.mrf.mxu2  ;;  %v3616_v58 = vpack.c.bf16 %v3610_v11, %v3609_v9 }
 0xfd6   : > { %v3571_v0 = vadd.f32 %v3563_v29, %v3534_v3  ;;  %v3536_v28 = vadd.f32 %v6630_v37, %v3535_v16 }
 0xfd7   : > { %3702 = vmatmul.bf16.gmra.mxu3 %v3616_v58 }
 0xfd8   : > { %v3579_v24 = vmul.f32 0.7978846, %v3571_v0  ;;  %v3548_v60 = vmul.f32 %v3536_v28, %v3536_v28 }
 0xfda   : > { %v3556_v27 = vmul.f32 %v3548_v60, %v3536_v28  ;;  %5125 = vtanh.f32 %v3579_v24 }
 0xfdc   : > { %v3564_v20 = vmul.f32 0.044715, %v3556_v27 }
 0xfde   : > { %v3572_v2 = vadd.f32 %v3564_v20, %v3536_v28 }
 0xfe0   : > { %v3580_v33 = vmul.f32 0.7978846, %v3572_v2  ;;  %v5126_v52 = vpop.eup %5125 }
 0xfe1   : > { %v3595_v57 = vadd.f32 1.0, %v5126_v52 }
 0xfe2   : > { %5127 = vtanh.f32 %v3580_v33 }
 0xfe3   : > { %v3603_v23 = vmul.f32 0.5, %v3595_v57 }
 0xfe5   : > { %v3611_v43 = vmul.f32 %v3603_v23, %v3534_v3 }
 0xfe8   : > { %v5128_v15 = vpop.eup %5127 }
 0xfe9   : > { %v3596_v26 = vadd.f32 1.0, %v5128_v15 }
 0xfeb   : > { %v3604_v59 = vmul.f32 0.5, %v3596_v26 }
 0xfed   : > { %v3612_v36 = vmul.f32 %v3604_v59, %v3536_v28 }
 0xfef   : > { %v3617_v42 = vpack.c.bf16 %v3612_v36, %v3611_v43 }
 0xff1   : > { %3707 = vmatmul.bf16.gmra.mxu3 %v3617_v42 }
 0xffa   : > { %v3538_v45 = vpop.f32.mrf.mxu2 }
 0xffb   : > { %v3539_v35 = vadd.f32 %v6630_v37, %v3538_v45 }
 0xffd   : > { %v3549_v55 = vmul.f32 %v3539_v35, %v3539_v35 }
 0xfff   : > { %v3557_v38 = vmul.f32 %v3549_v55, %v3539_v35 }
0x1001   : > { %v3565_v44 = vmul.f32 0.044715, %v3557_v38 }
0x1002   : > { %v3540_v18 = vpop.f32.mrf.mxu2 }
0x1003   : > { %v3573_v10 = vadd.f32 %v3565_v44, %v3539_v35  ;;  %v3541_v1 = vadd.f32 %v6630_v37, %v3540_v18  ;;  %v4903_v37 = vld [vmem:[%s6857_s14 + $0x1] ss:$0 sm:$0xff] }
0x1005   : > { %v3581_v19 = vmul.f32 0.7978846, %v3573_v10  ;;  %v3550_v61 = vmul.f32 %v3541_v1, %v3541_v1 }
0x1007   : > { %v3558_v54 = vmul.f32 %v3550_v61, %v3541_v1  ;;  %5129 = vtanh.f32 %v3581_v19 }
0x1009   : > { %v3566_v47 = vmul.f32 0.044715, %v3558_v54 }
0x100b   : > { %v3574_v50 = vadd.f32 %v3566_v47, %v3541_v1 }
0x100d   : > { %v3582_v14 = vmul.f32 0.7978846, %v3574_v50  ;;  %v5130_v41 = vpop.eup %5129 }
0x100e   : > { %v3597_v6 = vadd.f32 1.0, %v5130_v41 }
0x100f   : > { %5131 = vtanh.f32 %v3582_v14 }
0x1010   : > { %v3605_v34 = vmul.f32 0.5, %v3597_v6 }
0x1012   : > { %v3613_v48 = vmul.f32 %v3605_v34, %v3539_v35 }
0x1015   : > { %v5132_v4 = vpop.eup %5131 }
0x1016   : > { %v3598_v39 = vadd.f32 1.0, %v5132_v4 }
0x1018   : > { %v3606_v51 = vmul.f32 0.5, %v3598_v39 }
0x101a   : > { %v3614_v62 = vmul.f32 %v3606_v51, %v3541_v1 }
0x101c   : > { %v3618_v5 = vpack.c.bf16 %v3614_v62, %v3613_v48 }
0x101e   : > { %3712 = vmatmul.bf16.gmra.mxu3 %v3618_v5 }
0x1027   : > { %v3698_v25 = vpop.f32.mrf.mxu3 }
0x1028   : > { %v3699_v49 = vadd.f32 %v4903_v37, %v3698_v25 }
0x102a   : > { %v3718_v13 = vadd.f32 %v3699_v49, %v6560_v46 }
0x102c   : > { %3728 = vadd.xlane.f32.xlu1 %v3718_v13 }
0x102f   : > { %v3700_v3 = vpop.f32.mrf.mxu3 }
0x1030   : > { %v3701_v7 = vadd.f32 %v4903_v37, %v3700_v3 }
0x1032   : > { %v3719_v30 = vadd.f32 %v3701_v7, %v6563_v12 }
0x1034   : > { %3730 = vadd.xlane.f32.xlu0 %v3719_v30 }
0x105a   : > { %v3703_v56 = vpop.f32.mrf.mxu3 }
0x105b   : > { %v3704_v21 = vadd.f32 %v4903_v37, %v3703_v56 }
0x105d   : > { %v3720_v8 = vadd.f32 %v3704_v21, %v6576_v17  ;;  %v6702_v21 = vld [vmem:[%s6858_s15] ss:$0 sm:$0xff] }
0x105f   : > { %3732 = vadd.xlane.f32.xlu2 %v3720_v8 }
0x1062   : > { %v3705_v9 = vpop.f32.mrf.mxu3 }
0x1063   : > { %v3706_v11 = vadd.f32 %v4903_v37, %v3705_v9 }
0x1065   : > { %v3721_v29 = vadd.f32 %v3706_v11, %v6579_v32 }
0x1067   : > { %3734 = vadd.xlane.f32.xlu1 %v3721_v29 }
0x1074   : > { %v3708_v16 = vpop.f32.mrf.mxu3 }
0x1075   : > { %v3709_v58 = vadd.f32 %v4903_v37, %v3708_v16 }
0x1077   : > { %v3722_v46 = vadd.f32 %v3709_v58, %v6589_v40 }
0x1079   : > { %3736 = vadd.xlane.f32.xlu0 %v3722_v46 }
0x107c   : > { %v3710_v0 = vpop.f32.mrf.mxu3 }
0x107d   : > { %v3711_v28 = vadd.f32 %v4903_v37, %v3710_v0 }
0x107f   : > { %v3723_v12 = vadd.f32 %v3711_v28, %v6592_v22 }
0x1081   : > { %3738 = vadd.xlane.f32.xlu2 %v3723_v12 }
0x109f   : > { %v3729_v24 = vpop.xlane.xlu1 %3728 }
0x10a0   : > { %v3744_v60 = vmul.f32 %v3729_v24, %v5433_v31 }
0x10a1   : > { %v3713_v17 = vpop.f32.mrf.mxu3 }
0x10a2   : > { %v6656_v27 = vsub.f32 %v3718_v13, %v3744_v60  ;;  %v3714_v20 = vadd.f32 %v4903_v37, %v3713_v17 }
0x10a4   : > { %v3724_v32 = vadd.f32 %v3714_v20, %v6614_v63  ;;  %v3760_v2 = vmul.f32 %v6656_v27, %v6656_v27 }
0x10a6   : > { %3768 = vadd.xlane.f32.xlu2 %v3760_v2  ;;  %3740 = vadd.xlane.f32.xlu1 %v3724_v32 }
0x10a7   : > { %v3731_v40 = vpop.xlane.xlu0 %3730 }
0x10a8   : > { %v3745_v33 = vmul.f32 %v3731_v40, %v5433_v31 }
0x10a9   : > { %v3715_v52 = vpop.f32.mrf.mxu3 }
0x10aa   : > { %v6662_v22 = vsub.f32 %v3719_v30, %v3745_v33  ;;  %v3716_v57 = vadd.f32 %v4903_v37, %v3715_v52 }
0x10ac   : > { %v3725_v15 = vadd.f32 %v3716_v57, %v6617_v53  ;;  %v3761_v26 = vmul.f32 %v6662_v22, %v6662_v22 }
0x10ae   : > { %3742 = vadd.xlane.f32.xlu0 %v3725_v15  ;;  %3770 = vadd.xlane.f32.xlu1 %v3761_v26 }
0x10d2   : > { %v3733_v63 = vpop.xlane.xlu2 %3732 }
0x10d3   : > { %v3746_v23 = vmul.f32 %v3733_v63, %v5433_v31 }
0x10d5   : > { %v6668_v59 = vsub.f32 %v3720_v8, %v3746_v23 }
0x10d7   : > { %v3762_v43 = vmul.f32 %v6668_v59, %v6668_v59 }
0x10d9   : > { %3772 = vadd.xlane.f32.xlu0 %v3762_v43 }
0x10da   : > { %v3735_v36 = vpop.xlane.xlu1 %3734 }
0x10db   : > { %v3747_v42 = vmul.f32 %v3735_v36, %v5433_v31 }
0x10dd   : > { %v6673_v45 = vsub.f32 %v3721_v29, %v3747_v42  ;;  %v6708_v29 = vld [vmem:[%s6859_s16] ss:$0 sm:$0xff] }
0x10df   : > { %v3763_v53 = vmul.f32 %v6673_v45, %v6673_v45 }
0x10e1   : > { %3774 = vadd.xlane.f32.xlu2 %v3763_v53 }
0x10ec   : > { %v3737_v35 = vpop.xlane.xlu0 %3736 }
0x10ed   : > { %v3748_v55 = vmul.f32 %v3737_v35, %v5433_v31 }
0x10ef   : > { %v6678_v38 = vsub.f32 %v3722_v46, %v3748_v55  ;;  %v6714_v46 = vld [vmem:[%s6860_s17] ss:$0 sm:$0xff] }
0x10f1   : > { %v3764_v44 = vmul.f32 %v6678_v38, %v6678_v38 }
0x10f3   : > { %3776 = vadd.xlane.f32.xlu1 %v3764_v44 }
0x10f4   : > { %v3739_v18 = vpop.xlane.xlu2 %3738 }
0x10f5   : > { %v3749_v10 = vmul.f32 %v3739_v18, %v5433_v31 }
0x10f7   : > { %v6683_v1 = vsub.f32 %v3723_v12, %v3749_v10 }
0x10f9   : > { %v3765_v19 = vmul.f32 %v6683_v1, %v6683_v1 }
0x10fb   : > { %3778 = vadd.xlane.f32.xlu0 %v3765_v19 }
0x1119   : > { %v3769_v61 = vpop.xlane.xlu2 %3768  ;;  %v3741_v54 = vpop.xlane.xlu1 %3740 }
0x111a   : > { %v3784_v47 = vmul.f32 %v3769_v61, %v5433_v31  ;;  %v3750_v50 = vmul.f32 %v3741_v54, %v5433_v31 }
0x111c   : > { %v3792_v14 = vadd.f32 1e-05, %v3784_v47  ;;  %v6689_v41 = vsub.f32 %v3724_v32, %v3750_v50 }
0x111e   : > { %5133 = vrsqrt.f32 %v3792_v14  ;;  %v3766_v6 = vmul.f32 %v6689_v41, %v6689_v41  ;;  %vm3806_vm8 = vweird.f32 %v3792_v14 }
0x1120   : > { %3780 = vadd.xlane.f32.xlu2 %v3766_v6 }
0x1121   : > { %v3771_v4 = vpop.xlane.xlu1 %3770  ;;  %v3743_v39 = vpop.xlane.xlu0 %3742 }
0x1122   : > { %v3785_v34 = vmul.f32 %v3771_v4, %v5433_v31  ;;  %v3751_v51 = vmul.f32 %v3743_v39, %v5433_v31 }
0x1124   : > { %v5134_v48 = vpop.eup %5133  ;;  %v3793_v62 = vadd.f32 1e-05, %v3785_v34  ;;  %v6695_v5 = vsub.f32 %v3725_v15, %v3751_v51 }
0x1125   : > { %v3801_v37 = vmul.f32 %v5134_v48, %v3792_v14  ;;  %vm3807_vm7 = vweird.f32 %v5134_v48 }
0x1126   : > { %5135 = vrsqrt.f32 %v3793_v62  ;;  %v3767_v25 = vmul.f32 %v6695_v5, %v6695_v5  ;;  %vm3808_vm11 = vmor %vm3806_vm8, %vm3807_vm7  ;;  %vm3816_vm13 = vweird.f32 %v3793_v62 }
0x1127   : > { %v3802_v49 = vmul.f32 %v5134_v48, %v3801_v37 }
0x1128   : > { %3782 = vadd.xlane.f32.xlu1 %v3767_v25 }
0x1129   : > { %v3803_v13 = vmul.f32 0.5, %v3802_v49 }
0x112b   : > { %v3804_v3 = vsub.f32 1.5, %v3803_v13 }
0x112c   : > { %v5136_v7 = vpop.eup %5135 }
0x112d   : > { %v3805_v30 = vmul.f32 %v5134_v48, %v3804_v3  ;;  %v3811_v56 = vmul.f32 %v5136_v7, %v3793_v62  ;;  %vm3817_vm12 = vweird.f32 %v5136_v7 }
0x112e   : > { %vm3818_vm14 = vmor %vm3816_vm13, %vm3817_vm12 }
0x112f   : > { %v3809_v8 = vsel %vm3808_vm11, %v5134_v48, %v3805_v30  ;;  %v3812_v9 = vmul.f32 %v5136_v7, %v3811_v56 }
0x1130   : > { %v3880_v11 = vmul.f32 %v3809_v8, %v6656_v27 }
0x1131   : > { %v3813_v16 = vmul.f32 0.5, %v3812_v9 }
0x1132   : > { %v3891_v58 = vmul.f32 %v6702_v21, %v3880_v11 }
0x1133   : > { %v3814_v0 = vsub.f32 1.5, %v3813_v16 }
0x1134   : > { %v6717_v28 = vadd.f32 %v6708_v29, %v3891_v58 }
0x1135   : > { %v3815_v12 = vmul.f32 %v5136_v7, %v3814_v0 }
0x1136   : > { %v3914_v24 = vmul.f32 %v6714_v46, %v6717_v28 }
0x1137   : > { %v3819_v60 = vsel %vm3818_vm14, %v5136_v7, %v3815_v12 }
0x1138   : > { %v3881_v17 = vmul.f32 %v3819_v60, %v6662_v22  ;;  %3922 = vadd.xlane.f32.xlu0 %v3914_v24 }
0x113a   : > { %v3892_v27 = vmul.f32 %v6702_v21, %v3881_v17 }
0x113c   : > { %v6724_v20 = vadd.f32 %v6708_v29, %v3892_v27 }
0x113e   : > { %v3915_v32 = vmul.f32 %v6714_v46, %v6724_v20 }
0x1140   : > { %3924 = vadd.xlane.f32.xlu2 %v3915_v32 }
0x114c   : > { %v3773_v2 = vpop.xlane.xlu0 %3772 }
0x114d   : > { %v3786_v40 = vmul.f32 %v3773_v2, %v5433_v31 }
0x114f   : > { %v3794_v33 = vadd.f32 1e-05, %v3786_v40 }
0x1151   : > { %5137 = vrsqrt.f32 %v3794_v33  ;;  %vm3826_vm0 = vweird.f32 %v3794_v33 }
0x1154   : > { %v3775_v52 = vpop.xlane.xlu2 %3774 }
0x1155   : > { %v3787_v57 = vmul.f32 %v3775_v52, %v5433_v31 }
0x1157   : > { %v5138_v15 = vpop.eup %5137  ;;  %v3795_v22 = vadd.f32 1e-05, %v3787_v57 }
0x1158   : > { %v3821_v26 = vmul.f32 %v5138_v15, %v3794_v33  ;;  %vm3827_vm15 = vweird.f32 %v5138_v15 }
0x1159   : > { %5139 = vrsqrt.f32 %v3795_v22  ;;  %vm3828_vm9 = vmor %vm3826_vm0, %vm3827_vm15  ;;  %vm3836_vm1 = vweird.f32 %v3795_v22 }
0x115a   : > { %v3822_v63 = vmul.f32 %v5138_v15, %v3821_v26 }
0x115c   : > { %v3823_v23 = vmul.f32 0.5, %v3822_v63 }
0x115e   : > { %v3824_v43 = vsub.f32 1.5, %v3823_v23 }
0x115f   : > { %v5140_v36 = vpop.eup %5139 }
0x1160   : > { %v3825_v42 = vmul.f32 %v5138_v15, %v3824_v43  ;;  %v3831_v53 = vmul.f32 %v5140_v36, %v3795_v22  ;;  %vm3837_vm10 = vweird.f32 %v5140_v36 }
0x1161   : > { %vm3838_vm2 = vmor %vm3836_vm1, %vm3837_vm10 }
0x1162   : > { %v3829_v35 = vsel %vm3828_vm9, %v5138_v15, %v3825_v42  ;;  %v3832_v55 = vmul.f32 %v5140_v36, %v3831_v53 }
0x1163   : > { %v3882_v44 = vmul.f32 %v3829_v35, %v6668_v59 }
0x1164   : > { %v3833_v18 = vmul.f32 0.5, %v3832_v55 }
0x1165   : > { %v3893_v10 = vmul.f32 %v6702_v21, %v3882_v44 }
0x1166   : > { %v3834_v19 = vsub.f32 1.5, %v3833_v18  ;;  %v3777_v61 = vpop.xlane.xlu1 %3776 }
0x1167   : > { %v3788_v54 = vmul.f32 %v3777_v61, %v5433_v31  ;;  %v6734_v47 = vadd.f32 %v6708_v29, %v3893_v10 }
0x1168   : > { %v3835_v50 = vmul.f32 %v5140_v36, %v3834_v19 }
0x1169   : > { %v3796_v14 = vadd.f32 1e-05, %v3788_v54  ;;  %v3916_v6 = vmul.f32 %v6714_v46, %v6734_v47 }
0x116a   : > { %v3839_v4 = vsel %vm3838_vm2, %v5140_v36, %v3835_v50 }
0x116b   : > { %v3883_v59 = vmul.f32 %v3839_v4, %v6673_v45  ;;  %5141 = vrsqrt.f32 %v3796_v14  ;;  %3926 = vadd.xlane.f32.xlu1 %v3916_v6  ;;  %vm3846_vm4 = vweird.f32 %v3796_v14 }
0x116d   : > { %v3894_v39 = vmul.f32 %v6702_v21, %v3883_v59 }
0x116e   : > { %v3779_v34 = vpop.xlane.xlu0 %3778 }
0x116f   : > { %v3789_v51 = vmul.f32 %v3779_v34, %v5433_v31  ;;  %v6742_v48 = vadd.f32 %v6708_v29, %v3894_v39 }
0x1171   : > { %v5142_v62 = vpop.eup %5141  ;;  %v3797_v37 = vadd.f32 1e-05, %v3789_v51  ;;  %v3917_v25 = vmul.f32 %v6714_v46, %v6742_v48 }
0x1172   : > { %v3841_v49 = vmul.f32 %v5142_v62, %v3796_v14  ;;  %vm3847_vm3 = vweird.f32 %v5142_v62 }
0x1173   : > { %5143 = vrsqrt.f32 %v3797_v37  ;;  %3928 = vadd.xlane.f32.xlu0 %v3917_v25  ;;  %vm3848_vm5 = vmor %vm3846_vm4, %vm3847_vm3  ;;  %vm3856_vm7 = vweird.f32 %v3797_v37 }
0x1174   : > { %v3842_v13 = vmul.f32 %v5142_v62, %v3841_v49 }
0x1176   : > { %v3843_v45 = vmul.f32 0.5, %v3842_v13 }
0x1178   : > { %v3844_v3 = vsub.f32 1.5, %v3843_v45 }
0x1179   : > { %v5144_v7 = vpop.eup %5143 }
0x117a   : > { %v3845_v30 = vmul.f32 %v5142_v62, %v3844_v3  ;;  %v3851_v56 = vmul.f32 %v5144_v7, %v3797_v37  ;;  %vm3857_vm6 = vweird.f32 %v5144_v7 }
0x117b   : > { %vm3858_vm8 = vmor %vm3856_vm7, %vm3857_vm6 }
0x117c   : > { %v3849_v8 = vsel %vm3848_vm5, %v5142_v62, %v3845_v30  ;;  %v3852_v9 = vmul.f32 %v5144_v7, %v3851_v56 }
0x117d   : > { %v3884_v11 = vmul.f32 %v3849_v8, %v6678_v38 }
0x117e   : > { %v3853_v16 = vmul.f32 0.5, %v3852_v9 }
0x117f   : > { %v3895_v58 = vmul.f32 %v6702_v21, %v3884_v11 }
0x1180   : > { %v3854_v0 = vsub.f32 1.5, %v3853_v16 }
0x1181   : > { %v6749_v12 = vadd.f32 %v6708_v29, %v3895_v58 }
0x1182   : > { %v3855_v24 = vmul.f32 %v5144_v7, %v3854_v0 }
0x1183   : > { %v3918_v60 = vmul.f32 %v6714_v46, %v6749_v12 }
0x1184   : > { %v3859_v17 = vsel %vm3858_vm8, %v5144_v7, %v3855_v24 }
0x1185   : > { %v3885_v27 = vmul.f32 %v3859_v17, %v6683_v1  ;;  %3930 = vadd.xlane.f32.xlu2 %v3918_v60 }
0x1187   : > { %v3896_v38 = vmul.f32 %v6702_v21, %v3885_v27 }
0x1189   : > { %v6756_v32 = vadd.f32 %v6708_v29, %v3896_v38 }
0x118b   : > { %v3919_v2 = vmul.f32 %v6714_v46, %v6756_v32 }
0x118d   : > { %3932 = vadd.xlane.f32.xlu1 %v3919_v2 }
0x1193   : > { %v3781_v40 = vpop.xlane.xlu2 %3780 }
0x1194   : > { %v3790_v33 = vmul.f32 %v3781_v40, %v5433_v31 }
0x1196   : > { %v3798_v52 = vadd.f32 1e-05, %v3790_v33 }
0x1198   : > { %5145 = vrsqrt.f32 %v3798_v52  ;;  %vm3866_vm12 = vweird.f32 %v3798_v52 }
0x119b   : > { %v3783_v57 = vpop.xlane.xlu1 %3782 }
0x119c   : > { %v3791_v15 = vmul.f32 %v3783_v57, %v5433_v31 }
0x119e   : > { %v5146_v22 = vpop.eup %5145  ;;  %v3799_v1 = vadd.f32 1e-05, %v3791_v15 }
0x119f   : > { %v3861_v26 = vmul.f32 %v5146_v22, %v3798_v52  ;;  %vm3867_vm11 = vweird.f32 %v5146_v22 }
0x11a0   : > { %5147 = vrsqrt.f32 %v3799_v1  ;;  %vm3868_vm13 = vmor %vm3866_vm12, %vm3867_vm11  ;;  %vm3876_vm15 = vweird.f32 %v3799_v1 }
0x11a1   : > { %v3862_v63 = vmul.f32 %v5146_v22, %v3861_v26 }
0x11a3   : > { %v3863_v23 = vmul.f32 0.5, %v3862_v63 }
0x11a5   : > { %v3864_v43 = vsub.f32 1.5, %v3863_v23 }
0x11a6   : > { %v5148_v36 = vpop.eup %5147 }
0x11a7   : > { %v3865_v42 = vmul.f32 %v5146_v22, %v3864_v43  ;;  %v3871_v53 = vmul.f32 %v5148_v36, %v3799_v1  ;;  %vm3877_vm14 = vweird.f32 %v5148_v36 }
0x11a8   : > { %vm3878_vm0 = vmor %vm3876_vm15, %vm3877_vm14 }
0x11a9   : > { %v3869_v35 = vsel %vm3868_vm13, %v5146_v22, %v3865_v42  ;;  %v3872_v55 = vmul.f32 %v5148_v36, %v3871_v53 }
0x11aa   : > { %v3886_v44 = vmul.f32 %v3869_v35, %v6689_v41 }
0x11ab   : > { %v3873_v18 = vmul.f32 0.5, %v3872_v55  ;;  %v3923_v59 = vpop.xlane.xlu0 %3922 }
0x11ac   : > { %v3897_v31 = vmul.f32 %v6702_v21, %v3886_v44  ;;  %v4829_v44 = vld [vmem:[%s6861_s18 + $0x38] sm:$0xff] }
0x11ad   : > { %v3874_v10 = vsub.f32 1.5, %v3873_v18  ;;  %4084 = vmatpush.bf16.msrb.mxu0 %v4829_v44 }
0x11ae   : > { %v6765_v19 = vadd.f32 %v6708_v29, %v3897_v31 }
0x11af   : > { %v3875_v61 = vmul.f32 %v5148_v36, %v3874_v10 }
0x11b0   : > { %v3920_v54 = vmul.f32 %v6714_v46, %v6765_v19 }
0x11b1   : > { %v3879_v50 = vsel %vm3878_vm0, %v5148_v36, %v3875_v61 }
0x11b2   : > { %v3887_v14 = vmul.f32 %v3879_v50, %v6695_v5  ;;  %3934 = vadd.xlane.f32.xlu0 %v3920_v54  ;;  %v4828_v54 = vld [vmem:[%s6861_s18 + $0x30] sm:$0xff] }
0x11b3   : > { %v3925_v39 = vpop.xlane.xlu2 %3924  ;;  %4085 = vmatpush.bf16.msrb.mxu0 %v4828_v54 }
0x11b4   : > { %v3898_v41 = vmul.f32 %v6702_v21, %v3887_v14 }
0x11b6   : > { %v6772_v6 = vadd.f32 %v6708_v29, %v3898_v41 }
0x11b8   : > { %v3921_v4 = vmul.f32 %v6714_v46, %v6772_v6 }
0x11ba   : > { %3936 = vadd.xlane.f32.xlu2 %v3921_v4  ;;  %v4827_v4 = vld [vmem:[%s6861_s18 + $0x28] sm:$0xff] }
0x11bb   : > { %4086 = vmatpush.bf16.msrb.mxu0 %v4827_v4 }
0x11de   : > { %v3927_v34 = vpop.xlane.xlu1 %3926 }
0x11e6   : > { %v3929_v51 = vpop.xlane.xlu0 %3928 }
0x11f8   : > { %v3931_v62 = vpop.xlane.xlu2 %3930 }
0x11f9   : > { %v3955_v5 = vmax.f32 %v3923_v59, %v3931_v62 }
0x1200   : > { %v3933_v37 = vpop.xlane.xlu1 %3932 }
0x1201   : > { %v3956_v49 = vmax.f32 %v3925_v39, %v3933_v37 }
0x1203   : > { %v3959_v21 = vmax.f32 %v3955_v5, %v3956_v49  ;;  %v4824_v49 = vld [vmem:[%s6861_s18 + $0x10] sm:$0xff] }
0x1225   : > { %v3935_v25 = vpop.xlane.xlu0 %3934 }
0x1226   : > { %v3957_v45 = vmax.f32 %v3927_v34, %v3935_v25 }
0x122d   : > { %v3937_v13 = vpop.xlane.xlu2 %3936 }
0x122e   : > { %v3958_v3 = vmax.f32 %v3929_v51, %v3937_v13 }
0x1230   : > { %v3960_v7 = vmax.f32 %v3957_v45, %v3958_v3  ;;  %v4822_v45 = vld [vmem:[%s6861_s18] sm:$0xff] }
0x1232   : > { %v3961_v29 = vmax.f32 %v3959_v21, %v3960_v7 }
0x1234   : > { %v3962_v30 = vrot.slane %v3961_v29, 4 }
0x1236   : > { %v3963_v56 = vmax.f32 %v3961_v29, %v3962_v30 }
0x1238   : > { %v3964_v8 = vrot.slane %v3963_v56, 2 }
0x123a   : > { %v3965_v46 = vmax.f32 %v3963_v56, %v3964_v8 }
0x123c   : > { %v3966_v9 = vrot.slane %v3965_v46, 1 }
0x123e   : > { %v3967_v11 = vmax.f32 %v3965_v46, %v3966_v9 }
0x1240   : > { %v3968_v16 = vsub.f32 %v3923_v59, %v3967_v11  ;;  %v3969_v58 = vsub.f32 %v3925_v39, %v3967_v11  ;;  %v3970_v0 = vsub.f32 %v3927_v34, %v3967_v11  ;;  %v3971_v24 = vsub.f32 %v3929_v51, %v3967_v11  ;;  %v4826_v34 = vld [vmem:[%s6861_s18 + $0x20] sm:$0xff] }
0x1241   : > { %v3972_v27 = vsub.f32 %v3931_v62, %v3967_v11  ;;  %v3973_v2 = vsub.f32 %v3933_v37, %v3967_v11  ;;  %v3974_v33 = vsub.f32 %v3935_v25, %v3967_v11  ;;  %v3975_v57 = vsub.f32 %v3937_v13, %v3967_v11  ;;  %4087 = vmatpush.bf16.msrb.mxu0 %v4826_v34  ;;  %v4825_v62 = vld [vmem:[%s6861_s18 + $0x18] sm:$0xff]  ;;  %v4823_v13 = vld [vmem:[%s6861_s18 + $0x8] sm:$0xff] }
0x1242   : > { %v3976_v60 = vmul.f32 1.442695, %v3968_v16  ;;  %v3978_v17 = vmul.f32 1.442695, %v3969_v58  ;;  %v3980_v38 = vmul.f32 1.442695, %v3970_v0 }
0x1243   : > { %v3982_v40 = vmul.f32 1.442695, %v3971_v24  ;;  %v3984_v52 = vmul.f32 1.442695, %v3972_v27  ;;  %v3986_v15 = vmul.f32 1.442695, %v3973_v2 }
0x1244   : > { %5149 = vpow2.f32 %v3976_v60  ;;  %v3988_v26 = vmul.f32 1.442695, %v3974_v33  ;;  %v3990_v43 = vmul.f32 1.442695, %v3975_v57 }
0x1245   : > { %5151 = vpow2.f32 %v3978_v17  ;;  %4088 = vmatpush.bf16.msrb.mxu0 %v4825_v62 }
0x1246   : > { %5153 = vpow2.f32 %v3980_v38 }
0x1247   : > { %5155 = vpow2.f32 %v3982_v40 }
0x1248   : > { %5157 = vpow2.f32 %v3984_v52 }
0x1249   : > { %5159 = vpow2.f32 %v3986_v15  ;;  %4089 = vmatpush.bf16.msrb.mxu0 %v4824_v49 }
0x124a   : > { %v5150_v22 = vpop.eup %5149  ;;  %5161 = vpow2.f32 %v3988_v26 }
0x124b   : > { %v5152_v1 = vpop.eup %5151  ;;  %5163 = vpow2.f32 %v3990_v43 }
0x124c   : > { %v3992_v63 = vadd.f32 %v5152_v1, %v5150_v22  ;;  %v5154_v23 = vpop.eup %5153 }
0x124d   : > { %v5156_v42 = vpop.eup %5155  ;;  %4090 = vmatpush.bf16.msrb.mxu0 %v4823_v13 }
0x124e   : > { %v3993_v36 = vadd.f32 %v5154_v23, %v3992_v63  ;;  %v5158_v35 = vpop.eup %5157 }
0x124f   : > { %v5160_v18 = vpop.eup %5159 }
0x1250   : > { %v3994_v53 = vadd.f32 %v5156_v42, %v3993_v36  ;;  %v5162_v10 = vpop.eup %5161 }
0x1251   : > { %v5164_v50 = vpop.eup %5163  ;;  %4091 = vmatpush.bf16.msrb.mxu0 %v4822_v45 }
0x1252   : > { %v3995_v55 = vadd.f32 %v5158_v35, %v3994_v53 }
0x1254   : > { %v3996_v31 = vadd.f32 %v5160_v18, %v3995_v55 }
0x1256   : > { %v3997_v61 = vadd.f32 %v5162_v10, %v3996_v31 }
0x1258   : > { %v3998_v14 = vadd.f32 %v5164_v50, %v3997_v61 }
0x125a   : > { %v3999_v41 = vrot.slane %v3998_v14, 4 }
0x125c   : > { %v4000_v59 = vadd.f32 %v3999_v41, %v3998_v14 }
0x125e   : > { %v4001_v39 = vrot.slane %v4000_v59, 2 }
0x1260   : > { %v4002_v51 = vadd.f32 %v4001_v39, %v4000_v59 }
0x1262   : > { %v4003_v37 = vrot.slane %v4002_v51, 1 }
0x1264   : > { %v4004_v25 = vadd.f32 %v4003_v37, %v4002_v51 }
0x1266   : > { %5165 = vrcp.f32 %v4004_v25 }
0x126c   : > { %v5166_v5 = vpop.eup %5165 }
0x126d   : > { %v4006_v3 = vmul.f32 %v5166_v5, %v5150_v22  ;;  %v4007_v21 = vmul.f32 %v5166_v5, %v5152_v1  ;;  %v4008_v7 = vmul.f32 %v5166_v5, %v5154_v23  ;;  %v4009_v29 = vmul.f32 %v5166_v5, %v5156_v42 }
0x126e   : > { %v4010_v8 = vmul.f32 %v5166_v5, %v5158_v35  ;;  %v4011_v11 = vmul.f32 %v5166_v5, %v5160_v18  ;;  %v4012_v0 = vmul.f32 %v5166_v5, %v5162_v10  ;;  %v4013_v17 = vmul.f32 %v5166_v5, %v5164_v50 }
0x126f   : > { %v4014_v30 = vmul.f32 %v4006_v3, %v6717_v28  ;;  %v4015_v56 = vmul.f32 %v4007_v21, %v6724_v20  ;;  %v4016_v46 = vmul.f32 %v4008_v7, %v6734_v47  ;;  %v4017_v16 = vmul.f32 %v4009_v29, %v6742_v48 }
0x1270   : > { %v4018_v24 = vmul.f32 %v4010_v8, %v6749_v12  ;;  %v4019_v27 = vmul.f32 %v4011_v11, %v6756_v32  ;;  %v4020_v20 = vmul.f32 %v4012_v0, %v6765_v19  ;;  %v4021_v47 = vmul.f32 %v4013_v17, %v6772_v6  ;;  %v3954_v32 = vld [vmem:[%s6905_s28] sm:$0x1] }
0x1271   : > { %v4022_v9 = vadd.f32 %v4015_v56, %v4014_v30 }
0x1273   : > { %v4023_v58 = vadd.f32 %v4022_v9, %v4016_v46 }
0x1275   : > { %v4024_v60 = vadd.f32 %v4023_v58, %v4017_v16 }
0x1277   : > { %v4025_v28 = vadd.f32 %v4024_v60, %v4018_v24 }
0x1279   : > { %v4026_v38 = vadd.f32 %v4025_v28, %v4019_v27 }
0x127b   : > { %v4027_v2 = vadd.f32 %v4026_v38, %v4020_v20 }
0x127d   : > { %v4028_v40 = vadd.f32 %v4027_v2, %v4021_v47 }
0x127f   : > { %v4029_v33 = vrot.slane %v4028_v40, 4 }
0x1281   : > { %v4030_v48 = vadd.f32 %v4029_v33, %v4028_v40 }
0x1283   : > { %v4031_v52 = vrot.slane %v4030_v48, 2 }
0x1285   : > { %v4032_v57 = vadd.f32 %v4031_v52, %v4030_v48 }
0x1287   : > { %v4033_v15 = vrot.slane %v4032_v57, 1 }
0x1289   : > { %v4034_v12 = vadd.f32 %v4033_v15, %v4032_v57 }
0x128b   : > { %v4035_v22 = vpack.c.bf16 %v4034_v12, %v4034_v12 }
0x128d   : > { %4092 = vmatmul.bf16.vlgmr.msrb.gmra.mxu0 %v4035_v22 }
0x130a   : > { %v4093_v19 = vpop.f32.mrf.mxu0 }
0x130b   : > { %v4094_v6 = vadd.f32 %v4093_v19, %v3954_v32 }
0x130d   : > { %4097 = vst [vmem:[%s621_s23] sm:$0x1] %v4094_v6 }
0x130e   : > { %5194 = shalt.err (!%p5191_p3)
}
0x130f   : > { %4849 = dma.vmem_to_hbm [thread:$0]  (%p5376_p5), %s4110_s24, 16, %s4112_s29, %s4099_s3  }
0x1312   : > { %v4095_v1 = vpop.f32.mrf.mxu0 }
0x1313 PF: > { %s6906_s0 = sld [smem:[#allocation8_spill]] }
0x1314   : > { %s6907_s25 = sld [smem:[#allocation6_spill]] }
0x1319   : > { %p4855_p4 = scmp.ge.s32.totalorder %s6906_s0, 2 }
0x131a   : > { %s4123_s23 = sand.u32 1, %s6907_s25  }
0x131b   : > { %p4852_p7 = pnand %p4855_p4, %p5380_p6  ;;  %s4124_s2 = scalar_lea.sflag [#allocation4], %s4123_s23 }
0x131d   : > { %p4853_p8 = pneg %p4852_p7 }
0x131f   : > { %5212 = dma.done.wait (%p4853_p8), %s4124_s2, 16  }
0x1320   : > { %5214 = vsyncadd (%p4853_p8), %s4124_s2, 4294967280  ;;  %s6909_s24 = sld [smem:[#allocation9_spill]]  ;;  %s6912_s1 = smov %s5221_s22 }
0x1321   : > { %s6910_s5 = sld [smem:[#allocation7_spill]] }
0x1322   : > { %s6911_s23 = sld [smem:[#allocation10_spill]] }
0x1326   : > { %p30_p9 = scmp.ge.s32.totalorder %s6909_s24, 4  }
0x1327   : > { %s6913_s22 = smov %s6910_s5 }
0x1328   :  { %32 = sbr.rel (!%p30_p9) target bundleno = 12 (0xc), region = 148 }
0x132d   :  { %4129 = vsyncpa [#allocation4], 1 }
0x132e   :  { %4131 = vsyncpa [#allocation4 + $0x1], 1 }

</bundles_post_ra>
